<compile_context>
chip_gen: v6e
topology: v6e:2x2x1
jax: 0.10.0
libtpu: 0.0.40
codegen_flags: <defaults>
</compile_context>

<pallas_src>
import functools

import jax
import jax.numpy as jnp
from jax import lax
from jax.experimental import pallas as pl
from jax.experimental.pallas import tpu as pltpu


# ----------------------------------------------------------------------------
# Fused Pallas kernel: one batch element per grid step
# ----------------------------------------------------------------------------
def _fused_forward_kernel(x_ref, w1_ref, b1_ref, w2_ref, b2_ref, wh_ref, bh_ref,
                          o_ref, *, IC1, OC1, KH1, KW1, OH1, OW1,
                          IC2, OC2, KH2, KW2, OH2, OW2):
    # ---- conv1: self.adaptador = nn.Conv2d(1, 3, 2), stride 1, valid ----
    xs = [x_ref[0, ic] for ic in range(IC1)]                     # IC1 x [H, W]
    y1 = []
    for oc in range(OC1):
        acc = jnp.zeros((OH1, OW1), jnp.float32) + b1_ref[oc]
        for ic in range(IC1):
            xi = xs[ic]
            for di in range(KH1):
                for dj in range(KW1):
                    w = w1_ref[((oc * IC1 + ic) * KH1 + di) * KW1 + dj]
                    acc = acc + w * xi[di:di + OH1, dj:dj + OW1]
        y1.append(acc)

    # ---- conv2 + ReLU (base_model stand-in conv) ----
    accs = [jnp.zeros((OH2, OW2), jnp.float32) + b2_ref[oc] for oc in range(OC2)]
    for ic in range(IC2):
        yi = y1[ic]
        for di in range(KH2):
            for dj in range(KW2):
                tile = yi[di:di + OH2, dj:dj + OW2]              # reused across out-channels
                for oc in range(OC2):
                    w = w2_ref[((oc * IC2 + ic) * KH2 + di) * KW2 + dj]
                    accs[oc] = accs[oc] + w * tile

    # ---- GAP + folded head: Linear(8,2) @ Linear(2,1) collapsed to [8]->1 ----
    inv_pool = 1.0 / float(OH2 * OW2)
    result = jnp.zeros((1, 1), jnp.float32) + bh_ref[0]
    for oc in range(OC2):
        a = jnp.maximum(accs[oc], 0.0)                           # ReLU
        pooled = jnp.sum(a, keepdims=True) * inv_pool            # (1, 1)
        result = result + wh_ref[oc] * pooled
    o_ref[0] = result


# ----------------------------------------------------------------------------
# Wrapper: one pallas_call for the whole network
# ----------------------------------------------------------------------------
def convolutional_net_forward(x, params):
    """x: [N, 1, H, W] float32 (NCHW, matching torch). Returns [N, 1]."""
    N, IC1, H, W = x.shape
    w1, b1 = params["adapt_w"], params["adapt_b"]                # [OC,IC,KH,KW], [OC]
    OC1, IC1w, KH1, KW1 = w1.shape
    assert IC1w == IC1
    OH1, OW1 = H - KH1 + 1, W - KW1 + 1

    w2, b2 = params["base_w"], params["base_b"]
    OC2, IC2, KH2, KW2 = w2.shape
    assert IC2 == OC1
    OH2, OW2 = OH1 - KH2 + 1, OW1 - KW2 + 1

    # Fold classifier Linear(8,2) and top Linear(2,1) (both torch [out, in]):
    # (p @ fc1.T + fb) @ top.T + tb  ==  p @ (fc1.T @ top.T) + (fb @ top.T + tb)
    w_head = (params["fc1_w"].T @ params["top_w"].T).reshape(-1).astype(jnp.float32)   # [OC2]
    b_head = (params["fc1_b"] @ params["top_w"].T
              + params["top_b"]).reshape(-1).astype(jnp.float32)                        # [1]

    kernel = functools.partial(
        _fused_forward_kernel,
        IC1=IC1, OC1=OC1, KH1=KH1, KW1=KW1, OH1=OH1, OW1=OW1,
        IC2=IC2, OC2=OC2, KH2=KH2, KW2=KW2, OH2=OH2, OW2=OW2)

    out = pl.pallas_call(
        kernel,
        out_shape=jax.ShapeDtypeStruct((N, 1, 1), jnp.float32),
        grid=(N,),                                               # batch-parallel (uses both TCs on v7x)
        in_specs=[
            pl.BlockSpec((1, IC1, H, W), lambda n: (n, 0, 0, 0)),            # one image per step (VMEM)
            pl.BlockSpec(memory_space=pltpu.MemorySpace.SMEM),               # conv1 weights (flat)
            pl.BlockSpec(memory_space=pltpu.MemorySpace.SMEM),               # conv1 bias
            pl.BlockSpec(memory_space=pltpu.MemorySpace.SMEM),               # conv2 weights (flat)
            pl.BlockSpec(memory_space=pltpu.MemorySpace.SMEM),               # conv2 bias
            pl.BlockSpec(memory_space=pltpu.MemorySpace.SMEM),               # folded head weight [OC2]
            pl.BlockSpec(memory_space=pltpu.MemorySpace.SMEM),               # folded head bias [1]
        ],
        out_specs=pl.BlockSpec((1, 1, 1), lambda n: (n, 0, 0)),
        compiler_params=pltpu.CompilerParams(dimension_semantics=("parallel",)),
    )(x,
      w1.reshape(-1).astype(jnp.float32), b1.astype(jnp.float32),
      w2.reshape(-1).astype(jnp.float32), b2.astype(jnp.float32),
      w_head, b_head)
    return out.reshape(N, 1)


# ----------------------------------------------------------------------------
# Pure-JAX reference (unfused path) for numerical verification
# ----------------------------------------------------------------------------
def _reference_forward(x, params):
    dn = ("NCHW", "OIHW", "NCHW")
    y = lax.conv_general_dilated(x, params["adapt_w"], (1, 1), "VALID",
                                 dimension_numbers=dn)
    y = y + params["adapt_b"].reshape(1, -1, 1, 1)
    y = lax.conv_general_dilated(y, params["base_w"], (1, 1), "VALID",
                                 dimension_numbers=dn)
    y = jnp.maximum(y + params["base_b"].reshape(1, -1, 1, 1), 0.0)
    pooled = y.mean(axis=(2, 3))                                  # [N, 8]
    h = pooled @ params["fc1_w"].T + params["fc1_b"]              # Linear(8, 2)
    return h @ params["top_w"].T + params["top_b"]                # Linear(2, 1)


def init_params(key):
    ks = jax.random.split(key, 8)
    f32 = jnp.float32
    return {
        # nn.Conv2d(1, 3, 2)   -- torch layout [OC, IC, KH, KW]
        "adapt_w": 0.1 * jax.random.normal(ks[0], (3, 1, 2, 2), f32),
        "adapt_b": 0.1 * jax.random.normal(ks[1], (3,), f32),
        # base_model conv stand-in: Conv2d(3, 8, 3)
        "base_w": 0.1 * jax.random.normal(ks[2], (8, 3, 3, 3), f32),
        "base_b": 0.1 * jax.random.normal(ks[3], (8,), f32),
        # base_model classifier: Linear(8, 2)   -- torch layout [out, in]
        "fc1_w": 0.1 * jax.random.normal(ks[4], (2, 8), f32),
        "fc1_b": 0.1 * jax.random.normal(ks[5], (2,), f32),
        # self.top: Linear(2, 1)                -- torch layout [out, in]
        "top_w": 0.1 * jax.random.normal(ks[6], (1, 2), f32),
        "top_b": 0.1 * jax.random.normal(ks[7], (1,), f32),
    }


if __name__ == "__main__":
    key = jax.random.PRNGKey(0)
    pkey, xkey = jax.random.split(key)
    params = init_params(pkey)
    x = jax.random.normal(xkey, (2, 1, 16, 16), jnp.float32)      # NCHW, 1 channel

    out = jax.jit(convolutional_net_forward)(x, params)
    out = jax.block_until_ready(out)
    assert out.shape == (2, 1) and out.dtype == jnp.float32

    ref = _reference_forward(x, params)
    assert jnp.allclose(out, ref, atol=1e-4, rtol=1e-4), (out, ref)
    print("KERNEL_OK")
</pallas_src>

<mosaic_0001>
module attributes {stable_mosaic.version = 11 : i64} {
  func.func @_fused_forward_kernel(%arg0: i32, %arg1: memref<1x1x16x16xf32, #tpu.memory_space<vmem>>, %arg2: memref<12xf32, #tpu.memory_space<smem>>, %arg3: memref<3xf32, #tpu.memory_space<smem>>, %arg4: memref<216xf32, #tpu.memory_space<smem>>, %arg5: memref<8xf32, #tpu.memory_space<smem>>, %arg6: memref<8xf32, #tpu.memory_space<smem>>, %arg7: memref<1xf32, #tpu.memory_space<smem>>, %arg8: memref<1x1x1xf32, #tpu.memory_space<vmem>>) attributes {dimension_semantics = [#tpu.dimension_semantics<parallel>], iteration_bounds = array<i64: 2>, scalar_prefetch = 0 : i64, scratch_operands = 0 : i64, tpu.core_type = #tpu.core_type<tc>, window_params = [{transform_indices = @transform_0, window_bounds = array<i64: 1, 1, 16, 16>}, {transform_indices = @transform_1, window_bounds = array<i64: 12>}, {transform_indices = @transform_2, window_bounds = array<i64: 3>}, {transform_indices = @transform_3, window_bounds = array<i64: 216>}, {transform_indices = @transform_4, window_bounds = array<i64: 8>}, {transform_indices = @transform_5, window_bounds = array<i64: 8>}, {transform_indices = @transform_6, window_bounds = array<i64: 1>}, {transform_indices = @transform_7, window_bounds = array<i64: 1, 1, 1>}]} {
    %c0 = arith.constant 0 : index
    %c0_0 = arith.constant 0 : index
    %c0_1 = arith.constant 0 : index
    %c0_2 = arith.constant 0 : index
    %0 = vector.load %arg1[%c0, %c0_0, %c0_1, %c0_2] : memref<1x1x16x16xf32, #tpu.memory_space<vmem>>, vector<1x1x16x16xf32>
    %1 = vector.shape_cast %0 : vector<1x1x16x16xf32> to vector<16x16xf32>
    %cst = arith.constant 0.000000e+00 : f32
    %2 = vector.broadcast %cst : f32 to vector<15x15xf32>
    %c0_3 = arith.constant 0 : index
    %3 = memref.load %arg3[%c0_3] : memref<3xf32, #tpu.memory_space<smem>>
    %4 = vector.broadcast %3 : f32 to vector<15x15xf32>
    %5 = arith.addf %2, %4 : vector<15x15xf32>
    %c0_4 = arith.constant 0 : index
    %6 = memref.load %arg2[%c0_4] : memref<12xf32, #tpu.memory_space<smem>>
    %7 = vector.extract_strided_slice %1 {offsets = [0, 0], sizes = [15, 15], strides = [1, 1]} : vector<16x16xf32> to vector<15x15xf32>
    %8 = vector.broadcast %6 : f32 to vector<15x15xf32>
    %9 = arith.mulf %8, %7 : vector<15x15xf32>
    %10 = arith.addf %5, %9 : vector<15x15xf32>
    %c1 = arith.constant 1 : index
    %11 = memref.load %arg2[%c1] : memref<12xf32, #tpu.memory_space<smem>>
    %12 = vector.extract_strided_slice %1 {offsets = [0, 1], sizes = [15, 15], strides = [1, 1]} : vector<16x16xf32> to vector<15x15xf32>
    %13 = vector.broadcast %11 : f32 to vector<15x15xf32>
    %14 = arith.mulf %13, %12 : vector<15x15xf32>
    %15 = arith.addf %10, %14 : vector<15x15xf32>
    %c2 = arith.constant 2 : index
    %16 = memref.load %arg2[%c2] : memref<12xf32, #tpu.memory_space<smem>>
    %17 = vector.extract_strided_slice %1 {offsets = [1, 0], sizes = [15, 15], strides = [1, 1]} : vector<16x16xf32> to vector<15x15xf32>
    %18 = vector.broadcast %16 : f32 to vector<15x15xf32>
    %19 = arith.mulf %18, %17 : vector<15x15xf32>
    %20 = arith.addf %15, %19 : vector<15x15xf32>
    %c3 = arith.constant 3 : index
    %21 = memref.load %arg2[%c3] : memref<12xf32, #tpu.memory_space<smem>>
    %22 = vector.extract_strided_slice %1 {offsets = [1, 1], sizes = [15, 15], strides = [1, 1]} : vector<16x16xf32> to vector<15x15xf32>
    %23 = vector.broadcast %21 : f32 to vector<15x15xf32>
    %24 = arith.mulf %23, %22 : vector<15x15xf32>
    %25 = arith.addf %20, %24 : vector<15x15xf32>
    %cst_5 = arith.constant 0.000000e+00 : f32
    %26 = vector.broadcast %cst_5 : f32 to vector<15x15xf32>
    %c1_6 = arith.constant 1 : index
    %27 = memref.load %arg3[%c1_6] : memref<3xf32, #tpu.memory_space<smem>>
    %28 = vector.broadcast %27 : f32 to vector<15x15xf32>
    %29 = arith.addf %26, %28 : vector<15x15xf32>
    %c4 = arith.constant 4 : index
    %30 = memref.load %arg2[%c4] : memref<12xf32, #tpu.memory_space<smem>>
    %31 = vector.extract_strided_slice %1 {offsets = [0, 0], sizes = [15, 15], strides = [1, 1]} : vector<16x16xf32> to vector<15x15xf32>
    %32 = vector.broadcast %30 : f32 to vector<15x15xf32>
    %33 = arith.mulf %32, %31 : vector<15x15xf32>
    %34 = arith.addf %29, %33 : vector<15x15xf32>
    %c5 = arith.constant 5 : index
    %35 = memref.load %arg2[%c5] : memref<12xf32, #tpu.memory_space<smem>>
    %36 = vector.extract_strided_slice %1 {offsets = [0, 1], sizes = [15, 15], strides = [1, 1]} : vector<16x16xf32> to vector<15x15xf32>
    %37 = vector.broadcast %35 : f32 to vector<15x15xf32>
    %38 = arith.mulf %37, %36 : vector<15x15xf32>
    %39 = arith.addf %34, %38 : vector<15x15xf32>
    %c6 = arith.constant 6 : index
    %40 = memref.load %arg2[%c6] : memref<12xf32, #tpu.memory_space<smem>>
    %41 = vector.extract_strided_slice %1 {offsets = [1, 0], sizes = [15, 15], strides = [1, 1]} : vector<16x16xf32> to vector<15x15xf32>
    %42 = vector.broadcast %40 : f32 to vector<15x15xf32>
    %43 = arith.mulf %42, %41 : vector<15x15xf32>
    %44 = arith.addf %39, %43 : vector<15x15xf32>
    %c7 = arith.constant 7 : index
    %45 = memref.load %arg2[%c7] : memref<12xf32, #tpu.memory_space<smem>>
    %46 = vector.extract_strided_slice %1 {offsets = [1, 1], sizes = [15, 15], strides = [1, 1]} : vector<16x16xf32> to vector<15x15xf32>
    %47 = vector.broadcast %45 : f32 to vector<15x15xf32>
    %48 = arith.mulf %47, %46 : vector<15x15xf32>
    %49 = arith.addf %44, %48 : vector<15x15xf32>
    %cst_7 = arith.constant 0.000000e+00 : f32
    %50 = vector.broadcast %cst_7 : f32 to vector<15x15xf32>
    %c2_8 = arith.constant 2 : index
    %51 = memref.load %arg3[%c2_8] : memref<3xf32, #tpu.memory_space<smem>>
    %52 = vector.broadcast %51 : f32 to vector<15x15xf32>
    %53 = arith.addf %50, %52 : vector<15x15xf32>
    %c8 = arith.constant 8 : index
    %54 = memref.load %arg2[%c8] : memref<12xf32, #tpu.memory_space<smem>>
    %55 = vector.extract_strided_slice %1 {offsets = [0, 0], sizes = [15, 15], strides = [1, 1]} : vector<16x16xf32> to vector<15x15xf32>
    %56 = vector.broadcast %54 : f32 to vector<15x15xf32>
    %57 = arith.mulf %56, %55 : vector<15x15xf32>
    %58 = arith.addf %53, %57 : vector<15x15xf32>
    %c9 = arith.constant 9 : index
    %59 = memref.load %arg2[%c9] : memref<12xf32, #tpu.memory_space<smem>>
    %60 = vector.extract_strided_slice %1 {offsets = [0, 1], sizes = [15, 15], strides = [1, 1]} : vector<16x16xf32> to vector<15x15xf32>
    %61 = vector.broadcast %59 : f32 to vector<15x15xf32>
    %62 = arith.mulf %61, %60 : vector<15x15xf32>
    %63 = arith.addf %58, %62 : vector<15x15xf32>
    %c10 = arith.constant 10 : index
    %64 = memref.load %arg2[%c10] : memref<12xf32, #tpu.memory_space<smem>>
    %65 = vector.extract_strided_slice %1 {offsets = [1, 0], sizes = [15, 15], strides = [1, 1]} : vector<16x16xf32> to vector<15x15xf32>
    %66 = vector.broadcast %64 : f32 to vector<15x15xf32>
    %67 = arith.mulf %66, %65 : vector<15x15xf32>
    %68 = arith.addf %63, %67 : vector<15x15xf32>
    %c11 = arith.constant 11 : index
    %69 = memref.load %arg2[%c11] : memref<12xf32, #tpu.memory_space<smem>>
    %70 = vector.extract_strided_slice %1 {offsets = [1, 1], sizes = [15, 15], strides = [1, 1]} : vector<16x16xf32> to vector<15x15xf32>
    %71 = vector.broadcast %69 : f32 to vector<15x15xf32>
    %72 = arith.mulf %71, %70 : vector<15x15xf32>
    %73 = arith.addf %68, %72 : vector<15x15xf32>
    %cst_9 = arith.constant 0.000000e+00 : f32
    %74 = vector.broadcast %cst_9 : f32 to vector<13x13xf32>
    %c0_10 = arith.constant 0 : index
    %75 = memref.load %arg5[%c0_10] : memref<8xf32, #tpu.memory_space<smem>>
    %76 = vector.broadcast %75 : f32 to vector<13x13xf32>
    %77 = arith.addf %74, %76 : vector<13x13xf32>
    %cst_11 = arith.constant 0.000000e+00 : f32
    %78 = vector.broadcast %cst_11 : f32 to vector<13x13xf32>
    %c1_12 = arith.constant 1 : index
    %79 = memref.load %arg5[%c1_12] : memref<8xf32, #tpu.memory_space<smem>>
    %80 = vector.broadcast %79 : f32 to vector<13x13xf32>
    %81 = arith.addf %78, %80 : vector<13x13xf32>
    %cst_13 = arith.constant 0.000000e+00 : f32
    %82 = vector.broadcast %cst_13 : f32 to vector<13x13xf32>
    %c2_14 = arith.constant 2 : index
    %83 = memref.load %arg5[%c2_14] : memref<8xf32, #tpu.memory_space<smem>>
    %84 = vector.broadcast %83 : f32 to vector<13x13xf32>
    %85 = arith.addf %82, %84 : vector<13x13xf32>
    %cst_15 = arith.constant 0.000000e+00 : f32
    %86 = vector.broadcast %cst_15 : f32 to vector<13x13xf32>
    %c3_16 = arith.constant 3 : index
    %87 = memref.load %arg5[%c3_16] : memref<8xf32, #tpu.memory_space<smem>>
    %88 = vector.broadcast %87 : f32 to vector<13x13xf32>
    %89 = arith.addf %86, %88 : vector<13x13xf32>
    %cst_17 = arith.constant 0.000000e+00 : f32
    %90 = vector.broadcast %cst_17 : f32 to vector<13x13xf32>
    %c4_18 = arith.constant 4 : index
    %91 = memref.load %arg5[%c4_18] : memref<8xf32, #tpu.memory_space<smem>>
    %92 = vector.broadcast %91 : f32 to vector<13x13xf32>
    %93 = arith.addf %90, %92 : vector<13x13xf32>
    %cst_19 = arith.constant 0.000000e+00 : f32
    %94 = vector.broadcast %cst_19 : f32 to vector<13x13xf32>
    %c5_20 = arith.constant 5 : index
    %95 = memref.load %arg5[%c5_20] : memref<8xf32, #tpu.memory_space<smem>>
    %96 = vector.broadcast %95 : f32 to vector<13x13xf32>
    %97 = arith.addf %94, %96 : vector<13x13xf32>
    %cst_21 = arith.constant 0.000000e+00 : f32
    %98 = vector.broadcast %cst_21 : f32 to vector<13x13xf32>
    %c6_22 = arith.constant 6 : index
    %99 = memref.load %arg5[%c6_22] : memref<8xf32, #tpu.memory_space<smem>>
    %100 = vector.broadcast %99 : f32 to vector<13x13xf32>
    %101 = arith.addf %98, %100 : vector<13x13xf32>
    %cst_23 = arith.constant 0.000000e+00 : f32
    %102 = vector.broadcast %cst_23 : f32 to vector<13x13xf32>
    %c7_24 = arith.constant 7 : index
    %103 = memref.load %arg5[%c7_24] : memref<8xf32, #tpu.memory_space<smem>>
    %104 = vector.broadcast %103 : f32 to vector<13x13xf32>
    %105 = arith.addf %102, %104 : vector<13x13xf32>
    %106 = vector.extract_strided_slice %25 {offsets = [0, 0], sizes = [13, 13], strides = [1, 1]} : vector<15x15xf32> to vector<13x13xf32>
    %c0_25 = arith.constant 0 : index
    %107 = memref.load %arg4[%c0_25] : memref<216xf32, #tpu.memory_space<smem>>
    %108 = vector.broadcast %107 : f32 to vector<13x13xf32>
    %109 = arith.mulf %108, %106 : vector<13x13xf32>
    %110 = arith.addf %77, %109 : vector<13x13xf32>
    %c27 = arith.constant 27 : index
    %111 = memref.load %arg4[%c27] : memref<216xf32, #tpu.memory_space<smem>>
    %112 = vector.broadcast %111 : f32 to vector<13x13xf32>
    %113 = arith.mulf %112, %106 : vector<13x13xf32>
    %114 = arith.addf %81, %113 : vector<13x13xf32>
    %c54 = arith.constant 54 : index
    %115 = memref.load %arg4[%c54] : memref<216xf32, #tpu.memory_space<smem>>
    %116 = vector.broadcast %115 : f32 to vector<13x13xf32>
    %117 = arith.mulf %116, %106 : vector<13x13xf32>
    %118 = arith.addf %85, %117 : vector<13x13xf32>
    %c81 = arith.constant 81 : index
    %119 = memref.load %arg4[%c81] : memref<216xf32, #tpu.memory_space<smem>>
    %120 = vector.broadcast %119 : f32 to vector<13x13xf32>
    %121 = arith.mulf %120, %106 : vector<13x13xf32>
    %122 = arith.addf %89, %121 : vector<13x13xf32>
    %c108 = arith.constant 108 : index
    %123 = memref.load %arg4[%c108] : memref<216xf32, #tpu.memory_space<smem>>
    %124 = vector.broadcast %123 : f32 to vector<13x13xf32>
    %125 = arith.mulf %124, %106 : vector<13x13xf32>
    %126 = arith.addf %93, %125 : vector<13x13xf32>
    %c135 = arith.constant 135 : index
    %127 = memref.load %arg4[%c135] : memref<216xf32, #tpu.memory_space<smem>>
    %128 = vector.broadcast %127 : f32 to vector<13x13xf32>
    %129 = arith.mulf %128, %106 : vector<13x13xf32>
    %130 = arith.addf %97, %129 : vector<13x13xf32>
    %c162 = arith.constant 162 : index
    %131 = memref.load %arg4[%c162] : memref<216xf32, #tpu.memory_space<smem>>
    %132 = vector.broadcast %131 : f32 to vector<13x13xf32>
    %133 = arith.mulf %132, %106 : vector<13x13xf32>
    %134 = arith.addf %101, %133 : vector<13x13xf32>
    %c189 = arith.constant 189 : index
    %135 = memref.load %arg4[%c189] : memref<216xf32, #tpu.memory_space<smem>>
    %136 = vector.broadcast %135 : f32 to vector<13x13xf32>
    %137 = arith.mulf %136, %106 : vector<13x13xf32>
    %138 = arith.addf %105, %137 : vector<13x13xf32>
    %139 = vector.extract_strided_slice %25 {offsets = [0, 1], sizes = [13, 13], strides = [1, 1]} : vector<15x15xf32> to vector<13x13xf32>
    %c1_26 = arith.constant 1 : index
    %140 = memref.load %arg4[%c1_26] : memref<216xf32, #tpu.memory_space<smem>>
    %141 = vector.broadcast %140 : f32 to vector<13x13xf32>
    %142 = arith.mulf %141, %139 : vector<13x13xf32>
    %143 = arith.addf %110, %142 : vector<13x13xf32>
    %c28 = arith.constant 28 : index
    %144 = memref.load %arg4[%c28] : memref<216xf32, #tpu.memory_space<smem>>
    %145 = vector.broadcast %144 : f32 to vector<13x13xf32>
    %146 = arith.mulf %145, %139 : vector<13x13xf32>
    %147 = arith.addf %114, %146 : vector<13x13xf32>
    %c55 = arith.constant 55 : index
    %148 = memref.load %arg4[%c55] : memref<216xf32, #tpu.memory_space<smem>>
    %149 = vector.broadcast %148 : f32 to vector<13x13xf32>
    %150 = arith.mulf %149, %139 : vector<13x13xf32>
    %151 = arith.addf %118, %150 : vector<13x13xf32>
    %c82 = arith.constant 82 : index
    %152 = memref.load %arg4[%c82] : memref<216xf32, #tpu.memory_space<smem>>
    %153 = vector.broadcast %152 : f32 to vector<13x13xf32>
    %154 = arith.mulf %153, %139 : vector<13x13xf32>
    %155 = arith.addf %122, %154 : vector<13x13xf32>
    %c109 = arith.constant 109 : index
    %156 = memref.load %arg4[%c109] : memref<216xf32, #tpu.memory_space<smem>>
    %157 = vector.broadcast %156 : f32 to vector<13x13xf32>
    %158 = arith.mulf %157, %139 : vector<13x13xf32>
    %159 = arith.addf %126, %158 : vector<13x13xf32>
    %c136 = arith.constant 136 : index
    %160 = memref.load %arg4[%c136] : memref<216xf32, #tpu.memory_space<smem>>
    %161 = vector.broadcast %160 : f32 to vector<13x13xf32>
    %162 = arith.mulf %161, %139 : vector<13x13xf32>
    %163 = arith.addf %130, %162 : vector<13x13xf32>
    %c163 = arith.constant 163 : index
    %164 = memref.load %arg4[%c163] : memref<216xf32, #tpu.memory_space<smem>>
    %165 = vector.broadcast %164 : f32 to vector<13x13xf32>
    %166 = arith.mulf %165, %139 : vector<13x13xf32>
    %167 = arith.addf %134, %166 : vector<13x13xf32>
    %c190 = arith.constant 190 : index
    %168 = memref.load %arg4[%c190] : memref<216xf32, #tpu.memory_space<smem>>
    %169 = vector.broadcast %168 : f32 to vector<13x13xf32>
    %170 = arith.mulf %169, %139 : vector<13x13xf32>
    %171 = arith.addf %138, %170 : vector<13x13xf32>
    %172 = vector.extract_strided_slice %25 {offsets = [0, 2], sizes = [13, 13], strides = [1, 1]} : vector<15x15xf32> to vector<13x13xf32>
    %c2_27 = arith.constant 2 : index
    %173 = memref.load %arg4[%c2_27] : memref<216xf32, #tpu.memory_space<smem>>
    %174 = vector.broadcast %173 : f32 to vector<13x13xf32>
    %175 = arith.mulf %174, %172 : vector<13x13xf32>
    %176 = arith.addf %143, %175 : vector<13x13xf32>
    %c29 = arith.constant 29 : index
    %177 = memref.load %arg4[%c29] : memref<216xf32, #tpu.memory_space<smem>>
    %178 = vector.broadcast %177 : f32 to vector<13x13xf32>
    %179 = arith.mulf %178, %172 : vector<13x13xf32>
    %180 = arith.addf %147, %179 : vector<13x13xf32>
    %c56 = arith.constant 56 : index
    %181 = memref.load %arg4[%c56] : memref<216xf32, #tpu.memory_space<smem>>
    %182 = vector.broadcast %181 : f32 to vector<13x13xf32>
    %183 = arith.mulf %182, %172 : vector<13x13xf32>
    %184 = arith.addf %151, %183 : vector<13x13xf32>
    %c83 = arith.constant 83 : index
    %185 = memref.load %arg4[%c83] : memref<216xf32, #tpu.memory_space<smem>>
    %186 = vector.broadcast %185 : f32 to vector<13x13xf32>
    %187 = arith.mulf %186, %172 : vector<13x13xf32>
    %188 = arith.addf %155, %187 : vector<13x13xf32>
    %c110 = arith.constant 110 : index
    %189 = memref.load %arg4[%c110] : memref<216xf32, #tpu.memory_space<smem>>
    %190 = vector.broadcast %189 : f32 to vector<13x13xf32>
    %191 = arith.mulf %190, %172 : vector<13x13xf32>
    %192 = arith.addf %159, %191 : vector<13x13xf32>
    %c137 = arith.constant 137 : index
    %193 = memref.load %arg4[%c137] : memref<216xf32, #tpu.memory_space<smem>>
    %194 = vector.broadcast %193 : f32 to vector<13x13xf32>
    %195 = arith.mulf %194, %172 : vector<13x13xf32>
    %196 = arith.addf %163, %195 : vector<13x13xf32>
    %c164 = arith.constant 164 : index
    %197 = memref.load %arg4[%c164] : memref<216xf32, #tpu.memory_space<smem>>
    %198 = vector.broadcast %197 : f32 to vector<13x13xf32>
    %199 = arith.mulf %198, %172 : vector<13x13xf32>
    %200 = arith.addf %167, %199 : vector<13x13xf32>
    %c191 = arith.constant 191 : index
    %201 = memref.load %arg4[%c191] : memref<216xf32, #tpu.memory_space<smem>>
    %202 = vector.broadcast %201 : f32 to vector<13x13xf32>
    %203 = arith.mulf %202, %172 : vector<13x13xf32>
    %204 = arith.addf %171, %203 : vector<13x13xf32>
    %205 = vector.extract_strided_slice %25 {offsets = [1, 0], sizes = [13, 13], strides = [1, 1]} : vector<15x15xf32> to vector<13x13xf32>
    %c3_28 = arith.constant 3 : index
    %206 = memref.load %arg4[%c3_28] : memref<216xf32, #tpu.memory_space<smem>>
    %207 = vector.broadcast %206 : f32 to vector<13x13xf32>
    %208 = arith.mulf %207, %205 : vector<13x13xf32>
    %209 = arith.addf %176, %208 : vector<13x13xf32>
    %c30 = arith.constant 30 : index
    %210 = memref.load %arg4[%c30] : memref<216xf32, #tpu.memory_space<smem>>
    %211 = vector.broadcast %210 : f32 to vector<13x13xf32>
    %212 = arith.mulf %211, %205 : vector<13x13xf32>
    %213 = arith.addf %180, %212 : vector<13x13xf32>
    %c57 = arith.constant 57 : index
    %214 = memref.load %arg4[%c57] : memref<216xf32, #tpu.memory_space<smem>>
    %215 = vector.broadcast %214 : f32 to vector<13x13xf32>
    %216 = arith.mulf %215, %205 : vector<13x13xf32>
    %217 = arith.addf %184, %216 : vector<13x13xf32>
    %c84 = arith.constant 84 : index
    %218 = memref.load %arg4[%c84] : memref<216xf32, #tpu.memory_space<smem>>
    %219 = vector.broadcast %218 : f32 to vector<13x13xf32>
    %220 = arith.mulf %219, %205 : vector<13x13xf32>
    %221 = arith.addf %188, %220 : vector<13x13xf32>
    %c111 = arith.constant 111 : index
    %222 = memref.load %arg4[%c111] : memref<216xf32, #tpu.memory_space<smem>>
    %223 = vector.broadcast %222 : f32 to vector<13x13xf32>
    %224 = arith.mulf %223, %205 : vector<13x13xf32>
    %225 = arith.addf %192, %224 : vector<13x13xf32>
    %c138 = arith.constant 138 : index
    %226 = memref.load %arg4[%c138] : memref<216xf32, #tpu.memory_space<smem>>
    %227 = vector.broadcast %226 : f32 to vector<13x13xf32>
    %228 = arith.mulf %227, %205 : vector<13x13xf32>
    %229 = arith.addf %196, %228 : vector<13x13xf32>
    %c165 = arith.constant 165 : index
    %230 = memref.load %arg4[%c165] : memref<216xf32, #tpu.memory_space<smem>>
    %231 = vector.broadcast %230 : f32 to vector<13x13xf32>
    %232 = arith.mulf %231, %205 : vector<13x13xf32>
    %233 = arith.addf %200, %232 : vector<13x13xf32>
    %c192 = arith.constant 192 : index
    %234 = memref.load %arg4[%c192] : memref<216xf32, #tpu.memory_space<smem>>
    %235 = vector.broadcast %234 : f32 to vector<13x13xf32>
    %236 = arith.mulf %235, %205 : vector<13x13xf32>
    %237 = arith.addf %204, %236 : vector<13x13xf32>
    %238 = vector.extract_strided_slice %25 {offsets = [1, 1], sizes = [13, 13], strides = [1, 1]} : vector<15x15xf32> to vector<13x13xf32>
    %c4_29 = arith.constant 4 : index
    %239 = memref.load %arg4[%c4_29] : memref<216xf32, #tpu.memory_space<smem>>
    %240 = vector.broadcast %239 : f32 to vector<13x13xf32>
    %241 = arith.mulf %240, %238 : vector<13x13xf32>
    %242 = arith.addf %209, %241 : vector<13x13xf32>
    %c31 = arith.constant 31 : index
    %243 = memref.load %arg4[%c31] : memref<216xf32, #tpu.memory_space<smem>>
    %244 = vector.broadcast %243 : f32 to vector<13x13xf32>
    %245 = arith.mulf %244, %238 : vector<13x13xf32>
    %246 = arith.addf %213, %245 : vector<13x13xf32>
    %c58 = arith.constant 58 : index
    %247 = memref.load %arg4[%c58] : memref<216xf32, #tpu.memory_space<smem>>
    %248 = vector.broadcast %247 : f32 to vector<13x13xf32>
    %249 = arith.mulf %248, %238 : vector<13x13xf32>
    %250 = arith.addf %217, %249 : vector<13x13xf32>
    %c85 = arith.constant 85 : index
    %251 = memref.load %arg4[%c85] : memref<216xf32, #tpu.memory_space<smem>>
    %252 = vector.broadcast %251 : f32 to vector<13x13xf32>
    %253 = arith.mulf %252, %238 : vector<13x13xf32>
    %254 = arith.addf %221, %253 : vector<13x13xf32>
    %c112 = arith.constant 112 : index
    %255 = memref.load %arg4[%c112] : memref<216xf32, #tpu.memory_space<smem>>
    %256 = vector.broadcast %255 : f32 to vector<13x13xf32>
    %257 = arith.mulf %256, %238 : vector<13x13xf32>
    %258 = arith.addf %225, %257 : vector<13x13xf32>
    %c139 = arith.constant 139 : index
    %259 = memref.load %arg4[%c139] : memref<216xf32, #tpu.memory_space<smem>>
    %260 = vector.broadcast %259 : f32 to vector<13x13xf32>
    %261 = arith.mulf %260, %238 : vector<13x13xf32>
    %262 = arith.addf %229, %261 : vector<13x13xf32>
    %c166 = arith.constant 166 : index
    %263 = memref.load %arg4[%c166] : memref<216xf32, #tpu.memory_space<smem>>
    %264 = vector.broadcast %263 : f32 to vector<13x13xf32>
    %265 = arith.mulf %264, %238 : vector<13x13xf32>
    %266 = arith.addf %233, %265 : vector<13x13xf32>
    %c193 = arith.constant 193 : index
    %267 = memref.load %arg4[%c193] : memref<216xf32, #tpu.memory_space<smem>>
    %268 = vector.broadcast %267 : f32 to vector<13x13xf32>
    %269 = arith.mulf %268, %238 : vector<13x13xf32>
    %270 = arith.addf %237, %269 : vector<13x13xf32>
    %271 = vector.extract_strided_slice %25 {offsets = [1, 2], sizes = [13, 13], strides = [1, 1]} : vector<15x15xf32> to vector<13x13xf32>
    %c5_30 = arith.constant 5 : index
    %272 = memref.load %arg4[%c5_30] : memref<216xf32, #tpu.memory_space<smem>>
    %273 = vector.broadcast %272 : f32 to vector<13x13xf32>
    %274 = arith.mulf %273, %271 : vector<13x13xf32>
    %275 = arith.addf %242, %274 : vector<13x13xf32>
    %c32 = arith.constant 32 : index
    %276 = memref.load %arg4[%c32] : memref<216xf32, #tpu.memory_space<smem>>
    %277 = vector.broadcast %276 : f32 to vector<13x13xf32>
    %278 = arith.mulf %277, %271 : vector<13x13xf32>
    %279 = arith.addf %246, %278 : vector<13x13xf32>
    %c59 = arith.constant 59 : index
    %280 = memref.load %arg4[%c59] : memref<216xf32, #tpu.memory_space<smem>>
    %281 = vector.broadcast %280 : f32 to vector<13x13xf32>
    %282 = arith.mulf %281, %271 : vector<13x13xf32>
    %283 = arith.addf %250, %282 : vector<13x13xf32>
    %c86 = arith.constant 86 : index
    %284 = memref.load %arg4[%c86] : memref<216xf32, #tpu.memory_space<smem>>
    %285 = vector.broadcast %284 : f32 to vector<13x13xf32>
    %286 = arith.mulf %285, %271 : vector<13x13xf32>
    %287 = arith.addf %254, %286 : vector<13x13xf32>
    %c113 = arith.constant 113 : index
    %288 = memref.load %arg4[%c113] : memref<216xf32, #tpu.memory_space<smem>>
    %289 = vector.broadcast %288 : f32 to vector<13x13xf32>
    %290 = arith.mulf %289, %271 : vector<13x13xf32>
    %291 = arith.addf %258, %290 : vector<13x13xf32>
    %c140 = arith.constant 140 : index
    %292 = memref.load %arg4[%c140] : memref<216xf32, #tpu.memory_space<smem>>
    %293 = vector.broadcast %292 : f32 to vector<13x13xf32>
    %294 = arith.mulf %293, %271 : vector<13x13xf32>
    %295 = arith.addf %262, %294 : vector<13x13xf32>
    %c167 = arith.constant 167 : index
    %296 = memref.load %arg4[%c167] : memref<216xf32, #tpu.memory_space<smem>>
    %297 = vector.broadcast %296 : f32 to vector<13x13xf32>
    %298 = arith.mulf %297, %271 : vector<13x13xf32>
    %299 = arith.addf %266, %298 : vector<13x13xf32>
    %c194 = arith.constant 194 : index
    %300 = memref.load %arg4[%c194] : memref<216xf32, #tpu.memory_space<smem>>
    %301 = vector.broadcast %300 : f32 to vector<13x13xf32>
    %302 = arith.mulf %301, %271 : vector<13x13xf32>
    %303 = arith.addf %270, %302 : vector<13x13xf32>
    %304 = vector.extract_strided_slice %25 {offsets = [2, 0], sizes = [13, 13], strides = [1, 1]} : vector<15x15xf32> to vector<13x13xf32>
    %c6_31 = arith.constant 6 : index
    %305 = memref.load %arg4[%c6_31] : memref<216xf32, #tpu.memory_space<smem>>
    %306 = vector.broadcast %305 : f32 to vector<13x13xf32>
    %307 = arith.mulf %306, %304 : vector<13x13xf32>
    %308 = arith.addf %275, %307 : vector<13x13xf32>
    %c33 = arith.constant 33 : index
    %309 = memref.load %arg4[%c33] : memref<216xf32, #tpu.memory_space<smem>>
    %310 = vector.broadcast %309 : f32 to vector<13x13xf32>
    %311 = arith.mulf %310, %304 : vector<13x13xf32>
    %312 = arith.addf %279, %311 : vector<13x13xf32>
    %c60 = arith.constant 60 : index
    %313 = memref.load %arg4[%c60] : memref<216xf32, #tpu.memory_space<smem>>
    %314 = vector.broadcast %313 : f32 to vector<13x13xf32>
    %315 = arith.mulf %314, %304 : vector<13x13xf32>
    %316 = arith.addf %283, %315 : vector<13x13xf32>
    %c87 = arith.constant 87 : index
    %317 = memref.load %arg4[%c87] : memref<216xf32, #tpu.memory_space<smem>>
    %318 = vector.broadcast %317 : f32 to vector<13x13xf32>
    %319 = arith.mulf %318, %304 : vector<13x13xf32>
    %320 = arith.addf %287, %319 : vector<13x13xf32>
    %c114 = arith.constant 114 : index
    %321 = memref.load %arg4[%c114] : memref<216xf32, #tpu.memory_space<smem>>
    %322 = vector.broadcast %321 : f32 to vector<13x13xf32>
    %323 = arith.mulf %322, %304 : vector<13x13xf32>
    %324 = arith.addf %291, %323 : vector<13x13xf32>
    %c141 = arith.constant 141 : index
    %325 = memref.load %arg4[%c141] : memref<216xf32, #tpu.memory_space<smem>>
    %326 = vector.broadcast %325 : f32 to vector<13x13xf32>
    %327 = arith.mulf %326, %304 : vector<13x13xf32>
    %328 = arith.addf %295, %327 : vector<13x13xf32>
    %c168 = arith.constant 168 : index
    %329 = memref.load %arg4[%c168] : memref<216xf32, #tpu.memory_space<smem>>
    %330 = vector.broadcast %329 : f32 to vector<13x13xf32>
    %331 = arith.mulf %330, %304 : vector<13x13xf32>
    %332 = arith.addf %299, %331 : vector<13x13xf32>
    %c195 = arith.constant 195 : index
    %333 = memref.load %arg4[%c195] : memref<216xf32, #tpu.memory_space<smem>>
    %334 = vector.broadcast %333 : f32 to vector<13x13xf32>
    %335 = arith.mulf %334, %304 : vector<13x13xf32>
    %336 = arith.addf %303, %335 : vector<13x13xf32>
    %337 = vector.extract_strided_slice %25 {offsets = [2, 1], sizes = [13, 13], strides = [1, 1]} : vector<15x15xf32> to vector<13x13xf32>
    %c7_32 = arith.constant 7 : index
    %338 = memref.load %arg4[%c7_32] : memref<216xf32, #tpu.memory_space<smem>>
    %339 = vector.broadcast %338 : f32 to vector<13x13xf32>
    %340 = arith.mulf %339, %337 : vector<13x13xf32>
    %341 = arith.addf %308, %340 : vector<13x13xf32>
    %c34 = arith.constant 34 : index
    %342 = memref.load %arg4[%c34] : memref<216xf32, #tpu.memory_space<smem>>
    %343 = vector.broadcast %342 : f32 to vector<13x13xf32>
    %344 = arith.mulf %343, %337 : vector<13x13xf32>
    %345 = arith.addf %312, %344 : vector<13x13xf32>
    %c61 = arith.constant 61 : index
    %346 = memref.load %arg4[%c61] : memref<216xf32, #tpu.memory_space<smem>>
    %347 = vector.broadcast %346 : f32 to vector<13x13xf32>
    %348 = arith.mulf %347, %337 : vector<13x13xf32>
    %349 = arith.addf %316, %348 : vector<13x13xf32>
    %c88 = arith.constant 88 : index
    %350 = memref.load %arg4[%c88] : memref<216xf32, #tpu.memory_space<smem>>
    %351 = vector.broadcast %350 : f32 to vector<13x13xf32>
    %352 = arith.mulf %351, %337 : vector<13x13xf32>
    %353 = arith.addf %320, %352 : vector<13x13xf32>
    %c115 = arith.constant 115 : index
    %354 = memref.load %arg4[%c115] : memref<216xf32, #tpu.memory_space<smem>>
    %355 = vector.broadcast %354 : f32 to vector<13x13xf32>
    %356 = arith.mulf %355, %337 : vector<13x13xf32>
    %357 = arith.addf %324, %356 : vector<13x13xf32>
    %c142 = arith.constant 142 : index
    %358 = memref.load %arg4[%c142] : memref<216xf32, #tpu.memory_space<smem>>
    %359 = vector.broadcast %358 : f32 to vector<13x13xf32>
    %360 = arith.mulf %359, %337 : vector<13x13xf32>
    %361 = arith.addf %328, %360 : vector<13x13xf32>
    %c169 = arith.constant 169 : index
    %362 = memref.load %arg4[%c169] : memref<216xf32, #tpu.memory_space<smem>>
    %363 = vector.broadcast %362 : f32 to vector<13x13xf32>
    %364 = arith.mulf %363, %337 : vector<13x13xf32>
    %365 = arith.addf %332, %364 : vector<13x13xf32>
    %c196 = arith.constant 196 : index
    %366 = memref.load %arg4[%c196] : memref<216xf32, #tpu.memory_space<smem>>
    %367 = vector.broadcast %366 : f32 to vector<13x13xf32>
    %368 = arith.mulf %367, %337 : vector<13x13xf32>
    %369 = arith.addf %336, %368 : vector<13x13xf32>
    %370 = vector.extract_strided_slice %25 {offsets = [2, 2], sizes = [13, 13], strides = [1, 1]} : vector<15x15xf32> to vector<13x13xf32>
    %c8_33 = arith.constant 8 : index
    %371 = memref.load %arg4[%c8_33] : memref<216xf32, #tpu.memory_space<smem>>
    %372 = vector.broadcast %371 : f32 to vector<13x13xf32>
    %373 = arith.mulf %372, %370 : vector<13x13xf32>
    %374 = arith.addf %341, %373 : vector<13x13xf32>
    %c35 = arith.constant 35 : index
    %375 = memref.load %arg4[%c35] : memref<216xf32, #tpu.memory_space<smem>>
    %376 = vector.broadcast %375 : f32 to vector<13x13xf32>
    %377 = arith.mulf %376, %370 : vector<13x13xf32>
    %378 = arith.addf %345, %377 : vector<13x13xf32>
    %c62 = arith.constant 62 : index
    %379 = memref.load %arg4[%c62] : memref<216xf32, #tpu.memory_space<smem>>
    %380 = vector.broadcast %379 : f32 to vector<13x13xf32>
    %381 = arith.mulf %380, %370 : vector<13x13xf32>
    %382 = arith.addf %349, %381 : vector<13x13xf32>
    %c89 = arith.constant 89 : index
    %383 = memref.load %arg4[%c89] : memref<216xf32, #tpu.memory_space<smem>>
    %384 = vector.broadcast %383 : f32 to vector<13x13xf32>
    %385 = arith.mulf %384, %370 : vector<13x13xf32>
    %386 = arith.addf %353, %385 : vector<13x13xf32>
    %c116 = arith.constant 116 : index
    %387 = memref.load %arg4[%c116] : memref<216xf32, #tpu.memory_space<smem>>
    %388 = vector.broadcast %387 : f32 to vector<13x13xf32>
    %389 = arith.mulf %388, %370 : vector<13x13xf32>
    %390 = arith.addf %357, %389 : vector<13x13xf32>
    %c143 = arith.constant 143 : index
    %391 = memref.load %arg4[%c143] : memref<216xf32, #tpu.memory_space<smem>>
    %392 = vector.broadcast %391 : f32 to vector<13x13xf32>
    %393 = arith.mulf %392, %370 : vector<13x13xf32>
    %394 = arith.addf %361, %393 : vector<13x13xf32>
    %c170 = arith.constant 170 : index
    %395 = memref.load %arg4[%c170] : memref<216xf32, #tpu.memory_space<smem>>
    %396 = vector.broadcast %395 : f32 to vector<13x13xf32>
    %397 = arith.mulf %396, %370 : vector<13x13xf32>
    %398 = arith.addf %365, %397 : vector<13x13xf32>
    %c197 = arith.constant 197 : index
    %399 = memref.load %arg4[%c197] : memref<216xf32, #tpu.memory_space<smem>>
    %400 = vector.broadcast %399 : f32 to vector<13x13xf32>
    %401 = arith.mulf %400, %370 : vector<13x13xf32>
    %402 = arith.addf %369, %401 : vector<13x13xf32>
    %403 = vector.extract_strided_slice %49 {offsets = [0, 0], sizes = [13, 13], strides = [1, 1]} : vector<15x15xf32> to vector<13x13xf32>
    %c9_34 = arith.constant 9 : index
    %404 = memref.load %arg4[%c9_34] : memref<216xf32, #tpu.memory_space<smem>>
    %405 = vector.broadcast %404 : f32 to vector<13x13xf32>
    %406 = arith.mulf %405, %403 : vector<13x13xf32>
    %407 = arith.addf %374, %406 : vector<13x13xf32>
    %c36 = arith.constant 36 : index
    %408 = memref.load %arg4[%c36] : memref<216xf32, #tpu.memory_space<smem>>
    %409 = vector.broadcast %408 : f32 to vector<13x13xf32>
    %410 = arith.mulf %409, %403 : vector<13x13xf32>
    %411 = arith.addf %378, %410 : vector<13x13xf32>
    %c63 = arith.constant 63 : index
    %412 = memref.load %arg4[%c63] : memref<216xf32, #tpu.memory_space<smem>>
    %413 = vector.broadcast %412 : f32 to vector<13x13xf32>
    %414 = arith.mulf %413, %403 : vector<13x13xf32>
    %415 = arith.addf %382, %414 : vector<13x13xf32>
    %c90 = arith.constant 90 : index
    %416 = memref.load %arg4[%c90] : memref<216xf32, #tpu.memory_space<smem>>
    %417 = vector.broadcast %416 : f32 to vector<13x13xf32>
    %418 = arith.mulf %417, %403 : vector<13x13xf32>
    %419 = arith.addf %386, %418 : vector<13x13xf32>
    %c117 = arith.constant 117 : index
    %420 = memref.load %arg4[%c117] : memref<216xf32, #tpu.memory_space<smem>>
    %421 = vector.broadcast %420 : f32 to vector<13x13xf32>
    %422 = arith.mulf %421, %403 : vector<13x13xf32>
    %423 = arith.addf %390, %422 : vector<13x13xf32>
    %c144 = arith.constant 144 : index
    %424 = memref.load %arg4[%c144] : memref<216xf32, #tpu.memory_space<smem>>
    %425 = vector.broadcast %424 : f32 to vector<13x13xf32>
    %426 = arith.mulf %425, %403 : vector<13x13xf32>
    %427 = arith.addf %394, %426 : vector<13x13xf32>
    %c171 = arith.constant 171 : index
    %428 = memref.load %arg4[%c171] : memref<216xf32, #tpu.memory_space<smem>>
    %429 = vector.broadcast %428 : f32 to vector<13x13xf32>
    %430 = arith.mulf %429, %403 : vector<13x13xf32>
    %431 = arith.addf %398, %430 : vector<13x13xf32>
    %c198 = arith.constant 198 : index
    %432 = memref.load %arg4[%c198] : memref<216xf32, #tpu.memory_space<smem>>
    %433 = vector.broadcast %432 : f32 to vector<13x13xf32>
    %434 = arith.mulf %433, %403 : vector<13x13xf32>
    %435 = arith.addf %402, %434 : vector<13x13xf32>
    %436 = vector.extract_strided_slice %49 {offsets = [0, 1], sizes = [13, 13], strides = [1, 1]} : vector<15x15xf32> to vector<13x13xf32>
    %c10_35 = arith.constant 10 : index
    %437 = memref.load %arg4[%c10_35] : memref<216xf32, #tpu.memory_space<smem>>
    %438 = vector.broadcast %437 : f32 to vector<13x13xf32>
    %439 = arith.mulf %438, %436 : vector<13x13xf32>
    %440 = arith.addf %407, %439 : vector<13x13xf32>
    %c37 = arith.constant 37 : index
    %441 = memref.load %arg4[%c37] : memref<216xf32, #tpu.memory_space<smem>>
    %442 = vector.broadcast %441 : f32 to vector<13x13xf32>
    %443 = arith.mulf %442, %436 : vector<13x13xf32>
    %444 = arith.addf %411, %443 : vector<13x13xf32>
    %c64 = arith.constant 64 : index
    %445 = memref.load %arg4[%c64] : memref<216xf32, #tpu.memory_space<smem>>
    %446 = vector.broadcast %445 : f32 to vector<13x13xf32>
    %447 = arith.mulf %446, %436 : vector<13x13xf32>
    %448 = arith.addf %415, %447 : vector<13x13xf32>
    %c91 = arith.constant 91 : index
    %449 = memref.load %arg4[%c91] : memref<216xf32, #tpu.memory_space<smem>>
    %450 = vector.broadcast %449 : f32 to vector<13x13xf32>
    %451 = arith.mulf %450, %436 : vector<13x13xf32>
    %452 = arith.addf %419, %451 : vector<13x13xf32>
    %c118 = arith.constant 118 : index
    %453 = memref.load %arg4[%c118] : memref<216xf32, #tpu.memory_space<smem>>
    %454 = vector.broadcast %453 : f32 to vector<13x13xf32>
    %455 = arith.mulf %454, %436 : vector<13x13xf32>
    %456 = arith.addf %423, %455 : vector<13x13xf32>
    %c145 = arith.constant 145 : index
    %457 = memref.load %arg4[%c145] : memref<216xf32, #tpu.memory_space<smem>>
    %458 = vector.broadcast %457 : f32 to vector<13x13xf32>
    %459 = arith.mulf %458, %436 : vector<13x13xf32>
    %460 = arith.addf %427, %459 : vector<13x13xf32>
    %c172 = arith.constant 172 : index
    %461 = memref.load %arg4[%c172] : memref<216xf32, #tpu.memory_space<smem>>
    %462 = vector.broadcast %461 : f32 to vector<13x13xf32>
    %463 = arith.mulf %462, %436 : vector<13x13xf32>
    %464 = arith.addf %431, %463 : vector<13x13xf32>
    %c199 = arith.constant 199 : index
    %465 = memref.load %arg4[%c199] : memref<216xf32, #tpu.memory_space<smem>>
    %466 = vector.broadcast %465 : f32 to vector<13x13xf32>
    %467 = arith.mulf %466, %436 : vector<13x13xf32>
    %468 = arith.addf %435, %467 : vector<13x13xf32>
    %469 = vector.extract_strided_slice %49 {offsets = [0, 2], sizes = [13, 13], strides = [1, 1]} : vector<15x15xf32> to vector<13x13xf32>
    %c11_36 = arith.constant 11 : index
    %470 = memref.load %arg4[%c11_36] : memref<216xf32, #tpu.memory_space<smem>>
    %471 = vector.broadcast %470 : f32 to vector<13x13xf32>
    %472 = arith.mulf %471, %469 : vector<13x13xf32>
    %473 = arith.addf %440, %472 : vector<13x13xf32>
    %c38 = arith.constant 38 : index
    %474 = memref.load %arg4[%c38] : memref<216xf32, #tpu.memory_space<smem>>
    %475 = vector.broadcast %474 : f32 to vector<13x13xf32>
    %476 = arith.mulf %475, %469 : vector<13x13xf32>
    %477 = arith.addf %444, %476 : vector<13x13xf32>
    %c65 = arith.constant 65 : index
    %478 = memref.load %arg4[%c65] : memref<216xf32, #tpu.memory_space<smem>>
    %479 = vector.broadcast %478 : f32 to vector<13x13xf32>
    %480 = arith.mulf %479, %469 : vector<13x13xf32>
    %481 = arith.addf %448, %480 : vector<13x13xf32>
    %c92 = arith.constant 92 : index
    %482 = memref.load %arg4[%c92] : memref<216xf32, #tpu.memory_space<smem>>
    %483 = vector.broadcast %482 : f32 to vector<13x13xf32>
    %484 = arith.mulf %483, %469 : vector<13x13xf32>
    %485 = arith.addf %452, %484 : vector<13x13xf32>
    %c119 = arith.constant 119 : index
    %486 = memref.load %arg4[%c119] : memref<216xf32, #tpu.memory_space<smem>>
    %487 = vector.broadcast %486 : f32 to vector<13x13xf32>
    %488 = arith.mulf %487, %469 : vector<13x13xf32>
    %489 = arith.addf %456, %488 : vector<13x13xf32>
    %c146 = arith.constant 146 : index
    %490 = memref.load %arg4[%c146] : memref<216xf32, #tpu.memory_space<smem>>
    %491 = vector.broadcast %490 : f32 to vector<13x13xf32>
    %492 = arith.mulf %491, %469 : vector<13x13xf32>
    %493 = arith.addf %460, %492 : vector<13x13xf32>
    %c173 = arith.constant 173 : index
    %494 = memref.load %arg4[%c173] : memref<216xf32, #tpu.memory_space<smem>>
    %495 = vector.broadcast %494 : f32 to vector<13x13xf32>
    %496 = arith.mulf %495, %469 : vector<13x13xf32>
    %497 = arith.addf %464, %496 : vector<13x13xf32>
    %c200 = arith.constant 200 : index
    %498 = memref.load %arg4[%c200] : memref<216xf32, #tpu.memory_space<smem>>
    %499 = vector.broadcast %498 : f32 to vector<13x13xf32>
    %500 = arith.mulf %499, %469 : vector<13x13xf32>
    %501 = arith.addf %468, %500 : vector<13x13xf32>
    %502 = vector.extract_strided_slice %49 {offsets = [1, 0], sizes = [13, 13], strides = [1, 1]} : vector<15x15xf32> to vector<13x13xf32>
    %c12 = arith.constant 12 : index
    %503 = memref.load %arg4[%c12] : memref<216xf32, #tpu.memory_space<smem>>
    %504 = vector.broadcast %503 : f32 to vector<13x13xf32>
    %505 = arith.mulf %504, %502 : vector<13x13xf32>
    %506 = arith.addf %473, %505 : vector<13x13xf32>
    %c39 = arith.constant 39 : index
    %507 = memref.load %arg4[%c39] : memref<216xf32, #tpu.memory_space<smem>>
    %508 = vector.broadcast %507 : f32 to vector<13x13xf32>
    %509 = arith.mulf %508, %502 : vector<13x13xf32>
    %510 = arith.addf %477, %509 : vector<13x13xf32>
    %c66 = arith.constant 66 : index
    %511 = memref.load %arg4[%c66] : memref<216xf32, #tpu.memory_space<smem>>
    %512 = vector.broadcast %511 : f32 to vector<13x13xf32>
    %513 = arith.mulf %512, %502 : vector<13x13xf32>
    %514 = arith.addf %481, %513 : vector<13x13xf32>
    %c93 = arith.constant 93 : index
    %515 = memref.load %arg4[%c93] : memref<216xf32, #tpu.memory_space<smem>>
    %516 = vector.broadcast %515 : f32 to vector<13x13xf32>
    %517 = arith.mulf %516, %502 : vector<13x13xf32>
    %518 = arith.addf %485, %517 : vector<13x13xf32>
    %c120 = arith.constant 120 : index
    %519 = memref.load %arg4[%c120] : memref<216xf32, #tpu.memory_space<smem>>
    %520 = vector.broadcast %519 : f32 to vector<13x13xf32>
    %521 = arith.mulf %520, %502 : vector<13x13xf32>
    %522 = arith.addf %489, %521 : vector<13x13xf32>
    %c147 = arith.constant 147 : index
    %523 = memref.load %arg4[%c147] : memref<216xf32, #tpu.memory_space<smem>>
    %524 = vector.broadcast %523 : f32 to vector<13x13xf32>
    %525 = arith.mulf %524, %502 : vector<13x13xf32>
    %526 = arith.addf %493, %525 : vector<13x13xf32>
    %c174 = arith.constant 174 : index
    %527 = memref.load %arg4[%c174] : memref<216xf32, #tpu.memory_space<smem>>
    %528 = vector.broadcast %527 : f32 to vector<13x13xf32>
    %529 = arith.mulf %528, %502 : vector<13x13xf32>
    %530 = arith.addf %497, %529 : vector<13x13xf32>
    %c201 = arith.constant 201 : index
    %531 = memref.load %arg4[%c201] : memref<216xf32, #tpu.memory_space<smem>>
    %532 = vector.broadcast %531 : f32 to vector<13x13xf32>
    %533 = arith.mulf %532, %502 : vector<13x13xf32>
    %534 = arith.addf %501, %533 : vector<13x13xf32>
    %535 = vector.extract_strided_slice %49 {offsets = [1, 1], sizes = [13, 13], strides = [1, 1]} : vector<15x15xf32> to vector<13x13xf32>
    %c13 = arith.constant 13 : index
    %536 = memref.load %arg4[%c13] : memref<216xf32, #tpu.memory_space<smem>>
    %537 = vector.broadcast %536 : f32 to vector<13x13xf32>
    %538 = arith.mulf %537, %535 : vector<13x13xf32>
    %539 = arith.addf %506, %538 : vector<13x13xf32>
    %c40 = arith.constant 40 : index
    %540 = memref.load %arg4[%c40] : memref<216xf32, #tpu.memory_space<smem>>
    %541 = vector.broadcast %540 : f32 to vector<13x13xf32>
    %542 = arith.mulf %541, %535 : vector<13x13xf32>
    %543 = arith.addf %510, %542 : vector<13x13xf32>
    %c67 = arith.constant 67 : index
    %544 = memref.load %arg4[%c67] : memref<216xf32, #tpu.memory_space<smem>>
    %545 = vector.broadcast %544 : f32 to vector<13x13xf32>
    %546 = arith.mulf %545, %535 : vector<13x13xf32>
    %547 = arith.addf %514, %546 : vector<13x13xf32>
    %c94 = arith.constant 94 : index
    %548 = memref.load %arg4[%c94] : memref<216xf32, #tpu.memory_space<smem>>
    %549 = vector.broadcast %548 : f32 to vector<13x13xf32>
    %550 = arith.mulf %549, %535 : vector<13x13xf32>
    %551 = arith.addf %518, %550 : vector<13x13xf32>
    %c121 = arith.constant 121 : index
    %552 = memref.load %arg4[%c121] : memref<216xf32, #tpu.memory_space<smem>>
    %553 = vector.broadcast %552 : f32 to vector<13x13xf32>
    %554 = arith.mulf %553, %535 : vector<13x13xf32>
    %555 = arith.addf %522, %554 : vector<13x13xf32>
    %c148 = arith.constant 148 : index
    %556 = memref.load %arg4[%c148] : memref<216xf32, #tpu.memory_space<smem>>
    %557 = vector.broadcast %556 : f32 to vector<13x13xf32>
    %558 = arith.mulf %557, %535 : vector<13x13xf32>
    %559 = arith.addf %526, %558 : vector<13x13xf32>
    %c175 = arith.constant 175 : index
    %560 = memref.load %arg4[%c175] : memref<216xf32, #tpu.memory_space<smem>>
    %561 = vector.broadcast %560 : f32 to vector<13x13xf32>
    %562 = arith.mulf %561, %535 : vector<13x13xf32>
    %563 = arith.addf %530, %562 : vector<13x13xf32>
    %c202 = arith.constant 202 : index
    %564 = memref.load %arg4[%c202] : memref<216xf32, #tpu.memory_space<smem>>
    %565 = vector.broadcast %564 : f32 to vector<13x13xf32>
    %566 = arith.mulf %565, %535 : vector<13x13xf32>
    %567 = arith.addf %534, %566 : vector<13x13xf32>
    %568 = vector.extract_strided_slice %49 {offsets = [1, 2], sizes = [13, 13], strides = [1, 1]} : vector<15x15xf32> to vector<13x13xf32>
    %c14 = arith.constant 14 : index
    %569 = memref.load %arg4[%c14] : memref<216xf32, #tpu.memory_space<smem>>
    %570 = vector.broadcast %569 : f32 to vector<13x13xf32>
    %571 = arith.mulf %570, %568 : vector<13x13xf32>
    %572 = arith.addf %539, %571 : vector<13x13xf32>
    %c41 = arith.constant 41 : index
    %573 = memref.load %arg4[%c41] : memref<216xf32, #tpu.memory_space<smem>>
    %574 = vector.broadcast %573 : f32 to vector<13x13xf32>
    %575 = arith.mulf %574, %568 : vector<13x13xf32>
    %576 = arith.addf %543, %575 : vector<13x13xf32>
    %c68 = arith.constant 68 : index
    %577 = memref.load %arg4[%c68] : memref<216xf32, #tpu.memory_space<smem>>
    %578 = vector.broadcast %577 : f32 to vector<13x13xf32>
    %579 = arith.mulf %578, %568 : vector<13x13xf32>
    %580 = arith.addf %547, %579 : vector<13x13xf32>
    %c95 = arith.constant 95 : index
    %581 = memref.load %arg4[%c95] : memref<216xf32, #tpu.memory_space<smem>>
    %582 = vector.broadcast %581 : f32 to vector<13x13xf32>
    %583 = arith.mulf %582, %568 : vector<13x13xf32>
    %584 = arith.addf %551, %583 : vector<13x13xf32>
    %c122 = arith.constant 122 : index
    %585 = memref.load %arg4[%c122] : memref<216xf32, #tpu.memory_space<smem>>
    %586 = vector.broadcast %585 : f32 to vector<13x13xf32>
    %587 = arith.mulf %586, %568 : vector<13x13xf32>
    %588 = arith.addf %555, %587 : vector<13x13xf32>
    %c149 = arith.constant 149 : index
    %589 = memref.load %arg4[%c149] : memref<216xf32, #tpu.memory_space<smem>>
    %590 = vector.broadcast %589 : f32 to vector<13x13xf32>
    %591 = arith.mulf %590, %568 : vector<13x13xf32>
    %592 = arith.addf %559, %591 : vector<13x13xf32>
    %c176 = arith.constant 176 : index
    %593 = memref.load %arg4[%c176] : memref<216xf32, #tpu.memory_space<smem>>
    %594 = vector.broadcast %593 : f32 to vector<13x13xf32>
    %595 = arith.mulf %594, %568 : vector<13x13xf32>
    %596 = arith.addf %563, %595 : vector<13x13xf32>
    %c203 = arith.constant 203 : index
    %597 = memref.load %arg4[%c203] : memref<216xf32, #tpu.memory_space<smem>>
    %598 = vector.broadcast %597 : f32 to vector<13x13xf32>
    %599 = arith.mulf %598, %568 : vector<13x13xf32>
    %600 = arith.addf %567, %599 : vector<13x13xf32>
    %601 = vector.extract_strided_slice %49 {offsets = [2, 0], sizes = [13, 13], strides = [1, 1]} : vector<15x15xf32> to vector<13x13xf32>
    %c15 = arith.constant 15 : index
    %602 = memref.load %arg4[%c15] : memref<216xf32, #tpu.memory_space<smem>>
    %603 = vector.broadcast %602 : f32 to vector<13x13xf32>
    %604 = arith.mulf %603, %601 : vector<13x13xf32>
    %605 = arith.addf %572, %604 : vector<13x13xf32>
    %c42 = arith.constant 42 : index
    %606 = memref.load %arg4[%c42] : memref<216xf32, #tpu.memory_space<smem>>
    %607 = vector.broadcast %606 : f32 to vector<13x13xf32>
    %608 = arith.mulf %607, %601 : vector<13x13xf32>
    %609 = arith.addf %576, %608 : vector<13x13xf32>
    %c69 = arith.constant 69 : index
    %610 = memref.load %arg4[%c69] : memref<216xf32, #tpu.memory_space<smem>>
    %611 = vector.broadcast %610 : f32 to vector<13x13xf32>
    %612 = arith.mulf %611, %601 : vector<13x13xf32>
    %613 = arith.addf %580, %612 : vector<13x13xf32>
    %c96 = arith.constant 96 : index
    %614 = memref.load %arg4[%c96] : memref<216xf32, #tpu.memory_space<smem>>
    %615 = vector.broadcast %614 : f32 to vector<13x13xf32>
    %616 = arith.mulf %615, %601 : vector<13x13xf32>
    %617 = arith.addf %584, %616 : vector<13x13xf32>
    %c123 = arith.constant 123 : index
    %618 = memref.load %arg4[%c123] : memref<216xf32, #tpu.memory_space<smem>>
    %619 = vector.broadcast %618 : f32 to vector<13x13xf32>
    %620 = arith.mulf %619, %601 : vector<13x13xf32>
    %621 = arith.addf %588, %620 : vector<13x13xf32>
    %c150 = arith.constant 150 : index
    %622 = memref.load %arg4[%c150] : memref<216xf32, #tpu.memory_space<smem>>
    %623 = vector.broadcast %622 : f32 to vector<13x13xf32>
    %624 = arith.mulf %623, %601 : vector<13x13xf32>
    %625 = arith.addf %592, %624 : vector<13x13xf32>
    %c177 = arith.constant 177 : index
    %626 = memref.load %arg4[%c177] : memref<216xf32, #tpu.memory_space<smem>>
    %627 = vector.broadcast %626 : f32 to vector<13x13xf32>
    %628 = arith.mulf %627, %601 : vector<13x13xf32>
    %629 = arith.addf %596, %628 : vector<13x13xf32>
    %c204 = arith.constant 204 : index
    %630 = memref.load %arg4[%c204] : memref<216xf32, #tpu.memory_space<smem>>
    %631 = vector.broadcast %630 : f32 to vector<13x13xf32>
    %632 = arith.mulf %631, %601 : vector<13x13xf32>
    %633 = arith.addf %600, %632 : vector<13x13xf32>
    %634 = vector.extract_strided_slice %49 {offsets = [2, 1], sizes = [13, 13], strides = [1, 1]} : vector<15x15xf32> to vector<13x13xf32>
    %c16 = arith.constant 16 : index
    %635 = memref.load %arg4[%c16] : memref<216xf32, #tpu.memory_space<smem>>
    %636 = vector.broadcast %635 : f32 to vector<13x13xf32>
    %637 = arith.mulf %636, %634 : vector<13x13xf32>
    %638 = arith.addf %605, %637 : vector<13x13xf32>
    %c43 = arith.constant 43 : index
    %639 = memref.load %arg4[%c43] : memref<216xf32, #tpu.memory_space<smem>>
    %640 = vector.broadcast %639 : f32 to vector<13x13xf32>
    %641 = arith.mulf %640, %634 : vector<13x13xf32>
    %642 = arith.addf %609, %641 : vector<13x13xf32>
    %c70 = arith.constant 70 : index
    %643 = memref.load %arg4[%c70] : memref<216xf32, #tpu.memory_space<smem>>
    %644 = vector.broadcast %643 : f32 to vector<13x13xf32>
    %645 = arith.mulf %644, %634 : vector<13x13xf32>
    %646 = arith.addf %613, %645 : vector<13x13xf32>
    %c97 = arith.constant 97 : index
    %647 = memref.load %arg4[%c97] : memref<216xf32, #tpu.memory_space<smem>>
    %648 = vector.broadcast %647 : f32 to vector<13x13xf32>
    %649 = arith.mulf %648, %634 : vector<13x13xf32>
    %650 = arith.addf %617, %649 : vector<13x13xf32>
    %c124 = arith.constant 124 : index
    %651 = memref.load %arg4[%c124] : memref<216xf32, #tpu.memory_space<smem>>
    %652 = vector.broadcast %651 : f32 to vector<13x13xf32>
    %653 = arith.mulf %652, %634 : vector<13x13xf32>
    %654 = arith.addf %621, %653 : vector<13x13xf32>
    %c151 = arith.constant 151 : index
    %655 = memref.load %arg4[%c151] : memref<216xf32, #tpu.memory_space<smem>>
    %656 = vector.broadcast %655 : f32 to vector<13x13xf32>
    %657 = arith.mulf %656, %634 : vector<13x13xf32>
    %658 = arith.addf %625, %657 : vector<13x13xf32>
    %c178 = arith.constant 178 : index
    %659 = memref.load %arg4[%c178] : memref<216xf32, #tpu.memory_space<smem>>
    %660 = vector.broadcast %659 : f32 to vector<13x13xf32>
    %661 = arith.mulf %660, %634 : vector<13x13xf32>
    %662 = arith.addf %629, %661 : vector<13x13xf32>
    %c205 = arith.constant 205 : index
    %663 = memref.load %arg4[%c205] : memref<216xf32, #tpu.memory_space<smem>>
    %664 = vector.broadcast %663 : f32 to vector<13x13xf32>
    %665 = arith.mulf %664, %634 : vector<13x13xf32>
    %666 = arith.addf %633, %665 : vector<13x13xf32>
    %667 = vector.extract_strided_slice %49 {offsets = [2, 2], sizes = [13, 13], strides = [1, 1]} : vector<15x15xf32> to vector<13x13xf32>
    %c17 = arith.constant 17 : index
    %668 = memref.load %arg4[%c17] : memref<216xf32, #tpu.memory_space<smem>>
    %669 = vector.broadcast %668 : f32 to vector<13x13xf32>
    %670 = arith.mulf %669, %667 : vector<13x13xf32>
    %671 = arith.addf %638, %670 : vector<13x13xf32>
    %c44 = arith.constant 44 : index
    %672 = memref.load %arg4[%c44] : memref<216xf32, #tpu.memory_space<smem>>
    %673 = vector.broadcast %672 : f32 to vector<13x13xf32>
    %674 = arith.mulf %673, %667 : vector<13x13xf32>
    %675 = arith.addf %642, %674 : vector<13x13xf32>
    %c71 = arith.constant 71 : index
    %676 = memref.load %arg4[%c71] : memref<216xf32, #tpu.memory_space<smem>>
    %677 = vector.broadcast %676 : f32 to vector<13x13xf32>
    %678 = arith.mulf %677, %667 : vector<13x13xf32>
    %679 = arith.addf %646, %678 : vector<13x13xf32>
    %c98 = arith.constant 98 : index
    %680 = memref.load %arg4[%c98] : memref<216xf32, #tpu.memory_space<smem>>
    %681 = vector.broadcast %680 : f32 to vector<13x13xf32>
    %682 = arith.mulf %681, %667 : vector<13x13xf32>
    %683 = arith.addf %650, %682 : vector<13x13xf32>
    %c125 = arith.constant 125 : index
    %684 = memref.load %arg4[%c125] : memref<216xf32, #tpu.memory_space<smem>>
    %685 = vector.broadcast %684 : f32 to vector<13x13xf32>
    %686 = arith.mulf %685, %667 : vector<13x13xf32>
    %687 = arith.addf %654, %686 : vector<13x13xf32>
    %c152 = arith.constant 152 : index
    %688 = memref.load %arg4[%c152] : memref<216xf32, #tpu.memory_space<smem>>
    %689 = vector.broadcast %688 : f32 to vector<13x13xf32>
    %690 = arith.mulf %689, %667 : vector<13x13xf32>
    %691 = arith.addf %658, %690 : vector<13x13xf32>
    %c179 = arith.constant 179 : index
    %692 = memref.load %arg4[%c179] : memref<216xf32, #tpu.memory_space<smem>>
    %693 = vector.broadcast %692 : f32 to vector<13x13xf32>
    %694 = arith.mulf %693, %667 : vector<13x13xf32>
    %695 = arith.addf %662, %694 : vector<13x13xf32>
    %c206 = arith.constant 206 : index
    %696 = memref.load %arg4[%c206] : memref<216xf32, #tpu.memory_space<smem>>
    %697 = vector.broadcast %696 : f32 to vector<13x13xf32>
    %698 = arith.mulf %697, %667 : vector<13x13xf32>
    %699 = arith.addf %666, %698 : vector<13x13xf32>
    %700 = vector.extract_strided_slice %73 {offsets = [0, 0], sizes = [13, 13], strides = [1, 1]} : vector<15x15xf32> to vector<13x13xf32>
    %c18 = arith.constant 18 : index
    %701 = memref.load %arg4[%c18] : memref<216xf32, #tpu.memory_space<smem>>
    %702 = vector.broadcast %701 : f32 to vector<13x13xf32>
    %703 = arith.mulf %702, %700 : vector<13x13xf32>
    %704 = arith.addf %671, %703 : vector<13x13xf32>
    %c45 = arith.constant 45 : index
    %705 = memref.load %arg4[%c45] : memref<216xf32, #tpu.memory_space<smem>>
    %706 = vector.broadcast %705 : f32 to vector<13x13xf32>
    %707 = arith.mulf %706, %700 : vector<13x13xf32>
    %708 = arith.addf %675, %707 : vector<13x13xf32>
    %c72 = arith.constant 72 : index
    %709 = memref.load %arg4[%c72] : memref<216xf32, #tpu.memory_space<smem>>
    %710 = vector.broadcast %709 : f32 to vector<13x13xf32>
    %711 = arith.mulf %710, %700 : vector<13x13xf32>
    %712 = arith.addf %679, %711 : vector<13x13xf32>
    %c99 = arith.constant 99 : index
    %713 = memref.load %arg4[%c99] : memref<216xf32, #tpu.memory_space<smem>>
    %714 = vector.broadcast %713 : f32 to vector<13x13xf32>
    %715 = arith.mulf %714, %700 : vector<13x13xf32>
    %716 = arith.addf %683, %715 : vector<13x13xf32>
    %c126 = arith.constant 126 : index
    %717 = memref.load %arg4[%c126] : memref<216xf32, #tpu.memory_space<smem>>
    %718 = vector.broadcast %717 : f32 to vector<13x13xf32>
    %719 = arith.mulf %718, %700 : vector<13x13xf32>
    %720 = arith.addf %687, %719 : vector<13x13xf32>
    %c153 = arith.constant 153 : index
    %721 = memref.load %arg4[%c153] : memref<216xf32, #tpu.memory_space<smem>>
    %722 = vector.broadcast %721 : f32 to vector<13x13xf32>
    %723 = arith.mulf %722, %700 : vector<13x13xf32>
    %724 = arith.addf %691, %723 : vector<13x13xf32>
    %c180 = arith.constant 180 : index
    %725 = memref.load %arg4[%c180] : memref<216xf32, #tpu.memory_space<smem>>
    %726 = vector.broadcast %725 : f32 to vector<13x13xf32>
    %727 = arith.mulf %726, %700 : vector<13x13xf32>
    %728 = arith.addf %695, %727 : vector<13x13xf32>
    %c207 = arith.constant 207 : index
    %729 = memref.load %arg4[%c207] : memref<216xf32, #tpu.memory_space<smem>>
    %730 = vector.broadcast %729 : f32 to vector<13x13xf32>
    %731 = arith.mulf %730, %700 : vector<13x13xf32>
    %732 = arith.addf %699, %731 : vector<13x13xf32>
    %733 = vector.extract_strided_slice %73 {offsets = [0, 1], sizes = [13, 13], strides = [1, 1]} : vector<15x15xf32> to vector<13x13xf32>
    %c19 = arith.constant 19 : index
    %734 = memref.load %arg4[%c19] : memref<216xf32, #tpu.memory_space<smem>>
    %735 = vector.broadcast %734 : f32 to vector<13x13xf32>
    %736 = arith.mulf %735, %733 : vector<13x13xf32>
    %737 = arith.addf %704, %736 : vector<13x13xf32>
    %c46 = arith.constant 46 : index
    %738 = memref.load %arg4[%c46] : memref<216xf32, #tpu.memory_space<smem>>
    %739 = vector.broadcast %738 : f32 to vector<13x13xf32>
    %740 = arith.mulf %739, %733 : vector<13x13xf32>
    %741 = arith.addf %708, %740 : vector<13x13xf32>
    %c73 = arith.constant 73 : index
    %742 = memref.load %arg4[%c73] : memref<216xf32, #tpu.memory_space<smem>>
    %743 = vector.broadcast %742 : f32 to vector<13x13xf32>
    %744 = arith.mulf %743, %733 : vector<13x13xf32>
    %745 = arith.addf %712, %744 : vector<13x13xf32>
    %c100 = arith.constant 100 : index
    %746 = memref.load %arg4[%c100] : memref<216xf32, #tpu.memory_space<smem>>
    %747 = vector.broadcast %746 : f32 to vector<13x13xf32>
    %748 = arith.mulf %747, %733 : vector<13x13xf32>
    %749 = arith.addf %716, %748 : vector<13x13xf32>
    %c127 = arith.constant 127 : index
    %750 = memref.load %arg4[%c127] : memref<216xf32, #tpu.memory_space<smem>>
    %751 = vector.broadcast %750 : f32 to vector<13x13xf32>
    %752 = arith.mulf %751, %733 : vector<13x13xf32>
    %753 = arith.addf %720, %752 : vector<13x13xf32>
    %c154 = arith.constant 154 : index
    %754 = memref.load %arg4[%c154] : memref<216xf32, #tpu.memory_space<smem>>
    %755 = vector.broadcast %754 : f32 to vector<13x13xf32>
    %756 = arith.mulf %755, %733 : vector<13x13xf32>
    %757 = arith.addf %724, %756 : vector<13x13xf32>
    %c181 = arith.constant 181 : index
    %758 = memref.load %arg4[%c181] : memref<216xf32, #tpu.memory_space<smem>>
    %759 = vector.broadcast %758 : f32 to vector<13x13xf32>
    %760 = arith.mulf %759, %733 : vector<13x13xf32>
    %761 = arith.addf %728, %760 : vector<13x13xf32>
    %c208 = arith.constant 208 : index
    %762 = memref.load %arg4[%c208] : memref<216xf32, #tpu.memory_space<smem>>
    %763 = vector.broadcast %762 : f32 to vector<13x13xf32>
    %764 = arith.mulf %763, %733 : vector<13x13xf32>
    %765 = arith.addf %732, %764 : vector<13x13xf32>
    %766 = vector.extract_strided_slice %73 {offsets = [0, 2], sizes = [13, 13], strides = [1, 1]} : vector<15x15xf32> to vector<13x13xf32>
    %c20 = arith.constant 20 : index
    %767 = memref.load %arg4[%c20] : memref<216xf32, #tpu.memory_space<smem>>
    %768 = vector.broadcast %767 : f32 to vector<13x13xf32>
    %769 = arith.mulf %768, %766 : vector<13x13xf32>
    %770 = arith.addf %737, %769 : vector<13x13xf32>
    %c47 = arith.constant 47 : index
    %771 = memref.load %arg4[%c47] : memref<216xf32, #tpu.memory_space<smem>>
    %772 = vector.broadcast %771 : f32 to vector<13x13xf32>
    %773 = arith.mulf %772, %766 : vector<13x13xf32>
    %774 = arith.addf %741, %773 : vector<13x13xf32>
    %c74 = arith.constant 74 : index
    %775 = memref.load %arg4[%c74] : memref<216xf32, #tpu.memory_space<smem>>
    %776 = vector.broadcast %775 : f32 to vector<13x13xf32>
    %777 = arith.mulf %776, %766 : vector<13x13xf32>
    %778 = arith.addf %745, %777 : vector<13x13xf32>
    %c101 = arith.constant 101 : index
    %779 = memref.load %arg4[%c101] : memref<216xf32, #tpu.memory_space<smem>>
    %780 = vector.broadcast %779 : f32 to vector<13x13xf32>
    %781 = arith.mulf %780, %766 : vector<13x13xf32>
    %782 = arith.addf %749, %781 : vector<13x13xf32>
    %c128 = arith.constant 128 : index
    %783 = memref.load %arg4[%c128] : memref<216xf32, #tpu.memory_space<smem>>
    %784 = vector.broadcast %783 : f32 to vector<13x13xf32>
    %785 = arith.mulf %784, %766 : vector<13x13xf32>
    %786 = arith.addf %753, %785 : vector<13x13xf32>
    %c155 = arith.constant 155 : index
    %787 = memref.load %arg4[%c155] : memref<216xf32, #tpu.memory_space<smem>>
    %788 = vector.broadcast %787 : f32 to vector<13x13xf32>
    %789 = arith.mulf %788, %766 : vector<13x13xf32>
    %790 = arith.addf %757, %789 : vector<13x13xf32>
    %c182 = arith.constant 182 : index
    %791 = memref.load %arg4[%c182] : memref<216xf32, #tpu.memory_space<smem>>
    %792 = vector.broadcast %791 : f32 to vector<13x13xf32>
    %793 = arith.mulf %792, %766 : vector<13x13xf32>
    %794 = arith.addf %761, %793 : vector<13x13xf32>
    %c209 = arith.constant 209 : index
    %795 = memref.load %arg4[%c209] : memref<216xf32, #tpu.memory_space<smem>>
    %796 = vector.broadcast %795 : f32 to vector<13x13xf32>
    %797 = arith.mulf %796, %766 : vector<13x13xf32>
    %798 = arith.addf %765, %797 : vector<13x13xf32>
    %799 = vector.extract_strided_slice %73 {offsets = [1, 0], sizes = [13, 13], strides = [1, 1]} : vector<15x15xf32> to vector<13x13xf32>
    %c21 = arith.constant 21 : index
    %800 = memref.load %arg4[%c21] : memref<216xf32, #tpu.memory_space<smem>>
    %801 = vector.broadcast %800 : f32 to vector<13x13xf32>
    %802 = arith.mulf %801, %799 : vector<13x13xf32>
    %803 = arith.addf %770, %802 : vector<13x13xf32>
    %c48 = arith.constant 48 : index
    %804 = memref.load %arg4[%c48] : memref<216xf32, #tpu.memory_space<smem>>
    %805 = vector.broadcast %804 : f32 to vector<13x13xf32>
    %806 = arith.mulf %805, %799 : vector<13x13xf32>
    %807 = arith.addf %774, %806 : vector<13x13xf32>
    %c75 = arith.constant 75 : index
    %808 = memref.load %arg4[%c75] : memref<216xf32, #tpu.memory_space<smem>>
    %809 = vector.broadcast %808 : f32 to vector<13x13xf32>
    %810 = arith.mulf %809, %799 : vector<13x13xf32>
    %811 = arith.addf %778, %810 : vector<13x13xf32>
    %c102 = arith.constant 102 : index
    %812 = memref.load %arg4[%c102] : memref<216xf32, #tpu.memory_space<smem>>
    %813 = vector.broadcast %812 : f32 to vector<13x13xf32>
    %814 = arith.mulf %813, %799 : vector<13x13xf32>
    %815 = arith.addf %782, %814 : vector<13x13xf32>
    %c129 = arith.constant 129 : index
    %816 = memref.load %arg4[%c129] : memref<216xf32, #tpu.memory_space<smem>>
    %817 = vector.broadcast %816 : f32 to vector<13x13xf32>
    %818 = arith.mulf %817, %799 : vector<13x13xf32>
    %819 = arith.addf %786, %818 : vector<13x13xf32>
    %c156 = arith.constant 156 : index
    %820 = memref.load %arg4[%c156] : memref<216xf32, #tpu.memory_space<smem>>
    %821 = vector.broadcast %820 : f32 to vector<13x13xf32>
    %822 = arith.mulf %821, %799 : vector<13x13xf32>
    %823 = arith.addf %790, %822 : vector<13x13xf32>
    %c183 = arith.constant 183 : index
    %824 = memref.load %arg4[%c183] : memref<216xf32, #tpu.memory_space<smem>>
    %825 = vector.broadcast %824 : f32 to vector<13x13xf32>
    %826 = arith.mulf %825, %799 : vector<13x13xf32>
    %827 = arith.addf %794, %826 : vector<13x13xf32>
    %c210 = arith.constant 210 : index
    %828 = memref.load %arg4[%c210] : memref<216xf32, #tpu.memory_space<smem>>
    %829 = vector.broadcast %828 : f32 to vector<13x13xf32>
    %830 = arith.mulf %829, %799 : vector<13x13xf32>
    %831 = arith.addf %798, %830 : vector<13x13xf32>
    %832 = vector.extract_strided_slice %73 {offsets = [1, 1], sizes = [13, 13], strides = [1, 1]} : vector<15x15xf32> to vector<13x13xf32>
    %c22 = arith.constant 22 : index
    %833 = memref.load %arg4[%c22] : memref<216xf32, #tpu.memory_space<smem>>
    %834 = vector.broadcast %833 : f32 to vector<13x13xf32>
    %835 = arith.mulf %834, %832 : vector<13x13xf32>
    %836 = arith.addf %803, %835 : vector<13x13xf32>
    %c49 = arith.constant 49 : index
    %837 = memref.load %arg4[%c49] : memref<216xf32, #tpu.memory_space<smem>>
    %838 = vector.broadcast %837 : f32 to vector<13x13xf32>
    %839 = arith.mulf %838, %832 : vector<13x13xf32>
    %840 = arith.addf %807, %839 : vector<13x13xf32>
    %c76 = arith.constant 76 : index
    %841 = memref.load %arg4[%c76] : memref<216xf32, #tpu.memory_space<smem>>
    %842 = vector.broadcast %841 : f32 to vector<13x13xf32>
    %843 = arith.mulf %842, %832 : vector<13x13xf32>
    %844 = arith.addf %811, %843 : vector<13x13xf32>
    %c103 = arith.constant 103 : index
    %845 = memref.load %arg4[%c103] : memref<216xf32, #tpu.memory_space<smem>>
    %846 = vector.broadcast %845 : f32 to vector<13x13xf32>
    %847 = arith.mulf %846, %832 : vector<13x13xf32>
    %848 = arith.addf %815, %847 : vector<13x13xf32>
    %c130 = arith.constant 130 : index
    %849 = memref.load %arg4[%c130] : memref<216xf32, #tpu.memory_space<smem>>
    %850 = vector.broadcast %849 : f32 to vector<13x13xf32>
    %851 = arith.mulf %850, %832 : vector<13x13xf32>
    %852 = arith.addf %819, %851 : vector<13x13xf32>
    %c157 = arith.constant 157 : index
    %853 = memref.load %arg4[%c157] : memref<216xf32, #tpu.memory_space<smem>>
    %854 = vector.broadcast %853 : f32 to vector<13x13xf32>
    %855 = arith.mulf %854, %832 : vector<13x13xf32>
    %856 = arith.addf %823, %855 : vector<13x13xf32>
    %c184 = arith.constant 184 : index
    %857 = memref.load %arg4[%c184] : memref<216xf32, #tpu.memory_space<smem>>
    %858 = vector.broadcast %857 : f32 to vector<13x13xf32>
    %859 = arith.mulf %858, %832 : vector<13x13xf32>
    %860 = arith.addf %827, %859 : vector<13x13xf32>
    %c211 = arith.constant 211 : index
    %861 = memref.load %arg4[%c211] : memref<216xf32, #tpu.memory_space<smem>>
    %862 = vector.broadcast %861 : f32 to vector<13x13xf32>
    %863 = arith.mulf %862, %832 : vector<13x13xf32>
    %864 = arith.addf %831, %863 : vector<13x13xf32>
    %865 = vector.extract_strided_slice %73 {offsets = [1, 2], sizes = [13, 13], strides = [1, 1]} : vector<15x15xf32> to vector<13x13xf32>
    %c23 = arith.constant 23 : index
    %866 = memref.load %arg4[%c23] : memref<216xf32, #tpu.memory_space<smem>>
    %867 = vector.broadcast %866 : f32 to vector<13x13xf32>
    %868 = arith.mulf %867, %865 : vector<13x13xf32>
    %869 = arith.addf %836, %868 : vector<13x13xf32>
    %c50 = arith.constant 50 : index
    %870 = memref.load %arg4[%c50] : memref<216xf32, #tpu.memory_space<smem>>
    %871 = vector.broadcast %870 : f32 to vector<13x13xf32>
    %872 = arith.mulf %871, %865 : vector<13x13xf32>
    %873 = arith.addf %840, %872 : vector<13x13xf32>
    %c77 = arith.constant 77 : index
    %874 = memref.load %arg4[%c77] : memref<216xf32, #tpu.memory_space<smem>>
    %875 = vector.broadcast %874 : f32 to vector<13x13xf32>
    %876 = arith.mulf %875, %865 : vector<13x13xf32>
    %877 = arith.addf %844, %876 : vector<13x13xf32>
    %c104 = arith.constant 104 : index
    %878 = memref.load %arg4[%c104] : memref<216xf32, #tpu.memory_space<smem>>
    %879 = vector.broadcast %878 : f32 to vector<13x13xf32>
    %880 = arith.mulf %879, %865 : vector<13x13xf32>
    %881 = arith.addf %848, %880 : vector<13x13xf32>
    %c131 = arith.constant 131 : index
    %882 = memref.load %arg4[%c131] : memref<216xf32, #tpu.memory_space<smem>>
    %883 = vector.broadcast %882 : f32 to vector<13x13xf32>
    %884 = arith.mulf %883, %865 : vector<13x13xf32>
    %885 = arith.addf %852, %884 : vector<13x13xf32>
    %c158 = arith.constant 158 : index
    %886 = memref.load %arg4[%c158] : memref<216xf32, #tpu.memory_space<smem>>
    %887 = vector.broadcast %886 : f32 to vector<13x13xf32>
    %888 = arith.mulf %887, %865 : vector<13x13xf32>
    %889 = arith.addf %856, %888 : vector<13x13xf32>
    %c185 = arith.constant 185 : index
    %890 = memref.load %arg4[%c185] : memref<216xf32, #tpu.memory_space<smem>>
    %891 = vector.broadcast %890 : f32 to vector<13x13xf32>
    %892 = arith.mulf %891, %865 : vector<13x13xf32>
    %893 = arith.addf %860, %892 : vector<13x13xf32>
    %c212 = arith.constant 212 : index
    %894 = memref.load %arg4[%c212] : memref<216xf32, #tpu.memory_space<smem>>
    %895 = vector.broadcast %894 : f32 to vector<13x13xf32>
    %896 = arith.mulf %895, %865 : vector<13x13xf32>
    %897 = arith.addf %864, %896 : vector<13x13xf32>
    %898 = vector.extract_strided_slice %73 {offsets = [2, 0], sizes = [13, 13], strides = [1, 1]} : vector<15x15xf32> to vector<13x13xf32>
    %c24 = arith.constant 24 : index
    %899 = memref.load %arg4[%c24] : memref<216xf32, #tpu.memory_space<smem>>
    %900 = vector.broadcast %899 : f32 to vector<13x13xf32>
    %901 = arith.mulf %900, %898 : vector<13x13xf32>
    %902 = arith.addf %869, %901 : vector<13x13xf32>
    %c51 = arith.constant 51 : index
    %903 = memref.load %arg4[%c51] : memref<216xf32, #tpu.memory_space<smem>>
    %904 = vector.broadcast %903 : f32 to vector<13x13xf32>
    %905 = arith.mulf %904, %898 : vector<13x13xf32>
    %906 = arith.addf %873, %905 : vector<13x13xf32>
    %c78 = arith.constant 78 : index
    %907 = memref.load %arg4[%c78] : memref<216xf32, #tpu.memory_space<smem>>
    %908 = vector.broadcast %907 : f32 to vector<13x13xf32>
    %909 = arith.mulf %908, %898 : vector<13x13xf32>
    %910 = arith.addf %877, %909 : vector<13x13xf32>
    %c105 = arith.constant 105 : index
    %911 = memref.load %arg4[%c105] : memref<216xf32, #tpu.memory_space<smem>>
    %912 = vector.broadcast %911 : f32 to vector<13x13xf32>
    %913 = arith.mulf %912, %898 : vector<13x13xf32>
    %914 = arith.addf %881, %913 : vector<13x13xf32>
    %c132 = arith.constant 132 : index
    %915 = memref.load %arg4[%c132] : memref<216xf32, #tpu.memory_space<smem>>
    %916 = vector.broadcast %915 : f32 to vector<13x13xf32>
    %917 = arith.mulf %916, %898 : vector<13x13xf32>
    %918 = arith.addf %885, %917 : vector<13x13xf32>
    %c159 = arith.constant 159 : index
    %919 = memref.load %arg4[%c159] : memref<216xf32, #tpu.memory_space<smem>>
    %920 = vector.broadcast %919 : f32 to vector<13x13xf32>
    %921 = arith.mulf %920, %898 : vector<13x13xf32>
    %922 = arith.addf %889, %921 : vector<13x13xf32>
    %c186 = arith.constant 186 : index
    %923 = memref.load %arg4[%c186] : memref<216xf32, #tpu.memory_space<smem>>
    %924 = vector.broadcast %923 : f32 to vector<13x13xf32>
    %925 = arith.mulf %924, %898 : vector<13x13xf32>
    %926 = arith.addf %893, %925 : vector<13x13xf32>
    %c213 = arith.constant 213 : index
    %927 = memref.load %arg4[%c213] : memref<216xf32, #tpu.memory_space<smem>>
    %928 = vector.broadcast %927 : f32 to vector<13x13xf32>
    %929 = arith.mulf %928, %898 : vector<13x13xf32>
    %930 = arith.addf %897, %929 : vector<13x13xf32>
    %931 = vector.extract_strided_slice %73 {offsets = [2, 1], sizes = [13, 13], strides = [1, 1]} : vector<15x15xf32> to vector<13x13xf32>
    %c25 = arith.constant 25 : index
    %932 = memref.load %arg4[%c25] : memref<216xf32, #tpu.memory_space<smem>>
    %933 = vector.broadcast %932 : f32 to vector<13x13xf32>
    %934 = arith.mulf %933, %931 : vector<13x13xf32>
    %935 = arith.addf %902, %934 : vector<13x13xf32>
    %c52 = arith.constant 52 : index
    %936 = memref.load %arg4[%c52] : memref<216xf32, #tpu.memory_space<smem>>
    %937 = vector.broadcast %936 : f32 to vector<13x13xf32>
    %938 = arith.mulf %937, %931 : vector<13x13xf32>
    %939 = arith.addf %906, %938 : vector<13x13xf32>
    %c79 = arith.constant 79 : index
    %940 = memref.load %arg4[%c79] : memref<216xf32, #tpu.memory_space<smem>>
    %941 = vector.broadcast %940 : f32 to vector<13x13xf32>
    %942 = arith.mulf %941, %931 : vector<13x13xf32>
    %943 = arith.addf %910, %942 : vector<13x13xf32>
    %c106 = arith.constant 106 : index
    %944 = memref.load %arg4[%c106] : memref<216xf32, #tpu.memory_space<smem>>
    %945 = vector.broadcast %944 : f32 to vector<13x13xf32>
    %946 = arith.mulf %945, %931 : vector<13x13xf32>
    %947 = arith.addf %914, %946 : vector<13x13xf32>
    %c133 = arith.constant 133 : index
    %948 = memref.load %arg4[%c133] : memref<216xf32, #tpu.memory_space<smem>>
    %949 = vector.broadcast %948 : f32 to vector<13x13xf32>
    %950 = arith.mulf %949, %931 : vector<13x13xf32>
    %951 = arith.addf %918, %950 : vector<13x13xf32>
    %c160 = arith.constant 160 : index
    %952 = memref.load %arg4[%c160] : memref<216xf32, #tpu.memory_space<smem>>
    %953 = vector.broadcast %952 : f32 to vector<13x13xf32>
    %954 = arith.mulf %953, %931 : vector<13x13xf32>
    %955 = arith.addf %922, %954 : vector<13x13xf32>
    %c187 = arith.constant 187 : index
    %956 = memref.load %arg4[%c187] : memref<216xf32, #tpu.memory_space<smem>>
    %957 = vector.broadcast %956 : f32 to vector<13x13xf32>
    %958 = arith.mulf %957, %931 : vector<13x13xf32>
    %959 = arith.addf %926, %958 : vector<13x13xf32>
    %c214 = arith.constant 214 : index
    %960 = memref.load %arg4[%c214] : memref<216xf32, #tpu.memory_space<smem>>
    %961 = vector.broadcast %960 : f32 to vector<13x13xf32>
    %962 = arith.mulf %961, %931 : vector<13x13xf32>
    %963 = arith.addf %930, %962 : vector<13x13xf32>
    %964 = vector.extract_strided_slice %73 {offsets = [2, 2], sizes = [13, 13], strides = [1, 1]} : vector<15x15xf32> to vector<13x13xf32>
    %c26 = arith.constant 26 : index
    %965 = memref.load %arg4[%c26] : memref<216xf32, #tpu.memory_space<smem>>
    %966 = vector.broadcast %965 : f32 to vector<13x13xf32>
    %967 = arith.mulf %966, %964 : vector<13x13xf32>
    %968 = arith.addf %935, %967 : vector<13x13xf32>
    %c53 = arith.constant 53 : index
    %969 = memref.load %arg4[%c53] : memref<216xf32, #tpu.memory_space<smem>>
    %970 = vector.broadcast %969 : f32 to vector<13x13xf32>
    %971 = arith.mulf %970, %964 : vector<13x13xf32>
    %972 = arith.addf %939, %971 : vector<13x13xf32>
    %c80 = arith.constant 80 : index
    %973 = memref.load %arg4[%c80] : memref<216xf32, #tpu.memory_space<smem>>
    %974 = vector.broadcast %973 : f32 to vector<13x13xf32>
    %975 = arith.mulf %974, %964 : vector<13x13xf32>
    %976 = arith.addf %943, %975 : vector<13x13xf32>
    %c107 = arith.constant 107 : index
    %977 = memref.load %arg4[%c107] : memref<216xf32, #tpu.memory_space<smem>>
    %978 = vector.broadcast %977 : f32 to vector<13x13xf32>
    %979 = arith.mulf %978, %964 : vector<13x13xf32>
    %980 = arith.addf %947, %979 : vector<13x13xf32>
    %c134 = arith.constant 134 : index
    %981 = memref.load %arg4[%c134] : memref<216xf32, #tpu.memory_space<smem>>
    %982 = vector.broadcast %981 : f32 to vector<13x13xf32>
    %983 = arith.mulf %982, %964 : vector<13x13xf32>
    %984 = arith.addf %951, %983 : vector<13x13xf32>
    %c161 = arith.constant 161 : index
    %985 = memref.load %arg4[%c161] : memref<216xf32, #tpu.memory_space<smem>>
    %986 = vector.broadcast %985 : f32 to vector<13x13xf32>
    %987 = arith.mulf %986, %964 : vector<13x13xf32>
    %988 = arith.addf %955, %987 : vector<13x13xf32>
    %c188 = arith.constant 188 : index
    %989 = memref.load %arg4[%c188] : memref<216xf32, #tpu.memory_space<smem>>
    %990 = vector.broadcast %989 : f32 to vector<13x13xf32>
    %991 = arith.mulf %990, %964 : vector<13x13xf32>
    %992 = arith.addf %959, %991 : vector<13x13xf32>
    %c215 = arith.constant 215 : index
    %993 = memref.load %arg4[%c215] : memref<216xf32, #tpu.memory_space<smem>>
    %994 = vector.broadcast %993 : f32 to vector<13x13xf32>
    %995 = arith.mulf %994, %964 : vector<13x13xf32>
    %996 = arith.addf %963, %995 : vector<13x13xf32>
    %cst_37 = arith.constant 0.000000e+00 : f32
    %997 = vector.broadcast %cst_37 : f32 to vector<1x1xf32>
    %c0_38 = arith.constant 0 : index
    %998 = memref.load %arg7[%c0_38] : memref<1xf32, #tpu.memory_space<smem>>
    %999 = vector.broadcast %998 : f32 to vector<1x1xf32>
    %1000 = arith.addf %997, %999 : vector<1x1xf32>
    %cst_39 = arith.constant 0.000000e+00 : f32
    %1001 = vector.broadcast %cst_39 : f32 to vector<13x13xf32>
    %1002 = arith.maximumf %968, %1001 : vector<13x13xf32>
    %1003 = vector.shape_cast %1002 : vector<13x13xf32> to vector<1x13x13xf32>
    %cst_40 = arith.constant dense<0.000000e+00> : vector<1xf32>
    %1004 = vector.multi_reduction <add>, %1003, %cst_40 [1, 2] : vector<1x13x13xf32> to vector<1xf32>
    %1005 = vector.shape_cast %1004 : vector<1xf32> to vector<1x1x1xf32>
    %1006 = vector.extract %1005[0, 0, 0] : f32 from vector<1x1x1xf32>
    %1007 = vector.broadcast %1006 : f32 to vector<1x1xf32>
    %cst_41 = arith.constant 5.917160e-03 : f32
    %1008 = vector.broadcast %cst_41 : f32 to vector<1x1xf32>
    %1009 = arith.mulf %1007, %1008 : vector<1x1xf32>
    %c0_42 = arith.constant 0 : index
    %1010 = memref.load %arg6[%c0_42] : memref<8xf32, #tpu.memory_space<smem>>
    %1011 = vector.broadcast %1010 : f32 to vector<1x1xf32>
    %1012 = arith.mulf %1011, %1009 : vector<1x1xf32>
    %1013 = arith.addf %1000, %1012 : vector<1x1xf32>
    %cst_43 = arith.constant 0.000000e+00 : f32
    %1014 = vector.broadcast %cst_43 : f32 to vector<13x13xf32>
    %1015 = arith.maximumf %972, %1014 : vector<13x13xf32>
    %1016 = vector.shape_cast %1015 : vector<13x13xf32> to vector<1x13x13xf32>
    %cst_44 = arith.constant dense<0.000000e+00> : vector<1xf32>
    %1017 = vector.multi_reduction <add>, %1016, %cst_44 [1, 2] : vector<1x13x13xf32> to vector<1xf32>
    %1018 = vector.shape_cast %1017 : vector<1xf32> to vector<1x1x1xf32>
    %1019 = vector.extract %1018[0, 0, 0] : f32 from vector<1x1x1xf32>
    %1020 = vector.broadcast %1019 : f32 to vector<1x1xf32>
    %cst_45 = arith.constant 5.917160e-03 : f32
    %1021 = vector.broadcast %cst_45 : f32 to vector<1x1xf32>
    %1022 = arith.mulf %1020, %1021 : vector<1x1xf32>
    %c1_46 = arith.constant 1 : index
    %1023 = memref.load %arg6[%c1_46] : memref<8xf32, #tpu.memory_space<smem>>
    %1024 = vector.broadcast %1023 : f32 to vector<1x1xf32>
    %1025 = arith.mulf %1024, %1022 : vector<1x1xf32>
    %1026 = arith.addf %1013, %1025 : vector<1x1xf32>
    %cst_47 = arith.constant 0.000000e+00 : f32
    %1027 = vector.broadcast %cst_47 : f32 to vector<13x13xf32>
    %1028 = arith.maximumf %976, %1027 : vector<13x13xf32>
    %1029 = vector.shape_cast %1028 : vector<13x13xf32> to vector<1x13x13xf32>
    %cst_48 = arith.constant dense<0.000000e+00> : vector<1xf32>
    %1030 = vector.multi_reduction <add>, %1029, %cst_48 [1, 2] : vector<1x13x13xf32> to vector<1xf32>
    %1031 = vector.shape_cast %1030 : vector<1xf32> to vector<1x1x1xf32>
    %1032 = vector.extract %1031[0, 0, 0] : f32 from vector<1x1x1xf32>
    %1033 = vector.broadcast %1032 : f32 to vector<1x1xf32>
    %cst_49 = arith.constant 5.917160e-03 : f32
    %1034 = vector.broadcast %cst_49 : f32 to vector<1x1xf32>
    %1035 = arith.mulf %1033, %1034 : vector<1x1xf32>
    %c2_50 = arith.constant 2 : index
    %1036 = memref.load %arg6[%c2_50] : memref<8xf32, #tpu.memory_space<smem>>
    %1037 = vector.broadcast %1036 : f32 to vector<1x1xf32>
    %1038 = arith.mulf %1037, %1035 : vector<1x1xf32>
    %1039 = arith.addf %1026, %1038 : vector<1x1xf32>
    %cst_51 = arith.constant 0.000000e+00 : f32
    %1040 = vector.broadcast %cst_51 : f32 to vector<13x13xf32>
    %1041 = arith.maximumf %980, %1040 : vector<13x13xf32>
    %1042 = vector.shape_cast %1041 : vector<13x13xf32> to vector<1x13x13xf32>
    %cst_52 = arith.constant dense<0.000000e+00> : vector<1xf32>
    %1043 = vector.multi_reduction <add>, %1042, %cst_52 [1, 2] : vector<1x13x13xf32> to vector<1xf32>
    %1044 = vector.shape_cast %1043 : vector<1xf32> to vector<1x1x1xf32>
    %1045 = vector.extract %1044[0, 0, 0] : f32 from vector<1x1x1xf32>
    %1046 = vector.broadcast %1045 : f32 to vector<1x1xf32>
    %cst_53 = arith.constant 5.917160e-03 : f32
    %1047 = vector.broadcast %cst_53 : f32 to vector<1x1xf32>
    %1048 = arith.mulf %1046, %1047 : vector<1x1xf32>
    %c3_54 = arith.constant 3 : index
    %1049 = memref.load %arg6[%c3_54] : memref<8xf32, #tpu.memory_space<smem>>
    %1050 = vector.broadcast %1049 : f32 to vector<1x1xf32>
    %1051 = arith.mulf %1050, %1048 : vector<1x1xf32>
    %1052 = arith.addf %1039, %1051 : vector<1x1xf32>
    %cst_55 = arith.constant 0.000000e+00 : f32
    %1053 = vector.broadcast %cst_55 : f32 to vector<13x13xf32>
    %1054 = arith.maximumf %984, %1053 : vector<13x13xf32>
    %1055 = vector.shape_cast %1054 : vector<13x13xf32> to vector<1x13x13xf32>
    %cst_56 = arith.constant dense<0.000000e+00> : vector<1xf32>
    %1056 = vector.multi_reduction <add>, %1055, %cst_56 [1, 2] : vector<1x13x13xf32> to vector<1xf32>
    %1057 = vector.shape_cast %1056 : vector<1xf32> to vector<1x1x1xf32>
    %1058 = vector.extract %1057[0, 0, 0] : f32 from vector<1x1x1xf32>
    %1059 = vector.broadcast %1058 : f32 to vector<1x1xf32>
    %cst_57 = arith.constant 5.917160e-03 : f32
    %1060 = vector.broadcast %cst_57 : f32 to vector<1x1xf32>
    %1061 = arith.mulf %1059, %1060 : vector<1x1xf32>
    %c4_58 = arith.constant 4 : index
    %1062 = memref.load %arg6[%c4_58] : memref<8xf32, #tpu.memory_space<smem>>
    %1063 = vector.broadcast %1062 : f32 to vector<1x1xf32>
    %1064 = arith.mulf %1063, %1061 : vector<1x1xf32>
    %1065 = arith.addf %1052, %1064 : vector<1x1xf32>
    %cst_59 = arith.constant 0.000000e+00 : f32
    %1066 = vector.broadcast %cst_59 : f32 to vector<13x13xf32>
    %1067 = arith.maximumf %988, %1066 : vector<13x13xf32>
    %1068 = vector.shape_cast %1067 : vector<13x13xf32> to vector<1x13x13xf32>
    %cst_60 = arith.constant dense<0.000000e+00> : vector<1xf32>
    %1069 = vector.multi_reduction <add>, %1068, %cst_60 [1, 2] : vector<1x13x13xf32> to vector<1xf32>
    %1070 = vector.shape_cast %1069 : vector<1xf32> to vector<1x1x1xf32>
    %1071 = vector.extract %1070[0, 0, 0] : f32 from vector<1x1x1xf32>
    %1072 = vector.broadcast %1071 : f32 to vector<1x1xf32>
    %cst_61 = arith.constant 5.917160e-03 : f32
    %1073 = vector.broadcast %cst_61 : f32 to vector<1x1xf32>
    %1074 = arith.mulf %1072, %1073 : vector<1x1xf32>
    %c5_62 = arith.constant 5 : index
    %1075 = memref.load %arg6[%c5_62] : memref<8xf32, #tpu.memory_space<smem>>
    %1076 = vector.broadcast %1075 : f32 to vector<1x1xf32>
    %1077 = arith.mulf %1076, %1074 : vector<1x1xf32>
    %1078 = arith.addf %1065, %1077 : vector<1x1xf32>
    %cst_63 = arith.constant 0.000000e+00 : f32
    %1079 = vector.broadcast %cst_63 : f32 to vector<13x13xf32>
    %1080 = arith.maximumf %992, %1079 : vector<13x13xf32>
    %1081 = vector.shape_cast %1080 : vector<13x13xf32> to vector<1x13x13xf32>
    %cst_64 = arith.constant dense<0.000000e+00> : vector<1xf32>
    %1082 = vector.multi_reduction <add>, %1081, %cst_64 [1, 2] : vector<1x13x13xf32> to vector<1xf32>
    %1083 = vector.shape_cast %1082 : vector<1xf32> to vector<1x1x1xf32>
    %1084 = vector.extract %1083[0, 0, 0] : f32 from vector<1x1x1xf32>
    %1085 = vector.broadcast %1084 : f32 to vector<1x1xf32>
    %cst_65 = arith.constant 5.917160e-03 : f32
    %1086 = vector.broadcast %cst_65 : f32 to vector<1x1xf32>
    %1087 = arith.mulf %1085, %1086 : vector<1x1xf32>
    %c6_66 = arith.constant 6 : index
    %1088 = memref.load %arg6[%c6_66] : memref<8xf32, #tpu.memory_space<smem>>
    %1089 = vector.broadcast %1088 : f32 to vector<1x1xf32>
    %1090 = arith.mulf %1089, %1087 : vector<1x1xf32>
    %1091 = arith.addf %1078, %1090 : vector<1x1xf32>
    %cst_67 = arith.constant 0.000000e+00 : f32
    %1092 = vector.broadcast %cst_67 : f32 to vector<13x13xf32>
    %1093 = arith.maximumf %996, %1092 : vector<13x13xf32>
    %1094 = vector.shape_cast %1093 : vector<13x13xf32> to vector<1x13x13xf32>
    %cst_68 = arith.constant dense<0.000000e+00> : vector<1xf32>
    %1095 = vector.multi_reduction <add>, %1094, %cst_68 [1, 2] : vector<1x13x13xf32> to vector<1xf32>
    %1096 = vector.shape_cast %1095 : vector<1xf32> to vector<1x1x1xf32>
    %1097 = vector.extract %1096[0, 0, 0] : f32 from vector<1x1x1xf32>
    %1098 = vector.broadcast %1097 : f32 to vector<1x1xf32>
    %cst_69 = arith.constant 5.917160e-03 : f32
    %1099 = vector.broadcast %cst_69 : f32 to vector<1x1xf32>
    %1100 = arith.mulf %1098, %1099 : vector<1x1xf32>
    %c7_70 = arith.constant 7 : index
    %1101 = memref.load %arg6[%c7_70] : memref<8xf32, #tpu.memory_space<smem>>
    %1102 = vector.broadcast %1101 : f32 to vector<1x1xf32>
    %1103 = arith.mulf %1102, %1100 : vector<1x1xf32>
    %1104 = arith.addf %1091, %1103 : vector<1x1xf32>
    %c0_71 = arith.constant 0 : index
    %c0_72 = arith.constant 0 : index
    %c0_73 = arith.constant 0 : index
    %1105 = vector.load %arg8[%c0_71, %c0_72, %c0_73] : memref<1x1x1xf32, #tpu.memory_space<vmem>>, vector<1x1x1xf32>
    %1106 = vector.shape_cast %1105 : vector<1x1x1xf32> to vector<1x1xf32>
    %1107 = vector.shape_cast %1104 : vector<1x1xf32> to vector<1x1x1xf32>
    tpu.vector_store %arg8[%c0_71, %c0_72, %c0_73], %1107 {strides = array<i32>} : memref<1x1x1xf32, #tpu.memory_space<vmem>>, vector<1x1x1xf32>,
    return
  }
  func.func @transform_0(%arg0: i32) -> (i32, i32, i32, i32) {
    %c0_i32 = arith.constant 0 : i32
    %c0_i32_0 = arith.constant 0 : i32
    %c0_i32_1 = arith.constant 0 : i32
    %c0_i32_2 = arith.constant 0 : i32
    return %arg0, %c0_i32, %c0_i32_0, %c0_i32_1 : i32, i32, i32, i32
  }
  func.func @transform_1(%arg0: i32) -> i32 {
    %c0_i32 = arith.constant 0 : i32
    %c0_i32_0 = arith.constant 0 : i32
    return %c0_i32 : i32
  }
  func.func @transform_2(%arg0: i32) -> i32 {
    %c0_i32 = arith.constant 0 : i32
    %c0_i32_0 = arith.constant 0 : i32
    return %c0_i32 : i32
  }
  func.func @transform_3(%arg0: i32) -> i32 {
    %c0_i32 = arith.constant 0 : i32
    %c0_i32_0 = arith.constant 0 : i32
    return %c0_i32 : i32
  }
  func.func @transform_4(%arg0: i32) -> i32 {
    %c0_i32 = arith.constant 0 : i32
    %c0_i32_0 = arith.constant 0 : i32
    return %c0_i32 : i32
  }
  func.func @transform_5(%arg0: i32) -> i32 {
    %c0_i32 = arith.constant 0 : i32
    %c0_i32_0 = arith.constant 0 : i32
    return %c0_i32 : i32
  }
  func.func @transform_6(%arg0: i32) -> i32 {
    %c0_i32 = arith.constant 0 : i32
    %c0_i32_0 = arith.constant 0 : i32
    return %c0_i32 : i32
  }
  func.func @transform_7(%arg0: i32) -> (i32, i32, i32) {
    %c0_i32 = arith.constant 0 : i32
    %c0_i32_0 = arith.constant 0 : i32
    %c0_i32_1 = arith.constant 0 : i32
    return %arg0, %c0_i32, %c0_i32_0 : i32, i32, i32
  }
}

</mosaic_0001>

<bundles_post_ra>
// kernel: convolutional_net_forward.1
= control target key start
LH: loop header
LB: loop body
LE: loop exit
PB: predicated region body
PF: predicated region fallthrough
CT: control target
= control target key end

     0   :  { %s7689_s0 = inlined_call_operand.vmem [shape: f32[2,1,16,16], index: 0, kind: input, shape index: {}]   ;;  %s7690_s1 = inlined_call_operand.vmem [shape: f32[12], index: 1, kind: input, shape index: {}]   ;;  %s7691_s2 = inlined_call_operand.vmem [shape: f32[3], index: 2, kind: input, shape index: {}]   ;;  %s7692_s3 = inlined_call_operand.vmem [shape: f32[216], index: 3, kind: input, shape index: {}]   ;;  %s7693_s4 = inlined_call_operand.vmem [shape: f32[8], index: 4, kind: input, shape index: {}]   ;;  %s7694_s5 = inlined_call_operand.vmem [shape: f32[8], index: 5, kind: input, shape index: {}]   ;;  %s7695_s6 = inlined_call_operand.<no memory space> [shape: f32[1], index: 6, kind: input, shape index: {}]   ;;  %s7696_s7 = inlined_call_operand.vmem [shape: f32[2,1,1], index: 7, kind: output, shape index: {}]  }
   0x1   :  { %7754 = sst [smem:[#allocation216_spill]] %s7689_s0 }
   0x2   :  { %7755 = sst [smem:[#allocation217_spill]] %s7690_s1 }
   0x3   :  { %7756 = sst [smem:[#allocation218_spill]] %s7691_s2 }
   0x4   :  { %7757 = sst [smem:[#allocation219_spill]] %s7692_s3 }
   0x5   :  { %7758 = sst [smem:[#allocation220_spill]] %s7693_s4 }
   0x6   :  { %7759 = sst [smem:[#allocation221_spill]] %s7694_s5 }
   0x7   :  { %7760 = sst [smem:[#allocation222_spill]] %s7696_s7 }
   0x8   :  { %12 = sst [smem:[#allocation2]] %s7695_s6 }
   0x9   :  { %13 = vsyncpa [#allocation4], 0 }
   0xa   :  { %14 = vsyncpa [#allocation6], 0 }
   0xb   :  { %15 = vsyncpa [#allocation9], 0  ;;  %s4349_s26 = smov 0  }
   0xc LB: > { %7761 = sst [smem:[#allocation14_spill]] %s4297_s26  ;;  %s4358_s30 = sadd.s32 4294967295, %s4297_s26   ;;  %s4297_s26 = sphi %s4349_s26, %s21_s26  }
   0xd   : > { %s7762_s2 = sld [smem:[#allocation218_spill]]  ;;  %p3865_p0 = scmp.ge.s32.totalorder %s4297_s26, 1 }
   0xe   : > { %p204_p1 = scmp.lt.s32.totalorder %s4297_s26, 3  ;;  %p7697_p2 = scmp.eq.s32.totalorder %s4358_s30, 0 }
   0xf   : > { %s7764_s4 = sld [smem:[#allocation220_spill]] }
  0x10   : > { %p4363_p3 = pnand %p3865_p0, %p204_p1  ;;  %s7765_s1 = sld [smem:[#allocation217_spill]] }
  0x11   : > { %s7767_s3 = sld [smem:[#allocation219_spill]] }
  0x12   : > { %p4161_p4 = pneg %p4363_p3  ;;  %s7768_s5 = sld [smem:[#allocation221_spill]] }
  0x13   : > { %s228_s29 = sshll.u32 %s7762_s2, 4  ;;  %s229_s29 = int_to_ptr.vmem [resolvable:$true] %s228_s29 }
  0x14   : > { %p4381_p5 = pnand %p7697_p2, %p4161_p4  ;;  %s4204_s21 = scalar_lea.vmem %s229_s29, 16 }
  0x15   : > { %s250_s10 = sshll.u32 %s7764_s4, 4  ;;  %p4205_p6 = scmp.ne.s32.totalorder %s229_s29, %s4204_s21  ;;  %s4370_s10 = int_to_ptr.vmem [resolvable:$true] %s250_s10 }
  0x16   : > { %s217_s13 = sshll.u32 %s7765_s1, 4  ;;  %p4395_p7 = pneg %p4381_p5  ;;  %s4377_s13 = int_to_ptr.vmem [resolvable:$true] %s217_s13 }
  0x17   : > { %s239_s17 = sshll.u32 %s7767_s3, 4  ;;  %p4212_p10 = scmp.lt.s32.totalorder %s229_s29, %s229_s29  ;;  %s4388_s17 = int_to_ptr.vmem [resolvable:$true] %s239_s17 }
  0x18   : > { %s261_s20 = sshll.u32 %s7768_s5, 4  ;;  %p4207_p8 = pnand %p4395_p7, %p4205_p6  ;;  %s262_s20 = int_to_ptr.vmem [resolvable:$true] %s261_s20 }
  0x19   : > { %p4213_p11 = scmp.lt.s32.totalorder %s4204_s21, %s4204_s21 }
  0x1a   : > { %p4208_p9 = pneg %p4207_p8 }
  0x1b   : > { %p4214_p12 = por %p4213_p11, %p4212_p10 }
  0x1d   : > { %p4215_p13 = pnand %p4214_p12, %p4208_p9 }
  0x1f   : > { %4218 = shalt.err (!%p4215_p13)
}
  0x20   : > { %s4299_s23 = smov [#allocation5]   ;;  %s4219_s24 = scalar_lea.vmem %s4370_s10, 16 }
  0x21   : > { %4167 = dma.vmem_to_smem (!%p4381_p5), %s229_s29, 16, %s4299_s23, [#allocation6]  }
  0x22   : > { %p4220_p0 = scmp.ne.s32.totalorder %s4370_s10, %s4219_s24  ;;  %p4227_p6 = scmp.lt.s32.totalorder %s4370_s10, %s4370_s10 }
  0x23   : > { %p4228_p8 = scmp.lt.s32.totalorder %s4219_s24, %s4219_s24 }
  0x24   : > { %p4222_p1 = pnand %p4220_p0, %p4395_p7 }
  0x25   : > { %p4229_p2 = por %p4228_p8, %p4227_p6 }
  0x26   : > { %p4223_p4 = pneg %p4222_p1 }
  0x28   : > { %p4230_p10 = pnand %p4229_p2, %p4223_p4 }
  0x2a   : > { %4233 = shalt.err (!%p4230_p10)
}
  0x2b   : > { %s4300_s25 = smov [#allocation8]   ;;  %s4234_s27 = scalar_lea.vmem %s4377_s13, 16 }
  0x2c   : > { %4173 = dma.vmem_to_smem (!%p4381_p5), %s4370_s10, 16, %s4300_s25, [#allocation9]  }
  0x2d   : > { %p4235_p9 = scmp.ne.s32.totalorder %s4377_s13, %s4234_s27  ;;  %p4242_p13 = scmp.lt.s32.totalorder %s4377_s13, %s4377_s13 }
  0x2e   : > { %p4243_p0 = scmp.lt.s32.totalorder %s4234_s27, %s4234_s27 }
  0x2f   : > { %p4237_p11 = pnand %p4235_p9, %p4395_p7 }
  0x30   : > { %p4244_p1 = por %p4243_p0, %p4242_p13 }
  0x31   : > { %p4238_p12 = pneg %p4237_p11 }
  0x33   : > { %p4245_p2 = pnand %p4244_p1, %p4238_p12 }
  0x35   : > { %4248 = shalt.err (!%p4245_p2)
}
  0x36   : > { %s4301_s28 = smov [#allocation3]   ;;  %s4249_s29 = scalar_lea.vmem %s4388_s17, 32 }
  0x37   : > { %4164 = dma.vmem_to_smem (!%p4381_p5), %s4377_s13, 16, %s4301_s28, [#allocation4]  }
  0x38   : > { %p4250_p4 = scmp.ne.s32.totalorder %s4388_s17, %s4249_s29  ;;  %p4257_p10 = scmp.lt.s32.totalorder %s4388_s17, %s4388_s17 }
  0x39   : > { %p4258_p9 = scmp.lt.s32.totalorder %s4249_s29, %s4249_s29 }
  0x3a   : > { %p4252_p6 = pnand %p4250_p4, %p4395_p7 }
  0x3b   : > { %p4259_p11 = por %p4258_p9, %p4257_p10 }
  0x3c   : > { %p4253_p8 = pneg %p4252_p6 }
  0x3e   : > { %p4260_p12 = pnand %p4259_p11, %p4253_p8 }
  0x40   : > { %4263 = shalt.err (!%p4260_p12)
}
  0x41   : > { %s4302_s8 = smov [#allocation7]   ;;  %s4264_s11 = scalar_lea.vmem %s262_s20, 16 }
  0x42   : > { %4170 = dma.vmem_to_smem (!%p4381_p5), %s4388_s17, 32, %s4302_s8, [#allocation6]  }
  0x43   : > { %p4265_p13 = scmp.ne.s32.totalorder %s262_s20, %s4264_s11  ;;  %p4272_p2 = scmp.lt.s32.totalorder %s262_s20, %s262_s20 }
  0x44   : > { %p4273_p4 = scmp.lt.s32.totalorder %s4264_s11, %s4264_s11 }
  0x45   : > { %p4267_p0 = pnand %p4265_p13, %p4395_p7 }
  0x46   : > { %p4274_p6 = por %p4273_p4, %p4272_p2 }
  0x47   : > { %p4268_p1 = pneg %p4267_p0 }
  0x49   : > { %p4275_p8 = pnand %p4274_p6, %p4268_p1 }
  0x4b   : > { %4278 = shalt.err (!%p4275_p8)
}
  0x4c   : > { %s4303_s12 = smov [#allocation10]   ;;  %285 = sbr.rel (%p4363_p3) target bundleno = 1162 (0x48a), region = 48 }
  0x4d   : > { %4176 = dma.vmem_to_smem (!%p4381_p5), %s262_s20, 16, %s4303_s12, [#allocation9]  }
  0x51   : > { %p7770_p10 = scmp.eq.s32.totalorder %s4358_s30, 0 }
  0x53   : > { %4284 = dma.done.wait (%p7770_p10), [#allocation4], 16   ;;  %p7771_p9 = pmov %p7770_p10 }
  0x55   : > { %4286 = vsyncadd (%p7771_p9), [#allocation4], 4294967280  ;;  %p7772_p7 = pmov %p7771_p9 }
  0x57   : > { %4288 = dma.done.wait (%p7772_p7), [#allocation6], 48   ;;  %p7773_p11 = pmov %p7772_p7 }
  0x58   : > { %p7774_p12 = pmov %p7772_p7 }
  0x59   : > { %4290 = vsyncadd (%p7773_p11), [#allocation6], 4294967248 }
  0x5a   : > { %4292 = dma.done.wait (%p7774_p12), [#allocation9], 32   ;;  %p7775_p5 = pmov %p7772_p7 }
  0x5c   : > { %4294 = vsyncadd (%p7775_p5), [#allocation9], 4294967264 }
  0x5d   : > { %307 = sfence }
  0x5e   : > { %p332_p3 = scmp.lt.s32.totalorder %s4358_s30, 1  ;;  %s3885_s6 = sld [smem:[#allocation3 + $0x5]]  ;;  %vm371_vm0 = vcmask 1046528   ;;  %vm1180_vm1 = vcmask 1045504   ;;  %vm3606_vm2 = vcmask 102400   ;;  %vm3604_vm3 = vcmask 105472  }
  0x5f   : > { %s3880_s13 = sld [smem:[#allocation3 + $0x1]]  ;;  %s7698_s20 = smov 127   ;;  %vm3764_vm4 = vcmask 0  }
  0x60   : > { %s8449_s30 = smov (!%p332_p3, %s4358_s30), 1  ;;  %s3882_s15 = sld [smem:[#allocation3 + $0x3]] }
  0x61   : > { %7776 = sst [smem:[#allocation15_spill]] %s8449_s30  ;;  %s4124_s14 = sshll.u32 %s8449_s30, 4 }
  0x62   : > { %s7777_s0 = sld [smem:[#allocation216_spill]]  ;;  %s7704_s16 = smov 126  }
  0x63   : > { %s3887_s19 = sld [smem:[#allocation3 + $0x7]] }
  0x64   : > { %v406_v1 = vstv %s3885_s6  ;;  %s3890_s21 = sld [smem:[#allocation3 + $0x9]] }
  0x65   : > { %v352_v4 = vstv %s3880_s13  ;;  %s3892_s22 = sld [smem:[#allocation3 + $0xb]] }
  0x66   : > { %v380_v6 = vstv %s3882_s15  ;;  %s345_s23 = sld [smem:[#allocation3]] }
  0x67   : > { %s3881_s24 = sld [smem:[#allocation3 + $0x2]] }
  0x68   : > { %s4460_s18 = scalar_lea.vmem %s7777_s0, %s4124_s14  ;;  %s342_s25 = sld [smem:[#allocation5]] }
  0x69   : > { %v4463_v0 = vld [vmem:[%s4460_s18 + $0x8] sm:$0xff]  ;;  %v4466_v2 = vld [vmem:[%s4460_s18] sm:$0xff]  ;;  %v433_v8 = vstv %s3887_s19  ;;  %s3907_s27 = sld [smem:[#allocation7 + $0x1]] }
  0x6a   : > { %v408_v3 = vmul.f32 %v406_v1, %v4463_v0  ;;  %v353_v5 = vmul.f32 %v352_v4, %v4466_v2  ;;  %v382_v7 = vmul.f32 %v380_v6, %v4463_v0  ;;  %v354_v9 = vmul.f32 %v352_v4, %v4463_v0  ;;  %s3908_s28 = sld [smem:[#allocation7 + $0x1c]] }
  0x6b   : > { %v381_v10 = vmul.f32 %v380_v6, %v4466_v2  ;;  %v435_v11 = vmul.f32 %v433_v8, %v4463_v0  ;;  %v434_v13 = vmul.f32 %v433_v8, %v4466_v2  ;;  %v407_v15 = vmul.f32 %v406_v1, %v4466_v2  ;;  %s3909_s29 = sld [smem:[#allocation7 + $0x37]] }
  0x6c   : > { %413 = vrot.lane.b32.xlu1 %v408_v3, %s7698_s20  ;;  %357 = vrot.lane.b32.xlu0 %v353_v5, %s7698_s20  ;;  %v386_v12 = vrot.slane %v382_v7, 1  ;;  %v459_v19 = vstv %s3890_s21  ;;  %v486_v20 = vstv %s3892_s22  ;;  %s3910_s8 = sld [smem:[#allocation7 + $0x52]] }
  0x6d   : > { %v439_v14 = vrot.slane %v435_v11, 1  ;;  %v385_v16 = vrot.slane %v381_v10, 1  ;;  %v438_v17 = vrot.slane %v434_v13, 1  ;;  %v487_v22 = vmul.f32 %v486_v20, %v4466_v2  ;;  %s3911_s9 = sld [smem:[#allocation7 + $0x6d]] }
  0x6e   : > { %v461_v23 = vmul.f32 %v459_v19, %v4463_v0  ;;  %v488_v24 = vmul.f32 %v486_v20, %v4463_v0  ;;  %v460_v25 = vmul.f32 %v459_v19, %v4466_v2  ;;  %v346_v29 = vstv %s345_s23  ;;  %s3912_s10 = sld [smem:[#allocation7 + $0x88]] }
  0x6f   : > { %v387_v18 = vsel %vm371_vm0, %v385_v16, %v386_v12  ;;  %v440_v21 = vsel %vm371_vm0, %v438_v17, %v439_v14  ;;  %v491_v26 = vrot.slane %v487_v22, 1  ;;  %v366_v30 = vstv %s3881_s24  ;;  %s3913_s11 = sld [smem:[#allocation7 + $0xa3]] }
  0x70   : > { %390 = vrot.lane.b32.xlu1 %v386_v12, %s7698_s20  ;;  %359 = vrot.lane.b32.xlu0 %v354_v9, %s7698_s20  ;;  %v492_v27 = vrot.slane %v488_v24, 1  ;;  %v348_v31 = vmul.f32 %v346_v29, %v4463_v0  ;;  %v343_v33 = vstv %s342_s25  ;;  %v347_v34 = vmul.f32 %v346_v29, %v4466_v2  ;;  %s3914_s12 = sld [smem:[#allocation7 + $0xbe]] }
  0x71   : > { %v367_v35 = vmul.f32 %v366_v30, %v4466_v2  ;;  %v368_v36 = vmul.f32 %v366_v30, %v4463_v0  ;;  %v575_v49 = vstv %s3907_s27  ;;  %v589_v55 = vstv %s3908_s28  ;;  %s3915_s6 = sld [smem:[#allocation7 + $0x2]] }
  0x72   : > { %v493_v28 = vsel %vm371_vm0, %v491_v26, %v492_v27  ;;  %v350_v38 = vadd.f32 %v348_v31, %v343_v33  ;;  %v349_v39 = vadd.f32 %v347_v34, %v343_v33  ;;  %v603_v58 = vstv %s3909_s29  ;;  %s3916_s13 = sld [smem:[#allocation7 + $0x1d]] }
  0x73   : > { %v372_v40 = vrot.slane %v367_v35, 1  ;;  %v373_v41 = vrot.slane %v368_v36, 1  ;;  %v617_v61 = vstv %s3910_s8  ;;  %v631_v1 = vstv %s3911_s9  ;;  %s3917_s14 = sld [smem:[#allocation7 + $0x38]] }
  0x74   : > { %443 = vrot.lane.b32.xlu1 %v439_v14, %s7698_s20  ;;  %411 = vrot.lane.b32.xlu0 %v407_v15, %s7698_s20  ;;  %v645_v5 = vstv %s3912_s10  ;;  %s3918_s15 = sld [smem:[#allocation7 + $0x53]] }
  0x75   : > { %v374_v46 = vsel %vm371_vm0, %v372_v40, %v373_v41  ;;  %v659_v8 = vstv %s3913_s11  ;;  %s3919_s17 = sld [smem:[#allocation7 + $0x6e]] }
  0x76   : > { %v673_v11 = vstv %s3914_s12  ;;  %s3920_s19 = sld [smem:[#allocation7 + $0x89]] }
  0x77   : > { %v687_v14 = vstv %s3915_s6  ;;  %s3921_s21 = sld [smem:[#allocation7 + $0xa4]] }
  0x78   : > { %388 = vrot.lane.b32.xlu1 %v387_v18, %s7698_s20  ;;  %441 = vrot.lane.b32.xlu0 %v440_v21, %s7698_s20  ;;  %v701_v17 = vstv %s3916_s13  ;;  %s3922_s22 = sld [smem:[#allocation7 + $0xbf]] }
  0x79   : > { %v715_v20 = vstv %s3917_s14  ;;  %s3931_s23 = sld [smem:[#allocation7 + $0x4]] }
  0x7a   : > { %s3932_s24 = sld [smem:[#allocation7 + $0x1f]] }
  0x7b   : > { %v743_v26 = vstv %s3919_s17  ;;  %s3933_s25 = sld [smem:[#allocation7 + $0x3a]] }
  0x7c   : > { %466 = vrot.lane.b32.xlu1 %v461_v23, %s7698_s20  ;;  %464 = vrot.lane.b32.xlu0 %v460_v25, %s7698_s20  ;;  %v729_v23 = vstv %s3918_s15  ;;  %v757_v29 = vstv %s3920_s19  ;;  %s3934_s27 = sld [smem:[#allocation7 + $0x55]] }
  0x7d   : > { %v771_v33 = vstv %s3921_s21  ;;  %s3935_s28 = sld [smem:[#allocation7 + $0x70]] }
  0x7e   : > { %v785_v36 = vstv %s3922_s22  ;;  %s3936_s29 = sld [smem:[#allocation7 + $0x8b]] }
  0x7f   : > { %s3937_s8 = sld [smem:[#allocation7 + $0xa6]] }
  0x80   : > { %496 = vrot.lane.b32.xlu1 %v492_v27, %s7698_s20  ;;  %494 = vrot.lane.b32.xlu0 %v493_v28, %s7698_s20  ;;  %s3938_s9 = sld [smem:[#allocation7 + $0xc1]] }
  0x81   : > { %s3939_s10 = sld [smem:[#allocation7 + $0x5]] }
  0x82   : > { %s3940_s11 = sld [smem:[#allocation7 + $0x20]] }
  0x83   : > { %s3941_s12 = sld [smem:[#allocation7 + $0x3b]] }
  0x84   : > { %s4608_s6 = sld [smem:[#allocation7 + $0x56]] }
  0x85   : > { %s4615_s13 = sld [smem:[#allocation7 + $0x71]] }
  0x86   : > { %s3944_s14 = sld [smem:[#allocation7 + $0x8c]] }
  0x87   : > { %s4633_s15 = sld [smem:[#allocation7 + $0xa7]] }
  0x88   : > { %s3946_s17 = sld [smem:[#allocation7 + $0xc2]] }
  0x89   : > { %s4651_s19 = sld [smem:[#allocation7 + $0x7]] }
  0x8a   : > { %s4666_s21 = sld [smem:[#allocation7 + $0x22]] }
  0x8b   : > { %s4672_s22 = sld [smem:[#allocation7 + $0x3d]] }
  0x8c   : > { %s5415_s0 = sld [smem:[#allocation7 + $0x39]] }
  0x8d   : > { %s5423_s1 = sld [smem:[#allocation7 + $0x6f]] }
  0x8e   : > { %s5430_s2 = sld [smem:[#allocation7 + $0x2e]] }
  0x8f   : > { %s5432_s3 = sld [smem:[#allocation7 + $0x8a]] }
  0x90   : > { %s5439_s4 = sld [smem:[#allocation7 + $0xa5]] }
  0x91   : > { %s5444_s5 = sld [smem:[#allocation7 + $0xc0]] }
  0x92   : > { %s5452_s26 = sld [smem:[#allocation7 + $0x14]] }
  0x93   : > { %s5454_s7 = sld [smem:[#allocation7 + $0x6]] }
  0x94   : > { %s5474_s30 = sld [smem:[#allocation7 + $0x49]] }
  0x99   : > { %7896 = sst [smem:[#allocation133_spill]] %s5454_s7  ;;  %s7901_s7 = smov 127  }
  0xde   : > { %v4496_v32 = vpop.permute.xlu1 %413  ;;  %v358_v37 = vpop.permute.xlu0 %357 }
  0xdf   : > { %v363_v45 = vadd.f32 %v358_v37, %v349_v39  ;;  %v903_v37 = vstv %s3931_s23  ;;  %s4690_s23 = sld [smem:[#allocation7 + $0x58]] }
  0xe1   : > { %v377_v51 = vadd.f32 %v374_v46, %v363_v45 }
  0xe2   : > { %v391_v42 = vpop.permute.xlu1 %390  ;;  %v360_v43 = vpop.permute.xlu0 %359 }
  0xe3   : > { %v364_v44 = vadd.f32 %v360_v43, %v350_v38 }
  0xe5   : > { %v378_v47 = vadd.f32 %v373_v41, %v364_v44  ;;  %v937_v44 = vstv %s3933_s25  ;;  %s4714_s25 = sld [smem:[#allocation7 + $0x8e]] }
  0xe6   : > { %v4502_v48 = vpop.permute.xlu1 %443 }
  0xe7   : > { %v4504_v50 = vadd.f32 %v391_v42, %v378_v47  ;;  %v920_v42 = vstv %s3932_s24  ;;  %s4696_s24 = sld [smem:[#allocation7 + $0x73]] }
  0xe9   : > { %v577_v53 = vmul.f32 %v575_v49, %v4504_v50  ;;  %v591_v57 = vmul.f32 %v589_v55, %v4504_v50  ;;  %v605_v60 = vmul.f32 %v603_v58, %v4504_v50  ;;  %v619_v63 = vmul.f32 %v617_v61, %v4504_v50 }
  0xea   : > { %v389_v52 = vpop.permute.xlu1 %388  ;;  %v633_v4 = vmul.f32 %v631_v1, %v4504_v50  ;;  %v647_v7 = vmul.f32 %v645_v5, %v4504_v50  ;;  %v661_v10 = vmul.f32 %v659_v8, %v4504_v50  ;;  %v675_v13 = vmul.f32 %v673_v11, %v4504_v50 }
  0xeb   : > { %v4507_v54 = vadd.f32 %v389_v52, %v377_v51  ;;  %582 = vrot.lane.b32.xlu1 %v577_v53, %s7698_s20  ;;  %v689_v16 = vmul.f32 %v687_v14, %v4504_v50  ;;  %v703_v19 = vmul.f32 %v701_v17, %v4504_v50  ;;  %v717_v22 = vmul.f32 %v715_v20, %v4504_v50 }
  0xec   : > { %v731_v25 = vmul.f32 %v729_v23, %v4504_v50  ;;  %v745_v28 = vmul.f32 %v743_v26, %v4504_v50  ;;  %v759_v31 = vmul.f32 %v757_v29, %v4504_v50  ;;  %v773_v35 = vmul.f32 %v771_v33, %v4504_v50 }
  0xed   : > { %v576_v56 = vmul.f32 %v575_v49, %v4507_v54  ;;  %v590_v59 = vmul.f32 %v589_v55, %v4507_v54  ;;  %v604_v62 = vmul.f32 %v603_v58, %v4507_v54  ;;  %v618_v3 = vmul.f32 %v617_v61, %v4507_v54 }
  0xee   : > { %v632_v6 = vmul.f32 %v631_v1, %v4507_v54  ;;  %v646_v9 = vmul.f32 %v645_v5, %v4507_v54  ;;  %v660_v12 = vmul.f32 %v659_v8, %v4507_v54  ;;  %v674_v15 = vmul.f32 %v673_v11, %v4507_v54 }
  0xef   : > { %580 = vrot.lane.b32.xlu0 %v576_v56, %s7698_s20  ;;  %596 = vrot.lane.b32.xlu1 %v591_v57, %s7698_s20  ;;  %v688_v18 = vmul.f32 %v687_v14, %v4507_v54  ;;  %v702_v21 = vmul.f32 %v701_v17, %v4507_v54  ;;  %v716_v24 = vmul.f32 %v715_v20, %v4507_v54  ;;  %v954_v52 = vstv %s3934_s27  ;;  %s4720_s27 = sld [smem:[#allocation7 + $0xa9]] }
  0xf0   : > { %v730_v27 = vmul.f32 %v729_v23, %v4507_v54  ;;  %v744_v30 = vmul.f32 %v743_v26, %v4507_v54  ;;  %v758_v34 = vmul.f32 %v757_v29, %v4507_v54  ;;  %v772_v38 = vmul.f32 %v771_v33, %v4507_v54 }
  0xf1   : > { %v787_v39 = vmul.f32 %v785_v36, %v4504_v50  ;;  %v905_v40 = vmul.f32 %v903_v37, %v4504_v50  ;;  %v904_v41 = vmul.f32 %v903_v37, %v4507_v54  ;;  %v786_v43 = vmul.f32 %v785_v36, %v4507_v54 }
  0xf2   : > { %v922_v46 = vmul.f32 %v920_v42, %v4504_v50  ;;  %v921_v47 = vmul.f32 %v920_v42, %v4507_v54  ;;  %v939_v51 = vmul.f32 %v937_v44, %v4504_v50  ;;  %v938_v56 = vmul.f32 %v937_v44, %v4507_v54 }
  0xf3   : > { %594 = vrot.lane.b32.xlu0 %v590_v59, %s7698_s20  ;;  %610 = vrot.lane.b32.xlu1 %v605_v60, %s7698_s20  ;;  %v909_v45 = vrot.slane %v905_v40, 1  ;;  %v908_v49 = vrot.slane %v904_v41, 1  ;;  %v956_v58 = vmul.f32 %v954_v52, %v4504_v50  ;;  %v955_v61 = vmul.f32 %v954_v52, %v4507_v54 }
  0xf4   : > { %v926_v53 = vrot.slane %v922_v46, 1  ;;  %v925_v57 = vrot.slane %v921_v47, 1  ;;  %v943_v59 = vrot.slane %v939_v51, 1  ;;  %v1090_v41 = vstv %s4608_s6  ;;  %s4807_s6 = sld [smem:[#allocation5 + $0x1]] }
  0xf5   : > { %v910_v55 = vsel %vm371_vm0, %v908_v49, %v909_v45  ;;  %v960_v1 = vrot.slane %v956_v58, 1  ;;  %v1092_v47 = vmul.f32 %v1090_v41, %v4504_v50  ;;  %v1107_v49 = vstv %s4615_s13  ;;  %s4814_s13 = sld [smem:[#allocation7 + $0x8f]] }
  0xf6   : > { %v927_v60 = vsel %vm371_vm0, %v925_v57, %v926_v53  ;;  %v1109_v58 = vmul.f32 %v1107_v49, %v4504_v50 }
  0xf7   : > { %608 = vrot.lane.b32.xlu0 %v604_v62, %s7698_s20  ;;  %624 = vrot.lane.b32.xlu1 %v619_v63, %s7698_s20  ;;  %v942_v62 = vrot.slane %v938_v56, 1  ;;  %v971_v63 = vstv %s3935_s28  ;;  %s4732_s28 = sld [smem:[#allocation7 + $0xc4]] }
  0xf8   : > { %v973_v5 = vmul.f32 %v971_v63, %v4504_v50 }
  0xfb   : > { %622 = vrot.lane.b32.xlu0 %v618_v3, %s7698_s20  ;;  %638 = vrot.lane.b32.xlu1 %v633_v4, %s7698_s20  ;;  %v988_v3 = vstv %s3936_s29  ;;  %v944_v4 = vsel %vm371_vm0, %v942_v62, %v943_v59  ;;  %s4744_s29 = sld [smem:[#allocation7 + $0x8]] }
  0xfc   : > { %v990_v8 = vmul.f32 %v988_v3, %v4504_v50 }
  0xff   : > { %636 = vrot.lane.b32.xlu0 %v632_v6, %s7698_s20  ;;  %652 = vrot.lane.b32.xlu1 %v647_v7, %s7698_s20  ;;  %v972_v6 = vmul.f32 %v971_v63, %v4507_v54  ;;  %v959_v7 = vrot.slane %v955_v61, 1  ;;  %v1108_v61 = vmul.f32 %v1107_v49, %v4507_v54  ;;  %v1124_v63 = vstv %s3944_s14  ;;  %s4816_s14 = sld [smem:[#allocation3 + $0x6]] }
 0x101   : > { %v961_v11 = vsel %vm371_vm0, %v959_v7, %v960_v1  ;;  %v1125_v7 = vmul.f32 %v1124_v63, %v4507_v54 }
 0x103   : > { %650 = vrot.lane.b32.xlu0 %v646_v9, %s7698_s20  ;;  %666 = vrot.lane.b32.xlu1 %v661_v10, %s7698_s20  ;;  %v1005_v9 = vstv %s3937_s8  ;;  %v977_v10 = vrot.slane %v973_v5, 1  ;;  %s4762_s8 = sld [smem:[#allocation7 + $0x23]] }
 0x104   : > { %v1007_v14 = vmul.f32 %v1005_v9, %v4504_v50  ;;  %v1006_v17 = vmul.f32 %v1005_v9, %v4507_v54 }
 0x106   : > { %v1011_v20 = vrot.slane %v1007_v14, 1 }
 0x107   : > { %664 = vrot.lane.b32.xlu0 %v660_v12, %s7698_s20  ;;  %680 = vrot.lane.b32.xlu1 %v675_v13, %s7698_s20  ;;  %v989_v12 = vmul.f32 %v988_v3, %v4507_v54  ;;  %v976_v13 = vrot.slane %v972_v6, 1  ;;  %v1113_v3 = vrot.slane %v1109_v58, 1  ;;  %v1126_v6 = vmul.f32 %v1124_v63, %v4504_v50 }
 0x10b   : > { %678 = vrot.lane.b32.xlu0 %v674_v15, %s7698_s20  ;;  %694 = vrot.lane.b32.xlu1 %v689_v16, %s7704_s16  ;;  %v994_v15 = vrot.slane %v990_v8, 1  ;;  %v978_v16 = vsel %vm371_vm0, %v976_v13, %v977_v10  ;;  %v1112_v8 = vrot.slane %v1108_v61, 1 }
 0x10d   : > { %v1114_v13 = vsel %vm371_vm0, %v1112_v8, %v1113_v3 }
 0x10f   : > { %692 = vrot.lane.b32.xlu0 %v688_v18, %s7704_s16  ;;  %708 = vrot.lane.b32.xlu1 %v703_v19, %s7704_s16  ;;  %v993_v18 = vrot.slane %v989_v12, 1  ;;  %v1022_v19 = vstv %s3938_s9  ;;  %v1130_v12 = vrot.slane %v1126_v6, 1  ;;  %s4769_s9 = sld [smem:[#allocation7 + $0x3e]] }
 0x110   : > { %v1024_v23 = vmul.f32 %v1022_v19, %v4504_v50 }
 0x113   : > { %706 = vrot.lane.b32.xlu0 %v702_v21, %s7704_s16  ;;  %722 = vrot.lane.b32.xlu1 %v717_v22, %s7704_s16  ;;  %v1039_v21 = vstv %s3939_s10  ;;  %v995_v22 = vsel %vm371_vm0, %v993_v18, %v994_v15  ;;  %s4780_s10 = sld [smem:[#allocation7 + $0x59]] }
 0x114   : > { %v1041_v26 = vmul.f32 %v1039_v21, %v4504_v50 }
 0x117   : > { %720 = vrot.lane.b32.xlu0 %v716_v24, %s7704_s16  ;;  %736 = vrot.lane.b32.xlu1 %v731_v25, %s7704_s16  ;;  %v1023_v24 = vmul.f32 %v1022_v19, %v4507_v54  ;;  %v1010_v25 = vrot.slane %v1006_v17, 1  ;;  %v1280_v19 = vstv %s4651_s19  ;;  %s4869_s19 = sld [smem:[#allocation7 + $0xa]] }
 0x119   : > { %v1012_v29 = vsel %vm371_vm0, %v1010_v25, %v1011_v20 }
 0x11b   : > { %734 = vrot.lane.b32.xlu0 %v730_v27, %s7704_s16  ;;  %750 = vrot.lane.b32.xlu1 %v745_v28, %s7704_s16  ;;  %v1056_v27 = vstv %s3940_s11  ;;  %v1028_v28 = vrot.slane %v1024_v23, 1  ;;  %s4792_s11 = sld [smem:[#allocation7 + $0x74]] }
 0x11c   : > { %v1058_v33 = vmul.f32 %v1056_v27, %v4504_v50  ;;  %v1057_v36 = vmul.f32 %v1056_v27, %v4507_v54 }
 0x11e   : > { %v1062_v40 = vrot.slane %v1058_v33, 1  ;;  %v1297_v33 = vstv %s4666_s21  ;;  %s4882_s21 = sld [smem:[#allocation7 + $0x25]] }
 0x11f   : > { %748 = vrot.lane.b32.xlu0 %v744_v30, %s7704_s16  ;;  %764 = vrot.lane.b32.xlu1 %v759_v31, %s7704_s16  ;;  %v1040_v30 = vmul.f32 %v1039_v21, %v4507_v54  ;;  %v1027_v31 = vrot.slane %v1023_v24, 1 }
 0x121   : > { %v1044_v37 = vrot.slane %v1040_v30, 1  ;;  %v1281_v30 = vmul.f32 %v1280_v19, %v4507_v54 }
 0x123   : > { %762 = vrot.lane.b32.xlu0 %v758_v34, %s7704_s16  ;;  %778 = vrot.lane.b32.xlu1 %v773_v35, %s7704_s16  ;;  %v1045_v34 = vrot.slane %v1041_v26, 1  ;;  %v1029_v35 = vsel %vm371_vm0, %v1027_v31, %v1028_v28  ;;  %v1282_v26 = vmul.f32 %v1280_v19, %v4504_v50 }
 0x125   : > { %v1046_v42 = vsel %vm371_vm0, %v1044_v37, %v1045_v34 }
 0x127   : > { %776 = vrot.lane.b32.xlu0 %v772_v38, %s7704_s16  ;;  %792 = vrot.lane.b32.xlu1 %v787_v39, %s7704_s16  ;;  %v4619_v38 = vpop.permute.xlu0 %411  ;;  %v1073_v39 = vstv %s3941_s12  ;;  %s4801_s12 = sld [smem:[#allocation3 + $0x4]] }
 0x128   : > { %v1074_v44 = vmul.f32 %v1073_v39, %v4507_v54 }
 0x12a   : > { %v1078_v56 = vrot.slane %v1074_v44, 1 }
 0x12b   : > { %790 = vrot.lane.b32.xlu0 %v786_v43, %s7704_s16  ;;  %913 = vrot.lane.b32.xlu1 %v909_v45, %s7698_s20  ;;  %v1075_v43 = vmul.f32 %v1073_v39, %v4504_v50  ;;  %v1061_v45 = vrot.slane %v1057_v36, 1  ;;  %v4629_v46 = vpop.permute.xlu0 %441  ;;  %v1314_v36 = vstv %s4672_s22  ;;  %s3981_s22 = sld [smem:[#allocation7 + $0x40]] }
 0x12c   : > { %v1316_v44 = vmul.f32 %v1314_v36, %v4504_v50 }
 0x12d   : > { %v1079_v51 = vrot.slane %v1075_v43, 1  ;;  %v1063_v52 = vsel %vm371_vm0, %v1061_v45, %v1062_v40 }
 0x12e   : > { %v1320_v58 = vrot.slane %v1316_v44, 2 }
 0x12f   : > { %911 = vrot.lane.b32.xlu0 %v910_v55, %s7698_s20  ;;  %930 = vrot.lane.b32.xlu1 %v926_v53, %s7698_s20  ;;  %v4636_v53 = vpop.permute.xlu1 %466  ;;  %v1091_v55 = vmul.f32 %v1090_v41, %v4507_v54  ;;  %v4641_v57 = vpop.permute.xlu0 %464  ;;  %v1298_v41 = vmul.f32 %v1297_v33, %v4507_v54 }
 0x131   : > { %v1095_v62 = vrot.slane %v1091_v55, 1  ;;  %v1331_v55 = vstv %s4690_s23  ;;  %s3982_s23 = sld [smem:[#allocation7 + $0x5b]] }
 0x132   : > { %v1332_v63 = vmul.f32 %v1331_v55, %v4507_v54 }
 0x133   : > { %928 = vrot.lane.b32.xlu0 %v927_v60, %s7698_s20  ;;  %947 = vrot.lane.b32.xlu1 %v943_v59, %s7698_s20  ;;  %v1096_v59 = vrot.slane %v1092_v47, 1  ;;  %v1080_v60 = vsel %vm371_vm0, %v1078_v56, %v1079_v51  ;;  %v4657_v9 = vpop.permute.xlu0 %494 }
 0x135   : > { %v1097_v5 = vsel %vm371_vm0, %v1095_v62, %v1096_v59  ;;  %v1333_v62 = vmul.f32 %v1331_v55, %v4504_v50 }
 0x137   : > { %945 = vrot.lane.b32.xlu0 %v944_v4, %s7698_s20  ;;  %964 = vrot.lane.b32.xlu1 %v960_v1, %s7698_s20  ;;  %v4648_v1 = vpop.permute.xlu1 %496  ;;  %v1141_v4 = vstv %s4633_s15  ;;  %s4823_s15 = sld [smem:[#allocation7 + $0xaa]] }
 0x138   : > { %v1142_v14 = vmul.f32 %v1141_v4, %v4507_v54 }
 0x13a   : > { %v1146_v24 = vrot.slane %v1142_v14, 1 }
 0x13b   : > { %962 = vrot.lane.b32.xlu0 %v961_v11, %s7698_s20  ;;  %981 = vrot.lane.b32.xlu1 %v977_v10, %s7698_s20  ;;  %v1143_v10 = vmul.f32 %v1141_v4, %v4504_v50 }
 0x13d   : > { %v1147_v18 = vrot.slane %v1143_v10, 1 }
 0x13f   : > { %979 = vrot.lane.b32.xlu0 %v978_v16, %s7698_s20  ;;  %998 = vrot.lane.b32.xlu1 %v994_v15, %s7698_s20  ;;  %v1129_v15 = vrot.slane %v1125_v7, 1  ;;  %v1158_v16 = vstv %s3946_s17  ;;  %v1337_v7 = vrot.slane %v1333_v62, 2  ;;  %s4841_s17 = sld [smem:[#allocation7 + $0xc5]] }
 0x140   : > { %v1159_v23 = vmul.f32 %v1158_v16, %v4507_v54 }
 0x141   : > { %v1131_v21 = vsel %vm371_vm0, %v1129_v15, %v1130_v12 }
 0x142   : > { %v1163_v31 = vrot.slane %v1159_v23, 1 }
 0x143   : > { %996 = vrot.lane.b32.xlu0 %v995_v22, %s7698_s20  ;;  %1015 = vrot.lane.b32.xlu1 %v1011_v20, %s7698_s20  ;;  %v1160_v22 = vmul.f32 %v1158_v16, %v4504_v50  ;;  %v1382_v16 = vstv %s4720_s27  ;;  %s3985_s27 = sld [smem:[#allocation7 + $0xac]] }
 0x147   : > { %1013 = vrot.lane.b32.xlu0 %v1012_v29, %s7698_s20  ;;  %1032 = vrot.lane.b32.xlu1 %v1028_v28, %s7698_s20  ;;  %v1164_v28 = vrot.slane %v1160_v22, 1  ;;  %v1148_v29 = vsel %vm371_vm0, %v1146_v24, %v1147_v18 }
 0x149   : > { %v1165_v39 = vsel %vm371_vm0, %v1163_v31, %v1164_v28 }
 0x14b   : > { %1030 = vrot.lane.b32.xlu0 %v1029_v35, %s7698_s20  ;;  %1049 = vrot.lane.b32.xlu1 %v1045_v34, %s7704_s16  ;;  %v1286_v35 = vrot.slane %v1282_v26, 2  ;;  %v1384_v26 = vmul.f32 %v1382_v16, %v4504_v50 }
 0x14f   : > { %1047 = vrot.lane.b32.xlu0 %v1046_v42, %s7704_s16  ;;  %1066 = vrot.lane.b32.xlu1 %v1062_v40, %s7704_s16  ;;  %v1299_v40 = vmul.f32 %v1297_v33, %v4504_v50  ;;  %v1285_v42 = vrot.slane %v1281_v30, 2  ;;  %v1383_v33 = vmul.f32 %v1382_v16, %v4507_v54 }
 0x151   : > { %v1303_v47 = vrot.slane %v1299_v40, 2  ;;  %v1287_v49 = vsel %vm1180_vm1, %v1285_v42, %v1286_v35  ;;  %v1416_v40 = vstv %s4744_s29  ;;  %v1388_v42 = vrot.slane %v1384_v26, 2  ;;  %s3987_s29 = sld [smem:[#allocation7 + $0xb]] }
 0x153   : > { %1064 = vrot.lane.b32.xlu0 %v1063_v52, %s7704_s16  ;;  %1083 = vrot.lane.b32.xlu1 %v1079_v51, %s7704_s16  ;;  %v1315_v51 = vmul.f32 %v1314_v36, %v4507_v54  ;;  %v1302_v52 = vrot.slane %v1298_v41, 2 }
 0x155   : > { %v1304_v61 = vsel %vm1180_vm1, %v1302_v52, %v1303_v47  ;;  %v1418_v52 = vmul.f32 %v1416_v40, %v4504_v50 }
 0x157   : > { %1081 = vrot.lane.b32.xlu0 %v1080_v60, %s7704_s16  ;;  %1100 = vrot.lane.b32.xlu1 %v1096_v59, %s7704_s16  ;;  %v1348_v59 = vstv %s4696_s24  ;;  %s3983_s24 = sld [smem:[#allocation7 + $0x76]] }
 0x158   : > { %v1349_v10 = vmul.f32 %v1348_v59, %v4507_v54 }
 0x15a   : > { %v1353_v23 = vrot.slane %v1349_v10, 2 }
 0x15b   : > { %1098 = vrot.lane.b32.xlu0 %v1097_v5, %s7704_s16  ;;  %1117 = vrot.lane.b32.xlu1 %v1113_v3, %s7704_s16  ;;  %v1319_v3 = vrot.slane %v1315_v51, 2  ;;  %v1350_v5 = vmul.f32 %v1348_v59, %v4504_v50 }
 0x15d   : > { %v4661_v11 = vpop.permute.xlu1 %582  ;;  %v1321_v8 = vsel %vm1180_vm1, %v1319_v3, %v1320_v58  ;;  %v1354_v15 = vrot.slane %v1350_v5, 2  ;;  %v1422_v5 = vrot.slane %v1418_v52, 2 }
 0x15f   : > { %1115 = vrot.lane.b32.xlu0 %v1114_v13, %s7704_s16  ;;  %1134 = vrot.lane.b32.xlu1 %v1130_v12, %s7704_s16  ;;  %v1336_v12 = vrot.slane %v1332_v63, 2  ;;  %v1365_v13 = vstv %s4714_s25  ;;  %v1355_v31 = vsel %vm1180_vm1, %v1353_v23, %v1354_v15  ;;  %v1433_v63 = vstv %s4762_s8  ;;  %s3984_s25 = sld [smem:[#allocation7 + $0x91]] }
 0x160   : > { %v1366_v22 = vmul.f32 %v1365_v13, %v4507_v54  ;;  %s3988_s8 = sld [smem:[#allocation7 + $0x26]] }
 0x161   : > { %v4669_v17 = vpop.permute.xlu0 %580  ;;  %v4674_v20 = vpop.permute.xlu1 %596  ;;  %v1338_v19 = vsel %vm1180_vm1, %v1336_v12, %v1337_v7  ;;  %v1435_v12 = vmul.f32 %v1433_v63, %v4504_v50 }
 0x163   : > { %1132 = vrot.lane.b32.xlu0 %v1131_v21, %s7704_s16  ;;  %1151 = vrot.lane.b32.xlu1 %v1147_v18, %s7704_s16  ;;  %v1367_v21 = vmul.f32 %v1365_v13, %v4504_v50  ;;  %v1434_v13 = vmul.f32 %v1433_v63, %v4507_v54  ;;  %v1439_v23 = vrot.slane %v1435_v12, 2  ;;  %v397_v12 = vstv %s4807_s6  ;;  %s3993_s6 = sld [smem:[#allocation7 + $0xad]] }
 0x165   : > { %v4681_v25 = vpop.permute.xlu0 %594  ;;  %v4684_v27 = vpop.permute.xlu1 %610  ;;  %v1371_v30 = vrot.slane %v1367_v21, 2  ;;  %v1467_v21 = vstv %s4780_s10  ;;  %s3990_s10 = sld [smem:[#allocation7 + $0x5c]] }
 0x167   : > { %1149 = vrot.lane.b32.xlu0 %v1148_v29, %s7704_s16  ;;  %1168 = vrot.lane.b32.xlu1 %v1164_v28, %s7704_s16  ;;  %v1399_v28 = vstv %s4732_s28  ;;  %s3986_s28 = sld [smem:[#allocation7 + $0xc7]] }
 0x169   : > { %v4693_v34 = vpop.permute.xlu0 %608  ;;  %v4698_v37 = vpop.permute.xlu1 %624 }
 0x16b   : > { %1166 = vrot.lane.b32.xlu0 %v1165_v39, %s7704_s16  ;;  %1290 = vrot.lane.b32.xlu1 %v1286_v35, %s7698_s20  ;;  %v1370_v35 = vrot.slane %v1366_v22, 2  ;;  %v1401_v39 = vmul.f32 %v1399_v28, %v4504_v50 }
 0x16d   : > { %v4705_v43 = vpop.permute.xlu0 %622  ;;  %v4708_v45 = vpop.permute.xlu1 %638  ;;  %v1372_v44 = vsel %vm1180_vm1, %v1370_v35, %v1371_v30  ;;  %v1484_v35 = vstv %s4792_s11  ;;  %s3991_s11 = sld [smem:[#allocation7 + $0x77]] }
 0x16f   : > { %1288 = vrot.lane.b32.xlu0 %v1287_v49, %s7698_s20  ;;  %1307 = vrot.lane.b32.xlu1 %v1303_v47, %s7698_s20  ;;  %v1400_v47 = vmul.f32 %v1399_v28, %v4507_v54  ;;  %v1387_v49 = vrot.slane %v1383_v33, 2  ;;  %v1469_v33 = vmul.f32 %v1467_v21, %v4504_v50 }
 0x171   : > { %v4717_v56 = vpop.permute.xlu0 %636  ;;  %v4722_v60 = vpop.permute.xlu1 %652  ;;  %v1389_v59 = vsel %vm1180_vm1, %v1387_v49, %v1388_v42  ;;  %v1404_v62 = vrot.slane %v1400_v47, 2  ;;  %v1468_v47 = vmul.f32 %v1467_v21, %v4507_v54  ;;  %v400_v49 = vstv %s4801_s12  ;;  %s3992_s12 = sld [smem:[#allocation7 + $0x92]] }
 0x172   : > { %v1518_v21 = vstv %s4823_s15  ;;  %s4004_s15 = sld [smem:[#allocation7 + $0x28]] }
 0x173   : > { %1305 = vrot.lane.b32.xlu0 %v1304_v61, %s7698_s20  ;;  %1324 = vrot.lane.b32.xlu1 %v1320_v58, %s7698_s20  ;;  %v1405_v58 = vrot.slane %v1401_v39, 2  ;;  %v1417_v61 = vmul.f32 %v1416_v40, %v4507_v54  ;;  %v1472_v63 = vrot.slane %v1468_v47, 2 }
 0x175   : > { %v4729_v4 = vpop.permute.xlu0 %650  ;;  %v4734_v6 = vpop.permute.xlu1 %666  ;;  %v1406_v10 = vsel %vm1180_vm1, %v1404_v62, %v1405_v58 }
 0x177   : > { %1322 = vrot.lane.b32.xlu0 %v1321_v8, %s7698_s20  ;;  %1341 = vrot.lane.b32.xlu1 %v1337_v7, %s7698_s20  ;;  %v1450_v7 = vstv %s4769_s9  ;;  %s3989_s9 = sld [smem:[#allocation7 + $0x41]] }
 0x178   : > { %v1451_v28 = vmul.f32 %v1450_v7, %v4507_v54 }
 0x179   : > { %v4741_v14 = vpop.permute.xlu0 %664  ;;  %v4746_v18 = vpop.permute.xlu1 %680 }
 0x17b   : > { %1339 = vrot.lane.b32.xlu0 %v1338_v19, %s7698_s20  ;;  %1358 = vrot.lane.b32.xlu1 %v1354_v15, %s7698_s20  ;;  %v1421_v15 = vrot.slane %v1417_v61, 2  ;;  %v1452_v19 = vmul.f32 %v1450_v7, %v4504_v50  ;;  %v1473_v61 = vrot.slane %v1469_v33, 2  ;;  %v1501_v7 = vstv %s4814_s13  ;;  %s5003_s13 = sld [smem:[#allocation7 + $0xc8]] }
 0x17c   : > { %v1502_v33 = vmul.f32 %v1501_v7, %v4507_v54 }
 0x17d   : > { %v4753_v24 = vpop.permute.xlu0 %678  ;;  %v4757_v29 = vpop.permute.xlu1 %694  ;;  %v1423_v26 = vsel %vm1180_vm1, %v1421_v15, %v1422_v5  ;;  %v1456_v40 = vrot.slane %v1452_v19, 2 }
 0x17e   : > { %7778 = vst [vmem:[#allocation16_spill] sm:$0xff] %v4753_v24  ;;  %7779 = vst [vmem:[#allocation17_spill] sm:$0xff] %v4757_v29 }
 0x17f   : > { %1356 = vrot.lane.b32.xlu0 %v1355_v31, %s7698_s20  ;;  %1375 = vrot.lane.b32.xlu1 %v1371_v30, %s7698_s20  ;;  %v1438_v30 = vrot.slane %v1434_v13, 2  ;;  %v420_v13 = vstv %s4816_s14  ;;  %s4003_s14 = sld [smem:[#allocation7 + $0xd]] }
 0x181   : > { %v4765_v36 = vpop.permute.xlu0 %692  ;;  %v4771_v41 = vpop.permute.xlu1 %708 }
 0x182   : > { %7780 = vst [vmem:[#allocation18_spill] sm:$0xff] %v4765_v36  ;;  %7781 = vst [vmem:[#allocation19_spill] sm:$0xff] %v4771_v41 }
 0x183   : > { %1373 = vrot.lane.b32.xlu0 %v1372_v44, %s7698_s20  ;;  %1392 = vrot.lane.b32.xlu1 %v1388_v42, %s7698_s20  ;;  %v1440_v42 = vsel %vm1180_vm1, %v1438_v30, %v1439_v23  ;;  %v1455_v44 = vrot.slane %v1451_v28, 2  ;;  %v1503_v28 = vmul.f32 %v1501_v7, %v4504_v50 }
 0x185   : > { %v4777_v51 = vpop.permute.xlu0 %706  ;;  %v4782_v55 = vpop.permute.xlu1 %722  ;;  %v1457_v62 = vsel %vm1180_vm1, %v1455_v44, %v1456_v40  ;;  %v421_v44 = vmul.f32 %v420_v13, %v4466_v2 }
 0x186   : > { %7782 = vst [vmem:[#allocation20_spill] sm:$0xff] %v4777_v51  ;;  %7783 = vst [vmem:[#allocation21_spill] sm:$0xff] %v4782_v55  ;;  %v7971_v55 = vstv %s5444_s5 }
 0x187   : > { %1390 = vrot.lane.b32.xlu0 %v1389_v59, %s7698_s20  ;;  %1409 = vrot.lane.b32.xlu1 %v1405_v58, %s7698_s20  ;;  %v1486_v58 = vmul.f32 %v1484_v35, %v4504_v50 }
 0x189   : > { %v4789_v3 = vpop.permute.xlu0 %720  ;;  %v4794_v8 = vpop.permute.xlu1 %736  ;;  %v1490_v19 = vrot.slane %v1486_v58, 2  ;;  %v1520_v58 = vmul.f32 %v1518_v21, %v4504_v50 }
 0x18a   : > { %7784 = vst [vmem:[#allocation22_spill] sm:$0xff] %v4789_v3  ;;  %7785 = vst [vmem:[#allocation23_spill] sm:$0xff] %v4794_v8 }
 0x18b   : > { %1407 = vrot.lane.b32.xlu0 %v1406_v10, %s7698_s20  ;;  %1426 = vrot.lane.b32.xlu1 %v1422_v5, %s7704_s16  ;;  %v1485_v5 = vmul.f32 %v1484_v35, %v4507_v54  ;;  %v402_v10 = vmul.f32 %v400_v49, %v4463_v0  ;;  %v401_v35 = vmul.f32 %v400_v49, %v4466_v2 }
 0x18c   : > { %v1519_v49 = vmul.f32 %v1518_v21, %v4507_v54 }
 0x18d   : > { %v4803_v16 = vpop.permute.xlu0 %734  ;;  %v4809_v22 = vpop.permute.xlu1 %750  ;;  %v1489_v30 = vrot.slane %v1485_v5, 2  ;;  %v1506_v5 = vrot.slane %v1502_v33, 2  ;;  %v403_v7 = vadd.f32 %v401_v35, %v397_v12 }
 0x18e   : > { %7786 = vst [vmem:[#allocation24_spill] sm:$0xff] %v4803_v16  ;;  %7787 = vst [vmem:[#allocation25_spill] sm:$0xff] %v4809_v22  ;;  %v1523_v21 = vrot.slane %v1519_v49, 2 }
 0x18f   : > { %1424 = vrot.lane.b32.xlu0 %v1423_v26, %s7704_s16  ;;  %1443 = vrot.lane.b32.xlu1 %v1439_v23, %s7704_s16  ;;  %v1474_v26 = vsel %vm1180_vm1, %v1472_v63, %v1473_v61  ;;  %v1491_v63 = vsel %vm1180_vm1, %v1489_v30, %v1490_v19  ;;  %v417_v33 = vadd.f32 %v4619_v38, %v403_v7 }
 0x191   : > { %v4819_v31 = vpop.permute.xlu0 %748  ;;  %v4825_v39 = vpop.permute.xlu1 %764 }
 0x192   : > { %7788 = vst [vmem:[#allocation26_spill] sm:$0xff] %v4819_v31  ;;  %7789 = vst [vmem:[#allocation27_spill] sm:$0xff] %v4825_v39 }
 0x193   : > { %1441 = vrot.lane.b32.xlu0 %v1440_v42, %s7704_s16  ;;  %1460 = vrot.lane.b32.xlu1 %v1456_v40, %s7704_s16  ;;  %v422_v40 = vmul.f32 %v420_v13, %v4463_v0  ;;  %v404_v42 = vadd.f32 %v402_v10, %v397_v12  ;;  %v1535_v0 = vstv %s4841_s17  ;;  %v425_v13 = vrot.slane %v421_v44, 1  ;;  %s5018_s17 = sld [smem:[#allocation7 + $0x43]] }
 0x194   : > { %v1537_v12 = vmul.f32 %v1535_v0, %v4504_v50  ;;  %v1536_v30 = vmul.f32 %v1535_v0, %v4507_v54 }
 0x195   : > { %v4832_v52 = vpop.permute.xlu0 %762  ;;  %v4835_v59 = vpop.permute.xlu1 %778  ;;  %v426_v2 = vrot.slane %v422_v40, 1  ;;  %v418_v10 = vadd.f32 %v4496_v32, %v404_v42 }
 0x196   : > { %7790 = vst [vmem:[#allocation28_spill] sm:$0xff] %v4832_v52  ;;  %7791 = vst [vmem:[#allocation29_spill] sm:$0xff] %v4835_v59 }
 0x197   : > { %1458 = vrot.lane.b32.xlu0 %v1457_v62, %s7704_s16  ;;  %1477 = vrot.lane.b32.xlu1 %v1473_v61, %s7704_s16  ;;  %v1507_v62 = vrot.slane %v1503_v28, 2  ;;  %v1524_v28 = vrot.slane %v1520_v58, 2  ;;  %v431_v32 = vadd.f32 %v426_v2, %v418_v10  ;;  %v427_v35 = vsel %vm371_vm0, %v425_v13, %v426_v2 }
 0x198   : > { %v1541_v58 = vrot.slane %v1537_v12, 2  ;;  %v1614_v10 = vstv %s4882_s21  ;;  %s5042_s21 = sld [smem:[#allocation7 + $0x79]] }
 0x199   : > { %v4847_v15 = vpop.permute.xlu0 %776  ;;  %v4850_v23 = vpop.permute.xlu1 %792  ;;  %v4889_v42 = vadd.f32 %v4502_v48, %v431_v32  ;;  %v1525_v38 = vsel %vm1180_vm1, %v1523_v21, %v1524_v28  ;;  %v1628_v21 = vstv %s3981_s22  ;;  %s5059_s22 = sld [smem:[#allocation7 + $0x94]] }
 0x19a   : > { %7792 = vst [vmem:[#allocation30_spill] sm:$0xff] %v4847_v15  ;;  %7793 = vst [vmem:[#allocation31_spill] sm:$0xff] %v4850_v23 }
 0x19b   : > { %1475 = vrot.lane.b32.xlu0 %v1474_v26, %s7704_s16  ;;  %1494 = vrot.lane.b32.xlu1 %v1490_v19, %s7704_s16  ;;  %v1508_v19 = vsel %vm1180_vm1, %v1506_v5, %v1507_v62  ;;  %7799 = vst [vmem:[#allocation37_spill] sm:$0xff] %v4889_v42  ;;  %v1600_v5 = vstv %s4869_s19  ;;  %v1616_v12 = vmul.f32 %v1614_v10, %v4889_v42  ;;  %s5035_s19 = sld [smem:[#allocation7 + $0x5e]] }
 0x19c   : > { %v1602_v48 = vmul.f32 %v1600_v5, %v4889_v42  ;;  %v1630_v32 = vmul.f32 %v1628_v21, %v4889_v42 }
 0x19d   : > { %v4860_v47 = vpop.permute.xlu0 %790  ;;  %v4863_v61 = vpop.permute.xlu1 %913 }
 0x19e   : > { %7794 = vst [vmem:[#allocation32_spill] sm:$0xff] %v4860_v47  ;;  %7795 = vst [vmem:[#allocation33_spill] sm:$0xff] %v4863_v61 }
 0x19f   : > { %1492 = vrot.lane.b32.xlu0 %v1491_v63, %s7704_s16  ;;  %1511 = vrot.lane.b32.xlu1 %v1507_v62, %s7704_s16  ;;  %v1540_v62 = vrot.slane %v1536_v30, 2  ;;  %v430_v63 = vadd.f32 %v427_v35, %v417_v33  ;;  %v1642_v35 = vstv %s3982_s23  ;;  %s5065_s23 = sld [smem:[#allocation7 + $0xaf]] }
 0x1a1   : > { %v4873_v26 = vpop.permute.xlu0 %911  ;;  %v4875_v61 = vpop.permute.xlu1 %930  ;;  %v1542_v0 = vsel %vm1180_vm1, %v1540_v62, %v1541_v58  ;;  %v4904_v2 = vadd.f32 %v4629_v46, %v430_v63  ;;  %v1644_v63 = vmul.f32 %v1642_v35, %v4889_v42 }
 0x1a2   : > { %7796 = vst [vmem:[#allocation34_spill] sm:$0xff] %v4873_v26  ;;  %7797 = vst [vmem:[#allocation35_spill] sm:$0xff] %v4875_v61 }
 0x1a3   : > { %1509 = vrot.lane.b32.xlu0 %v1508_v19, %s7704_s16  ;;  %1528 = vrot.lane.b32.xlu1 %v1524_v28, %s7704_s16  ;;  %7803 = vst [vmem:[#allocation41_spill] sm:$0xff] %v4904_v2  ;;  %v1601_v28 = vmul.f32 %v1600_v5, %v4904_v2  ;;  %v1615_v30 = vmul.f32 %v1614_v10, %v4904_v2  ;;  %v1656_v5 = vstv %s3983_s24  ;;  %s5077_s24 = sld [smem:[#allocation7 + $0xca]] }
 0x1a5   : > { %v4886_v40 = vpop.permute.xlu0 %928  ;;  %v4891_v44 = vpop.permute.xlu1 %947 }
 0x1a6   : > { %7798 = vst [vmem:[#allocation36_spill] sm:$0xff] %v4886_v40  ;;  %7800 = vst [vmem:[#allocation38_spill] sm:$0xff] %v4891_v44 }
 0x1a7   : > { %1526 = vrot.lane.b32.xlu0 %v1525_v38, %s7704_s16  ;;  %1545 = vrot.lane.b32.xlu1 %v1541_v58, %s7704_s16  ;;  %v1629_v38 = vmul.f32 %v1628_v21, %v4904_v2 }
 0x1a9   : > { %v4897_v49 = vpop.permute.xlu0 %945  ;;  %v4899_v7 = vpop.permute.xlu1 %964 }
 0x1aa   : > { %7801 = vst [vmem:[#allocation39_spill] sm:$0xff] %v4897_v49  ;;  %7802 = vst [vmem:[#allocation40_spill] sm:$0xff] %v4899_v7 }
 0x1ab   : > { %1543 = vrot.lane.b32.xlu0 %v1542_v0, %s7704_s16  ;;  %1607 = vrot.lane.b32.xlu1 %v1602_v48, %s7698_s20  ;;  %v1643_v0 = vmul.f32 %v1642_v35, %v4904_v2  ;;  %v1684_v35 = vstv %s3985_s27  ;;  %s5102_s27 = sld [smem:[#allocation7 + $0x29]] }
 0x1ad   : > { %v4909_v13 = vpop.permute.xlu0 %962  ;;  %v4912_v19 = vpop.permute.xlu1 %981 }
 0x1ae   : > { %7804 = vst [vmem:[#allocation42_spill] sm:$0xff] %v4909_v13  ;;  %7805 = vst [vmem:[#allocation43_spill] sm:$0xff] %v4912_v19 }
 0x1af   : > { %1605 = vrot.lane.b32.xlu0 %v1601_v28, %s7698_s20  ;;  %1621 = vrot.lane.b32.xlu1 %v1616_v12, %s7698_s20  ;;  %v1658_v28 = vmul.f32 %v1656_v5, %v4889_v42  ;;  %v1670_v12 = vstv %s3984_s25  ;;  %s5095_s25 = sld [smem:[#allocation7 + $0xe]] }
 0x1b1   : > { %v4917_v46 = vpop.permute.xlu0 %979  ;;  %v4920_v33 = vpop.permute.xlu1 %998 }
 0x1b2   : > { %7806 = vst [vmem:[#allocation44_spill] sm:$0xff] %v4917_v46  ;;  %7807 = vst [vmem:[#allocation45_spill] sm:$0xff] %v4920_v33 }
 0x1b3   : > { %1619 = vrot.lane.b32.xlu0 %v1615_v30, %s7698_s20  ;;  %1635 = vrot.lane.b32.xlu1 %v1630_v32, %s7698_s20  ;;  %v1657_v30 = vmul.f32 %v1656_v5, %v4904_v2  ;;  %v1698_v5 = vstv %s3986_s28  ;;  %s5113_s28 = sld [smem:[#allocation7 + $0x44]] }
 0x1b5   : > { %v4925_v58 = vpop.permute.xlu0 %996  ;;  %v4928_v62 = vpop.permute.xlu1 %1015 }
 0x1b6   : > { %7808 = vst [vmem:[#allocation46_spill] sm:$0xff] %v4925_v58  ;;  %7809 = vst [vmem:[#allocation47_spill] sm:$0xff] %v4928_v62 }
 0x1b7   : > { %1633 = vrot.lane.b32.xlu0 %v1629_v38, %s7698_s20  ;;  %1649 = vrot.lane.b32.xlu1 %v1644_v63, %s7698_s20  ;;  %v1672_v38 = vmul.f32 %v1670_v12, %v4889_v42 }
 0x1b9   : > { %v4933_v48 = vpop.permute.xlu0 %1013  ;;  %v4936_v10 = vpop.permute.xlu1 %1032 }
 0x1ba   : > { %7810 = vst [vmem:[#allocation48_spill] sm:$0xff] %v4933_v48  ;;  %7811 = vst [vmem:[#allocation49_spill] sm:$0xff] %v4936_v10 }
 0x1bb   : > { %1647 = vrot.lane.b32.xlu0 %v1643_v0, %s7698_s20  ;;  %1663 = vrot.lane.b32.xlu1 %v1658_v28, %s7698_s20  ;;  %v1671_v0 = vmul.f32 %v1670_v12, %v4904_v2  ;;  %v1686_v28 = vmul.f32 %v1684_v35, %v4889_v42  ;;  %v1712_v12 = vstv %s3987_s29  ;;  %s5125_s29 = sld [smem:[#allocation7 + $0x5f]] }
 0x1bd   : > { %v4941_v21 = vpop.permute.xlu0 %1030  ;;  %v4944_v32 = vpop.permute.xlu1 %1049 }
 0x1be   : > { %7812 = vst [vmem:[#allocation50_spill] sm:$0xff] %v4941_v21  ;;  %7813 = vst [vmem:[#allocation51_spill] sm:$0xff] %v4944_v32 }
 0x1bf   : > { %1661 = vrot.lane.b32.xlu0 %v1657_v30, %s7698_s20  ;;  %1677 = vrot.lane.b32.xlu1 %v1672_v38, %s7698_s20  ;;  %v1685_v30 = vmul.f32 %v1684_v35, %v4904_v2  ;;  %v1700_v38 = vmul.f32 %v1698_v5, %v4889_v42  ;;  %v1726_v35 = vstv %s3988_s8  ;;  %s5143_s8 = sld [smem:[#allocation7 + $0x7a]] }
 0x1c1   : > { %v4949_v63 = vpop.permute.xlu0 %1047  ;;  %v4952_v48 = vpop.permute.xlu1 %1066 }
 0x1c2   : > { %7814 = vst [vmem:[#allocation52_spill] sm:$0xff] %v4949_v63  ;;  %7815 = vst [vmem:[#allocation53_spill] sm:$0xff] %v4952_v48 }
 0x1c3   : > { %1675 = vrot.lane.b32.xlu0 %v1671_v0, %s7698_s20  ;;  %1691 = vrot.lane.b32.xlu1 %v1686_v28, %s7698_s20  ;;  %v1699_v0 = vmul.f32 %v1698_v5, %v4904_v2  ;;  %v1714_v28 = vmul.f32 %v1712_v12, %v4889_v42  ;;  %v1740_v5 = vstv %s3989_s9  ;;  %s5150_s9 = sld [smem:[#allocation7 + $0x95]] }
 0x1c5   : > { %v4957_v21 = vpop.permute.xlu0 %1064  ;;  %v4960_v32 = vpop.permute.xlu1 %1083 }
 0x1c6   : > { %7816 = vst [vmem:[#allocation54_spill] sm:$0xff] %v4957_v21  ;;  %7817 = vst [vmem:[#allocation55_spill] sm:$0xff] %v4960_v32 }
 0x1c7   : > { %1689 = vrot.lane.b32.xlu0 %v1685_v30, %s7698_s20  ;;  %1705 = vrot.lane.b32.xlu1 %v1700_v38, %s7698_s20  ;;  %v1713_v30 = vmul.f32 %v1712_v12, %v4904_v2  ;;  %v1728_v38 = vmul.f32 %v1726_v35, %v4889_v42  ;;  %v1754_v12 = vstv %s3990_s10  ;;  %s5161_s10 = sld [smem:[#allocation7 + $0xb0]] }
 0x1c9   : > { %v4965_v48 = vpop.permute.xlu0 %1081  ;;  %v4968_v63 = vpop.permute.xlu1 %1100 }
 0x1ca   : > { %7818 = vst [vmem:[#allocation56_spill] sm:$0xff] %v4965_v48  ;;  %7819 = vst [vmem:[#allocation57_spill] sm:$0xff] %v4968_v63 }
 0x1cb   : > { %1703 = vrot.lane.b32.xlu0 %v1699_v0, %s7698_s20  ;;  %1719 = vrot.lane.b32.xlu1 %v1714_v28, %s7704_s16  ;;  %v1727_v0 = vmul.f32 %v1726_v35, %v4904_v2  ;;  %v1742_v28 = vmul.f32 %v1740_v5, %v4889_v42  ;;  %v1768_v35 = vstv %s3991_s11  ;;  %s5178_s11 = sld [smem:[#allocation7 + $0xcb]] }
 0x1cd   : > { %v4973_v21 = vpop.permute.xlu0 %1098  ;;  %v4976_v32 = vpop.permute.xlu1 %1117 }
 0x1ce   : > { %7820 = vst [vmem:[#allocation58_spill] sm:$0xff] %v4973_v21  ;;  %7821 = vst [vmem:[#allocation59_spill] sm:$0xff] %v4976_v32 }
 0x1cf   : > { %1717 = vrot.lane.b32.xlu0 %v1713_v30, %s7704_s16  ;;  %1733 = vrot.lane.b32.xlu1 %v1728_v38, %s7704_s16  ;;  %v1741_v30 = vmul.f32 %v1740_v5, %v4904_v2  ;;  %v1756_v38 = vmul.f32 %v1754_v12, %v4889_v42  ;;  %v1782_v5 = vstv %s3992_s12  ;;  %s5190_s12 = sld [smem:[#allocation7 + $0x10]] }
 0x1d1   : > { %v4981_v48 = vpop.permute.xlu0 %1115  ;;  %v4984_v63 = vpop.permute.xlu1 %1134 }
 0x1d2   : > { %7822 = vst [vmem:[#allocation60_spill] sm:$0xff] %v4981_v48  ;;  %7823 = vst [vmem:[#allocation61_spill] sm:$0xff] %v4984_v63 }
 0x1d3   : > { %1731 = vrot.lane.b32.xlu0 %v1727_v0, %s7704_s16  ;;  %1747 = vrot.lane.b32.xlu1 %v1742_v28, %s7704_s16  ;;  %v1755_v0 = vmul.f32 %v1754_v12, %v4904_v2  ;;  %v1770_v28 = vmul.f32 %v1768_v35, %v4889_v42  ;;  %v1784_v12 = vmul.f32 %v1782_v5, %v4889_v42 }
 0x1d5   : > { %v4989_v21 = vpop.permute.xlu0 %1132  ;;  %v4992_v32 = vpop.permute.xlu1 %1151 }
 0x1d6   : > { %7824 = vst [vmem:[#allocation62_spill] sm:$0xff] %v4989_v21  ;;  %7825 = vst [vmem:[#allocation63_spill] sm:$0xff] %v4992_v32  ;;  %v1783_v32 = vmul.f32 %v1782_v5, %v4904_v2 }
 0x1d7   : > { %1745 = vrot.lane.b32.xlu0 %v1741_v30, %s7704_s16  ;;  %1761 = vrot.lane.b32.xlu1 %v1756_v38, %s7704_s16  ;;  %v1769_v38 = vmul.f32 %v1768_v35, %v4904_v2 }
 0x1d9   : > { %v4997_v63 = vpop.permute.xlu0 %1149  ;;  %v5000_v48 = vpop.permute.xlu1 %1168 }
 0x1da   : > { %7826 = vst [vmem:[#allocation64_spill] sm:$0xff] %v4997_v63  ;;  %7827 = vst [vmem:[#allocation65_spill] sm:$0xff] %v5000_v48  ;;  %v1796_v48 = vstv %s3993_s6  ;;  %s5202_s6 = sld [smem:[#allocation7 + $0x2b]] }
 0x1db   : > { %1759 = vrot.lane.b32.xlu0 %v1755_v0, %s7704_s16  ;;  %1775 = vrot.lane.b32.xlu1 %v1770_v28, %s7704_s16  ;;  %v1798_v35 = vmul.f32 %v1796_v48, %v4889_v42 }
 0x1dd   : > { %v5007_v30 = vpop.permute.xlu0 %1166  ;;  %v5010_v63 = vpop.permute.xlu1 %1290 }
 0x1de   : > { %7828 = vst [vmem:[#allocation66_spill] sm:$0xff] %v5007_v30  ;;  %7829 = vst [vmem:[#allocation67_spill] sm:$0xff] %v5010_v63  ;;  %v1810_v63 = vstv %s5003_s13  ;;  %v1928_v30 = vstv %s4003_s14  ;;  %s5214_s13 = sld [smem:[#allocation7 + $0x46]] }
 0x1df   : > { %1773 = vrot.lane.b32.xlu0 %v1769_v38, %s7704_s16  ;;  %1789 = vrot.lane.b32.xlu1 %v1784_v12, %s7704_s16  ;;  %v1797_v12 = vmul.f32 %v1796_v48, %v4904_v2  ;;  %v1812_v5 = vmul.f32 %v1810_v63, %v4889_v42  ;;  %v1930_v21 = vmul.f32 %v1928_v30, %v4889_v42  ;;  %v1962_v48 = vstv %s5018_s17  ;;  %s5226_s14 = sld [smem:[#allocation7 + $0x61]] }
 0x1e0   : > { %v1963_v33 = vmul.f32 %v1962_v48, %v4904_v2  ;;  %s5250_s17 = sld [smem:[#allocation7 + $0x97]] }
 0x1e1   : > { %v5015_v0 = vpop.permute.xlu0 %1288  ;;  %v5020_v28 = vpop.permute.xlu1 %1307  ;;  %v1934_v10 = vrot.slane %v1930_v21, 1 }
 0x1e2   : > { %7830 = vst [vmem:[#allocation68_spill] sm:$0xff] %v5015_v0  ;;  %7831 = vst [vmem:[#allocation69_spill] sm:$0xff] %v5020_v28  ;;  %v1929_v28 = vmul.f32 %v1928_v30, %v4904_v2 }
 0x1e3   : > { %1787 = vrot.lane.b32.xlu0 %v1783_v32, %s7704_s16  ;;  %1803 = vrot.lane.b32.xlu1 %v1798_v35, %s7704_s16  ;;  %v1945_v32 = vstv %s4004_s15  ;;  %s5238_s15 = sld [smem:[#allocation7 + $0x7c]] }
 0x1e4   : > { %v1947_v30 = vmul.f32 %v1945_v32, %v4889_v42  ;;  %v1933_v62 = vrot.slane %v1929_v28, 1  ;;  %v1979_v28 = vstv %s5035_s19  ;;  %s5262_s19 = sld [smem:[#allocation7 + $0xb2]] }
 0x1e5   : > { %v5026_v38 = vpop.permute.xlu0 %1305  ;;  %v5029_v0 = vpop.permute.xlu1 %1324 }
 0x1e6   : > { %7832 = vst [vmem:[#allocation70_spill] sm:$0xff] %v5026_v38  ;;  %7833 = vst [vmem:[#allocation71_spill] sm:$0xff] %v5029_v0  ;;  %v1811_v38 = vmul.f32 %v1810_v63, %v4904_v2  ;;  %v1964_v63 = vmul.f32 %v1962_v48, %v4889_v42  ;;  %v1951_v58 = vrot.slane %v1947_v30, 1  ;;  %v1967_v48 = vrot.slane %v1963_v33, 1 }
 0x1e7   : > { %1801 = vrot.lane.b32.xlu0 %v1797_v12, %s7704_s16  ;;  %1817 = vrot.lane.b32.xlu1 %v1812_v5, %s7704_s16  ;;  %v1946_v12 = vmul.f32 %v1945_v32, %v4904_v2 }
 0x1e8   : > { %v1968_v32 = vrot.slane %v1964_v63, 1 }
 0x1e9   : > { %v5038_v35 = vpop.permute.xlu0 %1322  ;;  %v5044_v0 = vpop.permute.xlu1 %1341  ;;  %v1950_v21 = vrot.slane %v1946_v12, 1 }
 0x1ea   : > { %7834 = vst [vmem:[#allocation72_spill] sm:$0xff] %v5038_v35  ;;  %7835 = vst [vmem:[#allocation73_spill] sm:$0xff] %v5044_v0  ;;  %v1935_v0 = vsel %vm371_vm0, %v1933_v62, %v1934_v10 }
 0x1eb   : > { %1815 = vrot.lane.b32.xlu0 %v1811_v38, %s7704_s16  ;;  %1938 = vrot.lane.b32.xlu1 %v1934_v10, %s7698_s20  ;;  %v1952_v62 = vsel %vm371_vm0, %v1950_v21, %v1951_v58  ;;  %v1981_v10 = vmul.f32 %v1979_v28, %v4889_v42 }
 0x1ed   : > { %v5050_v5 = vpop.permute.xlu0 %1339  ;;  %v5053_v35 = vpop.permute.xlu1 %1358 }
 0x1ee   : > { %7836 = vst [vmem:[#allocation74_spill] sm:$0xff] %v5050_v5  ;;  %7837 = vst [vmem:[#allocation75_spill] sm:$0xff] %v5053_v35  ;;  %v1996_v5 = vstv %s5042_s21  ;;  %s5269_s21 = sld [smem:[#allocation7 + $0xcd]] }
 0x1ef   : > { %1936 = vrot.lane.b32.xlu0 %v1935_v0, %s7698_s20  ;;  %1955 = vrot.lane.b32.xlu1 %v1951_v58, %s7698_s20  ;;  %v1980_v0 = vmul.f32 %v1979_v28, %v4904_v2  ;;  %v1998_v12 = vmul.f32 %v1996_v5, %v4889_v42  ;;  %v1969_v58 = vsel %vm371_vm0, %v1967_v48, %v1968_v32  ;;  %v2013_v28 = vstv %s5059_s22  ;;  %s5277_s22 = sld [smem:[#allocation8]] }
 0x1f0   : > { %v1997_v33 = vmul.f32 %v1996_v5, %v4904_v2  ;;  %v2014_v48 = vmul.f32 %v2013_v28, %v4904_v2 }
 0x1f1   : > { %v5062_v38 = vpop.permute.xlu0 %1356  ;;  %v5067_v35 = vpop.permute.xlu1 %1375  ;;  %v1984_v21 = vrot.slane %v1980_v0, 1 }
 0x1f2   : > { %7838 = vst [vmem:[#allocation76_spill] sm:$0xff] %v5062_v38  ;;  %7839 = vst [vmem:[#allocation77_spill] sm:$0xff] %v5067_v35  ;;  %v1985_v38 = vrot.slane %v1981_v10, 1  ;;  %v2030_v35 = vstv %s5065_s23  ;;  %v2015_v10 = vmul.f32 %v2013_v28, %v4889_v42  ;;  %s5280_s23 = sld [smem:[#allocation7]] }
 0x1f3   : > { %1953 = vrot.lane.b32.xlu0 %v1952_v62, %s7698_s20  ;;  %1972 = vrot.lane.b32.xlu1 %v1968_v32, %s7698_s20  ;;  %v2001_v32 = vrot.slane %v1997_v33, 1  ;;  %v2032_v0 = vmul.f32 %v2030_v35, %v4889_v42  ;;  %v2018_v33 = vrot.slane %v2014_v48, 1 }
 0x1f5   : > { %v5074_v30 = vpop.permute.xlu0 %1373  ;;  %v5079_v63 = vpop.permute.xlu1 %1392 }
 0x1f6   : > { %7840 = vst [vmem:[#allocation78_spill] sm:$0xff] %v5074_v30  ;;  %7841 = vst [vmem:[#allocation79_spill] sm:$0xff] %v5079_v63  ;;  %v2002_v30 = vrot.slane %v1998_v12, 1  ;;  %v1986_v63 = vsel %vm371_vm0, %v1984_v21, %v1985_v38  ;;  %v2047_v12 = vstv %s5077_s24  ;;  %s5290_s24 = sld [smem:[#allocation7 + $0x11]] }
 0x1f7   : > { %1970 = vrot.lane.b32.xlu0 %v1969_v58, %s7698_s20  ;;  %1989 = vrot.lane.b32.xlu1 %v1985_v38, %s7698_s20  ;;  %v2019_v38 = vrot.slane %v2015_v10, 1 }
 0x1f8   : > { %v2003_v21 = vsel %vm371_vm0, %v2001_v32, %v2002_v30  ;;  %v2048_v32 = vmul.f32 %v2047_v12, %v4904_v2 }
 0x1f9   : > { %v5086_v62 = vpop.permute.xlu0 %1390  ;;  %v5089_v46 = vpop.permute.xlu1 %1409  ;;  %v2020_v10 = vsel %vm371_vm0, %v2018_v33, %v2019_v38 }
 0x1fa   : > { %7842 = vst [vmem:[#allocation80_spill] sm:$0xff] %v5086_v62  ;;  %7843 = vst [vmem:[#allocation81_spill] sm:$0xff] %v5089_v46  ;;  %v2052_v33 = vrot.slane %v2048_v32, 1 }
 0x1fb   : > { %1987 = vrot.lane.b32.xlu0 %v1986_v63, %s7698_s20  ;;  %2006 = vrot.lane.b32.xlu1 %v2002_v30, %s7698_s20  ;;  %v2031_v63 = vmul.f32 %v2030_v35, %v4904_v2  ;;  %v2064_v35 = vstv %s5095_s25  ;;  %s5292_s25 = sld [smem:[#allocation8 + $0x1]] }
 0x1fd   : > { %v5098_v5 = vpop.permute.xlu0 %1407  ;;  %v5104_v58 = vpop.permute.xlu1 %1426  ;;  %v2035_v30 = vrot.slane %v2031_v63, 1 }
 0x1fe   : > { %7844 = vst [vmem:[#allocation82_spill] sm:$0xff] %v5098_v5  ;;  %7845 = vst [vmem:[#allocation83_spill] sm:$0xff] %v5104_v58  ;;  %v2049_v5 = vmul.f32 %v2047_v12, %v4889_v42  ;;  %v2036_v58 = vrot.slane %v2032_v0, 1  ;;  %v2065_v12 = vmul.f32 %v2064_v35, %v4904_v2 }
 0x1ff   : > { %2004 = vrot.lane.b32.xlu0 %v2003_v21, %s7698_s20  ;;  %2023 = vrot.lane.b32.xlu1 %v2019_v38, %s7698_s20  ;;  %v2066_v38 = vmul.f32 %v2064_v35, %v4889_v42 }
 0x200   : > { %v2053_v21 = vrot.slane %v2049_v5, 1  ;;  %v2037_v0 = vsel %vm371_vm0, %v2035_v30, %v2036_v58  ;;  %v2069_v30 = vrot.slane %v2065_v12, 1 }
 0x201   : > { %v5110_v28 = vpop.permute.xlu0 %1424  ;;  %v5115_v46 = vpop.permute.xlu1 %1443 }
 0x202   : > { %7846 = vst [vmem:[#allocation84_spill] sm:$0xff] %v5110_v28  ;;  %7847 = vst [vmem:[#allocation85_spill] sm:$0xff] %v5115_v46  ;;  %v2081_v28 = vstv %s5102_s27  ;;  %v2070_v46 = vrot.slane %v2066_v38, 1  ;;  %s5295_s27 = sld [smem:[#allocation3 + $0x8]] }
 0x203   : > { %2021 = vrot.lane.b32.xlu0 %v2020_v10, %s7698_s20  ;;  %2040 = vrot.lane.b32.xlu1 %v2036_v58, %s7698_s20  ;;  %v2083_v5 = vmul.f32 %v2081_v28, %v4889_v42  ;;  %v2098_v10 = vstv %s5113_s28  ;;  %v2054_v58 = vsel %vm371_vm0, %v2052_v33, %v2053_v21  ;;  %v2082_v32 = vmul.f32 %v2081_v28, %v4904_v2  ;;  %s5298_s28 = sld [smem:[#allocation3 + $0xa]] }
 0x204   : > { %v2071_v38 = vsel %vm371_vm0, %v2069_v30, %v2070_v46  ;;  %v2099_v33 = vmul.f32 %v2098_v10, %v4904_v2 }
 0x205   : > { %v5122_v48 = vpop.permute.xlu0 %1441  ;;  %v5127_v62 = vpop.permute.xlu1 %1460  ;;  %v2086_v28 = vrot.slane %v2082_v32, 1 }
 0x206   : > { %7848 = vst [vmem:[#allocation86_spill] sm:$0xff] %v5122_v48  ;;  %7849 = vst [vmem:[#allocation87_spill] sm:$0xff] %v5127_v62 }
 0x207   : > { %2038 = vrot.lane.b32.xlu0 %v2037_v0, %s7698_s20  ;;  %2057 = vrot.lane.b32.xlu1 %v2053_v21, %s7698_s20  ;;  %v2100_v0 = vmul.f32 %v2098_v10, %v4889_v42  ;;  %v2087_v21 = vrot.slane %v2083_v5, 1  ;;  %v2132_v10 = vstv %s5143_s8  ;;  %s5310_s8 = sld [smem:[#allocation7 + $0x1b]] }
 0x209   : > { %v5134_v63 = vpop.permute.xlu0 %1458  ;;  %v5138_v48 = vpop.permute.xlu1 %1477  ;;  %v2088_v5 = vsel %vm371_vm0, %v2086_v28, %v2087_v21  ;;  %v2133_v28 = vmul.f32 %v2132_v10, %v4904_v2 }
 0x20a   : > { %7850 = vst [vmem:[#allocation88_spill] sm:$0xff] %v5134_v63  ;;  %7851 = vst [vmem:[#allocation89_spill] sm:$0xff] %v5138_v48  ;;  %v2115_v63 = vstv %s5125_s29  ;;  %s5308_s29 = sld [smem:[#allocation7 + $0x2c]] }
 0x20b   : > { %2055 = vrot.lane.b32.xlu0 %v2054_v58, %s7698_s20  ;;  %2074 = vrot.lane.b32.xlu1 %v2070_v46, %s7704_s16  ;;  %v2117_v58 = vmul.f32 %v2115_v63, %v4889_v42  ;;  %v2103_v46 = vrot.slane %v2099_v33, 1  ;;  %v2116_v30 = vmul.f32 %v2115_v63, %v4904_v2 }
 0x20d   : > { %v5146_v35 = vpop.permute.xlu0 %1475  ;;  %v5152_v62 = vpop.permute.xlu1 %1494 }
 0x20e   : > { %7852 = vst [vmem:[#allocation90_spill] sm:$0xff] %v5146_v35  ;;  %7853 = vst [vmem:[#allocation91_spill] sm:$0xff] %v5152_v62  ;;  %v2104_v62 = vrot.slane %v2100_v0, 1  ;;  %v2134_v0 = vmul.f32 %v2132_v10, %v4889_v42 }
 0x20f   : > { %2072 = vrot.lane.b32.xlu0 %v2071_v38, %s7704_s16  ;;  %2091 = vrot.lane.b32.xlu1 %v2087_v21, %s7704_s16  ;;  %v2121_v38 = vrot.slane %v2117_v58, 1  ;;  %v2120_v21 = vrot.slane %v2116_v30, 1  ;;  %v2166_v58 = vstv %s5161_s10  ;;  %v2137_v30 = vrot.slane %v2133_v28, 1  ;;  %s5319_s10 = sld [smem:[#allocation7 + $0x47]] }
 0x211   : > { %v5158_v12 = vpop.permute.xlu0 %1492  ;;  %v5163_v35 = vpop.permute.xlu1 %1511 }
 0x212   : > { %7854 = vst [vmem:[#allocation92_spill] sm:$0xff] %v5158_v12  ;;  %7855 = vst [vmem:[#allocation93_spill] sm:$0xff] %v5163_v35  ;;  %v2149_v12 = vstv %s5150_s9  ;;  %v2105_v35 = vsel %vm371_vm0, %v2103_v46, %v2104_v62  ;;  %v2122_v46 = vsel %vm371_vm0, %v2120_v21, %v2121_v38  ;;  %v2183_v21 = vstv %s5178_s11  ;;  %s5313_s9 = sld [smem:[#allocation5 + $0x2]] }
 0x213   : > { %2089 = vrot.lane.b32.xlu0 %v2088_v5, %s7704_s16  ;;  %2108 = vrot.lane.b32.xlu1 %v2104_v62, %s7704_s16  ;;  %v2151_v33 = vmul.f32 %v2149_v12, %v4889_v42  ;;  %v2138_v62 = vrot.slane %v2134_v0, 1  ;;  %v2150_v10 = vmul.f32 %v2149_v12, %v4904_v2  ;;  %v2167_v12 = vmul.f32 %v2166_v58, %v4904_v2  ;;  %s5321_s11 = sld [smem:[#allocation8 + $0x2]] }
 0x215   : > { %v5170_v32 = vpop.permute.xlu0 %1509  ;;  %v5173_v48 = vpop.permute.xlu1 %1528  ;;  %v2139_v0 = vsel %vm371_vm0, %v2137_v30, %v2138_v62  ;;  %v2171_v30 = vrot.slane %v2167_v12, 1  ;;  %v2321_v12 = vstv %s5202_s6  ;;  %s5331_s6 = sld [smem:[#allocation8 + $0x3]] }
 0x216   : > { %7856 = vst [vmem:[#allocation94_spill] sm:$0xff] %v5170_v32  ;;  %7857 = vst [vmem:[#allocation95_spill] sm:$0xff] %v5173_v48  ;;  %v2168_v32 = vmul.f32 %v2166_v58, %v4889_v42  ;;  %v2184_v58 = vmul.f32 %v2183_v21, %v4904_v2 }
 0x217   : > { %2106 = vrot.lane.b32.xlu0 %v2105_v35, %s7704_s16  ;;  %2125 = vrot.lane.b32.xlu1 %v2121_v38, %s7704_s16  ;;  %v2154_v38 = vrot.slane %v2150_v10, 1  ;;  %v2304_v10 = vstv %s5190_s12  ;;  %s5328_s12 = sld [smem:[#allocation7 + $0x36]] }
 0x219   : > { %v5182_v63 = vpop.permute.xlu0 %1526  ;;  %v5186_v5 = vpop.permute.xlu1 %1545  ;;  %7879 = sst [smem:[#allocation117_spill]] %s5321_s11 }
 0x21a   : > { %7858 = vst [vmem:[#allocation96_spill] sm:$0xff] %v5182_v63  ;;  %7859 = vst [vmem:[#allocation97_spill] sm:$0xff] %v5186_v5  ;;  %v2155_v63 = vrot.slane %v2151_v33, 1  ;;  %v2172_v33 = vrot.slane %v2168_v32, 1  ;;  %s5509_s11 = sld [smem:[#allocation7 + $0xa8]] }
 0x21b   : > { %2123 = vrot.lane.b32.xlu0 %v2122_v46, %s7704_s16  ;;  %2142 = vrot.lane.b32.xlu1 %v2138_v62, %s7704_s16  ;;  %v2185_v46 = vmul.f32 %v2183_v21, %v4889_v42  ;;  %v2305_v21 = vmul.f32 %v2304_v10, %v4904_v2 }
 0x21c   : > { %v2156_v62 = vsel %vm371_vm0, %v2154_v38, %v2155_v63  ;;  %v2188_v38 = vrot.slane %v2184_v58, 1  ;;  %v2338_v58 = vstv %s5214_s13  ;;  %s5336_s13 = sld [smem:[#allocation7 + $0x51]] }
 0x21d   : > { %v5194_v35 = vpop.permute.xlu0 %1543  ;;  %v5197_v48 = vpop.permute.xlu1 %1607  ;;  %v2189_v32 = vrot.slane %v2185_v46, 1  ;;  %v2340_v5 = vmul.f32 %v2338_v58, %v4889_v42 }
 0x21e   : > { %7860 = vst [vmem:[#allocation98_spill] sm:$0xff] %v5194_v35  ;;  %7861 = vst [vmem:[#allocation99_spill] sm:$0xff] %v5197_v48 }
 0x21f   : > { %2140 = vrot.lane.b32.xlu0 %v2139_v0, %s7704_s16  ;;  %2159 = vrot.lane.b32.xlu1 %v2155_v63, %s7704_s16  ;;  %v2173_v63 = vsel %vm371_vm0, %v2171_v30, %v2172_v33  ;;  %v2309_v30 = vrot.slane %v2305_v21, 2  ;;  %v2355_v21 = vstv %s5226_s14  ;;  %s5341_s14 = sld [smem:[#allocation8 + $0x4]] }
 0x221   : > { %v5206_v28 = vpop.permute.xlu0 %1605  ;;  %v5209_v35 = vpop.permute.xlu1 %1621 }
 0x222   : > { %7862 = vst [vmem:[#allocation100_spill] sm:$0xff] %v5206_v28  ;;  %7863 = vst [vmem:[#allocation101_spill] sm:$0xff] %v5209_v35  ;;  %v2306_v28 = vmul.f32 %v2304_v10, %v4889_v42  ;;  %v2322_v10 = vmul.f32 %v2321_v12, %v4904_v2 }
 0x223   : > { %2157 = vrot.lane.b32.xlu0 %v2156_v62, %s7704_s16  ;;  %2176 = vrot.lane.b32.xlu1 %v2172_v33, %s7704_s16  ;;  %v2190_v33 = vsel %vm371_vm0, %v2188_v38, %v2189_v32 }
 0x224   : > { %v2310_v46 = vrot.slane %v2306_v28, 2  ;;  %v2326_v38 = vrot.slane %v2322_v10, 2  ;;  %v2372_v10 = vstv %s5238_s15  ;;  %s5349_s15 = sld [smem:[#allocation7 + $0x62]] }
 0x225   : > { %v5218_v0 = vpop.permute.xlu0 %1619  ;;  %v5221_v48 = vpop.permute.xlu1 %1635 }
 0x226   : > { %7864 = vst [vmem:[#allocation102_spill] sm:$0xff] %v5218_v0  ;;  %7865 = vst [vmem:[#allocation103_spill] sm:$0xff] %v5221_v48  ;;  %v2323_v0 = vmul.f32 %v2321_v12, %v4889_v42  ;;  %v2339_v12 = vmul.f32 %v2338_v58, %v4904_v2  ;;  %v2356_v58 = vmul.f32 %v2355_v21, %v4904_v2 }
 0x227   : > { %2174 = vrot.lane.b32.xlu0 %v2173_v63, %s7704_s16  ;;  %2193 = vrot.lane.b32.xlu1 %v2189_v32, %s7704_s16  ;;  %v2311_v32 = vsel %vm1180_vm1, %v2309_v30, %v2310_v46 }
 0x228   : > { %v2327_v28 = vrot.slane %v2323_v0, 2  ;;  %v2344_v0 = vrot.slane %v2340_v5, 2  ;;  %v2343_v30 = vrot.slane %v2339_v12, 2  ;;  %v2373_v12 = vmul.f32 %v2372_v10, %v4904_v2 }
 0x229   : > { %v5230_v62 = vpop.permute.xlu0 %1633  ;;  %v5233_v35 = vpop.permute.xlu1 %1649 }
 0x22a   : > { %7866 = vst [vmem:[#allocation104_spill] sm:$0xff] %v5230_v62  ;;  %7867 = vst [vmem:[#allocation105_spill] sm:$0xff] %v5233_v35 }
 0x22b   : > { %2191 = vrot.lane.b32.xlu0 %v2190_v33, %s7704_s16  ;;  %2314 = vrot.lane.b32.xlu1 %v2310_v46, %s7698_s20  ;;  %v2328_v46 = vsel %vm1180_vm1, %v2326_v38, %v2327_v28  ;;  %v2360_v38 = vrot.slane %v2356_v58, 2 }
 0x22d   : > { %v5242_v63 = vpop.permute.xlu0 %1647  ;;  %v5245_v62 = vpop.permute.xlu1 %1663 }
 0x22e   : > { %7868 = vst [vmem:[#allocation106_spill] sm:$0xff] %v5242_v63  ;;  %7869 = vst [vmem:[#allocation107_spill] sm:$0xff] %v5245_v62  ;;  %v2357_v63 = vmul.f32 %v2355_v21, %v4889_v42  ;;  %v2389_v21 = vstv %s5250_s17  ;;  %s5353_s17 = sld [smem:[#allocation7 + $0x6c]] }
 0x22f   : > { %2312 = vrot.lane.b32.xlu0 %v2311_v32, %s7698_s20  ;;  %2331 = vrot.lane.b32.xlu1 %v2327_v28, %s7698_s20  ;;  %v2345_v28 = vsel %vm1180_vm1, %v2343_v30, %v2344_v0  ;;  %v2377_v30 = vrot.slane %v2373_v12, 2  ;;  %v2390_v58 = vmul.f32 %v2389_v21, %v4904_v2 }
 0x230   : > { %v2361_v5 = vrot.slane %v2357_v63, 2 }
 0x231   : > { %v5254_v33 = vpop.permute.xlu0 %1661  ;;  %v5257_v48 = vpop.permute.xlu1 %1677 }
 0x232   : > { %7870 = vst [vmem:[#allocation108_spill] sm:$0xff] %v5254_v33  ;;  %7871 = vst [vmem:[#allocation109_spill] sm:$0xff] %v5257_v48  ;;  %v2374_v33 = vmul.f32 %v2372_v10, %v4889_v42  ;;  %v2406_v10 = vstv %s5262_s19  ;;  %s5363_s19 = sld [smem:[#allocation7 + $0x7d]] }
 0x233   : > { %2329 = vrot.lane.b32.xlu0 %v2328_v46, %s7698_s20  ;;  %2348 = vrot.lane.b32.xlu1 %v2344_v0, %s7698_s20  ;;  %v2362_v0 = vsel %vm1180_vm1, %v2360_v38, %v2361_v5 }
 0x234   : > { %v2378_v46 = vrot.slane %v2374_v33, 2 }
 0x235   : > { %v5266_v32 = vpop.permute.xlu0 %1675  ;;  %v5271_v62 = vpop.permute.xlu1 %1691 }
 0x236   : > { %7872 = vst [vmem:[#allocation110_spill] sm:$0xff] %v5266_v32  ;;  %7873 = vst [vmem:[#allocation111_spill] sm:$0xff] %v5271_v62  ;;  %v2391_v32 = vmul.f32 %v2389_v21, %v4889_v42  ;;  %v2379_v12 = vsel %vm1180_vm1, %v2377_v30, %v2378_v46 }
 0x237   : > { %2346 = vrot.lane.b32.xlu0 %v2345_v28, %s7698_s20  ;;  %2365 = vrot.lane.b32.xlu1 %v2361_v5, %s7698_s20  ;;  %v2408_v5 = vmul.f32 %v2406_v10, %v4889_v42  ;;  %v2423_v28 = vstv %s5269_s21  ;;  %s5365_s21 = sld [smem:[#allocation8 + $0x5]] }
 0x238   : > { %v2395_v21 = vrot.slane %v2391_v32, 2 }
 0x239   : > { %v5282_v63 = vpop.permute.xlu0 %1689  ;;  %v5285_v62 = vpop.permute.xlu1 %1705  ;;  %v2412_v32 = vrot.slane %v2408_v5, 2  ;;  %v453_v5 = vstv %s5295_s27  ;;  %s5378_s27 = sld [smem:[#allocation7 + $0xa2]] }
 0x23a   : > { %7874 = vst [vmem:[#allocation112_spill] sm:$0xff] %v5282_v63  ;;  %7875 = vst [vmem:[#allocation113_spill] sm:$0xff] %v5285_v62  ;;  %v2394_v62 = vrot.slane %v2390_v58, 2  ;;  %v2457_v63 = vstv %s5308_s29  ;;  %s5389_s29 = sld [smem:[#allocation7 + $0xbd]] }
 0x23b   : > { %2363 = vrot.lane.b32.xlu0 %v2362_v0, %s7698_s20  ;;  %2382 = vrot.lane.b32.xlu1 %v2378_v46, %s7698_s20  ;;  %v2407_v0 = vmul.f32 %v2406_v10, %v4904_v2  ;;  %v2425_v46 = vmul.f32 %v2423_v28, %v4889_v42 }
 0x23c   : > { %v2396_v10 = vsel %vm1180_vm1, %v2394_v62, %v2395_v21 }
 0x23d   : > { %v5300_v33 = vpop.permute.xlu0 %1703  ;;  %v5304_v38 = vpop.permute.xlu1 %1719  ;;  %v2411_v58 = vrot.slane %v2407_v0, 2  ;;  %7884 = sst [smem:[#allocation122_spill]] %s5365_s21 }
 0x23e   : > { %7876 = vst [vmem:[#allocation114_spill] sm:$0xff] %v5300_v33  ;;  %7877 = vst [vmem:[#allocation115_spill] sm:$0xff] %v5304_v38  ;;  %v2424_v33 = vmul.f32 %v2423_v28, %v4904_v2  ;;  %s5530_s21 = sld [smem:[#allocation7 + $0x24]] }
 0x23f   : > { %2380 = vrot.lane.b32.xlu0 %v2379_v12, %s7698_s20  ;;  %2399 = vrot.lane.b32.xlu1 %v2395_v21, %s7698_s20  ;;  %v2440_v12 = vstv %s5290_s24  ;;  %v2429_v21 = vrot.slane %v2425_v46, 2  ;;  %v4202_v46 = vld [vmem:[%s4460_s18] sm:$0xff]  ;;  %s5374_s24 = sld [smem:[#allocation8 + $0x6]] }
 0x240   : > { %v2442_v28 = vmul.f32 %v2440_v12, %v4889_v42  ;;  %v2441_v48 = vmul.f32 %v2440_v12, %v4904_v2  ;;  %v454_v35 = vmul.f32 %v4202_v46, %v453_v5 }
 0x241   : > { %v5316_v38 = vpop.permute.xlu0 %1717  ;;  %v5323_v30 = vpop.permute.xlu1 %1733 }
 0x242   : > { %7878 = vst [vmem:[#allocation116_spill] sm:$0xff] %v5316_v38  ;;  %7880 = vst [vmem:[#allocation118_spill] sm:$0xff] %v5323_v30  ;;  %v473_v38 = vstv %s5298_s28  ;;  %v2428_v30 = vrot.slane %v2424_v33, 2  ;;  %v2459_v33 = vmul.f32 %v2457_v63, %v4889_v42  ;;  %v2445_v49 = vrot.slane %v2441_v48, 2  ;;  %s5383_s28 = sld [smem:[#allocation8 + $0x7]] }
 0x243   : > { %2397 = vrot.lane.b32.xlu0 %v2396_v10, %s7698_s20  ;;  %2416 = vrot.lane.b32.xlu1 %v2412_v32, %s7698_s20  ;;  %v2413_v10 = vsel %vm1180_vm1, %v2411_v58, %v2412_v32  ;;  %v474_v13 = vmul.f32 %v4202_v46, %v473_v38  ;;  %v2474_v58 = vstv %s5319_s10  ;;  %v2458_v46 = vmul.f32 %v2457_v63, %v4904_v2  ;;  %s5403_s10 = sld [smem:[#allocation7 + $0x98]] }
 0x244   : > { %v2430_v7 = vsel %vm1180_vm1, %v2428_v30, %v2429_v21  ;;  %v2476_v48 = vmul.f32 %v2474_v58, %v4889_v42 }
 0x245   : > { %v5338_v62 = vpop.permute.xlu0 %1731  ;;  %v5343_v0 = vpop.permute.xlu1 %1747  ;;  %7886 = sst [smem:[#allocation124_spill]] %s5374_s24 }
 0x246   : > { %7881 = vst [vmem:[#allocation119_spill] sm:$0xff] %v5338_v62  ;;  %7882 = vst [vmem:[#allocation120_spill] sm:$0xff] %v5343_v0  ;;  %v450_v62 = vstv %s5313_s9  ;;  %v4203_v0 = vld [vmem:[%s4460_s18 + $0x8] sm:$0xff]  ;;  %s5371_s18 = sld [smem:[#allocation7 + $0x87]] }
 0x247   : > { %2414 = vrot.lane.b32.xlu0 %v2413_v10, %s7698_s20  ;;  %2433 = vrot.lane.b32.xlu1 %v2429_v21, %s7698_s20  ;;  %v5357_v19 = vmul.f32 %v4203_v0, %v473_v38  ;;  %v2446_v10 = vrot.slane %v2442_v28, 2  ;;  %v478_v38 = vrot.slane %v474_v13, 1  ;;  %v456_v40 = vadd.f32 %v454_v35, %v450_v62  ;;  %s5393_s9 = sld [smem:[#allocation7 + $0x3]] }
 0x248   : > { %v2462_v21 = vrot.slane %v2458_v46, 2  ;;  %v2475_v13 = vmul.f32 %v2474_v58, %v4904_v2  ;;  %v2491_v35 = vstv %s5349_s15  ;;  %v2508_v58 = vstv %s5363_s19  ;;  %s5413_s15 = sld [smem:[#allocation7 + $0x13]] }
 0x249   : > { %v5359_v32 = vpop.permute.xlu0 %1745  ;;  %v5367_v12 = vpop.permute.xlu1 %1761  ;;  %v2447_v30 = vsel %vm1180_vm1, %v2445_v49, %v2446_v10  ;;  %s5418_s19 = sld [smem:[#allocation7 + $0x54]]  ;;  %v7953_v31 = vstv %s5383_s28 }
 0x24a   : > { %7883 = vst [vmem:[#allocation121_spill] sm:$0xff] %v5359_v32  ;;  %7885 = vst [vmem:[#allocation123_spill] sm:$0xff] %v5367_v12  ;;  %v455_v32 = vmul.f32 %v4203_v0, %v453_v5  ;;  %v2493_v0 = vmul.f32 %v2491_v35, %v4889_v42  ;;  %v2492_v12 = vmul.f32 %v2491_v35, %v4904_v2 }
 0x24b   : > { %2431 = vrot.lane.b32.xlu0 %v2430_v7, %s7698_s20  ;;  %2450 = vrot.lane.b32.xlu1 %v2446_v10, %s7704_s16  ;;  %v2463_v7 = vrot.slane %v2459_v33, 2  ;;  %v470_v33 = vadd.f32 %v4641_v57, %v456_v40  ;;  %v2480_v10 = vrot.slane %v2476_v48, 2  ;;  %s5405_s20 = sld [smem:[#allocation7 + $0x1e]]  ;;  %v2509_v35 = vmul.f32 %v2508_v58, %v4904_v2 }
 0x24c   : > { %v457_v57 = vadd.f32 %v455_v32, %v450_v62 }
 0x24d   : > { %v5380_v28 = vpop.permute.xlu0 %1759  ;;  %v5385_v63 = vpop.permute.xlu1 %1775  ;;  %v2464_v5 = vsel %vm1180_vm1, %v2462_v21, %v2463_v7 }
 0x24e   : > { %7887 = vst [vmem:[#allocation125_spill] sm:$0xff] %v5380_v28  ;;  %7888 = vst [vmem:[#allocation126_spill] sm:$0xff] %v5385_v63  ;;  %v7889_v28 = vrot.slane %v5357_v19, 1  ;;  %v471_v62 = vadd.f32 %v4636_v53, %v457_v57  ;;  %v2624_v53 = vstv %s5413_s15  ;;  %s5466_s15 = sld [smem:[#allocation7 + $0x3c]] }
 0x24f   : > { %2448 = vrot.lane.b32.xlu0 %v2447_v30, %s7704_s16  ;;  %2467 = vrot.lane.b32.xlu1 %v2463_v7, %s7704_s16  ;;  %v2479_v30 = vrot.slane %v2475_v13, 2  ;;  %v2497_v7 = vrot.slane %v2493_v0, 2  ;;  %v2496_v13 = vrot.slane %v2492_v12, 2  ;;  %v2525_v12 = vstv %s5403_s10  ;;  %s5462_s10 = sld [smem:[#allocation7 + $0x21]] }
 0x250   : > { %v480_v63 = vsel %vm371_vm0, %v478_v38, %v7889_v28  ;;  %v2510_v28 = vmul.f32 %v2508_v58, %v4889_v42  ;;  %v2526_v0 = vmul.f32 %v2525_v12, %v4904_v2  ;;  %v7956_v39 = vstv %s5418_s19  ;;  %s6019_s19 = sld [smem:[#allocation7 + $0x4c]] }
 0x251   : > { %v5400_v49 = vpop.permute.xlu0 %1773  ;;  %v5407_v46 = vpop.permute.xlu1 %1789  ;;  %v483_v40 = vadd.f32 %v480_v63, %v470_v33  ;;  %v2481_v21 = vsel %vm1180_vm1, %v2479_v30, %v2480_v10  ;;  %v2498_v58 = vsel %vm1180_vm1, %v2496_v13, %v2497_v7  ;;  %v7897_v30 = vrot.slane %v5357_v19, 1 }
 0x252   : > { %7890 = vst [vmem:[#allocation127_spill] sm:$0xff] %v5400_v49  ;;  %7891 = vst [vmem:[#allocation128_spill] sm:$0xff] %v5407_v46  ;;  %v2530_v13 = vrot.slane %v2526_v0, 2  ;;  %v2638_v19 = vstv %s5430_s2  ;;  %s5486_s2 = sld [smem:[#allocation7 + $0x72]]  ;;  %v533_v0 = vstv %s5310_s8  ;;  %v839_v16 = vmul.f32 %v7956_v39, %v4507_v54 }
 0x253   : > { %2465 = vrot.lane.b32.xlu0 %v2464_v5, %s7704_s16  ;;  %2484 = vrot.lane.b32.xlu1 %v2480_v10, %s7704_s16  ;;  %v5437_v32 = vadd.f32 %v4657_v9, %v483_v40  ;;  %v2514_v10 = vrot.slane %v2510_v28, 2  ;;  %v2513_v5 = vrot.slane %v2509_v35, 2  ;;  %v5458_v9 = vmul.f32 %v2525_v12, %v4889_v42  ;;  %s5504_s8 = sld [smem:[#allocation7 + $0x2f]] }
 0x254   : > { %v484_v57 = vadd.f32 %v7897_v30, %v471_v62  ;;  %v2736_v30 = vstv %s5452_s26  ;;  %v545_v12 = vstv %s5336_s13  ;;  %s5523_s26 = sld [smem:[#allocation7 + $0x9]]  ;;  %v843_v3 = vrot.slane %v839_v16, 1 }
 0x255   : > { %v5420_v38 = vpop.permute.xlu0 %1787  ;;  %v5425_v48 = vpop.permute.xlu1 %1803  ;;  %7898 = sst [smem:[#allocation134_spill]] %s5462_s10  ;;  %v7708_v35 = vrot.slane %v5458_v9, 2 }
 0x256   : > { %7892 = vst [vmem:[#allocation129_spill] sm:$0xff] %v5420_v38  ;;  %7893 = vst [vmem:[#allocation130_spill] sm:$0xff] %v5425_v48  ;;  %s5476_s10 = sld [smem:[#allocation7 + $0x57]]  ;;  %v5481_v62 = vadd.f32 %v4648_v1, %v484_v57  ;;  %v2639_v1 = vmul.f32 %v2638_v19, %v5437_v32 }
 0x257   : > { %2482 = vrot.lane.b32.xlu0 %v2481_v21, %s7704_s16  ;;  %2501 = vrot.lane.b32.xlu1 %v2497_v7, %s7704_s16  ;;  %v2625_v7 = vmul.f32 %v2624_v53, %v5437_v32  ;;  %v2515_v21 = vsel %vm1180_vm1, %v2513_v5, %v2514_v10  ;;  %v2532_v57 = vsel %vm1180_vm1, %v2530_v13, %v7708_v35  ;;  %s7909_s13 = sld [smem:[#allocation133_spill]] }
 0x258   : > { %s7910_s24 = sld [smem:[#allocation134_spill]]  ;;  %v2640_v35 = vmul.f32 %v2638_v19, %v5481_v62  ;;  %v535_v19 = vmul.f32 %v533_v0, %v4504_v50 }
 0x259   : > { %v5441_v63 = vpop.permute.xlu0 %1801  ;;  %v5446_v33 = vpop.permute.xlu1 %1817  ;;  %7911 = sst [smem:[#allocation133_spill]] %s5530_s21  ;;  %v2750_v38 = vstv %s5504_s8 }
 0x25a   : > { %7894 = vst [vmem:[#allocation131_spill] sm:$0xff] %v5441_v63  ;;  %7895 = vst [vmem:[#allocation132_spill] sm:$0xff] %v5446_v33  ;;  %7907 = sst [smem:[#allocation141_spill]] %s5523_s26 }
 0x25b   : > { %2499 = vrot.lane.b32.xlu0 %v2498_v58, %s7704_s16  ;;  %2518 = vrot.lane.b32.xlu1 %v2514_v10, %s7704_s16  ;;  %v527_v10 = vstv %s5280_s23  ;;  %s7904_s23 = smov 126   ;;  %v2737_v58 = vmul.f32 %v2736_v30, %v5437_v32  ;;  %s7915_s8 = sld [smem:[#allocation117_spill]] }
 0x25c   : > { %v528_v48 = vmul.f32 %v527_v10, %v4507_v54  ;;  %s5586_s26 = sld [smem:[#allocation7 + $0x16]] }
 0x25d   : > { %v5464_v40 = vpop.permute.xlu0 %1815  ;;  %v5468_v28 = vpop.permute.xlu1 %1938  ;;  %s7925_s21 = sld [smem:[#allocation122_spill]] }
 0x25e   : > { %7899 = vst [vmem:[#allocation135_spill] sm:$0xff] %v5464_v40  ;;  %7900 = vst [vmem:[#allocation136_spill] sm:$0xff] %v5468_v28  ;;  %v529_v40 = vmul.f32 %v527_v10, %v4504_v50  ;;  %v547_v10 = vmul.f32 %v545_v12, %v4504_v50  ;;  %s8025_s28 = sld [smem:[#allocation133_spill]] }
 0x25f   : > { %2516 = vrot.lane.b32.xlu0 %v2515_v21, %s7704_s16  ;;  %2629 = vrot.lane.b32.xlu1 %v2625_v7, %s7901_s7  ;;  %s5492_s16 = sld [smem:[#allocation7 + $0x8d]]  ;;  %v539_v21 = vstv %s5328_s12 }
 0x260   : > { %s5515_s12 = sld [smem:[#allocation7 + $0xc3]] }
 0x261   : > { %v5488_v5 = vpop.permute.xlu0 %1936  ;;  %v5494_v7 = vpop.permute.xlu1 %1955 }
 0x262   : > { %7902 = vst [vmem:[#allocation137_spill] sm:$0xff] %v5488_v5  ;;  %7903 = vst [vmem:[#allocation138_spill] sm:$0xff] %v5494_v7  ;;  %v2626_v5 = vmul.f32 %v2624_v53, %v5481_v62  ;;  %v2652_v53 = vstv %s5474_s30  ;;  %s5555_s30 = sld [smem:[#allocation7 + $0x64]] }
 0x263   : > { %2533 = vrot.lane.b32.xlu0 %v2532_v57, %s7904_s23  ;;  %2643 = vrot.lane.b32.xlu1 %v2639_v1, %s7901_s7  ;;  %v2653_v7 = vmul.f32 %v2652_v53, %v5437_v32 }
 0x265   : > { %v5517_v57 = vpop.permute.xlu0 %1953  ;;  %v5525_v1 = vpop.permute.xlu1 %1972 }
 0x266   : > { %7905 = sst [smem:[#allocation139_spill]] %s5515_s12  ;;  %7906 = vst [vmem:[#allocation140_spill] sm:$0xff] %v5517_v57  ;;  %7908 = vst [vmem:[#allocation142_spill] sm:$0xff] %v5525_v1  ;;  %v534_v57 = vmul.f32 %v533_v0, %v4507_v54  ;;  %v2751_v0 = vmul.f32 %v2750_v38, %v5437_v32 }
 0x267   : > { %2631 = vrot.lane.b32.xlu0 %v2626_v5, %s7901_s7  ;;  %2741 = vrot.lane.b32.xlu1 %v2737_v58, %s7904_s23  ;;  %v541_v58 = vmul.f32 %v539_v21, %v4504_v50  ;;  %v540_v5 = vmul.f32 %v539_v21, %v4507_v54  ;;  %s5574_s12 = sld [smem:[#allocation7 + $0x4a]]  ;;  %v546_v21 = vmul.f32 %v545_v12, %v4507_v54  ;;  %v7922_v12 = vstv %s5353_s17 }
 0x268   : > { %v552_v63 = vmul.f32 %v7922_v12, %v4507_v54  ;;  %v7928_v12 = vstv %s5331_s6  ;;  %s5901_s6 = sld [smem:[#allocation7 + $0x3f]] }
 0x269   : > { %v5541_v13 = vpop.permute.xlu0 %1970  ;;  %v5547_v28 = vpop.permute.xlu1 %1989  ;;  %v5619_v61 = vadd.f32 %v547_v10, %v7928_v12 }
 0x26a   : > { %7912 = vst [vmem:[#allocation143_spill] sm:$0xff] %v5541_v13  ;;  %7913 = vst [vmem:[#allocation144_spill] sm:$0xff] %v5547_v28  ;;  %v2738_v13 = vmul.f32 %v2736_v30, %v5481_v62  ;;  %v7918_v30 = vstv %s5353_s17  ;;  %s5922_s17 = sld [smem:[#allocation7 + $0x75]] }
 0x26b   : > { %2645 = vrot.lane.b32.xlu0 %v2640_v35, %s7901_s7  ;;  %2657 = vrot.lane.b32.xlu1 %v2653_v7, %s7901_s7  ;;  %v7917_v35 = vstv %s5277_s22  ;;  %v553_v1 = vmul.f32 %v7918_v30, %v4504_v50  ;;  %v7921_v30 = vstv %s5371_s18  ;;  %s7935_s22 = sld [smem:[#allocation124_spill]] }
 0x26c   : > { %v559_v46 = vmul.f32 %v7921_v30, %v4504_v50  ;;  %v2654_v30 = vmul.f32 %v2652_v53, %v5481_v62  ;;  %v7934_v53 = vmov %v7928_v12  ;;  %v7936_v12 = vstv %s5393_s9 }
 0x26d   : > { %v5565_v33 = vpop.permute.xlu0 %1987  ;;  %v5571_v7 = vpop.permute.xlu1 %2006  ;;  %v5639_v10 = vadd.f32 %v546_v21, %v7934_v53  ;;  %v7940_v21 = vstv %s5389_s29  ;;  %s5987_s29 = sld [smem:[#allocation7 + $0x42]] }
 0x26e   : > { %7914 = vst [vmem:[#allocation145_spill] sm:$0xff] %v5565_v33  ;;  %7916 = vst [vmem:[#allocation146_spill] sm:$0xff] %v5571_v7  ;;  %v5578_v33 = vadd.f32 %v529_v40, %v7917_v35  ;;  %v7919_v7 = vstv %s5292_s25  ;;  %v7920_v40 = vmov %v7917_v35  ;;  %s5648_s25 = sld [smem:[#allocation7 + $0xb3]]  ;;  %v571_v53 = vmul.f32 %v7940_v21, %v4504_v50 }
 0x26f   : > { %2743 = vrot.lane.b32.xlu0 %v2738_v13, %s7904_s23  ;;  %v5590_v49 = vadd.f32 %v535_v19, %v7919_v7  ;;  %v5594_v35 = vadd.f32 %v528_v48, %v7920_v40  ;;  %2755 = vrot.lane.b32.xlu1 %v2751_v0, %s7904_s23  ;;  %v7923_v13 = vstv %s7915_s8  ;;  %v7924_v44 = vmov %v7919_v7  ;;  %s6178_s8 = sld [smem:[#allocation7 + $0x9b]] }
 0x270   : > { %v5605_v28 = vadd.f32 %v541_v58, %v7923_v13  ;;  %v5609_v19 = vadd.f32 %v534_v57, %v7924_v44  ;;  %v7926_v48 = vstv %s5393_s9  ;;  %v7929_v0 = vmov %v7923_v13  ;;  %s5996_s9 = sld [smem:[#allocation7 + $0x80]] }
 0x271   : > { %v800_v7 = vmul.f32 %v7926_v48, %v4507_v54  ;;  %v5614_v40 = vpop.permute.xlu0 %2004  ;;  %v5623_v58 = vadd.f32 %v540_v5, %v7929_v0  ;;  %v7930_v44 = vstv %s5378_s27  ;;  %v7931_v13 = vstv %s5371_s18  ;;  %v5631_v26 = vpop.permute.xlu1 %2023  ;;  %s5945_s18 = sld [smem:[#allocation7 + $0xab]] }
 0x272   : > { %7927 = vst [vmem:[#allocation147_spill] sm:$0xff] %v5614_v40  ;;  %v565_v57 = vmul.f32 %v7930_v44, %v4504_v50  ;;  %v558_v48 = vmul.f32 %v7931_v13, %v4507_v54  ;;  %7932 = vst [vmem:[#allocation148_spill] sm:$0xff] %v5631_v26  ;;  %v7933_v40 = vstv %s5341_s14  ;;  %v5644_v5 = vmul.f32 %v7936_v12, %v4504_v50  ;;  %s5906_s14 = sld [smem:[#allocation7 + $0x5a]] }
 0x273   : > { %v5635_v47 = vadd.f32 %v553_v1, %v7933_v40  ;;  %2659 = vrot.lane.b32.xlu0 %v2654_v30, %s7901_s7  ;;  %v2666_v0 = vstv %s5555_s30  ;;  %v7938_v44 = vstv %s7925_s21  ;;  %v7939_v1 = vmov %v7933_v40  ;;  %s6165_s30 = sld [smem:[#allocation7 + $0xc9]] }
 0x274   : > { %7937 = vst [vmem:[#allocation149_spill] sm:$0xff] %v5644_v5  ;;  %v5652_v13 = vadd.f32 %v559_v46, %v7938_v44  ;;  %v5656_v40 = vadd.f32 %v552_v63, %v7939_v1  ;;  %v7941_v26 = vstv %s5378_s27  ;;  %v7942_v30 = vrot.slane %v5458_v9, 2  ;;  %s8024_s27 = sld [smem:[#allocation141_spill]] }
 0x275   : > { %v564_v12 = vmul.f32 %v7941_v26, %v4507_v54  ;;  %v7943_v23 = vmov %v7940_v21  ;;  %v7944_v44 = vstv %s5405_s20  ;;  %v804_v1 = vrot.slane %v800_v7, 1  ;;  %v5675_v21 = vpop.permute.xlu0 %2021 }
 0x276   : > { %2535 = vrot.lane.b32.xlu1 %v7942_v30, %s7904_s23  ;;  %v570_v46 = vmul.f32 %v7943_v23, %v4507_v54  ;;  %v5673_v63 = vmul.f32 %v7944_v44, %v4504_v50  ;;  %7946 = vst [vmem:[#allocation151_spill] sm:$0xff] %v5675_v21  ;;  %v2752_v26 = vmul.f32 %v2750_v38, %v5481_v62  ;;  %v7947_v15 = vstv %s7935_s22  ;;  %v5691_v44 = vpop.permute.xlu1 %2040 }
 0x277   : > { %v5680_v9 = vadd.f32 %v565_v57, %v7947_v15  ;;  %v7948_v30 = vstv %s7925_s21  ;;  %v7949_v23 = vstv %s5415_s0  ;;  %7951 = vst [vmem:[#allocation153_spill] sm:$0xff] %v5691_v44  ;;  %v2668_v7 = vmul.f32 %v2666_v0, %v5481_v62  ;;  %s5932_s21 = sld [smem:[#allocation7 + $0x90]] }
 0x278   : > { %7945 = vst [vmem:[#allocation150_spill] sm:$0xff] %v5673_v63  ;;  %v5684_v52 = vadd.f32 %v558_v48, %v7948_v30  ;;  %v5689_v59 = vmul.f32 %v7949_v23, %v4504_v50  ;;  %v7952_v21 = vstv %s5405_s20  ;;  %2757 = vrot.lane.b32.xlu0 %v2752_v26, %s7904_s23  ;;  %v2764_v15 = vstv %s5574_s12  ;;  %s8008_s20 = sld [smem:[#allocation139_spill]] }
 0x279   : > { %v813_v38 = vmul.f32 %v7952_v21, %v4507_v54  ;;  %v2952_v57 = vstv %s5586_s26  ;;  %v5703_v48 = vadd.f32 %v571_v53, %v7953_v31  ;;  %v7954_v30 = vstv %s7935_s22  ;;  %s6088_s12 = sld [smem:[#allocation7 + $0x93]] }
 0x27a   : > { %7950 = vst [vmem:[#allocation152_spill] sm:$0xff] %v5689_v59  ;;  %v5707_v23 = vadd.f32 %v564_v12, %v7954_v30  ;;  %v7955_v44 = vstv %s5415_s0  ;;  %2673 = vrot.lane.b32.xlu1 %v2668_v7, %s7901_s7  ;;  %v7957_v21 = vmov %v7953_v31  ;;  %v7958_v53 = vrot.slane %v5644_v5, 1  ;;  %v5726_v30 = vpop.permute.xlu0 %2038  ;;  %v5730_v7 = vpop.permute.xlu1 %2057  ;;  %s5747_s0 = sld [smem:[#allocation7 + $0x7f]] }
 0x27b   : > { %v826_v22 = vmul.f32 %v7955_v44, %v4507_v54  ;;  %v5718_v26 = vadd.f32 %v570_v46, %v7957_v21  ;;  %7960 = vst [vmem:[#allocation155_spill] sm:$0xff] %v5726_v30  ;;  %v2667_v44 = vmul.f32 %v2666_v0, %v5437_v32  ;;  %7961 = vst [vmem:[#allocation156_spill] sm:$0xff] %v5730_v7  ;;  %v7962_v31 = vmov %v7956_v39  ;;  %s6141_s26 = sld [smem:[#allocation7 + $0xae]] }
 0x27c   : > { %v5724_v12 = vsel %vm371_vm0, %v804_v1, %v7958_v53  ;;  %v2766_v46 = vmul.f32 %v2764_v15, %v5481_v62  ;;  %v2954_v21 = vmul.f32 %v2952_v57, %v5481_v62  ;;  %v2953_v1 = vmul.f32 %v2952_v57, %v5437_v32  ;;  %s6194_s22 = sld [smem:[#allocation7 + $0x67]] }
 0x27d   : > { %7959 = vst [vmem:[#allocation154_spill] sm:$0xff] %v5724_v12  ;;  %v817_v53 = vrot.slane %v813_v38, 1  ;;  %v5738_v30 = vmul.f32 %v7962_v31, %v4504_v50  ;;  %v7964_v0 = vstv %s5423_s1  ;;  %2671 = vrot.lane.b32.xlu0 %v2667_v44, %s7901_s7  ;;  %v2542_v39 = vstv %s5648_s25  ;;  %s5774_s1 = sld [smem:[#allocation7 + $0x65]] }
 0x27e   : > { %v5743_v12 = vmul.f32 %v7964_v0, %v4504_v50  ;;  %v830_v7 = vrot.slane %v826_v22, 1  ;;  %v7966_v8 = vmov %v7964_v0  ;;  %v7967_v38 = vstv %s5432_s3  ;;  %2771 = vrot.lane.b32.xlu1 %v2766_v46, %s7904_s23  ;;  %v5767_v16 = vpop.permute.xlu0 %2055  ;;  %v5770_v41 = vpop.permute.xlu1 %2074  ;;  %s5789_s3 = sld [smem:[#allocation7 + $0x31]] }
 0x27f   : > { %7963 = vst [vmem:[#allocation157_spill] sm:$0xff] %v5738_v30  ;;  %v852_v5 = vmul.f32 %v7966_v8, %v4507_v54  ;;  %v865_v57 = vmul.f32 %v7967_v38, %v4507_v54  ;;  %v7968_v31 = vmov %v7967_v38  ;;  %v7970_v44 = vstv %s5439_s4  ;;  %7972 = vst [vmem:[#allocation160_spill] sm:$0xff] %v5767_v16  ;;  %s6224_s25 = sld [smem:[#allocation7 + $0x4d]] }
 0x280   : > { %7965 = vst [vmem:[#allocation158_spill] sm:$0xff] %v5743_v12  ;;  %v5759_v0 = vmul.f32 %v7968_v31, %v4504_v50  ;;  %v878_v51 = vmul.f32 %v7970_v44, %v4507_v54  ;;  %v891_v22 = vmul.f32 %v7971_v55, %v4507_v54  ;;  %v2765_v8 = vmul.f32 %v2764_v15, %v5437_v32 }
 0x281   : > { %7973 = vst [vmem:[#allocation161_spill] sm:$0xff] %v5770_v41  ;;  %v2958_v38 = vrot.slane %v2954_v21, 1  ;;  %v2544_v46 = vmul.f32 %v2542_v39, %v4889_v42  ;;  %v2957_v36 = vrot.slane %v2953_v1, 1  ;;  %v2543_v31 = vmul.f32 %v2542_v39, %v4904_v2 }
 0x282   : > { %7969 = vst [vmem:[#allocation159_spill] sm:$0xff] %v5759_v0  ;;  %v7974_v44 = vrot.slane %v5673_v63, 1  ;;  %v7976_v41 = vstv %s5439_s4  ;;  %2769 = vrot.lane.b32.xlu0 %v2765_v8, %s7904_s23  ;;  %v7978_v39 = vrot.slane %v5689_v59, 1  ;;  %v7980_v16 = vstv %s5444_s5  ;;  %s5829_s4 = sld [smem:[#allocation7 + $0x17]] }
 0x283   : > { %v5786_v21 = vmul.f32 %v7976_v41, %v4504_v50  ;;  %v5799_v15 = vmul.f32 %v7980_v16, %v4504_v50  ;;  %2962 = vrot.lane.b32.xlu1 %v2958_v38, %s7901_s7  ;;  %v7982_v41 = vrot.slane %v5738_v30, 1  ;;  %v5813_v16 = vpop.permute.xlu1 %2091  ;;  %v2548_v59 = vrot.slane %v2544_v46, 2  ;;  %s5863_s5 = sld [smem:[#allocation7 + $0xce]] }
 0x284   : > { %v5779_v55 = vsel %vm371_vm0, %v817_v53, %v7974_v44  ;;  %v5794_v1 = vsel %vm371_vm0, %v830_v7, %v7978_v39  ;;  %v856_v53 = vrot.slane %v852_v5, 1  ;;  %v869_v44 = vrot.slane %v865_v57, 1  ;;  %v5811_v57 = vpop.permute.xlu0 %2072  ;;  %7986 = vst [vmem:[#allocation168_spill] sm:$0xff] %v5813_v16 }
 0x285   : > { %7975 = vst [vmem:[#allocation162_spill] sm:$0xff] %v5779_v55  ;;  %7977 = vst [vmem:[#allocation163_spill] sm:$0xff] %v5786_v21  ;;  %v5805_v8 = vsel %vm371_vm0, %v843_v3, %v7982_v41  ;;  %v882_v7 = vrot.slane %v878_v51, 1  ;;  %v7984_v39 = vstv %s7909_s13  ;;  %v2959_v63 = vsel %vm371_vm0, %v2957_v36, %v2958_v38  ;;  %s6157_s13 = sld [smem:[#allocation7 + $0xb5]] }
 0x286   : > { %7979 = vst [vmem:[#allocation164_spill] sm:$0xff] %v5794_v1  ;;  %7981 = vst [vmem:[#allocation165_spill] sm:$0xff] %v5799_v15  ;;  %v1176_v5 = vmul.f32 %v7984_v39, %v4507_v54  ;;  %v895_v1 = vrot.slane %v891_v22, 1  ;;  %v2547_v30 = vrot.slane %v2543_v31, 2  ;;  %v7987_v41 = vmov %v7984_v39  ;;  %2960 = vrot.lane.b32.xlu0 %v2959_v63, %s7901_s7 }
 0x287   : > { %7983 = vst [vmem:[#allocation166_spill] sm:$0xff] %v5805_v8  ;;  %7985 = vst [vmem:[#allocation167_spill] sm:$0xff] %v5811_v57  ;;  %v5820_v51 = vmul.f32 %v7987_v41, %v4504_v50  ;;  %v7989_v39 = vstv %s7910_s24  ;;  %v2680_v22 = vstv %s5747_s0  ;;  %v7991_v36 = vrot.slane %v5743_v12, 1  ;;  %2552 = vrot.lane.b32.xlu1 %v2548_v59, %s7904_s23  ;;  %s6257_s0 = sld [smem:[#allocation7 + $0xf]] }
 0x288   : > { %v5825_v55 = vmul.f32 %v7989_v39, %v4504_v50  ;;  %v7993_v46 = vrot.slane %v5759_v0, 1  ;;  %v7995_v39 = vstv %s5466_s15  ;;  %v7996_v63 = vrot.slane %v5786_v21, 1 }
 0x289   : > { %7988 = vst [vmem:[#allocation169_spill] sm:$0xff] %v5820_v51  ;;  %v5834_v38 = vsel %vm371_vm0, %v856_v53, %v7991_v36  ;;  %v5845_v3 = vmul.f32 %v7995_v39, %v4504_v50  ;;  %v1181_v36 = vrot.slane %v1176_v5, 2  ;;  %v7998_v16 = vstv %s7910_s24  ;;  %v5861_v39 = vpop.permute.xlu0 %2089  ;;  %s5981_s24 = sld [smem:[#allocation7 + $0xc]] }
 0x28a   : > { %7990 = vst [vmem:[#allocation170_spill] sm:$0xff] %v5825_v55  ;;  %7992 = vst [vmem:[#allocation171_spill] sm:$0xff] %v5834_v38  ;;  %v5839_v31 = vsel %vm371_vm0, %v869_v44, %v7993_v46  ;;  %v5851_v53 = vsel %vm371_vm0, %v882_v7, %v7996_v63  ;;  %v1190_v44 = vmul.f32 %v7998_v16, %v4507_v54  ;;  %v7999_v46 = vstv %s5476_s10  ;;  %s6045_s10 = sld [smem:[#allocation7 + $0x5d]] }
 0x28b   : > { %7994 = vst [vmem:[#allocation172_spill] sm:$0xff] %v5839_v31  ;;  %7997 = vst [vmem:[#allocation173_spill] sm:$0xff] %v5851_v53  ;;  %v5859_v41 = vmul.f32 %v7999_v46, %v4504_v50  ;;  %v8001_v57 = vrot.slane %v5799_v15, 1  ;;  %v8003_v5 = vmov %v7999_v46  ;;  %v5873_v53 = vpop.permute.xlu1 %2108  ;;  %v2682_v16 = vmul.f32 %v2680_v22, %v5481_v62 }
 0x28c   : > { %8000 = vst [vmem:[#allocation174_spill] sm:$0xff] %v5861_v39  ;;  %v1216_v63 = vmul.f32 %v8003_v5, %v4507_v54  ;;  %8004 = vst [vmem:[#allocation176_spill] sm:$0xff] %v5873_v53  ;;  %v2549_v46 = vsel %vm1180_vm1, %v2547_v30, %v2548_v59  ;;  %v7725_v31 = vrot.slane %v5820_v51, 2  ;;  %v2778_v21 = vstv %s5774_s1  ;;  %s6271_s1 = sld [smem:[#allocation7 + $0x19]] }
 0x28d   : > { %v5868_v7 = vsel %vm371_vm0, %v895_v1, %v8001_v57  ;;  %2550 = vrot.lane.b32.xlu0 %v2549_v46, %s7904_s23  ;;  %v2969_v15 = vstv %s5789_s3  ;;  %v8005_v57 = vstv %s5466_s15  ;;  %v8006_v5 = vstv %s5486_s2  ;;  %s6061_s15 = sld [smem:[#allocation7 + $0x32]] }
 0x28e   : > { %8002 = vst [vmem:[#allocation175_spill] sm:$0xff] %v5868_v7  ;;  %v1203_v7 = vmul.f32 %v8005_v57, %v4507_v54  ;;  %v5889_v53 = vmul.f32 %v8006_v5, %v4504_v50  ;;  %v8007_v59 = vmov %v8006_v5  ;;  %2687 = vrot.lane.b32.xlu1 %v2682_v16, %s7901_s7  ;;  %v5898_v46 = vsel %vm1180_vm1, %v1181_v36, %v7725_v31  ;;  %v5903_v5 = vpop.permute.xlu0 %2106  ;;  %s6075_s2 = sld [smem:[#allocation7 + $0x78]] }
 0x28f   : > { %v1229_v30 = vmul.f32 %v8007_v59, %v4507_v54  ;;  %8009 = vst [vmem:[#allocation177_spill] sm:$0xff] %v5898_v46  ;;  %v1194_v1 = vrot.slane %v1190_v44, 2  ;;  %8010 = vst [vmem:[#allocation178_spill] sm:$0xff] %v5903_v5  ;;  %v2681_v39 = vmul.f32 %v2680_v22, %v5437_v32  ;;  %v1220_v59 = vrot.slane %v1216_v63, 2  ;;  %v5908_v16 = vpop.permute.xlu1 %2125  ;;  %s6285_s3 = sld [smem:[#allocation7 + $0x45]] }
 0x290   : > { %8011 = vst [vmem:[#allocation179_spill] sm:$0xff] %v5908_v16  ;;  %v2780_v36 = vmul.f32 %v2778_v21, %v5481_v62  ;;  %v2971_v44 = vmul.f32 %v2969_v15, %v5481_v62  ;;  %v2970_v31 = vmul.f32 %v2969_v15, %v5437_v32  ;;  %v8012_v57 = vstv %s5509_s11  ;;  %s5963_s11 = sld [smem:[#allocation7 + $0x9a]] }
 0x291   : > { %v1255_v46 = vmul.f32 %v8012_v57, %v4507_v54  ;;  %v8013_v5 = vstv %s5492_s16  ;;  %v8014_v63 = vstv %s8008_s20  ;;  %2685 = vrot.lane.b32.xlu0 %v2681_v39, %s7901_s7  ;;  %v3088_v16 = vstv %s5829_s4  ;;  %s5951_s16 = sld [smem:[#allocation7 + $0xc6]] }
 0x292   : > { %v1242_v22 = vmul.f32 %v8013_v5, %v4507_v54  ;;  %v1268_v51 = vmul.f32 %v8014_v63, %v4507_v54  ;;  %v1207_v0 = vrot.slane %v1203_v7, 2  ;;  %v1233_v12 = vrot.slane %v1229_v30, 2  ;;  %2785 = vrot.lane.b32.xlu1 %v2780_v36, %s7904_s23  ;;  %v5947_v7 = vpop.permute.xlu0 %2123  ;;  %s6322_s4 = sld [smem:[#allocation7 + $0x60]] }
 0x293   : > { %v8015_v15 = vmov %v8013_v5  ;;  %v5938_v54 = vmul.f32 %v8012_v57, %v4504_v50  ;;  %v8016_v5 = vmov %v8014_v63  ;;  %8017 = vst [vmem:[#allocation180_spill] sm:$0xff] %v5947_v7  ;;  %v2779_v30 = vmul.f32 %v2778_v21, %v5437_v32  ;;  %s6356_s20 = sld [smem:[#allocation7 + $0xd0]] }
 0x294   : > { %v5930_v8 = vmul.f32 %v8015_v15, %v4504_v50  ;;  %v5943_v39 = vmul.f32 %v8016_v5, %v4504_v50  ;;  %v2559_v63 = vstv %s5863_s5  ;;  %v5953_v15 = vpop.permute.xlu1 %2142  ;;  %v2975_v36 = vrot.slane %v2971_v44, 1  ;;  %s6340_s5 = sld [smem:[#allocation7 + $0x7b]] }
 0x295   : > { %8018 = vst [vmem:[#allocation181_spill] sm:$0xff] %v5953_v15  ;;  %v3090_v38 = vmul.f32 %v3088_v16, %v5481_v62  ;;  %v2974_v57 = vrot.slane %v2970_v31, 1  ;;  %v3089_v29 = vmul.f32 %v3088_v16, %v5437_v32  ;;  %v8019_v50 = vrot.slane %v5825_v55, 2  ;;  %2783 = vrot.lane.b32.xlu0 %v2779_v30, %s7904_s23 }
 0x296   : > { %v1259_v7 = vrot.slane %v1255_v46, 2  ;;  %v1246_v24 = vrot.slane %v1242_v22, 2  ;;  %v1272_v21 = vrot.slane %v1268_v51, 2  ;;  %v8021_v44 = vrot.slane %v5845_v3, 2  ;;  %2979 = vrot.lane.b32.xlu1 %v2975_v36, %s7901_s7 }
 0x297   : > { %v5960_v5 = vsel %vm1180_vm1, %v1194_v1, %v8019_v50  ;;  %v8022_v31 = vrot.slane %v5859_v41, 2  ;;  %v7730_v1 = vrot.slane %v5930_v8, 2  ;;  %v8023_v46 = vrot.slane %v5889_v53, 2 }
 0x298   : > { %8020 = vst [vmem:[#allocation182_spill] sm:$0xff] %v5960_v5  ;;  %v5968_v15 = vsel %vm1180_vm1, %v1207_v0, %v8021_v44  ;;  %v1564_v30 = vstv %s5901_s6  ;;  %v5992_v50 = vpop.permute.xlu1 %2159  ;;  %v3094_v44 = vrot.slane %v3090_v38, 1  ;;  %v2560_v22 = vmul.f32 %v2559_v63, %v4904_v2  ;;  %s6367_s6 = sld [smem:[#allocation7 + $0x96]] }
 0x299   : > { %v5973_v16 = vsel %vm1180_vm1, %v1220_v59, %v8022_v31  ;;  %v5979_v51 = vsel %vm1180_vm1, %v1233_v12, %v8023_v46  ;;  %v5989_v59 = vpop.permute.xlu0 %2140  ;;  %v2561_v12 = vmul.f32 %v2559_v63, %v4889_v42  ;;  %8027 = vst [vmem:[#allocation184_spill] sm:$0xff] %v5992_v50  ;;  %v2976_v31 = vsel %vm371_vm0, %v2974_v57, %v2975_v36 }
 0x29a   : > { %8026 = vst [vmem:[#allocation183_spill] sm:$0xff] %v5989_v59  ;;  %v3093_v46 = vrot.slane %v3089_v29, 1  ;;  %v6001_v0 = vsel %vm1180_vm1, %v1246_v24, %v7730_v1  ;;  %v8028_v5 = vrot.slane %v5938_v54, 2  ;;  %v8029_v38 = vrot.slane %v5943_v39, 2  ;;  %2977 = vrot.lane.b32.xlu0 %v2976_v31, %s7901_s7  ;;  %3098 = vrot.lane.b32.xlu1 %v3094_v44, %s7904_s23 }
 0x29b   : > { %v8031_v63 = vstv %s8024_s27  ;;  %v8033_v24 = vstv %s8025_s28  ;;  %v1570_v1 = vstv %s5906_s14  ;;  %v1576_v59 = vstv %s5922_s17  ;;  %s6376_s14 = sld [smem:[#allocation7 + $0xb1]] }
 0x29c   : > { %v6006_v55 = vsel %vm1180_vm1, %v1259_v7, %v8028_v5  ;;  %v6011_v29 = vsel %vm1180_vm1, %v1272_v21, %v8029_v38  ;;  %v6016_v36 = vmul.f32 %v8031_v63, %v4889_v42  ;;  %v6024_v57 = vmul.f32 %v8033_v24, %v4889_v42  ;;  %s6385_s17 = sld [smem:[#allocation7 + $0x82]] }
 0x29d   : > { %8030 = vst [vmem:[#allocation185_spill] sm:$0xff] %v6011_v29  ;;  %v8035_v7 = vmov %v8031_v63  ;;  %v6035_v21 = vmul.f32 %v1564_v30, %v4889_v42  ;;  %v6038_v31 = vmul.f32 %v1564_v30, %v4904_v2  ;;  %v1582_v38 = vstv %s5932_s21  ;;  %s6400_s21 = sld [smem:[#allocation7 + $0xb6]] }
 0x29e   : > { %8032 = vst [vmem:[#allocation186_spill] sm:$0xff] %v6016_v36  ;;  %8034 = vst [vmem:[#allocation187_spill] sm:$0xff] %v6024_v57  ;;  %v6029_v5 = vmul.f32 %v8035_v7, %v4904_v2  ;;  %v1588_v63 = vstv %s5945_s18  ;;  %v6042_v36 = vpop.permute.xlu0 %2157  ;;  %v1594_v24 = vstv %s5951_s16  ;;  %v6047_v7 = vpop.permute.xlu1 %2176  ;;  %v2565_v57 = vrot.slane %v2561_v12, 2  ;;  %s6424_s18 = sld [smem:[#allocation7 + $0x68]] }
 0x29f   : > { %8037 = vst [vmem:[#allocation189_spill] sm:$0xff] %v6038_v31  ;;  %8038 = vst [vmem:[#allocation190_spill] sm:$0xff] %v6042_v36  ;;  %v2564_v50 = vrot.slane %v2560_v22, 2  ;;  %v6051_v29 = vmul.f32 %v1570_v1, %v4889_v42  ;;  %v6054_v30 = vmul.f32 %v1576_v59, %v4889_v42  ;;  %v6057_v31 = vmul.f32 %v1570_v1, %v4904_v2  ;;  %s6447_s16 = sld [smem:[#allocation7 + $0xcc]] }
 0x2a0   : > { %8036 = vst [vmem:[#allocation188_spill] sm:$0xff] %v6029_v5  ;;  %8039 = vst [vmem:[#allocation191_spill] sm:$0xff] %v6047_v7  ;;  %v3095_v5 = vsel %vm371_vm0, %v3093_v46, %v3094_v44  ;;  %v2694_v36 = vstv %s5963_s11  ;;  %v6064_v12 = vmul.f32 %v1582_v38, %v4889_v42  ;;  %v6067_v22 = vmul.f32 %v1576_v59, %v4904_v2  ;;  %s6471_s11 = sld [smem:[#allocation7 + $0x34]] }
 0x2a1   : > { %8040 = vst [vmem:[#allocation192_spill] sm:$0xff] %v6057_v31  ;;  %3096 = vrot.lane.b32.xlu0 %v3095_v5, %s7904_s23  ;;  %v6070_v44 = vmul.f32 %v1588_v63, %v4889_v42  ;;  %v6073_v46 = vmul.f32 %v1582_v38, %v4904_v2  ;;  %2569 = vrot.lane.b32.xlu1 %v2565_v57, %s7904_s23  ;;  %v1824_v7 = vstv %s5981_s24  ;;  %s6478_s24 = sld [smem:[#allocation7 + $0x1a]] }
 0x2a2   : > { %v6079_v1 = vmul.f32 %v1594_v24, %v4889_v42  ;;  %v6082_v5 = vmul.f32 %v1588_v63, %v4904_v2  ;;  %v6085_v59 = vmul.f32 %v1594_v24, %v4904_v2  ;;  %v6090_v38 = vpop.permute.xlu0 %2174  ;;  %v6098_v31 = vadd.f32 %v4669_v17, %v5594_v35  ;;  %s6506_s27 = sld [smem:[#allocation7 + $0x9d]] }
 0x2a3   : > { %8041 = vst [vmem:[#allocation193_spill] sm:$0xff] %v6070_v44  ;;  %8042 = vst [vmem:[#allocation194_spill] sm:$0xff] %v6073_v46  ;;  %v6094_v46 = vadd.f32 %v4661_v11, %v5578_v33  ;;  %v2696_v63 = vmul.f32 %v2694_v36, %v5481_v62  ;;  %v2566_v24 = vsel %vm1180_vm1, %v2564_v50, %v2565_v57  ;;  %v2986_v44 = vstv %s6019_s19  ;;  %s6539_s19 = sld [smem:[#allocation7 + $0x48]] }
 0x2a4   : > { %8043 = vst [vmem:[#allocation195_spill] sm:$0xff] %v6079_v1  ;;  %8044 = vst [vmem:[#allocation196_spill] sm:$0xff] %v6082_v5  ;;  %v6100_v1 = vpop.permute.xlu1 %2193  ;;  %v1850_v5 = vstv %s5987_s29  ;;  %v6111_v11 = vadd.f32 %v4674_v20, %v5590_v49  ;;  %v6115_v17 = vadd.f32 %v4681_v25, %v5609_v19  ;;  %v6118_v33 = vmul.f32 %v1824_v7, %v4889_v42  ;;  %s6525_s29 = sld [smem:[#allocation7 + $0xd1]] }
 0x2a5   : > { %8045 = vst [vmem:[#allocation197_spill] sm:$0xff] %v6085_v59  ;;  %8046 = vst [vmem:[#allocation198_spill] sm:$0xff] %v6090_v38  ;;  %v1825_v59 = vmul.f32 %v1824_v7, %v4904_v2  ;;  %2567 = vrot.lane.b32.xlu0 %v2566_v24, %s7904_s23  ;;  %v2792_v38 = vstv %s5996_s9  ;;  %v1851_v35 = vmul.f32 %v1850_v5, %v4904_v2  ;;  %2701 = vrot.lane.b32.xlu1 %v2696_v63, %s7901_s7  ;;  %s6531_s9 = sld [smem:[#allocation7 + $0x83]] }
 0x2a6   : > { %8047 = vst [vmem:[#allocation199_spill] sm:$0xff] %v6100_v1  ;;  %8048 = vst [vmem:[#allocation200_spill] sm:$0xff] %v6118_v33  ;;  %v6124_v50 = vadd.f32 %v4684_v27, %v5605_v28  ;;  %v6128_v20 = vadd.f32 %v4698_v37, %v5619_v61  ;;  %v6132_v25 = vadd.f32 %v4693_v34, %v5623_v58  ;;  %v6134_v49 = vpop.permute.xlu0 %2191  ;;  %v1863_v63 = vstv %s6045_s10  ;;  %s6554_s10 = sld [smem:[#allocation7 + $0x4f]] }
 0x2a7   : > { %8049 = vst [vmem:[#allocation201_spill] sm:$0xff] %v6134_v49  ;;  %v2695_v19 = vmul.f32 %v2694_v36, %v5437_v32  ;;  %v6139_v57 = vadd.f32 %v4705_v43, %v5639_v10  ;;  %v2794_v37 = vmul.f32 %v2792_v38, %v5481_v62  ;;  %v2988_v61 = vmul.f32 %v2986_v44, %v5481_v62 }
 0x2a8   : > { %v6143_v27 = vpop.permute.xlu1 %2314  ;;  %v2987_v34 = vmul.f32 %v2986_v44, %v5437_v32  ;;  %v6150_v28 = vadd.f32 %v4708_v45, %v5635_v47  ;;  %v1829_v58 = vrot.slane %v1825_v59, 1  ;;  %v6153_v43 = vmul.f32 %v1850_v5, %v4889_v42 }
 0x2a9   : > { %8050 = vst [vmem:[#allocation202_spill] sm:$0xff] %v6143_v27  ;;  %2699 = vrot.lane.b32.xlu0 %v2695_v19, %s7901_s7  ;;  %v3105_v10 = vstv %s6061_s15  ;;  %v6161_v36 = vadd.f32 %v4717_v56, %v5656_v40  ;;  %v1855_v44 = vrot.slane %v1851_v35, 1  ;;  %2799 = vrot.lane.b32.xlu1 %v2794_v37, %s7904_s23  ;;  %v1864_v45 = vmul.f32 %v1863_v63, %v4904_v2  ;;  %s6575_s15 = sld [smem:[#allocation7 + $0x35]] }
 0x2aa   : > { %8051 = vst [vmem:[#allocation203_spill] sm:$0xff] %v6153_v43  ;;  %v1876_v47 = vstv %s6075_s2  ;;  %v1889_v5 = vstv %s6088_s12  ;;  %v6171_v59 = vpop.permute.xlu0 %2312  ;;  %v2793_v24 = vmul.f32 %v2792_v38, %v5437_v32  ;;  %v2992_v56 = vrot.slane %v2988_v61, 1  ;;  %s6598_s2 = sld [smem:[#allocation7 + $0xb8]] }
 0x2ab   : > { %8052 = vst [vmem:[#allocation204_spill] sm:$0xff] %v6171_v59  ;;  %v3107_v40 = vmul.f32 %v3105_v10, %v5481_v62  ;;  %v2991_v7 = vrot.slane %v2987_v34, 1  ;;  %v3106_v35 = vmul.f32 %v3105_v10, %v5437_v32  ;;  %v6182_v37 = vadd.f32 %v4722_v60, %v5652_v13  ;;  %s6625_s12 = sld [smem:[#allocation7 + $0x9e]] }
 0x2ac   : > { %v6174_v19 = vpop.permute.xlu1 %2331  ;;  %v8054_v27 = vrot.slane %v6118_v33, 1  ;;  %v7731_v38 = vrot.slane %v6153_v43, 1  ;;  %v6191_v61 = vmul.f32 %v1863_v63, %v4889_v42  ;;  %v6198_v34 = vadd.f32 %v4734_v6, %v5680_v9 }
 0x2ad   : > { %8053 = vst [vmem:[#allocation205_spill] sm:$0xff] %v6174_v19  ;;  %2797 = vrot.lane.b32.xlu0 %v2793_v24, %s7904_s23  ;;  %v6202_v60 = vadd.f32 %v4729_v4, %v5684_v52  ;;  %v1877_v13 = vmul.f32 %v1876_v47, %v4904_v2  ;;  %2996 = vrot.lane.b32.xlu1 %v2992_v56, %s7901_s7  ;;  %v1902_v52 = vstv %s6141_s26  ;;  %v3111_v24 = vrot.slane %v3107_v40, 1  ;;  %s6630_s26 = sld [smem:[#allocation7 + $0x63]] }
 0x2ae   : > { %v6187_v59 = vsel %vm371_vm0, %v1829_v58, %v8054_v27  ;;  %v1890_v27 = vmul.f32 %v1889_v5, %v4904_v2  ;;  %v1868_v58 = vrot.slane %v1864_v45, 1  ;;  %v6210_v10 = vsel %vm371_vm0, %v1855_v44, %v7731_v38  ;;  %v6218_v4 = vpop.permute.xlu0 %2329 }
 0x2af   : > { %8055 = vst [vmem:[#allocation206_spill] sm:$0xff] %v6187_v59  ;;  %8056 = vst [vmem:[#allocation207_spill] sm:$0xff] %v6210_v10  ;;  %v6213_v6 = vmul.f32 %v1876_v47, %v4889_v42  ;;  %v6216_v9 = vmul.f32 %v1889_v5, %v4889_v42  ;;  %v2993_v45 = vsel %vm371_vm0, %v2991_v7, %v2992_v56  ;;  %v3110_v19 = vrot.slane %v3106_v35, 1  ;;  %v8081_v10 = vld [vmem:[#allocation154_spill] sm:$0xff] }
 0x2b0   : > { %8059 = vst [vmem:[#allocation210_spill] sm:$0xff] %v6218_v4  ;;  %v6221_v63 = vpop.permute.xlu1 %2348  ;;  %v6228_v44 = vadd.f32 %v4746_v18, %v5703_v48  ;;  %v6232_v47 = vadd.f32 %v4741_v14, %v5707_v23  ;;  %v7732_v5 = vrot.slane %v6191_v61, 1  ;;  %v2708_v38 = vstv %s6157_s13  ;;  %s6654_s13 = sld [smem:[#allocation7 + $0x6a]] }
 0x2b1   : > { %8057 = vst [vmem:[#allocation208_spill] sm:$0xff] %v6213_v6  ;;  %8058 = vst [vmem:[#allocation209_spill] sm:$0xff] %v6216_v9  ;;  %2994 = vrot.lane.b32.xlu0 %v2993_v45, %s7901_s7  ;;  %v1881_v4 = vrot.slane %v1877_v13, 1  ;;  %v1894_v40 = vrot.slane %v1890_v27, 1  ;;  %v1903_v7 = vmul.f32 %v1902_v52, %v4904_v2  ;;  %v1915_v56 = vstv %s6165_s30  ;;  %3115 = vrot.lane.b32.xlu1 %v3111_v24, %s7904_s23  ;;  %v8064_v13 = vld [vmem:[#allocation16_spill] sm:$0xff]  ;;  %v8067_v45 = vld [vmem:[#allocation18_spill] sm:$0xff] }
 0x2b2   : > { %8060 = vst [vmem:[#allocation211_spill] sm:$0xff] %v6221_v63  ;;  %v6244_v14 = vsel %vm371_vm0, %v1868_v58, %v7732_v5  ;;  %v6247_v48 = vmul.f32 %v1902_v52, %v4889_v42  ;;  %v1916_v23 = vmul.f32 %v1915_v56, %v4904_v2  ;;  %v6250_v35 = vpop.permute.xlu0 %2346  ;;  %v6254_v27 = vadd.f32 %v8064_v13, %v5718_v26  ;;  %v8065_v52 = vld [vmem:[#allocation17_spill] sm:$0xff]  ;;  %s6666_s30 = sld [smem:[#allocation7 + $0x50]] }
 0x2b3   : > { %8061 = vst [vmem:[#allocation212_spill] sm:$0xff] %v6244_v14  ;;  %8063 = vst [vmem:[#allocation214_spill] sm:$0xff] %v6250_v35  ;;  %v2710_v58 = vmul.f32 %v2708_v38, %v5481_v62  ;;  %v3112_v5 = vsel %vm371_vm0, %v3110_v19, %v3111_v24  ;;  %v699_v49 = vadd.f32 %v8065_v52, %v6094_v46  ;;  %v2806_v26 = vstv %s6178_s8  ;;  %s6675_s8 = sld [smem:[#allocation7 + $0xd3]] }
 0x2b4   : > { %8062 = vst [vmem:[#allocation213_spill] sm:$0xff] %v6247_v48  ;;  %v6259_v18 = vpop.permute.xlu1 %2365  ;;  %v6266_v59 = vmul.f32 %v1915_v56, %v4889_v42  ;;  %v3003_v13 = vstv %s6194_s22  ;;  %v698_v1 = vadd.f32 %v8067_v45, %v6098_v31  ;;  %v8068_v33 = vrot.slane %v6213_v6, 1  ;;  %s6703_s22 = sld [smem:[#allocation7 + $0x7e]] }
 0x2b5   : > { %3113 = vrot.lane.b32.xlu0 %v3112_v5, %s7904_s23  ;;  %v1907_v24 = vrot.slane %v1903_v7, 1  ;;  %v8070_v46 = vrot.slane %v6216_v9, 1  ;;  %2715 = vrot.lane.b32.xlu1 %v2710_v58, %s7901_s7  ;;  %v8072_v5 = vld [vmem:[#allocation19_spill] sm:$0xff]  ;;  %v1920_v45 = vrot.slane %v1916_v23, 1  ;;  %v2808_v7 = vmul.f32 %v2806_v26, %v5481_v62  ;;  %v8075_v58 = vld [vmem:[#allocation21_spill] sm:$0xff]  ;;  %v8077_v23 = vld [vmem:[#allocation149_spill] sm:$0xff] }
 0x2b6   : > { %8066 = vst [vmem:[#allocation16_spill] sm:$0xff] %v6266_v59  ;;  %v6278_v19 = vsel %vm371_vm0, %v1881_v4, %v8068_v33  ;;  %v713_v52 = vadd.f32 %v8072_v5, %v6111_v11  ;;  %v6291_v14 = vpop.permute.xlu0 %2363  ;;  %v2709_v33 = vmul.f32 %v2708_v38, %v5437_v32  ;;  %v727_v35 = vadd.f32 %v8075_v58, %v6124_v50  ;;  %v8076_v11 = vld [vmem:[#allocation20_spill] sm:$0xff]  ;;  %v8090_v58 = vld [vmem:[#allocation25_spill] sm:$0xff] }
 0x2b7   : > { %8069 = vst [vmem:[#allocation17_spill] sm:$0xff] %v6278_v19  ;;  %v6283_v56 = vsel %vm371_vm0, %v1894_v40, %v8070_v46  ;;  %8073 = vst [vmem:[#allocation19_spill] sm:$0xff] %v6291_v14  ;;  %v3005_v40 = vmul.f32 %v3003_v13, %v5481_v62  ;;  %v3122_v46 = vstv %s6224_s25  ;;  %v712_v5 = vadd.f32 %v8076_v11, %v6115_v17  ;;  %v8080_v19 = vld [vmem:[#allocation22_spill] sm:$0xff]  ;;  %v8091_v11 = vld [vmem:[#allocation152_spill] sm:$0xff]  ;;  %s6710_s25 = sld [smem:[#allocation7 + $0xb9]] }
 0x2b8   : > { %8071 = vst [vmem:[#allocation18_spill] sm:$0xff] %v6283_v56  ;;  %v6294_v4 = vpop.permute.xlu1 %2382  ;;  %v3004_v56 = vmul.f32 %v3003_v13, %v5437_v32  ;;  %v8078_v31 = vrot.slane %v8077_v23, 1  ;;  %v7735_v38 = vrot.slane %v6266_v59, 1  ;;  %v726_v13 = vadd.f32 %v8080_v19, %v6132_v25 }
 0x2b9   : > { %8074 = vst [vmem:[#allocation215_spill] sm:$0xff] %v6294_v4  ;;  %2713 = vrot.lane.b32.xlu0 %v2709_v33, %s7901_s7  ;;  %v8079_v4 = vld [vmem:[#allocation23_spill] sm:$0xff]  ;;  %v6315_v6 = vadd.f32 %v8081_v10, %v698_v1  ;;  %v8082_v50 = vrot.slane %v6247_v48, 1  ;;  %2813 = vrot.lane.b32.xlu1 %v2808_v7, %s7904_s23  ;;  %v2807_v1 = vmul.f32 %v2806_v26, %v5437_v32  ;;  %v8092_v23 = vrot.slane %v8091_v11, 1 }
 0x2ba   : > { %v6306_v14 = vadd.f32 %v8078_v31, %v699_v49  ;;  %v741_v63 = vadd.f32 %v8079_v4, %v6128_v20  ;;  %v8084_v49 = vld [vmem:[#allocation24_spill] sm:$0xff]  ;;  %v8085_v20 = vld [vmem:[#allocation150_spill] sm:$0xff]  ;;  %v6331_v25 = vpop.permute.xlu0 %2380  ;;  %v3124_v10 = vmul.f32 %v3122_v46, %v5481_v62  ;;  %v6338_v19 = vsel %vm371_vm0, %v1920_v45, %v7735_v38 }
 0x2bb   : > { %v6320_v17 = vsel %vm371_vm0, %v1907_v24, %v8082_v50  ;;  %v740_v31 = vadd.f32 %v8084_v49, %v6139_v57  ;;  %v8086_v33 = vrot.slane %v8085_v20, 1  ;;  %8087 = vst [vmem:[#allocation20_spill] sm:$0xff] %v6331_v25  ;;  %8088 = vst [vmem:[#allocation149_spill] sm:$0xff] %v6338_v19  ;;  %v3009_v24 = vrot.slane %v3005_v40, 1  ;;  %v8093_v49 = vld [vmem:[#allocation162_spill] sm:$0xff] }
 0x2bc   : > { %8083 = vst [vmem:[#allocation21_spill] sm:$0xff] %v6320_v17  ;;  %v6342_v57 = vpop.permute.xlu1 %2399  ;;  %v3123_v7 = vmul.f32 %v3122_v46, %v5437_v32  ;;  %v755_v26 = vadd.f32 %v8090_v58, %v6150_v28  ;;  %v6349_v50 = vadd.f32 %v8092_v23, %v727_v35  ;;  %v6352_v20 = vadd.f32 %v8093_v49, %v712_v5  ;;  %v8096_v46 = vld [vmem:[#allocation164_spill] sm:$0xff]  ;;  %v8097_v35 = vld [vmem:[#allocation26_spill] sm:$0xff] }
 0x2bd   : > { %v6329_v4 = vadd.f32 %v8086_v33, %v713_v52  ;;  %8089 = vst [vmem:[#allocation23_spill] sm:$0xff] %v6342_v57  ;;  %v3008_v52 = vrot.slane %v3004_v56, 1  ;;  %2811 = vrot.lane.b32.xlu0 %v2807_v1, %s7904_s23  ;;  %v3328_v45 = vstv %s6271_s1  ;;  %v8094_v33 = vld [vmem:[#allocation157_spill] sm:$0xff]  ;;  %v6363_v38 = vadd.f32 %v8096_v46, %v726_v13  ;;  %3013 = vrot.lane.b32.xlu1 %v3009_v24, %s7901_s7  ;;  %v8098_v1 = vld [vmem:[#allocation166_spill] sm:$0xff]  ;;  %s6759_s1 = sld [smem:[#allocation7 + $0x6b]] }
 0x2be   : > { %v8095_v40 = vrot.slane %v8094_v33, 1  ;;  %v2200_v28 = vstv %s6257_s0  ;;  %v2226_v58 = vstv %s6285_s3  ;;  %v754_v5 = vadd.f32 %v8097_v35, %v6161_v36  ;;  %s6748_s0 = sld [smem:[#allocation7 + $0x85]] }
 0x2bf   : > { %v6373_v11 = vadd.f32 %v8098_v1, %v740_v31  ;;  %v2227_v23 = vmul.f32 %v2226_v58, %v4904_v2  ;;  %v3128_v13 = vrot.slane %v3124_v10, 1  ;;  %v3010_v33 = vsel %vm371_vm0, %v3008_v52, %v3009_v24  ;;  %v8101_v31 = vld [vmem:[#allocation27_spill] sm:$0xff]  ;;  %v8106_v24 = vld [vmem:[#allocation29_spill] sm:$0xff]  ;;  %s6789_s3 = sld [smem:[#allocation7 + $0xd4]] }
 0x2c0   : > { %v6360_v56 = vadd.f32 %v8095_v40, %v741_v63  ;;  %v6378_v63 = vpop.permute.xlu0 %2397  ;;  %v6380_v49 = vpop.permute.xlu1 %2416  ;;  %v3330_v40 = vmul.f32 %v3328_v45, %v5481_v62  ;;  %v3127_v46 = vrot.slane %v3123_v7, 1  ;;  %v3329_v36 = vmul.f32 %v3328_v45, %v5437_v32  ;;  %v8102_v1 = vld [vmem:[#allocation158_spill] sm:$0xff]  ;;  %v8107_v7 = vld [vmem:[#allocation28_spill] sm:$0xff]  ;;  %v8108_v45 = vld [vmem:[#allocation30_spill] sm:$0xff] }
 0x2c1   : > { %8099 = vst [vmem:[#allocation22_spill] sm:$0xff] %v6378_v63  ;;  %8100 = vst [vmem:[#allocation154_spill] sm:$0xff] %v6380_v49  ;;  %v769_v35 = vadd.f32 %v8101_v31, %v6182_v37  ;;  %v8103_v19 = vrot.slane %v8102_v1, 1  ;;  %v6394_v10 = vmul.f32 %v2200_v28, %v4889_v42  ;;  %v6397_v63 = vmul.f32 %v2226_v58, %v4889_v42  ;;  %v8109_v58 = vld [vmem:[#allocation31_spill] sm:$0xff] }
 0x2c2   : > { %3011 = vrot.lane.b32.xlu0 %v3010_v33, %s7901_s7  ;;  %v783_v52 = vadd.f32 %v8106_v24, %v6198_v34  ;;  %v768_v37 = vadd.f32 %v8107_v7, %v6202_v60  ;;  %3132 = vrot.lane.b32.xlu1 %v3128_v13, %s7904_s23  ;;  %v797_v31 = vadd.f32 %v8109_v58, %v6228_v44  ;;  %v2231_v1 = vrot.slane %v2227_v23, 2  ;;  %v8112_v60 = vld [vmem:[#allocation171_spill] sm:$0xff] }
 0x2c3   : > { %v6391_v59 = vadd.f32 %v8103_v19, %v755_v26  ;;  %8104 = vst [vmem:[#allocation24_spill] sm:$0xff] %v6394_v10  ;;  %8105 = vst [vmem:[#allocation150_spill] sm:$0xff] %v6397_v63  ;;  %v782_v19 = vadd.f32 %v8108_v45, %v6232_v47  ;;  %v2239_v26 = vstv %s6322_s4  ;;  %v6413_v33 = vmul.f32 %v2200_v28, %v4904_v2  ;;  %v8114_v44 = vld [vmem:[#allocation159_spill] sm:$0xff]  ;;  %s6825_s4 = sld [smem:[#allocation7 + $0xa0]] }
 0x2c4   : > { %v2240_v34 = vmul.f32 %v2239_v26, %v4904_v2  ;;  %v6416_v24 = vpop.permute.xlu0 %2414  ;;  %v6419_v7 = vadd.f32 %v8112_v60, %v754_v5  ;;  %v6421_v47 = vpop.permute.xlu1 %2433  ;;  %v3334_v45 = vrot.slane %v3330_v40, 2  ;;  %v3129_v10 = vsel %vm371_vm0, %v3127_v46, %v3128_v13  ;;  %v8116_v5 = vld [vmem:[#allocation163_spill] sm:$0xff]  ;;  %v8118_v40 = vld [vmem:[#allocation172_spill] sm:$0xff]  ;;  %v8119_v46 = vld [vmem:[#allocation173_spill] sm:$0xff] }
 0x2c5   : > { %8110 = vst [vmem:[#allocation25_spill] sm:$0xff] %v6413_v33  ;;  %8111 = vst [vmem:[#allocation152_spill] sm:$0xff] %v6416_v24  ;;  %v3333_v49 = vrot.slane %v3329_v36, 2  ;;  %v8115_v58 = vrot.slane %v8114_v44, 1  ;;  %v7737_v23 = vrot.slane %v6397_v63, 2  ;;  %v2252_v33 = vstv %s6340_s5  ;;  %v8121_v44 = vld [vmem:[#allocation165_spill] sm:$0xff] }
 0x2c6   : > { %8113 = vst [vmem:[#allocation162_spill] sm:$0xff] %v6421_v47  ;;  %3130 = vrot.lane.b32.xlu0 %v3129_v10, %s7904_s23  ;;  %v2722_v24 = vstv %s6356_s20  ;;  %v8117_v60 = vrot.slane %v8116_v5, 1  ;;  %v6439_v13 = vadd.f32 %v8118_v40, %v768_v37  ;;  %v6442_v36 = vadd.f32 %v8119_v46, %v782_v19  ;;  %3338 = vrot.lane.b32.xlu1 %v3334_v45, %s7901_s7  ;;  %v8120_v10 = vld [vmem:[#allocation32_spill] sm:$0xff]  ;;  %s6834_s5 = sld [smem:[#allocation7 + $0x99]] }
 0x2c7   : > { %v6428_v28 = vadd.f32 %v8115_v58, %v769_v35  ;;  %v6445_v35 = vmul.f32 %v2239_v26, %v4889_v42  ;;  %v8122_v58 = vrot.slane %v8121_v44, 1  ;;  %v2244_v5 = vrot.slane %v2240_v34, 2  ;;  %s6840_s20 = sld [smem:[#allocation7 + $0x86]] }
 0x2c8   : > { %v6436_v47 = vadd.f32 %v8117_v60, %v783_v52  ;;  %v796_v52 = vadd.f32 %v8120_v10, %v6254_v27  ;;  %v6459_v19 = vsel %vm1180_vm1, %v2231_v1, %v7737_v23  ;;  %v6461_v26 = vpop.permute.xlu0 %2431  ;;  %v6464_v60 = vmul.f32 %v2252_v33, %v4889_v42  ;;  %v6466_v40 = vpop.permute.xlu1 %2450 }
 0x2c9   : > { %v6454_v37 = vadd.f32 %v8122_v58, %v797_v31  ;;  %8123 = vst [vmem:[#allocation157_spill] sm:$0xff] %v6459_v19  ;;  %8124 = vst [vmem:[#allocation164_spill] sm:$0xff] %v6461_v26  ;;  %v2724_v46 = vmul.f32 %v2722_v24, %v5481_v62  ;;  %v3335_v27 = vsel %vm1180_vm1, %v3333_v49, %v3334_v45  ;;  %v3020_v10 = vstv %s6385_s17  ;;  %v8127_v58 = vld [vmem:[#allocation33_spill] sm:$0xff]  ;;  %s6983_s17 = sld [smem:[#allocation7 + $0xa1]] }
 0x2ca   : > { %8125 = vst [vmem:[#allocation26_spill] sm:$0xff] %v6464_v60  ;;  %8126 = vst [vmem:[#allocation166_spill] sm:$0xff] %v6466_v40  ;;  %v2253_v31 = vmul.f32 %v2252_v33, %v4904_v2  ;;  %v2265_v34 = vstv %s6367_s6  ;;  %v2278_v44 = vstv %s6376_s14  ;;  %3336 = vrot.lane.b32.xlu0 %v3335_v27, %s7901_s7  ;;  %v2820_v1 = vstv %s6400_s21  ;;  %v8128_v33 = vld [vmem:[#allocation175_spill] sm:$0xff]  ;;  %s6889_s6 = sld [smem:[#allocation7 + $0x4b]] }
 0x2cb   : > { %v6482_v23 = vadd.f32 %v8127_v58, %v6306_v14  ;;  %v2266_v49 = vmul.f32 %v2265_v34, %v4904_v2  ;;  %v2279_v45 = vmul.f32 %v2278_v44, %v4904_v2  ;;  %2729 = vrot.lane.b32.xlu1 %v2724_v46, %s7901_s7  ;;  %v6489_v26 = vadd.f32 %v8128_v33, %v796_v52  ;;  %s6927_s14 = sld [smem:[#allocation7 + $0xbb]] }
 0x2cc   : > { %v6491_v27 = vpop.permute.xlu0 %2448  ;;  %v2723_v17 = vmul.f32 %v2722_v24, %v5437_v32  ;;  %v3022_v48 = vmul.f32 %v3020_v10, %v5481_v62  ;;  %v3021_v14 = vmul.f32 %v3020_v10, %v5437_v32  ;;  %v6497_v58 = vmul.f32 %v2265_v34, %v4889_v42  ;;  %v6502_v25 = vpop.permute.xlu1 %2467  ;;  %v8133_v24 = vld [vmem:[#allocation34_spill] sm:$0xff]  ;;  %s7034_s21 = sld [smem:[#allocation7 + $0xb4]] }
 0x2cd   : > { %8129 = vst [vmem:[#allocation27_spill] sm:$0xff] %v6491_v27  ;;  %v6500_v40 = vmul.f32 %v2278_v44, %v4889_v42  ;;  %8132 = vst [vmem:[#allocation28_spill] sm:$0xff] %v6502_v25  ;;  %v2822_v52 = vmul.f32 %v2820_v1, %v5481_v62  ;;  %v3139_v46 = vstv %s6424_s18  ;;  %v6510_v33 = vadd.f32 %v8133_v24, %v6315_v6  ;;  %v8136_v44 = vld [vmem:[#allocation35_spill] sm:$0xff]  ;;  %s7102_s18 = sld [smem:[#allocation7 + $0xd6]] }
 0x2ce   : > { %8130 = vst [vmem:[#allocation158_spill] sm:$0xff] %v6497_v58  ;;  %v7741_v27 = vrot.slane %v6464_v60, 2  ;;  %v2257_v10 = vrot.slane %v2253_v31, 2  ;;  %v8134_v34 = vrot.slane %v6445_v35, 2  ;;  %2727 = vrot.lane.b32.xlu0 %v2723_v17, %s7901_s7  ;;  %v6521_v25 = vadd.f32 %v8136_v44, %v6329_v4  ;;  %v8143_v4 = vld [vmem:[#allocation36_spill] sm:$0xff] }
 0x2cf   : > { %8131 = vst [vmem:[#allocation29_spill] sm:$0xff] %v6500_v40  ;;  %v2270_v57 = vrot.slane %v2266_v49, 2  ;;  %v2283_v63 = vrot.slane %v2279_v45, 2  ;;  %v2291_v9 = vstv %s6447_s16  ;;  %2827 = vrot.lane.b32.xlu1 %v2822_v52, %s7904_s23  ;;  %v3026_v31 = vrot.slane %v3022_v48, 1  ;;  %s7153_s16 = sld [smem:[#allocation7 + $0xbc]] }
 0x2d0   : > { %v6516_v19 = vsel %vm1180_vm1, %v2244_v5, %v8134_v34  ;;  %v6527_v6 = vpop.permute.xlu0 %2465  ;;  %v2821_v5 = vmul.f32 %v2820_v1, %v5437_v32  ;;  %v3141_v17 = vmul.f32 %v3139_v46, %v5481_v62  ;;  %v3025_v24 = vrot.slane %v3021_v14, 1  ;;  %v6535_v45 = vpop.permute.xlu1 %2484 }
 0x2d1   : > { %8135 = vst [vmem:[#allocation30_spill] sm:$0xff] %v6516_v19  ;;  %8137 = vst [vmem:[#allocation31_spill] sm:$0xff] %v6527_v6  ;;  %v3345_v52 = vstv %s6471_s11  ;;  %v3140_v34 = vmul.f32 %v3139_v46, %v5437_v32  ;;  %v6544_v48 = vsel %vm1180_vm1, %v2257_v10, %v7741_v27  ;;  %v6547_v1 = vmul.f32 %v2291_v9, %v4889_v42  ;;  %v8142_v46 = vld [vmem:[#allocation38_spill] sm:$0xff]  ;;  %s7243_s11 = sld [smem:[#allocation7 + $0x66]] }
 0x2d2   : > { %8138 = vst [vmem:[#allocation171_spill] sm:$0xff] %v6535_v45  ;;  %8139 = vst [vmem:[#allocation159_spill] sm:$0xff] %v6544_v48  ;;  %v6550_v14 = vmul.f32 %v2291_v9, %v4904_v2  ;;  %2825 = vrot.lane.b32.xlu0 %v2821_v5, %s7904_s23  ;;  %v3464_v44 = vstv %s6478_s24  ;;  %v6558_v49 = vadd.f32 %v8142_v46, %v6349_v50  ;;  %v8144_v27 = vrot.slane %v6497_v58, 2  ;;  %v8148_v50 = vld [vmem:[#allocation39_spill] sm:$0xff]  ;;  %s7252_s24 = sld [smem:[#allocation7 + $0xd7]] }
 0x2d3   : > { %8140 = vst [vmem:[#allocation163_spill] sm:$0xff] %v6547_v1  ;;  %v6562_v10 = vadd.f32 %v8143_v4, %v6352_v20  ;;  %v8146_v9 = vrot.slane %v6500_v40, 2  ;;  %3030 = vrot.lane.b32.xlu1 %v3026_v31, %s7901_s7  ;;  %v6579_v46 = vadd.f32 %v8148_v50, %v6363_v38  ;;  %v3145_v4 = vrot.slane %v3141_v17, 1  ;;  %v8150_v38 = vld [vmem:[#allocation40_spill] sm:$0xff] }
 0x2d4   : > { %8141 = vst [vmem:[#allocation172_spill] sm:$0xff] %v6550_v14  ;;  %v6567_v6 = vsel %vm1180_vm1, %v2270_v57, %v8144_v27  ;;  %v6581_v20 = vpop.permute.xlu0 %2482  ;;  %v3027_v2 = vsel %vm371_vm0, %v3025_v24, %v3026_v31  ;;  %v3347_v57 = vmul.f32 %v3345_v52, %v5481_v62  ;;  %v6585_v27 = vpop.permute.xlu1 %2501  ;;  %v3346_v42 = vmul.f32 %v3345_v52, %v5437_v32  ;;  %v8152_v52 = vld [vmem:[#allocation42_spill] sm:$0xff] }
 0x2d5   : > { %8145 = vst [vmem:[#allocation173_spill] sm:$0xff] %v6567_v6  ;;  %v6572_v5 = vsel %vm1180_vm1, %v2283_v63, %v8146_v9  ;;  %8149 = vst [vmem:[#allocation165_spill] sm:$0xff] %v6581_v20  ;;  %v3144_v63 = vrot.slane %v3140_v34, 1  ;;  %v3466_v9 = vmul.f32 %v3464_v44, %v5481_v62  ;;  %v3037_v6 = vstv %s6506_s27  ;;  %v8151_v34 = vld [vmem:[#allocation43_spill] sm:$0xff]  ;;  %s7368_s27 = sld [smem:[#allocation7 + $0x27]] }
 0x2d6   : > { %8147 = vst [vmem:[#allocation32_spill] sm:$0xff] %v6572_v5  ;;  %v6592_v50 = vadd.f32 %v8150_v38, %v6360_v56  ;;  %3028 = vrot.lane.b32.xlu0 %v3027_v2, %s7901_s7  ;;  %v3465_v24 = vmul.f32 %v3464_v44, %v5437_v32  ;;  %v6602_v5 = vadd.f32 %v8151_v34, %v6391_v59  ;;  %v8153_v56 = vld [vmem:[#allocation44_spill] sm:$0xff]  ;;  %v2834_v31 = vstv %s6525_s29  ;;  %v8154_v2 = vld [vmem:[#allocation45_spill] sm:$0xff]  ;;  %s7395_s29 = sld [smem:[#allocation7 + $0xcf]] }
 0x2d7   : > { %v6606_v19 = vadd.f32 %v8152_v52, %v6373_v11  ;;  %v6610_v38 = vadd.f32 %v8153_v56, %v6419_v7  ;;  %3149 = vrot.lane.b32.xlu1 %v3145_v4, %s7904_s23  ;;  %v6616_v44 = vadd.f32 %v8154_v2, %v6428_v28  ;;  %v6621_v59 = vmul.f32 %v3037_v6, %v5481_v62 }
 0x2d8   : > { %v6618_v17 = vpop.permute.xlu0 %2499  ;;  %v3156_v11 = vstv %s6531_s9  ;;  %v3038_v34 = vmul.f32 %v3037_v6, %v5437_v32  ;;  %v6627_v7 = vpop.permute.xlu1 %2518  ;;  %v3351_v52 = vrot.slane %v3347_v57, 2  ;;  %v3146_v56 = vsel %vm371_vm0, %v3144_v63, %v3145_v4  ;;  %v8157_v6 = vld [vmem:[#allocation46_spill] sm:$0xff]  ;;  %v8158_v63 = vld [vmem:[#allocation47_spill] sm:$0xff]  ;;  %s7415_s9 = sld [smem:[#allocation7 + $0x81]] }
 0x2d9   : > { %8155 = vst [vmem:[#allocation33_spill] sm:$0xff] %v6618_v17  ;;  %8156 = vst [vmem:[#allocation175_spill] sm:$0xff] %v6627_v7  ;;  %v3470_v14 = vrot.slane %v3466_v9, 2  ;;  %v3350_v28 = vrot.slane %v3346_v42, 2  ;;  %v2836_v2 = vmul.f32 %v2834_v31, %v5481_v62  ;;  %v3469_v1 = vrot.slane %v3465_v24, 2 }
 0x2da   : > { %3147 = vrot.lane.b32.xlu0 %v3146_v56, %s7904_s23  ;;  %v2588_v17 = vstv %s6539_s19  ;;  %v3362_v40 = vstv %s6554_s10  ;;  %v6638_v20 = vadd.f32 %v8157_v6, %v6439_v13  ;;  %v6642_v57 = vmul.f32 %v3156_v11, %v5481_v62  ;;  %s7426_s19 = sld [smem:[#allocation7 + $0x15]] }
 0x2db   : > { %3355 = vrot.lane.b32.xlu1 %v3351_v52, %s7901_s7  ;;  %v3157_v42 = vmul.f32 %v3156_v11, %v5437_v32  ;;  %v3481_v4 = vstv %s6575_s15  ;;  %v6648_v9 = vadd.f32 %v8158_v63, %v6436_v47  ;;  %v3043_v56 = vrot.slane %v6621_v59, 1  ;;  %s7451_s10 = sld [smem:[#allocation7 + $0x2a]] }
 0x2dc   : > { %v6650_v24 = vpop.permute.xlu0 %2516  ;;  %v2835_v13 = vmul.f32 %v2834_v31, %v5437_v32  ;;  %v3042_v6 = vrot.slane %v3038_v34, 1  ;;  %v6656_v7 = vpop.permute.xlu1 %2629  ;;  %v3352_v48 = vsel %vm1180_vm1, %v3350_v28, %v3351_v52  ;;  %v6660_v11 = vmul.f32 %v2588_v17, %v5437_v32  ;;  %v8162_v28 = vld [vmem:[#allocation49_spill] sm:$0xff]  ;;  %s7520_s15 = sld [smem:[#allocation7 + $0x30]] }
 0x2dd   : > { %8159 = vst [vmem:[#allocation34_spill] sm:$0xff] %v6650_v24  ;;  %8160 = vst [vmem:[#allocation35_spill] sm:$0xff] %v6656_v7  ;;  %v6663_v45 = vmul.f32 %v3362_v40, %v5481_v62  ;;  %v3363_v47 = vmul.f32 %v3362_v40, %v5437_v32  ;;  %v3471_v31 = vsel %vm1180_vm1, %v3469_v1, %v3470_v14  ;;  %v3054_v34 = vstv %s6598_s2  ;;  %v8163_v40 = vld [vmem:[#allocation48_spill] sm:$0xff]  ;;  %s7539_s2 = sld [smem:[#allocation7 + $0x33]] }
 0x2de   : > { %8161 = vst [vmem:[#allocation38_spill] sm:$0xff] %v6660_v11  ;;  %3353 = vrot.lane.b32.xlu0 %v3352_v48, %s7901_s7  ;;  %v6671_v59 = vmul.f32 %v3481_v4, %v5481_v62  ;;  %v3482_v52 = vmul.f32 %v3481_v4, %v5437_v32  ;;  %v6679_v63 = vadd.f32 %v8162_v28, %v6454_v37  ;;  %v3161_v1 = vrot.slane %v3157_v42, 1  ;;  %v8164_v11 = vld [vmem:[#allocation51_spill] sm:$0xff] }
 0x2df   : > { %v6683_v7 = vadd.f32 %v8163_v40, %v6442_v36  ;;  %3474 = vrot.lane.b32.xlu1 %v3470_v14, %s7904_s23  ;;  %v1054_v24 = vadd.f32 %v8164_v11, %v6482_v23  ;;  %v3044_v4 = vsel %vm371_vm0, %v3042_v6, %v3043_v56  ;;  %v6693_v58 = vmul.f32 %v2588_v17, %v5481_v62  ;;  %v8168_v23 = vld [vmem:[#allocation57_spill] sm:$0xff] }
 0x2e0   : > { %v6689_v60 = vpop.permute.xlu0 %2533  ;;  %v3173_v37 = vstv %s6625_s12  ;;  %v6696_v28 = vpop.permute.xlu1 %2643  ;;  %v3367_v40 = vrot.slane %v3363_v47, 2  ;;  %v2594_v14 = vstv %s6630_s26  ;;  %v6701_v48 = vmul.f32 %v3054_v34, %v5481_v62  ;;  %v8169_v47 = vld [vmem:[#allocation50_spill] sm:$0xff]  ;;  %s4093_s12 = sld [smem:[#allocation7 + $0x4e]] }
 0x2e1   : > { %8165 = vst [vmem:[#allocation36_spill] sm:$0xff] %v6689_v60  ;;  %8166 = vst [vmem:[#allocation39_spill] sm:$0xff] %v6693_v58  ;;  %v1105_v42 = vadd.f32 %v8168_v23, %v6592_v50  ;;  %v3486_v6 = vrot.slane %v3482_v52, 2  ;;  %v3055_v11 = vmul.f32 %v3054_v34, %v5437_v32  ;;  %v6714_v36 = vadd.f32 %v8169_v47, %v6489_v26  ;;  %v8171_v23 = vld [vmem:[#allocation169_spill] sm:$0xff]  ;;  %s4094_s26 = sld [smem:[#allocation7 + $0x69]] }
 0x2e2   : > { %8167 = vst [vmem:[#allocation40_spill] sm:$0xff] %v6696_v28  ;;  %3472 = vrot.lane.b32.xlu0 %v3471_v31, %s7904_s23  ;;  %v8170_v28 = vrot.slane %v6642_v57, 1  ;;  %v6721_v31 = vmul.f32 %v3173_v37, %v5481_v62  ;;  %v3174_v52 = vmul.f32 %v3173_v37, %v5437_v32  ;;  %v8172_v34 = vrot.slane %v8171_v23, 2 }
 0x2e3   : > { %2841 = vrot.lane.b32.xlu1 %v2836_v2, %s7904_s23  ;;  %v6731_v26 = vmul.f32 %v2594_v14, %v5481_v62  ;;  %v6734_v2 = vmul.f32 %v2594_v14, %v5437_v32  ;;  %v3379_v47 = vstv %s6654_s13  ;;  %v8179_v37 = vrot.slane %v6663_v45, 2  ;;  %s4072_s13 = sld [smem:[#allocation7 + $0x9c]] }
 0x2e4   : > { %v3163_v50 = vsel %vm371_vm0, %v3161_v1, %v8170_v28  ;;  %v6726_v17 = vadd.f32 %v8172_v34, %v1054_v24  ;;  %v6728_v60 = vpop.permute.xlu0 %2631  ;;  %v8177_v1 = vld [vmem:[#allocation52_spill] sm:$0xff]  ;;  %v6739_v58 = vpop.permute.xlu1 %2741  ;;  %v3498_v34 = vstv %s6666_s30  ;;  %s4095_s30 = sld [smem:[#allocation7 + $0x84]] }
 0x2e5   : > { %8174 = vst [vmem:[#allocation42_spill] sm:$0xff] %v6728_v60  ;;  %8175 = vst [vmem:[#allocation44_spill] sm:$0xff] %v6731_v26  ;;  %v1053_v28 = vadd.f32 %v8177_v1, %v6510_v33  ;;  %v6744_v23 = vsel %vm1180_vm1, %v3367_v40, %v8179_v37  ;;  %v8180_v60 = vrot.slane %v5859_v41, 2  ;;  %v3059_v1 = vrot.slane %v3055_v11, 1  ;;  %v8187_v40 = vld [vmem:[#allocation177_spill] sm:$0xff] }
 0x2e6   : > { %8173 = vst [vmem:[#allocation43_spill] sm:$0xff] %v6726_v17  ;;  %8176 = vst [vmem:[#allocation45_spill] sm:$0xff] %v6734_v2  ;;  %2839 = vrot.lane.b32.xlu0 %v2835_v13, %s7904_s23  ;;  %v8181_v2 = vrot.slane %v6671_v59, 2  ;;  %v6764_v37 = vmul.f32 %v3379_v47, %v5481_v62  ;;  %v3178_v41 = vrot.slane %v3174_v52, 1  ;;  %v8182_v13 = vld [vmem:[#allocation53_spill] sm:$0xff] }
 0x2e7   : > { %8178 = vst [vmem:[#allocation46_spill] sm:$0xff] %v6739_v58  ;;  %v1226_v14 = vadd.f32 %v8180_v60, %v1105_v42  ;;  %v3071_v58 = vstv %s6675_s8  ;;  %3047 = vrot.lane.b32.xlu1 %v3043_v56, %s7901_s7  ;;  %v3380_v60 = vmul.f32 %v3379_v47, %v5437_v32  ;;  %v6769_v42 = vadd.f32 %v8182_v13, %v6521_v25  ;;  %s7609_s8 = sld [smem:[#allocation7 + $0xb7]] }
 0x2e8   : > { %v6756_v33 = vsel %vm1180_vm1, %v3486_v6, %v8181_v2  ;;  %v8184_v6 = vld [vmem:[#allocation55_spill] sm:$0xff]  ;;  %v8185_v2 = vld [vmem:[#allocation73_spill] sm:$0xff]  ;;  %v6774_v43 = vpop.permute.xlu0 %2645  ;;  %v6777_v56 = vmul.f32 %v3498_v34, %v5481_v62  ;;  %v6780_v17 = vadd.f32 %v8187_v40, %v1053_v28  ;;  %v6782_v52 = vpop.permute.xlu1 %2657  ;;  %v2600_v47 = vstv %s6703_s22  ;;  %s7612_s22 = sld [smem:[#allocation7 + $0x9f]] }
 0x2e9   : > { %8183 = vst [vmem:[#allocation47_spill] sm:$0xff] %v6769_v42  ;;  %v1088_v11 = vadd.f32 %v8184_v6, %v6558_v49  ;;  %v1346_v24 = vadd.f32 %v8185_v2, %v1226_v14  ;;  %8186 = vst [vmem:[#allocation49_spill] sm:$0xff] %v6774_v43  ;;  %v6786_v26 = vmul.f32 %v3071_v58, %v5481_v62  ;;  %v8189_v49 = vld [vmem:[#allocation89_spill] sm:$0xff]  ;;  %v8190_v13 = vrot.slane %v6701_v48, 1  ;;  %v8191_v2 = vld [vmem:[#allocation54_spill] sm:$0xff] }
 0x2ea   : > { %8188 = vst [vmem:[#allocation48_spill] sm:$0xff] %v6782_v52  ;;  %v3499_v25 = vmul.f32 %v3498_v34, %v5437_v32  ;;  %3045 = vrot.lane.b32.xlu0 %v3044_v4, %s7901_s7  ;;  %v3190_v28 = vstv %s6710_s25  ;;  %v3072_v40 = vmul.f32 %v3071_v58, %v5437_v32  ;;  %v6802_v43 = vadd.f32 %v8191_v2, %v6562_v10  ;;  %s7616_s25 = sld [smem:[#allocation7 + $0xd2]] }
 0x2eb   : > { %v1482_v14 = vadd.f32 %v8189_v49, %v1346_v24  ;;  %v6796_v6 = vsel %vm371_vm0, %v3059_v1, %v8190_v13  ;;  %v8193_v34 = vrot.slane %v6642_v57, 1  ;;  %v8194_v4 = vrot.slane %v6721_v31, 1  ;;  %v8195_v13 = vld [vmem:[#allocation56_spill] sm:$0xff]  ;;  %v8200_v24 = vld [vmem:[#allocation58_spill] sm:$0xff] }
 0x2ec   : > { %8192 = vst [vmem:[#allocation51_spill] sm:$0xff] %v6802_v43  ;;  %v3384_v1 = vrot.slane %v3380_v60, 2  ;;  %v1087_v58 = vadd.f32 %v8195_v13, %v6579_v46  ;;  %v8196_v42 = vrot.slane %v5845_v3, 2  ;;  %v6819_v2 = vpop.permute.xlu0 %2743  ;;  %v6831_v46 = vmul.f32 %v3190_v28, %v5481_v62  ;;  %v8199_v60 = vld [vmem:[#allocation59_spill] sm:$0xff] }
 0x2ed   : > { %3166 = vrot.lane.b32.xlu1 %v8193_v34, %s7904_s23  ;;  %v6811_v49 = vsel %vm371_vm0, %v3178_v41, %v8194_v4  ;;  %8197 = vst [vmem:[#allocation57_spill] sm:$0xff] %v6819_v2  ;;  %v6823_v34 = vmul.f32 %v2600_v47, %v5481_v62  ;;  %v6827_v41 = vpop.permute.xlu1 %2755  ;;  %v3503_v4 = vrot.slane %v3499_v25, 2  ;;  %v3396_v3 = vstv %s6748_s0  ;;  %s7628_s0 = sld [smem:[#allocation7 + $0xba]] }
 0x2ee   : > { %v6817_v10 = vadd.f32 %v8196_v42, %v1088_v11  ;;  %8198 = vst [vmem:[#allocation50_spill] sm:$0xff] %v6827_v41  ;;  %v1574_v42 = vadd.f32 %v6051_v29, %v1482_v14  ;;  %3164 = vrot.lane.b32.xlu0 %v3163_v50, %s7904_s23  ;;  %v3076_v11 = vrot.slane %v3072_v40, 1  ;;  %v3191_v13 = vmul.f32 %v3190_v28, %v5437_v32  ;;  %v8204_v40 = vld [vmem:[#allocation105_spill] sm:$0xff] }
 0x2ef   : > { %v3515_v57 = vstv %s6759_s1  ;;  %v1122_v25 = vadd.f32 %v8199_v60, %v6602_v5  ;;  %v1104_v41 = vadd.f32 %v8200_v24, %v6606_v19  ;;  %v8201_v2 = vrot.slane %v6663_v45, 2  ;;  %s7640_s1 = sld [smem:[#allocation7 + $0xd5]] }
 0x2f0   : > { %v8202_v29 = vrot.slane %v6764_v37, 2  ;;  %v6855_v14 = vmul.f32 %v2600_v47, %v5437_v32  ;;  %v6858_v28 = vadd.f32 %v5968_v15, %v1087_v58  ;;  %v1654_v5 = vadd.f32 %v8204_v40, %v1574_v42  ;;  %v6861_v60 = vpop.permute.xlu0 %2659  ;;  %v8206_v42 = vld [vmem:[#allocation60_spill] sm:$0xff]  ;;  %v8207_v40 = vld [vmem:[#allocation123_spill] sm:$0xff] }
 0x2f1   : > { %3372 = vrot.lane.b32.xlu1 %v8201_v2, %s7901_s7  ;;  %v6864_v19 = vmul.f32 %v3396_v3, %v5481_v62  ;;  %v3397_v45 = vmul.f32 %v3396_v3, %v5437_v32  ;;  %v6867_v24 = vpop.permute.xlu1 %2535  ;;  %v6876_v15 = vmul.f32 %v3515_v57, %v5481_v62  ;;  %v3207_v58 = vstv %s6789_s3  ;;  %v8209_v47 = vld [vmem:[#allocation61_spill] sm:$0xff]  ;;  %s3620_s3 = sld [smem:[#allocation10]] }
 0x2f2   : > { %v6852_v50 = vsel %vm1180_vm1, %v3384_v1, %v8202_v29  ;;  %8203 = vst [vmem:[#allocation169_spill] sm:$0xff] %v6855_v14  ;;  %v8205_v1 = vrot.slane %v6777_v56, 2  ;;  %v1121_v29 = vadd.f32 %v8206_v42, %v6610_v38  ;;  %v1766_v43 = vadd.f32 %v8207_v40, %v1654_v5  ;;  %3370 = vrot.lane.b32.xlu0 %v6744_v23, %s7901_s7 }
 0x2f3   : > { %v8208_v3 = vrot.slane %v6786_v26, 1  ;;  %v1139_v14 = vadd.f32 %v8209_v47, %v6616_v44  ;;  %v8210_v52 = vrot.slane %v5889_v53, 2  ;;  %v6896_v5 = vadd.f32 %v5973_v16, %v1104_v41 }
 0x2f4   : > { %v6872_v2 = vsel %vm1180_vm1, %v3503_v4, %v8205_v1  ;;  %v3195_v1 = vrot.slane %v3191_v13, 1  ;;  %v8211_v23 = vrot.slane %v6671_v59, 2  ;;  %v6902_v42 = vpop.permute.xlu0 %2757  ;;  %v3401_v40 = vrot.slane %v3397_v45, 2 }
 0x2f5   : > { %v6887_v4 = vsel %vm371_vm0, %v3076_v11, %v8208_v3  ;;  %v1239_v38 = vadd.f32 %v8210_v52, %v1122_v25  ;;  %v3516_v11 = vmul.f32 %v3515_v57, %v5437_v32  ;;  %8212 = vst [vmem:[#allocation52_spill] sm:$0xff] %v6902_v42  ;;  %v6906_v44 = vmul.f32 %v3207_v58, %v5481_v62  ;;  %v8213_v52 = vld [vmem:[#allocation62_spill] sm:$0xff]  ;;  %v6911_v41 = vpop.permute.xlu1 %2673 }
 0x2f6   : > { %3491 = vrot.lane.b32.xlu1 %v8211_v23, %s7904_s23  ;;  %v3413_v53 = vstv %s6825_s4  ;;  %v1138_v16 = vadd.f32 %v8213_v52, %v6638_v20  ;;  %v2606_v25 = vstv %s6834_s5  ;;  %v3208_v47 = vmul.f32 %v3207_v58, %v5437_v32  ;;  %3489 = vrot.lane.b32.xlu0 %v6756_v33, %s7904_s23  ;;  %v8216_v52 = vld [vmem:[#allocation63_spill] sm:$0xff]  ;;  %s4115_s5 = sld [smem:[#allocation10 + $0x1]] }
 0x2f7   : > { %v1238_v57 = vadd.f32 %v5979_v51, %v1121_v29  ;;  %v8214_v3 = vrot.slane %v6191_v61, 1  ;;  %v8215_v45 = vrot.slane %v6831_v46, 1  ;;  %v3532_v20 = vstv %s6840_s20  ;;  %v8219_v29 = vld [vmem:[#allocation144_spill] sm:$0xff]  ;;  %s3599_s20 = sld [smem:[#allocation2]] }
 0x2f8   : > { %v1156_v59 = vadd.f32 %v8216_v52, %v6648_v9  ;;  %v8217_v58 = vrot.slane %v5930_v8, 2  ;;  %v3520_v61 = vrot.slane %v3516_v11, 2  ;;  %v6937_v33 = vmul.f32 %v3413_v53, %v5481_v62  ;;  %v8225_v8 = vld [vmem:[#allocation179_spill] sm:$0xff] }
 0x2f9   : > { %v1874_v23 = vadd.f32 %v8214_v3, %v1766_v43  ;;  %v6924_v13 = vsel %vm371_vm0, %v3195_v1, %v8215_v45  ;;  %v8218_v43 = vrot.slane %v6701_v48, 1  ;;  %v6940_v3 = vpop.permute.xlu0 %2671  ;;  %v8221_v45 = vrot.slane %v6864_v19, 2  ;;  %v6954_v11 = vpop.permute.xlu1 %2771 }
 0x2fa   : > { %v1252_v51 = vadd.f32 %v8217_v58, %v1139_v14  ;;  %8220 = vst [vmem:[#allocation53_spill] sm:$0xff] %v6940_v3  ;;  %v6949_v14 = vmul.f32 %v2606_v25, %v5481_v62  ;;  %v6952_v48 = vadd.f32 %v6001_v0, %v1138_v16  ;;  %v3212_v52 = vrot.slane %v3208_v47, 1  ;;  %3062 = vrot.lane.b32.xlu0 %v6796_v6, %s7901_s7 }
 0x2fb   : > { %3064 = vrot.lane.b32.xlu1 %v8218_v43, %s7901_s7  ;;  %v1994_v1 = vadd.f32 %v8219_v29, %v1874_v23  ;;  %v6945_v9 = vsel %vm1180_vm1, %v3401_v40, %v8221_v45  ;;  %v6957_v23 = vmul.f32 %v2606_v25, %v5437_v32  ;;  %v6960_v58 = vmul.f32 %v3532_v20, %v5481_v62  ;;  %v8223_v40 = vld [vmem:[#allocation71_spill] sm:$0xff]  ;;  %v8224_v29 = vld [vmem:[#allocation77_spill] sm:$0xff] }
 0x2fc   : > { %v1329_v43 = vadd.f32 %v8223_v40, %v6817_v10  ;;  %v1380_v45 = vadd.f32 %v8224_v29, %v1252_v51  ;;  %v2874_v0 = vstv %s6889_s6  ;;  %v8226_v16 = vrot.slane %v5938_v54, 2  ;;  %v8229_v54 = vld [vmem:[#allocation64_spill] sm:$0xff]  ;;  %v8231_v40 = vld [vmem:[#allocation87_spill] sm:$0xff]  ;;  %v8232_v29 = vld [vmem:[#allocation93_spill] sm:$0xff] }
 0x2fd   : > { %8222 = vst [vmem:[#allocation55_spill] sm:$0xff] %v6957_v23  ;;  %v2130_v42 = vadd.f32 %v8225_v8, %v1994_v1  ;;  %v8227_v25 = vrot.slane %v6721_v31, 1  ;;  %v8228_v23 = vrot.slane %v6876_v15, 2  ;;  %v3414_v1 = vmul.f32 %v3413_v53, %v5437_v32  ;;  %v6994_v51 = vpop.permute.xlu1 %2962 }
 0x2fe   : > { %v6971_v47 = vadd.f32 %v8226_v16, %v1156_v59  ;;  %v1155_v6 = vadd.f32 %v8229_v54, %v6683_v7  ;;  %v8230_v59 = vld [vmem:[#allocation75_spill] sm:$0xff]  ;;  %v1465_v31 = vadd.f32 %v8231_v40, %v1329_v43  ;;  %v1516_v16 = vadd.f32 %v8232_v29, %v1380_v45  ;;  %8235 = vst [vmem:[#allocation177_spill] sm:$0xff] %v6994_v51  ;;  %v8237_v43 = vld [vmem:[#allocation65_spill] sm:$0xff] }
 0x2ff   : > { %3183 = vrot.lane.b32.xlu1 %v8227_v25, %s7904_s23  ;;  %v6979_v10 = vsel %vm1180_vm1, %v3520_v61, %v8228_v23  ;;  %v1363_v8 = vadd.f32 %v8230_v59, %v1239_v38  ;;  %v6990_v25 = vpop.permute.xlu0 %2769  ;;  %v8234_v61 = vld [vmem:[#allocation72_spill] sm:$0xff]  ;;  %v8236_v53 = vrot.slane %v6906_v44, 1  ;;  %v2875_v38 = vmul.f32 %v2874_v0, %v5437_v32  ;;  %v8238_v45 = vld [vmem:[#allocation91_spill] sm:$0xff]  ;;  %3181 = vrot.lane.b32.xlu0 %v6811_v49, %s7904_s23 }
 0x300   : > { %8233 = vst [vmem:[#allocation73_spill] sm:$0xff] %v6990_v25  ;;  %v1328_v23 = vadd.f32 %v8234_v61, %v6858_v28  ;;  %v1173_v54 = vadd.f32 %v8237_v43, %v6679_v63  ;;  %v8239_v40 = vrot.slane %v6445_v35, 2  ;;  %v3430_v28 = vstv %s6927_s14  ;;  %v8240_v61 = vld [vmem:[#allocation76_spill] sm:$0xff]  ;;  %s4116_s14 = sld [smem:[#allocation10 + $0x2]] }
 0x301   : > { %v6999_v3 = vsel %vm371_vm0, %v3212_v52, %v8236_v53  ;;  %v1499_v59 = vadd.f32 %v8238_v45, %v1363_v8  ;;  %v1362_v51 = vadd.f32 %v8240_v61, %v1238_v57  ;;  %v8241_v52 = vld [vmem:[#allocation88_spill] sm:$0xff]  ;;  %v8242_v7 = vrot.slane %v6764_v37, 2  ;;  %v7028_v37 = vpop.permute.xlu1 %2552 }
 0x302   : > { %v2250_v29 = vadd.f32 %v8239_v40, %v2130_v42  ;;  %v1464_v53 = vadd.f32 %v8241_v52, %v1328_v23  ;;  %v3418_v25 = vrot.slane %v3414_v1, 2  ;;  %v7017_v63 = vmul.f32 %v2874_v0, %v5481_v62  ;;  %v8243_v23 = vld [vmem:[#allocation92_spill] sm:$0xff]  ;;  %v8251_v52 = vld [vmem:[#allocation128_spill] sm:$0xff] }
 0x303   : > { %3389 = vrot.lane.b32.xlu1 %v8242_v7, %s7901_s7  ;;  %v7020_v8 = vadd.f32 %v6006_v55, %v1155_v6  ;;  %v1568_v35 = vadd.f32 %v6035_v21, %v1465_v31  ;;  %v1586_v49 = vadd.f32 %v6064_v12, %v1516_v16  ;;  %v7025_v57 = vpop.permute.xlu0 %2960  ;;  %v1498_v43 = vadd.f32 %v8243_v23, %v1362_v51  ;;  %v8244_v21 = vld [vmem:[#allocation103_spill] sm:$0xff] }
 0x304   : > { %v2370_v42 = vadd.f32 %v6259_v18, %v2250_v29  ;;  %v2879_v1 = vrot.slane %v2875_v38, 1  ;;  %v7031_v0 = vmul.f32 %v3430_v28, %v5481_v62  ;;  %v3533_v55 = vmul.f32 %v3532_v20, %v5437_v32  ;;  %v8245_v18 = vld [vmem:[#allocation109_spill] sm:$0xff]  ;;  %3387 = vrot.lane.b32.xlu0 %v6852_v50, %s7901_s7  ;;  %v8247_v38 = vld [vmem:[#allocation189_spill] sm:$0xff] }
 0x305   : > { %v1640_v6 = vadd.f32 %v8244_v21, %v1568_v35  ;;  %v1580_v12 = vadd.f32 %v6054_v30, %v1499_v59  ;;  %v1682_v31 = vadd.f32 %v8245_v18, %v1586_v49  ;;  %v8246_v51 = vrot.slane %v5943_v39, 2  ;;  %v8249_v59 = vld [vmem:[#allocation107_spill] sm:$0xff]  ;;  %v8254_v49 = vld [vmem:[#allocation104_spill] sm:$0xff]  ;;  %v7066_v21 = vpop.permute.xlu1 %2687 }
 0x306   : > { %v2506_v16 = vadd.f32 %v6585_v27, %v2370_v42  ;;  %v1567_v45 = vadd.f32 %v8247_v38, %v1464_v53  ;;  %v8248_v20 = vrot.slane %v6777_v56, 2  ;;  %v7753_v40 = vrot.slane %v7017_v63, 1  ;;  %v8250_v27 = vld [vmem:[#allocation120_spill] sm:$0xff]  ;;  %v8253_v56 = vld [vmem:[#allocation66_spill] sm:$0xff] }
 0x307   : > { %v7044_v7 = vadd.f32 %v8246_v51, %v1173_v54  ;;  %v3549_v30 = vstv %s6983_s17  ;;  %v1668_v29 = vadd.f32 %v8249_v59, %v1580_v12  ;;  %v1752_v61 = vadd.f32 %v8250_v27, %v1640_v6  ;;  %v7055_v35 = vpop.permute.xlu0 %2550  ;;  %v8255_v12 = vld [vmem:[#allocation126_spill] sm:$0xff]  ;;  %v8260_v59 = vld [vmem:[#allocation121_spill] sm:$0xff] }
 0x308   : > { %3508 = vrot.lane.b32.xlu1 %v8248_v20, %s7904_s23  ;;  %v1794_v50 = vadd.f32 %v8251_v52, %v1682_v31  ;;  %v8252_v39 = vrot.slane %v6937_v33, 2  ;;  %v1172_v53 = vadd.f32 %v8253_v56, %v6714_v36  ;;  %v1639_v42 = vadd.f32 %v8254_v49, %v1567_v45  ;;  %v8256_v31 = vld [vmem:[#allocation44_spill] sm:$0xff]  ;;  %3506 = vrot.lane.b32.xlu0 %v6872_v2, %s7904_s23  ;;  %v8257_v36 = vld [vmem:[#allocation43_spill] sm:$0xff] }
 0x309   : > { %v1579_v23 = vadd.f32 %v6067_v22, %v1498_v43  ;;  %v1780_v18 = vadd.f32 %v8255_v12, %v1668_v29  ;;  %v2598_v51 = vadd.f32 %v8256_v31, %v2506_v16  ;;  %v7076_v38 = vmul.f32 %v3549_v30, %v5481_v62  ;;  %v8258_v45 = vld [vmem:[#allocation67_spill] sm:$0xff]  ;;  %v8259_v43 = vld [vmem:[#allocation108_spill] sm:$0xff] }
 0x30a   : > { %v7060_v54 = vsel %vm1180_vm1, %v3418_v25, %v8252_v39  ;;  %v3537_v25 = vrot.slane %v3533_v55, 2  ;;  %v7080_v22 = vadd.f32 %v8258_v45, %v8257_v36  ;;  %v1751_v27 = vadd.f32 %v8260_v59, %v1639_v42  ;;  %v8262_v55 = vld [vmem:[#allocation203_spill] sm:$0xff]  ;;  %v8264_v39 = vld [vmem:[#allocation209_spill] sm:$0xff] }
 0x30b   : > { %v1667_v20 = vadd.f32 %v8259_v43, %v1579_v23  ;;  %v8261_v16 = vrot.slane %v6786_v26, 1  ;;  %v7090_v2 = vsel %vm371_vm0, %v2879_v1, %v7753_v40  ;;  %v8263_v29 = vrot.slane %v8262_v55, 1  ;;  %v7097_v23 = vpop.permute.xlu0 %2685  ;;  %v8266_v26 = vld [vmem:[#allocation79_spill] sm:$0xff]  ;;  %v8267_v1 = vld [vmem:[#allocation185_spill] sm:$0xff]  ;;  %v8268_v45 = vld [vmem:[#allocation127_spill] sm:$0xff]  ;;  %v2786_v43 = vpop.permute.xlu1 %2785 }
 0x30c   : > { %v8265_v56 = vrot.slane %v8264_v39, 1  ;;  %v2678_v12 = vadd.f32 %v6911_v41, %v2598_v51  ;;  %v7100_v42 = vmul.f32 %v3430_v28, %v5437_v32  ;;  %v1397_v31 = vadd.f32 %v8266_v26, %v6971_v47  ;;  %v8270_v41 = vld [vmem:[#allocation208_spill] sm:$0xff]  ;;  %3079 = vrot.lane.b32.xlu0 %v6887_v4, %s7901_s7  ;;  %v8273_v47 = vld [vmem:[#allocation74_spill] sm:$0xff] }
 0x30d   : > { %3081 = vrot.lane.b32.xlu1 %v8261_v16, %s7901_s7  ;;  %v1861_v52 = vadd.f32 %v8263_v29, %v1752_v61  ;;  %v7107_v36 = vadd.f32 %v8267_v1, %v1172_v53  ;;  %v1779_v61 = vadd.f32 %v8268_v45, %v1667_v20  ;;  %v2612_v59 = vstv %s7034_s21  ;;  %v8272_v29 = vld [vmem:[#allocation148_spill] sm:$0xff]  ;;  %v8278_v45 = vld [vmem:[#allocation146_spill] sm:$0xff]  ;;  %s4117_s21 = sld [smem:[#allocation10 + $0x3]] }
 0x30e   : > { %v1900_v49 = vadd.f32 %v8265_v56, %v1794_v50  ;;  %v8269_v50 = vld [vmem:[#allocation142_spill] sm:$0xff]  ;;  %v8271_v51 = vrot.slane %v8270_v41, 1  ;;  %v7115_v39 = vadd.f32 %v2786_v43, %v2678_v12  ;;  %v1345_v53 = vadd.f32 %v8273_v47, %v6896_v5  ;;  %v8274_v56 = vld [vmem:[#allocation207_spill] sm:$0xff]  ;;  %v8279_v43 = vld [vmem:[#allocation176_spill] sm:$0xff] }
 0x30f   : > { %v1977_v16 = vadd.f32 %v8269_v50, %v1861_v52  ;;  %v1860_v26 = vadd.f32 %v8274_v56, %v1751_v27  ;;  %v8275_v20 = vrot.slane %v6831_v46, 1  ;;  %v8276_v52 = vrot.slane %v6960_v58, 2  ;;  %v8277_v12 = vld [vmem:[#allocation95_spill] sm:$0xff]  ;;  %v8280_v5 = vld [vmem:[#allocation184_spill] sm:$0xff]  ;;  %v7135_v27 = vpop.permute.xlu0 %2783  ;;  %v8281_v46 = vld [vmem:[#allocation78_spill] sm:$0xff] }
 0x310   : > { %v1887_v55 = vadd.f32 %v8271_v51, %v1780_v18  ;;  %v2028_v28 = vadd.f32 %v8272_v29, %v1900_v49  ;;  %v1533_v1 = vadd.f32 %v8277_v12, %v1397_v31  ;;  %v1379_v51 = vadd.f32 %v8281_v46, %v6952_v48  ;;  %v8282_v29 = vld [vmem:[#allocation80_spill] sm:$0xff]  ;;  %v7143_v49 = vpop.permute.xlu1 %2979  ;;  %v8285_v31 = vld [vmem:[#allocation90_spill] sm:$0xff]  ;;  %3198 = vrot.lane.b32.xlu0 %v6924_v13, %s7904_s23 }
 0x311   : > { %3200 = vrot.lane.b32.xlu1 %v8275_v20, %s7904_s23  ;;  %v7128_v18 = vsel %vm1180_vm1, %v3537_v25, %v8276_v52  ;;  %v2113_v50 = vadd.f32 %v8279_v43, %v1977_v16  ;;  %v1396_v47 = vadd.f32 %v8282_v29, %v7020_v8  ;;  %v8283_v25 = vld [vmem:[#allocation143_spill] sm:$0xff]  ;;  %v8284_v20 = vld [vmem:[#allocation17_spill] sm:$0xff]  ;;  %v8286_v16 = vld [vmem:[#allocation181_spill] sm:$0xff]  ;;  %v7151_v48 = vmul.f32 %v2612_v59, %v5481_v62 }
 0x312   : > { %v2011_v4 = vadd.f32 %v8278_v45, %v1887_v55  ;;  %v2164_v41 = vadd.f32 %v8280_v5, %v2028_v28  ;;  %v1976_v56 = vadd.f32 %v8283_v25, %v1860_v26  ;;  %v1886_v52 = vadd.f32 %v8284_v20, %v1779_v61  ;;  %v8287_v8 = vld [vmem:[#allocation94_spill] sm:$0xff]  ;;  %v8288_v26 = vld [vmem:[#allocation96_spill] sm:$0xff]  ;;  %v8293_v29 = vld [vmem:[#allocation150_spill] sm:$0xff] }
 0x313   : > { %v1481_v55 = vadd.f32 %v8285_v31, %v1345_v53  ;;  %v3435_v28 = vrot.slane %v7100_v42, 2  ;;  %v1515_v61 = vadd.f32 %v8287_v8, %v1379_v51  ;;  %v1532_v45 = vadd.f32 %v8288_v26, %v1396_v47  ;;  %v8289_v43 = vld [vmem:[#allocation147_spill] sm:$0xff]  ;;  %v8290_v53 = vld [vmem:[#allocation178_spill] sm:$0xff]  ;;  %v8292_v13 = vld [vmem:[#allocation193_spill] sm:$0xff]  ;;  %v7167_v6 = vpop.permute.xlu0 %2977 }
 0x314   : > { %v2147_v12 = vadd.f32 %v8286_v16, %v2011_v4  ;;  %v2010_v5 = vadd.f32 %v8289_v43, %v1886_v52  ;;  %v2112_v46 = vadd.f32 %v8290_v53, %v1976_v56  ;;  %v8291_v4 = vrot.slane %v6864_v19, 2  ;;  %v8295_v31 = vld [vmem:[#allocation158_spill] sm:$0xff]  ;;  %8297 = vst [vmem:[#allocation89_spill] sm:$0xff] %v7167_v6  ;;  %v8298_v47 = vld [vmem:[#allocation68_spill] sm:$0xff]  ;;  %v7175_v26 = vpop.permute.xlu1 %3098  ;;  %3404 = vrot.lane.b32.xlu0 %v6945_v9, %s7901_s7 }
 0x315   : > { %v1592_v42 = vadd.f32 %v8292_v13, %v1533_v1  ;;  %v8294_v25 = vrot.slane %v8293_v29, 2  ;;  %v8296_v16 = vrot.slane %v8295_v31, 2  ;;  %v3447_v51 = vstv %s7102_s18  ;;  %v8299_v56 = vld [vmem:[#allocation183_spill] sm:$0xff] }
 0x316   : > { %3406 = vrot.lane.b32.xlu1 %v8291_v4, %s7901_s7  ;;  %v7172_v52 = vadd.f32 %v8298_v47, %v6780_v17  ;;  %v2146_v8 = vadd.f32 %v8299_v56, %v2010_v5  ;;  %v7180_v19 = vmul.f32 %v3549_v30, %v5437_v32  ;;  %v7183_v1 = vmul.f32 %v2612_v59, %v5437_v32  ;;  %v8301_v43 = vld [vmem:[#allocation211_spill] sm:$0xff]  ;;  %v8302_v4 = vld [vmem:[#allocation26_spill] sm:$0xff]  ;;  %v8304_v17 = vld [vmem:[#allocation23_spill] sm:$0xff] }
 0x317   : > { %v2237_v20 = vadd.f32 %v8294_v25, %v2113_v50  ;;  %v2276_v40 = vadd.f32 %v8296_v16, %v2164_v41  ;;  %v8300_v50 = vld [vmem:[#allocation111_spill] sm:$0xff]  ;;  %v8303_v13 = vrot.slane %v8302_v4, 2  ;;  %v8305_v5 = vld [vmem:[#allocation192_spill] sm:$0xff]  ;;  %v8308_v59 = vld [vmem:[#allocation157_spill] sm:$0xff] }
 0x318   : > { %v1696_v41 = vadd.f32 %v8300_v50, %v1592_v42  ;;  %v1573_v31 = vadd.f32 %v8305_v5, %v1481_v55  ;;  %v8306_v16 = vld [vmem:[#allocation194_spill] sm:$0xff]  ;;  %v8307_v47 = vld [vmem:[#allocation196_spill] sm:$0xff]  ;;  %v2236_v6 = vadd.f32 %v8308_v59, %v2112_v46  ;;  %v8309_v42 = vrot.slane %v6876_v15, 2  ;;  %v8311_v50 = vld [vmem:[#allocation215_spill] sm:$0xff]  ;;  %v7203_v55 = vpop.permute.xlu0 %3096  ;;  %3523 = vrot.lane.b32.xlu0 %v6979_v10, %s7904_s23 }
 0x319   : > { %v2353_v53 = vadd.f32 %v8301_v43, %v2237_v20  ;;  %v2263_v29 = vadd.f32 %v8303_v13, %v2147_v12  ;;  %v2404_v25 = vadd.f32 %v8304_v17, %v2276_v40  ;;  %v1585_v30 = vadd.f32 %v8306_v16, %v1515_v61  ;;  %v8310_v20 = vld [vmem:[#allocation130_spill] sm:$0xff]  ;;  %v8312_v43 = vld [vmem:[#allocation171_spill] sm:$0xff]  ;;  %v8313_v61 = vld [vmem:[#allocation106_spill] sm:$0xff] }
 0x31a   : > { %v1591_v56 = vadd.f32 %v8307_v47, %v1532_v45  ;;  %3525 = vrot.lane.b32.xlu1 %v8309_v42, %s7904_s23  ;;  %v1808_v12 = vadd.f32 %v8310_v20, %v1696_v41  ;;  %v1653_v13 = vadd.f32 %v8313_v61, %v1573_v31  ;;  %v8314_v45 = vld [vmem:[#allocation112_spill] sm:$0xff]  ;;  %v8315_v46 = vld [vmem:[#allocation214_spill] sm:$0xff]  ;;  %v7209_v47 = vpop.permute.xlu1 %2569  ;;  %v8317_v59 = vld [vmem:[#allocation110_spill] sm:$0xff] }
 0x31b   : > { %v2387_v40 = vadd.f32 %v8311_v50, %v2263_v29  ;;  %v2489_v4 = vadd.f32 %v8312_v43, %v2353_v53  ;;  %v2540_v9 = vadd.f32 %v6867_v24, %v2404_v25  ;;  %v2352_v5 = vadd.f32 %v8315_v46, %v2236_v6  ;;  %v8316_v16 = vld [vmem:[#allocation159_spill] sm:$0xff]  ;;  %v8319_v25 = vld [vmem:[#allocation125_spill] sm:$0xff] }
 0x31c   : > { %v1695_v17 = vadd.f32 %v8314_v45, %v1591_v56  ;;  %v2262_v15 = vadd.f32 %v8316_v16, %v2146_v8  ;;  %v1681_v41 = vadd.f32 %v8317_v59, %v1585_v30  ;;  %v8318_v42 = vld [vmem:[#allocation175_spill] sm:$0xff]  ;;  %v7216_v24 = vmul.f32 %v3447_v51, %v5481_v62  ;;  %v8322_v8 = vld [vmem:[#allocation165_spill] sm:$0xff]  ;;  %v8327_v16 = vld [vmem:[#allocation39_spill] sm:$0xff]  ;;  %3215 = vrot.lane.b32.xlu0 %v6999_v3, %s7904_s23 }
 0x31d   : > { %v2523_v29 = vadd.f32 %v8318_v42, %v2387_v40  ;;  %v3566_v53 = vstv %s7153_s16  ;;  %v1765_v31 = vadd.f32 %v8319_v25, %v1653_v13  ;;  %v8320_v56 = vld [vmem:[#allocation131_spill] sm:$0xff]  ;;  %v2488_v43 = vadd.f32 %v8322_v8, %v2352_v5  ;;  %v8324_v40 = vld [vmem:[#allocation129_spill] sm:$0xff]  ;;  %v7231_v13 = vpop.permute.xlu0 %2567  ;;  %s4118_s16 = sld [smem:[#allocation10 + $0x4]] }
 0x31e   : > { %v1807_v20 = vadd.f32 %v8320_v56, %v1695_v17  ;;  %v8321_v6 = vld [vmem:[#allocation20_spill] sm:$0xff]  ;;  %v8323_v30 = vrot.slane %v6906_v44, 1  ;;  %v1793_v61 = vadd.f32 %v8324_v40, %v1681_v41  ;;  %v8325_v45 = vld [vmem:[#allocation213_spill] sm:$0xff]  ;;  %v2592_v59 = vadd.f32 %v8327_v16, %v2489_v4 }
 0x31f   : > { %v2386_v50 = vadd.f32 %v8321_v6, %v2262_v15  ;;  %v8326_v10 = vrot.slane %v8325_v45, 1  ;;  %v2610_v42 = vadd.f32 %v6949_v14, %v2540_v9  ;;  %v8328_v17 = vld [vmem:[#allocation34_spill] sm:$0xff]  ;;  %v2702_v15 = vpop.permute.xlu1 %2701  ;;  %v8329_v5 = vrot.slane %v7031_v0, 2  ;;  %v8336_v45 = vld [vmem:[#allocation191_spill] sm:$0xff] }
 0x320   : > { %3217 = vrot.lane.b32.xlu1 %v8323_v30, %s7904_s23  ;;  %v3554_v41 = vrot.slane %v7180_v19, 2  ;;  %v7241_v56 = vmul.f32 %v3447_v51, %v5437_v32  ;;  %v2664_v4 = vadd.f32 %v6861_v60, %v2592_v59  ;;  %v2604_v9 = vadd.f32 %v6823_v34, %v2523_v29  ;;  %v8333_v8 = vld [vmem:[#allocation38_spill] sm:$0xff]  ;;  %v8338_v16 = vld [vmem:[#allocation155_spill] sm:$0xff]  ;;  %3421 = vrot.lane.b32.xlu0 %v7060_v54, %s7901_s7 }
 0x321   : > { %v1913_v46 = vadd.f32 %v8326_v10, %v1808_v12  ;;  %v2522_v25 = vadd.f32 %v8328_v17, %v2386_v50  ;;  %v7237_v44 = vsel %vm1180_vm1, %v3435_v28, %v8329_v5  ;;  %v8330_v12 = vld [vmem:[#allocation153_spill] sm:$0xff]  ;;  %v7248_v6 = vadd.f32 %v2702_v15, %v2610_v42  ;;  %v8331_v28 = vld [vmem:[#allocation212_spill] sm:$0xff] }
 0x322   : > { %v1873_v19 = vadd.f32 %v8331_v28, %v1765_v31  ;;  %v8332_v50 = vld [vmem:[#allocation21_spill] sm:$0xff]  ;;  %v2591_v30 = vadd.f32 %v8333_v8, %v2488_v43  ;;  %v8334_v40 = vrot.slane %v6937_v33, 2  ;;  %v7263_v34 = vmul.f32 %v3566_v53, %v5481_v62  ;;  %v8335_v60 = vld [vmem:[#allocation18_spill] sm:$0xff]  ;;  %v8339_v33 = vld [vmem:[#allocation48_spill] sm:$0xff] }
 0x323   : > { %v2045_v14 = vadd.f32 %v8330_v12, %v1913_v46  ;;  %v1912_v51 = vadd.f32 %v8332_v50, %v1807_v20  ;;  %v1899_v29 = vadd.f32 %v8335_v60, %v1793_v61  ;;  %v2776_v10 = vadd.f32 %v6954_v11, %v2664_v4  ;;  %v7269_v46 = vpop.permute.xlu0 %2699  ;;  %v8337_v20 = vld [vmem:[#allocation145_spill] sm:$0xff]  ;;  %v2800_v5 = vpop.permute.xlu1 %2799  ;;  %v8341_v12 = vld [vmem:[#allocation81_spill] sm:$0xff]  ;;  %v8342_v28 = vld [vmem:[#allocation151_spill] sm:$0xff] }
 0x324   : > { %3423 = vrot.lane.b32.xlu1 %v8334_v40, %s7901_s7  ;;  %v2692_v31 = vadd.f32 %v7066_v21, %v2604_v9  ;;  %v1993_v43 = vadd.f32 %v8337_v20, %v1873_v19  ;;  %v2663_v42 = vadd.f32 %v8339_v33, %v2591_v30  ;;  %v8340_v17 = vld [vmem:[#allocation169_spill] sm:$0xff]  ;;  %v1414_v61 = vadd.f32 %v8341_v12, %v7044_v7  ;;  %v8343_v21 = vld [vmem:[#allocation180_spill] sm:$0xff]  ;;  %v8344_v9 = vld [vmem:[#allocation198_spill] sm:$0xff] }
 0x325   : > { %v2181_v3 = vadd.f32 %v8336_v45, %v2045_v14  ;;  %v2044_v59 = vadd.f32 %v8338_v16, %v1912_v51  ;;  %v2603_v15 = vadd.f32 %v8340_v17, %v2522_v25  ;;  %v2027_v14 = vadd.f32 %v8342_v28, %v1899_v29  ;;  %v8345_v51 = vld [vmem:[#allocation73_spill] sm:$0xff]  ;;  %v8351_v16 = vld [vmem:[#allocation82_spill] sm:$0xff]  ;;  %v8354_v12 = vld [vmem:[#allocation154_spill] sm:$0xff]  ;;  %3540 = vrot.lane.b32.xlu0 %v7128_v18, %s7904_s23 }
 0x326   : > { %v7278_v50 = vadd.f32 %v2800_v5, %v2692_v31  ;;  %v3453_v11 = vrot.slane %v7216_v24, 2  ;;  %v2129_v4 = vadd.f32 %v8343_v21, %v1993_v43  ;;  %v2775_v25 = vadd.f32 %v8345_v51, %v2663_v42  ;;  %v8347_v30 = vld [vmem:[#allocation97_spill] sm:$0xff]  ;;  %v8359_v51 = vld [vmem:[#allocation84_spill] sm:$0xff] }
 0x327   : > { %v2180_v19 = vadd.f32 %v8344_v9, %v2044_v59  ;;  %v2691_v8 = vadd.f32 %v7097_v23, %v2603_v15  ;;  %v8346_v7 = vrot.slane %v6960_v58, 2  ;;  %v1550_v40 = vadd.f32 %v8347_v30, %v1414_v61  ;;  %v8348_v60 = vld [vmem:[#allocation29_spill] sm:$0xff]  ;;  %v2798_v20 = vpop.permute.xlu0 %2797  ;;  %v8352_v23 = vld [vmem:[#allocation190_spill] sm:$0xff]  ;;  %v2997_v42 = vpop.permute.xlu1 %2996 }
 0x328   : > { %v8349_v54 = vrot.slane %v8348_v60, 2  ;;  %v8350_v45 = vrot.slane %v7017_v63, 1  ;;  %v3452_v43 = vrot.slane %v7241_v56, 2  ;;  %v1413_v59 = vadd.f32 %v8351_v16, %v7107_v36  ;;  %v8353_v15 = vld [vmem:[#allocation83_spill] sm:$0xff]  ;;  %v8355_v56 = vld [vmem:[#allocation98_spill] sm:$0xff] }
 0x329   : > { %3542 = vrot.lane.b32.xlu1 %v8346_v7, %s7904_s23  ;;  %v2163_v33 = vadd.f32 %v8352_v23, %v2027_v14  ;;  %v7299_v58 = vadd.f32 %v2798_v20, %v2691_v8  ;;  %v2887_v17 = vstv %s7243_s11  ;;  %v1431_v5 = vadd.f32 %v8353_v15, %v7080_v22  ;;  %v8356_v36 = vld [vmem:[#allocation30_spill] sm:$0xff]  ;;  %v8357_v14 = vld [vmem:[#allocation32_spill] sm:$0xff]  ;;  %3438 = vrot.lane.b32.xlu0 %v7237_v44, %s7901_s7  ;;  %v8372_v44 = vld [vmem:[#allocation132_spill] sm:$0xff] }
 0x32a   : > { %v2289_v29 = vadd.f32 %v8349_v54, %v2181_v3  ;;  %v2885_v31 = vadd.f32 %v8350_v45, %v2776_v10  ;;  %v3583_v63 = vstv %s7252_s24  ;;  %v1549_v10 = vadd.f32 %v8355_v56, %v1413_v59  ;;  %v8360_v7 = vld [vmem:[#allocation195_spill] sm:$0xff]  ;;  %v8363_v45 = vld [vmem:[#allocation173_spill] sm:$0xff]  ;;  %s4119_s24 = sld [smem:[#allocation10 + $0x5]] }
 0x32b   : > { %v2249_v28 = vadd.f32 %v8356_v36, %v2129_v4  ;;  %v2288_v21 = vadd.f32 %v8357_v14, %v2180_v19  ;;  %v8358_v9 = vrot.slane %v7031_v0, 2  ;;  %v2884_v22 = vadd.f32 %v7090_v2, %v2775_v25  ;;  %v2995_v60 = vpop.permute.xlu0 %2994  ;;  %v8364_v0 = vld [vmem:[#allocation152_spill] sm:$0xff]  ;;  %v7327_v16 = vpop.permute.xlu1 %3115  ;;  %v8367_v23 = vld [vmem:[#allocation197_spill] sm:$0xff]  ;;  %v8371_v36 = vld [vmem:[#allocation99_spill] sm:$0xff] }
 0x32c   : > { %v2421_v3 = vadd.f32 %v8354_v12, %v2289_v29  ;;  %v7305_v61 = vadd.f32 %v2997_v42, %v2885_v31  ;;  %v1430_v8 = vadd.f32 %v8359_v51, %v7172_v52  ;;  %v1598_v30 = vadd.f32 %v8360_v7, %v1550_v40  ;;  %v8362_v29 = vld [vmem:[#allocation19_spill] sm:$0xff]  ;;  %v8366_v40 = vld [vmem:[#allocation113_spill] sm:$0xff]  ;;  %v8368_v42 = vld [vmem:[#allocation22_spill] sm:$0xff] }
 0x32d   : > { %3440 = vrot.lane.b32.xlu1 %v8358_v9, %s7901_s7  ;;  %v8361_v54 = vrot.slane %v7076_v38, 2  ;;  %v2369_v19 = vadd.f32 %v8362_v29, %v2249_v28  ;;  %v2275_v31 = vadd.f32 %v8363_v45, %v2163_v33  ;;  %v2420_v20 = vadd.f32 %v8364_v0, %v2288_v21  ;;  %v8365_v52 = vld [vmem:[#allocation186_spill] sm:$0xff]  ;;  %v8369_v12 = vld [vmem:[#allocation33_spill] sm:$0xff]  ;;  %v8374_v51 = vld [vmem:[#allocation114_spill] sm:$0xff] }
 0x32e   : > { %v2557_v18 = vadd.f32 %v7028_v37, %v2421_v3  ;;  %v7329_v2 = vadd.f32 %v2995_v60, %v2884_v22  ;;  %v1556_v25 = vadd.f32 %v8365_v52, %v1431_v5  ;;  %v1710_v37 = vadd.f32 %v8366_v40, %v1598_v30  ;;  %v8373_v9 = vld [vmem:[#allocation188_spill] sm:$0xff]  ;;  %v8378_v45 = vld [vmem:[#allocation135_spill] sm:$0xff] }
 0x32f   : > { %v3556_v4 = vsel %vm1180_vm1, %v3554_v41, %v8361_v54  ;;  %v3572_v41 = vrot.slane %v7263_v34, 2  ;;  %v7337_v59 = vmul.f32 %v2887_v17, %v5437_v32  ;;  %v1597_v33 = vadd.f32 %v8367_v23, %v1549_v10  ;;  %v7349_v21 = vpop.permute.xlu0 %3113  ;;  %v2716_v60 = vpop.permute.xlu1 %2715  ;;  %v8379_v0 = vld [vmem:[#allocation45_spill] sm:$0xff] }
 0x330   : > { %v2403_v15 = vadd.f32 %v8368_v42, %v2275_v31  ;;  %v2505_v3 = vadd.f32 %v8369_v12, %v2369_v19  ;;  %v2556_v56 = vadd.f32 %v7055_v35, %v2420_v20  ;;  %v8370_v5 = vmov %v8361_v54  ;;  %v8375_v35 = vld [vmem:[#allocation36_spill] sm:$0xff]  ;;  %v8376_v54 = vld [vmem:[#allocation115_spill] sm:$0xff]  ;;  %3557 = vrot.lane.b32.xlu0 %v3556_v4, %s7904_s23 }
 0x331   : > { %3559 = vrot.lane.b32.xlu1 %v8370_v5, %s7904_s23  ;;  %v1612_v28 = vadd.f32 %v8371_v36, %v1556_v25  ;;  %v1822_v14 = vadd.f32 %v8372_v44, %v1710_v37  ;;  %v2616_v34 = vadd.f32 %v7151_v48, %v2557_v18  ;;  %v3567_v10 = vmul.f32 %v3566_v53, %v5437_v32  ;;  %v8380_v20 = vld [vmem:[#allocation16_spill] sm:$0xff] }
 0x332   : > { %v1555_v22 = vadd.f32 %v8373_v9, %v1430_v8  ;;  %v1709_v7 = vadd.f32 %v8374_v51, %v1597_v33  ;;  %v2539_v30 = vadd.f32 %v8375_v35, %v2403_v15  ;;  %v2889_v38 = vmul.f32 %v2887_v17, %v5481_v62  ;;  %v8377_v8 = vld [vmem:[#allocation100_spill] sm:$0xff]  ;;  %v8383_v15 = vld [vmem:[#allocation53_spill] sm:$0xff]  ;;  %v8389_v51 = vld [vmem:[#allocation136_spill] sm:$0xff] }
 0x333   : > { %v1724_v29 = vadd.f32 %v8376_v54, %v1612_v28  ;;  %v7359_v19 = vadd.f32 %v2716_v60, %v2616_v34  ;;  %v3454_v48 = vsel %vm1180_vm1, %v3452_v43, %v3453_v11  ;;  %v3585_v53 = vmul.f32 %v3583_v63, %v5481_v62  ;;  %v2714_v43 = vpop.permute.xlu0 %2713  ;;  %v8382_v33 = vld [vmem:[#allocation116_spill] sm:$0xff]  ;;  %v2814_v36 = vpop.permute.xlu1 %2813  ;;  %v8387_v28 = vld [vmem:[#allocation156_spill] sm:$0xff]  ;;  %v8391_v54 = vld [vmem:[#allocation206_spill] sm:$0xff] }
 0x334   : > { %v1611_v18 = vadd.f32 %v8377_v8, %v1555_v22  ;;  %v1821_v31 = vadd.f32 %v8378_v45, %v1709_v7  ;;  %v2597_v17 = vadd.f32 %v8379_v0, %v2505_v3  ;;  %v2615_v4 = vadd.f32 %v7183_v1, %v2556_v56  ;;  %v8384_v3 = vld [vmem:[#allocation55_spill] sm:$0xff]  ;;  %3455 = vrot.lane.b32.xlu0 %v3454_v48, %s7901_s7  ;;  %v8390_v35 = vld [vmem:[#allocation199_spill] sm:$0xff]  ;;  %v8392_v48 = vld [vmem:[#allocation160_spill] sm:$0xff] }
 0x335   : > { %3457 = vrot.lane.b32.xlu1 %v3453_v11, %s7901_s7  ;;  %v8381_v52 = vrot.slane %v8380_v20, 1  ;;  %v2892_v40 = vrot.slane %v7337_v59, 1  ;;  %v3571_v37 = vrot.slane %v3567_v10, 2  ;;  %v3584_v23 = vmul.f32 %v3583_v63, %v5437_v32  ;;  %v8385_v11 = vld [vmem:[#allocation200_spill] sm:$0xff]  ;;  %v8388_v59 = vld [vmem:[#allocation149_spill] sm:$0xff]  ;;  %s7402_s7 = sld [smem:[#allocation7 + $0x12]] }
 0x336   : > { %v1723_v42 = vadd.f32 %v8382_v33, %v1611_v18  ;;  %v2677_v12 = vadd.f32 %v8383_v15, %v2597_v17  ;;  %v2609_v5 = vadd.f32 %v8384_v3, %v2539_v30  ;;  %v7382_v24 = vadd.f32 %v2714_v43, %v2615_v4  ;;  %v8393_v18 = vld [vmem:[#allocation47_spill] sm:$0xff]  ;;  %v8396_v17 = vld [vmem:[#allocation161_spill] sm:$0xff]  ;;  %v8400_v15 = vld [vmem:[#allocation24_spill] sm:$0xff] }
 0x337   : > { %v1926_v25 = vadd.f32 %v8381_v52, %v1822_v14  ;;  %v8386_v1 = vrot.slane %v8385_v11, 1  ;;  %v7388_v14 = vadd.f32 %v2814_v36, %v7248_v6  ;;  %v2893_v63 = vrot.slane %v2889_v38, 1  ;;  %v2812_v60 = vpop.permute.xlu0 %2811  ;;  %v8394_v45 = vld [vmem:[#allocation170_spill] sm:$0xff]  ;;  %v8401_v3 = vld [vmem:[#allocation25_spill] sm:$0xff]  ;;  %v8402_v36 = vld [vmem:[#allocation163_spill] sm:$0xff] }
 0x338   : > { %v1925_v34 = vadd.f32 %v8388_v59, %v1821_v31  ;;  %v2789_v10 = vadd.f32 %v7135_v27, %v2677_v12  ;;  %v2705_v9 = vadd.f32 %v7269_v46, %v2609_v5  ;;  %v3589_v22 = vrot.slane %v3585_v53, 2  ;;  %v3014_v46 = vpop.permute.xlu1 %3013 }
 0x339   : > { %v1835_v56 = vadd.f32 %v8386_v1, %v1724_v29  ;;  %v2062_v44 = vadd.f32 %v8387_v28, %v1926_v25  ;;  %3576 = vrot.lane.b32.xlu1 %v3572_v41, %s7904_s23  ;;  %v2898_v6 = vadd.f32 %v2893_v63, %v7115_v39  ;;  %v3588_v38 = vrot.slane %v3584_v23, 2  ;;  %v8397_v25 = vld [vmem:[#allocation137_spill] sm:$0xff]  ;;  %v8398_v23 = vld [vmem:[#allocation201_spill] sm:$0xff]  ;;  %v8405_v28 = vld [vmem:[#allocation182_spill] sm:$0xff] }
 0x33a   : > { %v1834_v29 = vadd.f32 %v8391_v54, %v1723_v42  ;;  %v2061_v27 = vadd.f32 %v8392_v48, %v1925_v34  ;;  %v7404_v8 = vadd.f32 %v2812_v60, %v2705_v9  ;;  %v3573_v53 = vsel %vm1180_vm1, %v3571_v37, %v3572_v41  ;;  %v8399_v37 = vld [vmem:[#allocation69_spill] sm:$0xff] }
 0x33b   : > { %v1943_v7 = vadd.f32 %v8389_v51, %v1835_v56  ;;  %v2198_v30 = vadd.f32 %v8390_v35, %v2062_v44  ;;  %v8395_v31 = vrot.slane %v8394_v45, 2  ;;  %v7411_v39 = vadd.f32 %v3014_v46, %v2898_v6  ;;  %3574 = vrot.lane.b32.xlu0 %v3573_v53, %s7904_s23  ;;  %v8404_v56 = vld [vmem:[#allocation51_spill] sm:$0xff]  ;;  %v8407_v51 = vld [vmem:[#allocation85_spill] sm:$0xff] }
 0x33c   : > { %v2894_v20 = vsel %vm371_vm0, %v2892_v40, %v2893_v63  ;;  %v1837_v52 = vstv %s7368_s27  ;;  %v1942_v43 = vadd.f32 %v8397_v25, %v1834_v29  ;;  %v2197_v33 = vadd.f32 %v8398_v23, %v2061_v27  ;;  %v3012_v40 = vpop.permute.xlu0 %3011  ;;  %v8406_v63 = vld [vmem:[#allocation167_spill] sm:$0xff]  ;;  %v7431_v34 = vpop.permute.xlu1 %3132  ;;  %v8410_v54 = vld [vmem:[#allocation172_spill] sm:$0xff]  ;;  %v8412_v27 = vld [vmem:[#allocation70_spill] sm:$0xff] }
 0x33d   : > { %v1200_v0 = vadd.f32 %v8395_v31, %v8393_v18  ;;  %v2079_v4 = vadd.f32 %v8396_v17, %v1943_v7  ;;  %3593 = vrot.lane.b32.xlu1 %v3589_v22, %s7904_s23  ;;  %v2897_v41 = vadd.f32 %v2894_v20, %v2789_v10  ;;  %v2206_v12 = vrot.slane %v8400_v15, 2  ;;  %v8413_v53 = vld [vmem:[#allocation37_spill] sm:$0xff]  ;;  %v8416_v17 = vld [vmem:[#allocation202_spill] sm:$0xff]  ;;  %v8417_v23 = vld [vmem:[#allocation86_spill] sm:$0xff] }
 0x33e   : > { %v2205_v5 = vrot.slane %v8401_v3, 2  ;;  %v8403_v11 = vrot.slane %v8402_v36, 2  ;;  %v1199_v44 = vadd.f32 %v8405_v28, %v8404_v56  ;;  %v2078_v59 = vadd.f32 %v8406_v63, %v1942_v43  ;;  %v8419_v36 = vld [vmem:[#allocation187_spill] sm:$0xff]  ;;  %v8421_v28 = vld [vmem:[#allocation204_spill] sm:$0xff] }
 0x33f   : > { %v1312_v42 = vadd.f32 %v8399_v37, %v1200_v0  ;;  %v7433_v10 = vadd.f32 %v3012_v40, %v2897_v41  ;;  %v3590_v9 = vsel %vm1180_vm1, %v3588_v38, %v3589_v22  ;;  %v2211_v35 = vadd.f32 %v2206_v12, %v2079_v4  ;;  %v8414_v38 = vld [vmem:[#allocation41_spill] sm:$0xff] }
 0x340   : > { %v2302_v1 = vadd.f32 %v8403_v11, %v2198_v30  ;;  %v8408_v30 = vld [vmem:[#allocation162_spill] sm:$0xff]  ;;  %v8409_v60 = vmov %v8403_v11  ;;  %v8411_v29 = vrot.slane %v8410_v54, 2  ;;  %3591 = vrot.lane.b32.xlu0 %v3590_v9, %s7904_s23  ;;  %v1311_v46 = vadd.f32 %v8412_v27, %v1199_v44  ;;  %v7455_v43 = vpop.permute.xlu0 %3130  ;;  %v7460_v3 = vpop.permute.xlu1 %3338  ;;  %s7475_s23 = sld [smem:[#allocation7 + $0x18]] }
 0x341   : > { %v1448_v7 = vadd.f32 %v8407_v51, %v1312_v42  ;;  %v1839_v18 = vmul.f32 %v1837_v52, %v8413_v53  ;;  %v2618_v22 = vstv %s7395_s29  ;;  %v8415_v31 = vstv %s8025_s28  ;;  %s7502_s28 = sld [smem:[#allocation7 + $0x2d]] }
 0x342   : > { %v2438_v6 = vadd.f32 %v8408_v30, %v2302_v1  ;;  %v2298_v48 = vsel %vm1180_vm1, %v8411_v29, %v8409_v60  ;;  %v1559_v0 = vmul.f32 %v8415_v31, %v8414_v38  ;;  %v2319_v4 = vadd.f32 %v8416_v17, %v2211_v35  ;;  %v8420_v1 = vld [vmem:[#allocation166_spill] sm:$0xff]  ;;  %v8425_v31 = vld [vmem:[#allocation102_spill] sm:$0xff]  ;;  %s4120_s29 = sld [smem:[#allocation10 + $0x6]] }
 0x343   : > { %v2301_v45 = vadd.f32 %v2298_v48, %v2197_v33  ;;  %v2207_v20 = vsel %vm1180_vm1, %v2205_v5, %v2206_v12  ;;  %v1447_v41 = vadd.f32 %v8417_v23, %v1311_v46  ;;  %v8418_v33 = vld [vmem:[#allocation164_spill] sm:$0xff]  ;;  %v2576_v15 = vstv %s7402_s7  ;;  %v8423_v60 = vld [vmem:[#allocation27_spill] sm:$0xff]  ;;  %v8426_v23 = vld [vmem:[#allocation42_spill] sm:$0xff]  ;;  %s4121_s7 = sld [smem:[#allocation10 + $0x7]] }
 0x344   : > { %v2574_v25 = vadd.f32 %v7209_v47, %v2438_v6  ;;  %v2210_v37 = vadd.f32 %v2207_v20, %v2078_v59  ;;  %v1562_v11 = vadd.f32 %v8419_v36, %v1448_v7  ;;  %v2455_v40 = vadd.f32 %v8420_v1, %v2319_v4  ;;  %v8422_v59 = vld [vmem:[#allocation101_spill] sm:$0xff]  ;;  %v7472_v7 = vpop.permute.xlu0 %3336  ;;  %v2730_v29 = vpop.permute.xlu1 %2729 }
 0x345   : > { %v2437_v42 = vadd.f32 %v8418_v33, %v2301_v45  ;;  %v2620_v56 = vmul.f32 %v2618_v22, %v5481_v62  ;;  %v2900_v12 = vstv %s7415_s9  ;;  %v1843_v5 = vrot.slane %v1839_v18, 1  ;;  %s8445_s9 = sld [smem:[#allocation15_spill]] }
 0x346   : > { %v1838_v47 = vmul.f32 %v1837_v52, %v8414_v38  ;;  %v2318_v44 = vadd.f32 %v8421_v28, %v2210_v37  ;;  %v1626_v9 = vadd.f32 %v8422_v59, %v1562_v11  ;;  %v2578_v51 = vmul.f32 %v2576_v15, %v5481_v62 }
 0x347   : > { %v2573_v63 = vadd.f32 %v7231_v13, %v2437_v42  ;;  %v2848_v35 = vstv %s7426_s19  ;;  %v2622_v30 = vadd.f32 %v2620_v56, %v2574_v25  ;;  %v1561_v6 = vadd.f32 %v1559_v0, %v1447_v41  ;;  %v8424_v13 = vld [vmem:[#allocation118_spill] sm:$0xff]  ;;  %v8427_v42 = vld [vmem:[#allocation119_spill] sm:$0xff] }
 0x348   : > { %v2454_v54 = vadd.f32 %v8423_v60, %v2318_v44  ;;  %v2619_v52 = vmul.f32 %v2618_v22, %v5437_v32  ;;  %v2901_v48 = vmul.f32 %v2900_v12, %v5437_v32  ;;  %v1738_v27 = vadd.f32 %v8424_v13, %v1626_v9  ;;  %v2728_v33 = vpop.permute.xlu0 %2727  ;;  %v2828_v1 = vpop.permute.xlu1 %2827 }
 0x349   : > { %v2580_v46 = vadd.f32 %v2578_v51, %v2455_v40  ;;  %v7480_v18 = vadd.f32 %v2730_v29, %v2622_v30  ;;  %v2902_v45 = vmul.f32 %v2900_v12, %v5481_v62  ;;  %v1625_v17 = vadd.f32 %v8425_v31, %v1561_v6  ;;  %v8429_v51 = vld [vmem:[#allocation35_spill] sm:$0xff]  ;;  %v8430_v30 = vld [vmem:[#allocation138_spill] sm:$0xff] }
 0x34a   : > { %v1842_v4 = vrot.slane %v1838_v47, 1  ;;  %v2577_v0 = vmul.f32 %v2576_v15, %v5437_v32  ;;  %v2621_v20 = vadd.f32 %v2619_v52, %v2573_v63  ;;  %v2213_v25 = vstv %s7451_s10  ;;  %v8428_v47 = vld [vmem:[#allocation57_spill] sm:$0xff] }
 0x34b   : > { %v2636_v41 = vadd.f32 %v8426_v23, %v2580_v46  ;;  %v2849_v22 = vmul.f32 %v2848_v35, %v5437_v32  ;;  %v2850_v37 = vmul.f32 %v2848_v35, %v5481_v62  ;;  %v1737_v36 = vadd.f32 %v8427_v42, %v1625_v17  ;;  %v8434_v23 = vld [vmem:[#allocation177_spill] sm:$0xff]  ;;  %v8435_v42 = vld [vmem:[#allocation174_spill] sm:$0xff] }
 0x34c   : > { %v2579_v11 = vadd.f32 %v2577_v0, %v2454_v54  ;;  %v7490_v40 = vadd.f32 %v2728_v33, %v2621_v20  ;;  %v2905_v56 = vrot.slane %v2901_v48, 1  ;;  %v1848_v12 = vadd.f32 %v1843_v5, %v1738_v27  ;;  %v2826_v52 = vpop.permute.xlu0 %2825 }
 0x34d   : > { %v2748_v15 = vadd.f32 %v8428_v47, %v2636_v41  ;;  %v7494_v28 = vadd.f32 %v2828_v1, %v7359_v19  ;;  %v2906_v44 = vrot.slane %v2902_v45, 1  ;;  %v1844_v63 = vsel %vm371_vm0, %v1842_v4, %v1843_v5  ;;  %v8431_v19 = vld [vmem:[#allocation46_spill] sm:$0xff]  ;;  %v3031_v5 = vpop.permute.xlu1 %3030 }
 0x34e   : > { %v2215_v59 = vmul.f32 %v2213_v25, %v8413_v53  ;;  %v2214_v9 = vmul.f32 %v2213_v25, %v8414_v38  ;;  %v2635_v35 = vadd.f32 %v8429_v51, %v2579_v11  ;;  %v1960_v6 = vadd.f32 %v8430_v30, %v1848_v12  ;;  %v8432_v38 = vld [vmem:[#allocation168_spill] sm:$0xff]  ;;  %v8433_v4 = vld [vmem:[#allocation140_spill] sm:$0xff] }
 0x34f   : > { %v2853_v60 = vrot.slane %v2849_v22, 1  ;;  %v2854_v54 = vrot.slane %v2850_v37, 1  ;;  %v2911_v29 = vadd.f32 %v2906_v44, %v7278_v50  ;;  %v1847_v48 = vadd.f32 %v1844_v63, %v1737_v36 }
 0x350   : > { %v2747_v13 = vadd.f32 %v8431_v19, %v2635_v35  ;;  %v3224_v27 = vstv %s7475_s23  ;;  %v7507_v53 = vadd.f32 %v2826_v52, %v7382_v24  ;;  %v2096_v46 = vadd.f32 %v8432_v38, %v1960_v6  ;;  %v3029_v33 = vpop.permute.xlu0 %3028 }
 0x351   : > { %v2859_v45 = vadd.f32 %v2854_v54, %v2748_v15  ;;  %v7510_v31 = vadd.f32 %v3031_v5, %v2911_v29  ;;  %v2907_v17 = vsel %vm371_vm0, %v2905_v56, %v2906_v44  ;;  %v1959_v50 = vadd.f32 %v8433_v4, %v1847_v48  ;;  %v7522_v1 = vpop.permute.xlu1 %3149  ;;  %v8436_v15 = vld [vmem:[#allocation205_spill] sm:$0xff]  ;;  %v8439_v5 = vld [vmem:[#allocation31_spill] sm:$0xff] }
 0x352   : > { %v2219_v0 = vrot.slane %v2215_v59, 2  ;;  %v2218_v20 = vrot.slane %v2214_v9, 2  ;;  %v2910_v25 = vadd.f32 %v2907_v17, %v7299_v58  ;;  %v2855_v22 = vsel %vm371_vm0, %v2853_v60, %v2854_v54  ;;  %v8437_v54 = vld [vmem:[#allocation28_spill] sm:$0xff] }
 0x353   : > { %v2967_v41 = vadd.f32 %v8434_v23, %v2859_v45  ;;  %v3225_v24 = vmul.f32 %v3224_v27, %v5437_v32  ;;  %v3226_v37 = vmul.f32 %v3224_v27, %v5481_v62  ;;  %v2095_v36 = vadd.f32 %v8435_v42, %v1959_v50  ;;  %v8441_v42 = vld [vmem:[#allocation52_spill] sm:$0xff] }
 0x354   : > { %v2858_v11 = vadd.f32 %v2855_v22, %v2747_v13  ;;  %v7524_v56 = vadd.f32 %v3029_v33, %v2910_v25  ;;  %v2224_v58 = vadd.f32 %v2219_v0, %v2096_v46  ;;  %v2220_v63 = vsel %vm1180_vm1, %v2218_v20, %v2219_v0  ;;  %v7530_v51 = vpop.permute.xlu0 %3147  ;;  %v8440_v20 = vld [vmem:[#allocation49_spill] sm:$0xff] }
 0x355   : > { %v3103_v12 = vadd.f32 %v7175_v26, %v2967_v41  ;;  %v3229_v59 = vrot.slane %v3225_v24, 2  ;;  %v3230_v9 = vrot.slane %v3226_v37, 2  ;;  %v2223_v35 = vadd.f32 %v2220_v63, %v2095_v36  ;;  %v3356_v60 = vpop.permute.xlu1 %3355  ;;  %v8438_v26 = vld [vmem:[#allocation210_spill] sm:$0xff] }
 0x356   : > { %v2966_v47 = vadd.f32 %v7025_v57, %v2858_v11  ;;  %v2336_v44 = vadd.f32 %v8436_v15, %v2224_v58  ;;  %v2582_v30 = vstv %s7502_s28  ;;  %v2861_v46 = vstv %s7520_s15  ;;  %s8446_s15 = sld [smem:[#allocation222_spill]] }
 0x357   : > { %v3235_v52 = vadd.f32 %v3230_v9, %v3103_v12  ;;  %v2335_v48 = vadd.f32 %v8438_v26, %v2223_v35  ;;  %v2584_v57 = vmul.f32 %v2582_v30, %v5481_v62  ;;  %v3231_v13 = vsel %vm1180_vm1, %v3229_v59, %v3230_v9  ;;  %v8443_v59 = vld [vmem:[#allocation50_spill] sm:$0xff] }
 0x358   : > { %v3102_v6 = vadd.f32 %v7203_v55, %v2966_v47  ;;  %v2472_v29 = vadd.f32 %v8437_v54, %v2336_v44  ;;  %v3354_v27 = vpop.permute.xlu0 %3353  ;;  %v2583_v50 = vmul.f32 %v2582_v30, %v5437_v32  ;;  %v2863_v23 = vmul.f32 %v2861_v46, %v5481_v62 }
 0x359   : > { %v3343_v19 = vadd.f32 %v7460_v3, %v3235_v52  ;;  %v2471_v38 = vadd.f32 %v8439_v5, %v2335_v48  ;;  %v3475_v55 = vpop.permute.xlu1 %3474  ;;  %v2862_v3 = vmul.f32 %v2861_v46, %v5437_v32  ;;  %v3237_v44 = vstv %s7539_s2 }
 0x35a   : > { %v3234_v45 = vadd.f32 %v3231_v13, %v3102_v6  ;;  %v2586_v17 = vadd.f32 %v2584_v57, %v2472_v29  ;;  %v2867_v15 = vrot.slane %v2863_v23, 1  ;;  %v3238_v48 = vmul.f32 %v3237_v44, %v5437_v32 }
 0x35b   : > { %v3479_v4 = vadd.f32 %v3475_v55, %v3343_v19  ;;  %v2585_v22 = vadd.f32 %v2583_v50, %v2471_v38  ;;  %v2866_v47 = vrot.slane %v2862_v3, 1  ;;  %v3239_v57 = vmul.f32 %v3237_v44, %v5481_v62 }
 0x35c   : > { %v3342_v0 = vadd.f32 %v7472_v7, %v3234_v45  ;;  %v2650_v25 = vadd.f32 %v8440_v20, %v2586_v17  ;;  %v3473_v41 = vpop.permute.xlu0 %3472  ;;  %v8442_v7 = vld [vmem:[#allocation40_spill] sm:$0xff]  ;;  %v3242_v45 = vrot.slane %v3238_v48, 2  ;;  %s339_s2 = scalar_lea.vmem %s8446_s15, %s8445_s9 }
 0x35d   : > { %v3603_v24 = vmax.f32 %v3479_v4, 0.0  ;;  %v2842_v37 = vpop.permute.xlu1 %2841  ;;  %v2649_v58 = vadd.f32 %v8442_v7, %v2585_v22  ;;  %v2868_v26 = vsel %vm371_vm0, %v2866_v47, %v2867_v15  ;;  %v3243_v55 = vrot.slane %v3239_v57, 2 }
 0x35e   : > { %v3478_v33 = vadd.f32 %v3473_v41, %v3342_v0  ;;  %v2762_v36 = vadd.f32 %v8441_v42, %v2650_v25  ;;  %v7550_v11 = vadd.f32 %v2842_v37, %v7480_v18 }
 0x35f   : > { %v2761_v9 = vadd.f32 %v8443_v59, %v2649_v58  ;;  %v3607_v35 = vsel %vm3606_vm2, %v3603_v24, 0.0  ;;  %v3244_v20 = vsel %vm1180_vm1, %v3242_v45, %v3243_v55  ;;  %v3250_v24 = vstv %s4093_s12 }
 0x360   : > { %v3602_v12 = vmax.f32 %v3478_v33, 0.0  ;;  %v2840_v63 = vpop.permute.xlu0 %2839  ;;  %v2872_v18 = vadd.f32 %v2867_v15, %v2762_v36  ;;  %v3252_v7 = vmul.f32 %v3250_v24, %v5481_v62 }
 0x361   : > { %v7557_v6 = vpop.permute.xlu1 %3047  ;;  %v7560_v54 = vadd.f32 %v2840_v63, %v7490_v40  ;;  %v2871_v13 = vadd.f32 %v2868_v26, %v2761_v9  ;;  %v8444_v40 = vld [vmem:[#allocation89_spill] sm:$0xff]  ;;  %v3136_v9 = vadd.f32 %v7455_v43, %v7329_v2 }
 0x362   : > { %v3605_v30 = vsel %vm3604_vm3, %v3602_v12, 0.0  ;;  %v2984_v52 = vadd.f32 %v7143_v49, %v2872_v18  ;;  %v3256_v63 = vrot.slane %v3252_v7, 2 }
 0x363   : > { %v3608_v29 = vadd.f32 %v3607_v35, %v3605_v30  ;;  %v2983_v46 = vadd.f32 %v8444_v40, %v2871_v13  ;;  %v3263_v13 = vstv %s4094_s26 }
 0x364   : > { %v7566_v19 = vpop.permute.xlu0 %3045  ;;  %v3120_v38 = vadd.f32 %v7327_v16, %v2984_v52  ;;  %v3264_v2 = vmul.f32 %v3263_v13, %v5437_v32  ;;  %v3265_v43 = vmul.f32 %v3263_v13, %v5481_v62 }
 0x365   : > { %3609 = vadd.xlane.f32.xlu0 %v3608_v29  ;;  %v7568_v5 = vpop.permute.xlu1 %3166  ;;  %v3119_v49 = vadd.f32 %v7349_v21, %v2983_v46  ;;  %v3251_v21 = vmul.f32 %v3250_v24, %v5437_v32  ;;  %v2913_v24 = vstv %s4072_s13 }
 0x366   : > { %v3248_v50 = vadd.f32 %v3243_v55, %v3120_v38 }
 0x367   : > { %v3247_v3 = vadd.f32 %v3244_v20, %v3119_v49  ;;  %v3255_v44 = vrot.slane %v3251_v21, 2 }
 0x368   : > { %v7572_v17 = vpop.permute.xlu0 %3164  ;;  %v3360_v0 = vadd.f32 %v3356_v60, %v3248_v50 }
 0x369   : > { %v3373_v4 = vpop.permute.xlu1 %3372  ;;  %v3359_v22 = vadd.f32 %v3354_v27, %v3247_v3  ;;  %v3137_v27 = vadd.f32 %v7431_v34, %v7305_v61  ;;  %v3257_v29 = vsel %vm1180_vm1, %v3255_v44, %v3256_v63  ;;  %v3269_v3 = vrot.slane %v3265_v43, 2 }
 0x36a   : > { %v3260_v26 = vadd.f32 %v3257_v29, %v3136_v9 }
 0x36b   : > { %v3261_v30 = vadd.f32 %v3256_v63, %v3137_v27 }
 0x36c   : > { %v3371_v25 = vpop.permute.xlu0 %3370 }
 0x36d   : > { %v3492_v23 = vpop.permute.xlu1 %3491  ;;  %v3377_v18 = vadd.f32 %v3373_v4, %v3261_v30  ;;  %v3376_v61 = vadd.f32 %v3371_v25, %v3260_v26  ;;  %v3268_v25 = vrot.slane %v3264_v2, 2  ;;  %v2926_v30 = vstv %s7609_s8 }
 0x36e   : > { %v3496_v41 = vadd.f32 %v3492_v23, %v3360_v0  ;;  %v3154_v0 = vadd.f32 %v7522_v1, %v7411_v39  ;;  %v3276_v1 = vstv %s4095_s30  ;;  %v2927_v13 = vmul.f32 %v2926_v30, %v5437_v32 }
 0x36f   : > { %v3278_v27 = vmul.f32 %v3276_v1, %v5481_v62 }
 0x370   : > { %v3490_v16 = vpop.permute.xlu0 %3489  ;;  %v3625_v37 = vmax.f32 %v3496_v41, 0.0  ;;  %v3153_v41 = vadd.f32 %v7530_v51, %v7433_v10  ;;  %v2915_v10 = vmul.f32 %v2913_v24, %v5481_v62 }
 0x371   : > { %v7576_v33 = vpop.permute.xlu1 %3064  ;;  %v3495_v42 = vadd.f32 %v3490_v16, %v3359_v22  ;;  %v3274_v16 = vadd.f32 %v3269_v3, %v3154_v0 }
 0x372   : > { %v3627_v60 = vsel %vm3606_vm2, %v3625_v37, 0.0  ;;  %v2919_v29 = vrot.slane %v2915_v10, 1  ;;  %v3302_v10 = vstv %s7628_s0 }
 0x373   : > { %v3624_v36 = vmax.f32 %v3495_v42, 0.0  ;;  %v3270_v42 = vsel %vm1180_vm1, %v3268_v25, %v3269_v3 }
 0x374   : > { %v7580_v58 = vpop.permute.xlu0 %3062  ;;  %v3273_v39 = vadd.f32 %v3270_v42, %v3153_v41  ;;  %v2931_v41 = vrot.slane %v2927_v13, 1 }
 0x375   : > { %v3626_v12 = vsel %vm3604_vm3, %v3624_v36, 0.0  ;;  %v7584_v47 = vpop.permute.xlu1 %3183 }
 0x376   : > { %v3628_v15 = vadd.f32 %v3627_v60, %v3626_v12  ;;  %v2914_v60 = vmul.f32 %v2913_v24, %v5437_v32  ;;  %v3277_v12 = vmul.f32 %v3276_v1, %v5437_v32 }
 0x378   : > { %v7588_v59 = vpop.permute.xlu0 %3181  ;;  %3629 = vadd.xlane.f32.xlu1 %v3628_v15 }
 0x379   : > { %v3390_v35 = vpop.permute.xlu1 %3389 }
 0x37a   : > { %v3394_v37 = vadd.f32 %v3390_v35, %v3274_v16  ;;  %v3171_v35 = vadd.f32 %v7568_v5, %v7510_v31 }
 0x37c   : > { %v3388_v52 = vpop.permute.xlu0 %3387 }
 0x37d   : > { %v3509_v48 = vpop.permute.xlu1 %3508  ;;  %v3393_v51 = vadd.f32 %v3388_v52, %v3273_v39  ;;  %v3281_v52 = vrot.slane %v3277_v12, 2 }
 0x37e   : > { %v3513_v57 = vadd.f32 %v3509_v48, %v3377_v18  ;;  %v2918_v18 = vrot.slane %v2914_v60, 1  ;;  %v3282_v48 = vrot.slane %v3278_v27, 2 }
 0x380   : > { %v3507_v34 = vpop.permute.xlu0 %3506  ;;  %v3645_v38 = vmax.f32 %v3513_v57, 0.0  ;;  %v3289_v57 = vstv %s7612_s22  ;;  %v3287_v2 = vadd.f32 %v3282_v48, %v3171_v35 }
 0x381   : > { %v7593_v40 = vpop.permute.xlu1 %3081  ;;  %v3512_v46 = vadd.f32 %v3507_v34, %v3376_v61  ;;  %v3170_v34 = vadd.f32 %v7572_v17, %v7524_v56  ;;  %v3290_v0 = vmul.f32 %v3289_v57, %v5437_v32  ;;  %v3291_v25 = vmul.f32 %v3289_v57, %v5481_v62 }
 0x382   : > { %v3647_v49 = vsel %vm3606_vm2, %v3645_v38, 0.0 }
 0x383   : > { %v3644_v45 = vmax.f32 %v3512_v46, 0.0  ;;  %v2924_v46 = vadd.f32 %v2919_v29, %v7388_v14  ;;  %v3295_v60 = vrot.slane %v3291_v25, 2 }
 0x384   : > { %v7597_v55 = vpop.permute.xlu0 %3079 }
 0x385   : > { %v3646_v4 = vsel %vm3604_vm3, %v3644_v45, 0.0  ;;  %v7601_v50 = vpop.permute.xlu1 %3200  ;;  %v2928_v45 = vmul.f32 %v2926_v30, %v5481_v62  ;;  %v3052_v56 = vadd.f32 %v7557_v6, %v2924_v46  ;;  %v3303_v30 = vmul.f32 %v3302_v10, %v5437_v32 }
 0x386   : > { %v3648_v20 = vadd.f32 %v3647_v49, %v3646_v4  ;;  %v2920_v49 = vsel %vm371_vm0, %v2918_v18, %v2919_v29  ;;  %v2939_v4 = vstv %s7616_s25  ;;  %v3315_v18 = vstv %s7640_s1 }
 0x387   : > { %v2923_v3 = vadd.f32 %v2920_v49, %v7404_v8  ;;  %v3188_v42 = vadd.f32 %v7584_v47, %v3052_v56  ;;  %v2940_v39 = vmul.f32 %v2939_v4, %v5437_v32  ;;  %v3316_v49 = vmul.f32 %v3315_v18, %v5437_v32 }
 0x388   : > { %v7605_v23 = vpop.permute.xlu0 %3198  ;;  %3649 = vadd.xlane.f32.xlu0 %v3648_v20  ;;  %v3283_v20 = vsel %vm1180_vm1, %v3281_v52, %v3282_v48  ;;  %v3317_v56 = vmul.f32 %v3315_v18, %v5481_v62 }
 0x389   : > { %v3407_v22 = vpop.permute.xlu1 %3406  ;;  %v3286_v16 = vadd.f32 %v3283_v20, %v3170_v34  ;;  %v3051_v6 = vadd.f32 %v7566_v19, %v2923_v3  ;;  %v3300_v35 = vadd.f32 %v3295_v60, %v3188_v42 }
 0x38a   : > { %v3411_v17 = vadd.f32 %v3407_v22, %v3287_v2  ;;  %v2941_v22 = vmul.f32 %v2939_v4, %v5481_v62  ;;  %v3307_v4 = vrot.slane %v3303_v30, 2 }
 0x38b   : > { %v3187_v8 = vadd.f32 %v7588_v59, %v3051_v6  ;;  %v3304_v59 = vmul.f32 %v3302_v10, %v5481_v62  ;;  %v3321_v62 = vrot.slane %v3317_v56, 2 }
 0x38c   : > { %v3405_v36 = vpop.permute.xlu0 %3404  ;;  %v2945_v19 = vrot.slane %v2941_v22, 1 }
 0x38d   : > { %v3526_v21 = vpop.permute.xlu1 %3525 }
 0x38e   : > { %v3530_v7 = vadd.f32 %v3526_v21, %v3394_v37  ;;  %v2932_v37 = vrot.slane %v2928_v45, 1  ;;  %v3410_v21 = vadd.f32 %v3405_v36, %v3286_v16 }
 0x390   : > { %v3524_v15 = vpop.permute.xlu0 %3523  ;;  %v3665_v44 = vmax.f32 %v3530_v7, 0.0  ;;  %v3294_v7 = vrot.slane %v3290_v0, 2  ;;  %v2937_v47 = vadd.f32 %v2932_v37, %v7494_v28  ;;  %v3308_v0 = vrot.slane %v3304_v59, 2 }
 0x391   : > { %v3529_v9 = vadd.f32 %v3524_v15, %v3393_v51 }
 0x392   : > { %v7620_v63 = vpop.permute.xlu1 %3217  ;;  %v3667_v38 = vsel %vm3606_vm2, %v3665_v44, 0.0  ;;  %v2933_v44 = vsel %vm371_vm0, %v2931_v41, %v2932_v37  ;;  %v3069_v29 = vadd.f32 %v7576_v33, %v2937_v47  ;;  %v3296_v52 = vsel %vm1180_vm1, %v3294_v7, %v3295_v60 }
 0x393   : > { %v3664_v26 = vmax.f32 %v3529_v9, 0.0  ;;  %v2944_v9 = vrot.slane %v2940_v39, 1  ;;  %v2936_v57 = vadd.f32 %v2933_v44, %v7507_v53  ;;  %v3299_v34 = vadd.f32 %v3296_v52, %v3187_v8 }
 0x394   : > { %v7626_v61 = vpop.permute.xlu0 %3215  ;;  %v3205_v46 = vadd.f32 %v7601_v50, %v3069_v29  ;;  %v3309_v16 = vsel %vm1180_vm1, %v3307_v4, %v3308_v0 }
 0x395   : > { %v3666_v31 = vsel %vm3604_vm3, %v3664_v26, 0.0  ;;  %v2946_v2 = vsel %vm371_vm0, %v2944_v9, %v2945_v19 }
 0x396   : > { %v3424_v5 = vpop.permute.xlu1 %3423  ;;  %v3668_v43 = vadd.f32 %v3667_v38, %v3666_v31  ;;  %v2950_v31 = vadd.f32 %v2945_v19, %v7550_v11  ;;  %v2949_v11 = vadd.f32 %v2946_v2, %v7560_v54 }
 0x397   : > { %v3428_v26 = vadd.f32 %v3424_v5, %v3300_v35  ;;  %v3068_v5 = vadd.f32 %v7580_v58, %v2936_v57 }
 0x398   : > { %v3422_v14 = vpop.permute.xlu0 %3421  ;;  %3669 = vadd.xlane.f32.xlu0 %v3668_v43  ;;  %v3086_v53 = vadd.f32 %v7593_v40, %v2950_v31  ;;  %v3085_v32 = vadd.f32 %v7597_v55, %v2949_v11 }
 0x399   : > { %v3427_v43 = vadd.f32 %v3422_v14, %v3299_v34  ;;  %v3204_v50 = vadd.f32 %v7605_v23, %v3068_v5  ;;  %v3313_v14 = vadd.f32 %v3308_v0, %v3205_v46 }
 0x39a   : > { %v3222_v3 = vadd.f32 %v7620_v63, %v3086_v53  ;;  %v3221_v42 = vadd.f32 %v7626_v61, %v3085_v32 }
 0x39b   : > { %v3543_v24 = vpop.permute.xlu1 %3542  ;;  %v3312_v23 = vadd.f32 %v3309_v16, %v3204_v50 }
 0x39c   : > { %v3547_v1 = vadd.f32 %v3543_v24, %v3411_v17  ;;  %v3541_v51 = vpop.permute.xlu0 %3540  ;;  %v3320_v24 = vrot.slane %v3316_v49, 2  ;;  %v3326_v6 = vadd.f32 %v3321_v62, %v3222_v3 }
 0x39d   : > { %v3546_v15 = vadd.f32 %v3541_v51, %v3410_v21 }
 0x39e   : > { %v3685_v12 = vmax.f32 %v3547_v1, 0.0  ;;  %v3322_v7 = vsel %vm1180_vm1, %v3320_v24, %v3321_v62 }
 0x39f   : > { %v3441_v27 = vpop.permute.xlu1 %3440  ;;  %v3684_v36 = vmax.f32 %v3546_v15, 0.0  ;;  %v3325_v51 = vadd.f32 %v3322_v7, %v3221_v42 }
 0x3a0   : > { %v3439_v48 = vpop.permute.xlu0 %3438  ;;  %v3687_v28 = vsel %vm3606_vm2, %v3685_v12, 0.0  ;;  %v3445_v40 = vadd.f32 %v3441_v27, %v3313_v14 }
 0x3a1   : > { %v3686_v13 = vsel %vm3604_vm3, %v3684_v36, 0.0  ;;  %v3444_v21 = vadd.f32 %v3439_v48, %v3312_v23 }
 0x3a2   : > { %v3688_v33 = vadd.f32 %v3687_v28, %v3686_v13 }
 0x3a3   : > { %v3560_v38 = vpop.permute.xlu1 %3559 }
 0x3a4   : > { %v3564_v45 = vadd.f32 %v3560_v38, %v3428_v26  ;;  %v3558_v17 = vpop.permute.xlu0 %3557  ;;  %3689 = vadd.xlane.f32.xlu1 %v3688_v33 }
 0x3a5   : > { %v3563_v58 = vadd.f32 %v3558_v17, %v3427_v43 }
 0x3a6   : > { %v3705_v20 = vmax.f32 %v3564_v45, 0.0 }
 0x3a7   : > { %v3458_v25 = vpop.permute.xlu1 %3457  ;;  %v3704_v41 = vmax.f32 %v3563_v58, 0.0 }
 0x3a8   : > { %v3456_v37 = vpop.permute.xlu0 %3455  ;;  %v3707_v54 = vsel %vm3606_vm2, %v3705_v20, 0.0  ;;  %v3462_v55 = vadd.f32 %v3458_v25, %v3326_v6 }
 0x3a9   : > { %v3706_v39 = vsel %vm3604_vm3, %v3704_v41, 0.0  ;;  %v3461_v27 = vadd.f32 %v3456_v37, %v3325_v51 }
 0x3aa   : > { %v3708_v22 = vadd.f32 %v3707_v54, %v3706_v39 }
 0x3ab   : > { %v3577_v1 = vpop.permute.xlu1 %3576 }
 0x3ac   : > { %v3581_v63 = vadd.f32 %v3577_v1, %v3445_v40  ;;  %3709 = vadd.xlane.f32.xlu0 %v3708_v22 }
 0x3ad   : > { %v3575_v60 = vpop.permute.xlu0 %3574 }
 0x3ae   : > { %v3725_v10 = vmax.f32 %v3581_v63, 0.0  ;;  %v3580_v12 = vadd.f32 %v3575_v60, %v3444_v21 }
 0x3af   : > { %v3594_v8 = vpop.permute.xlu1 %3593 }
 0x3b0   : > { %v3598_v61 = vadd.f32 %v3594_v8, %v3462_v55  ;;  %v3724_v15 = vmax.f32 %v3580_v12, 0.0  ;;  %v3727_v44 = vsel %vm3606_vm2, %v3725_v10, 0.0 }
 0x3b2   : > { %v3592_v47 = vpop.permute.xlu0 %3591  ;;  %v3745_v9 = vmax.f32 %v3598_v61, 0.0  ;;  %v3726_v35 = vsel %vm3604_vm3, %v3724_v15, 0.0 }
 0x3b3   : > { %v3597_v19 = vadd.f32 %v3592_v47, %v3461_v27  ;;  %v3728_v30 = vadd.f32 %v3727_v44, %v3726_v35 }
 0x3b4   : > { %v3747_v18 = vsel %vm3606_vm2, %v3745_v9, 0.0 }
 0x3b5   : > { %v3744_v36 = vmax.f32 %v3597_v19, 0.0  ;;  %3729 = vadd.xlane.f32.xlu1 %v3728_v30  ;;  %v3621_v30 = vstv %s3620_s3 }
 0x3b7   : > { %v3746_v29 = vsel %vm3604_vm3, %v3744_v36, 0.0 }
 0x3b8   : > { %v3748_v26 = vadd.f32 %v3747_v18, %v3746_v29  ;;  %v3641_v29 = vstv %s4115_s5 }
 0x3ba   : > { %3749 = vadd.xlane.f32.xlu0 %v3748_v26 }
 0x3ee   : > { %v3610_v52 = vpop.xlane.xlu0 %3609 }
 0x3ef   : > { %v3611_v59 = vrot.slane %v3610_v52, 4 }
 0x3f1   : > { %v3612_v48 = vadd.f32 %v3611_v59, %v3610_v52 }
 0x3f3   : > { %v3613_v57 = vrot.slane %v3612_v48, 2 }
 0x3f5   : > { %v3614_v28 = vadd.f32 %v3613_v57, %v3612_v48  ;;  %v3600_v48 = vstv %s3599_s20  ;;  %v3661_v57 = vstv %s4116_s14 }
 0x3f7   : > { %v3615_v34 = vrot.slane %v3614_v28, 1 }
 0x3f9   : > { %v3616_v13 = vadd.f32 %v3615_v34, %v3614_v28 }
 0x3fb   : > { %4125 = vpush %v3616_v13 }
 0x401   : > { %v3630_v38 = vpop.xlane.xlu1 %3629 }
 0x402   : > { %v3631_v31 = vrot.slane %v3630_v38, 4 }
 0x404   : > { %v3632_v46 = vadd.f32 %v3631_v31, %v3630_v38  ;;  %v3681_v38 = vstv %s4117_s21 }
 0x406   : > { %v3633_v45 = vrot.slane %v3632_v46, 2 }
 0x408   : > { %v3634_v33 = vadd.f32 %v3633_v45, %v3632_v46 }
 0x40a   : > { %v3635_v5 = vrot.slane %v3634_v33, 1 }
 0x40c   : > { %v3636_v2 = vadd.f32 %v3635_v5, %v3634_v33  ;;  %v3701_v5 = vstv %s4118_s16 }
 0x40e   : > { %4127 = vpush %v3636_v2 }
 0x411   : > { %v3650_v43 = vpop.xlane.xlu0 %3649 }
 0x412   : > { %v3651_v49 = vrot.slane %v3650_v43, 4 }
 0x414   : > { %v3652_v53 = vadd.f32 %v3651_v49, %v3650_v43 }
 0x416   : > { %v3653_v4 = vrot.slane %v3652_v53, 2 }
 0x418   : > { %v3654_v0 = vadd.f32 %v3653_v4, %v3652_v53  ;;  %v3721_v53 = vstv %s4119_s24 }
 0x41a   : > { %v3655_v56 = vrot.slane %v3654_v0, 1 }
 0x41c   : > { %v3656_v17 = vadd.f32 %v3655_v56, %v3654_v0 }
 0x41e   : > { %4129 = vpush %v3656_v17  ;;  %v3741_v17 = vstv %s4120_s29 }
 0x421   : > { %v3670_v11 = vpop.xlane.xlu0 %3669 }
 0x422   : > { %v3671_v50 = vrot.slane %v3670_v11, 4 }
 0x424   : > { %v3672_v20 = vadd.f32 %v3671_v50, %v3670_v11 }
 0x426   : > { %v3673_v25 = vrot.slane %v3672_v20, 2 }
 0x428   : > { %v3674_v58 = vadd.f32 %v3673_v25, %v3672_v20 }
 0x42a   : > { %v3675_v3 = vrot.slane %v3674_v58, 1 }
 0x42c   : > { %v3676_v14 = vadd.f32 %v3675_v3, %v3674_v58  ;;  %s4126_s4 = spop %4125 }
 0x42d   : > { %v3690_v32 = vpop.xlane.xlu1 %3689  ;;  %v3618_v9 = vstv %s4126_s4 }
 0x42e   : > { %v3691_v41 = vrot.slane %v3690_v32, 4  ;;  %4131 = vpush %v3676_v14  ;;  %v3619_v19 = vmul.f32 0.00591716, %v3618_v9  ;;  %v3761_v14 = vstv %s4121_s7 }
 0x430   : > { %v3692_v40 = vadd.f32 %v3691_v41, %v3690_v32  ;;  %v3622_v52 = vmul.f32 %v3621_v30, %v3619_v19 }
 0x432   : > { %v3693_v16 = vrot.slane %v3692_v40, 2  ;;  %v3623_v46 = vadd.f32 %v3622_v52, %v3600_v48 }
 0x434   : > { %v3694_v24 = vadd.f32 %v3693_v16, %v3692_v40 }
 0x435   : > { %v3710_v62 = vpop.xlane.xlu0 %3709 }
 0x436   : > { %v3711_v37 = vrot.slane %v3710_v62, 4  ;;  %v3695_v42 = vrot.slane %v3694_v24, 1 }
 0x438   : > { %v3712_v54 = vadd.f32 %v3711_v37, %v3710_v62  ;;  %v3696_v23 = vadd.f32 %v3695_v42, %v3694_v24 }
 0x43a   : > { %v3713_v39 = vrot.slane %v3712_v54, 2  ;;  %4133 = vpush %v3696_v23 }
 0x43c   : > { %v3714_v1 = vadd.f32 %v3713_v39, %v3712_v54 }
 0x43e   : > { %v3730_v6 = vpop.xlane.xlu1 %3729  ;;  %v3715_v22 = vrot.slane %v3714_v1, 1 }
 0x43f   : > { %v3731_v63 = vrot.slane %v3730_v6, 4  ;;  %s4128_s6 = spop %4127 }
 0x440   : > { %v3716_v55 = vadd.f32 %v3715_v22, %v3714_v1  ;;  %v3638_v35 = vstv %s4128_s6 }
 0x441   : > { %v3732_v21 = vadd.f32 %v3731_v63, %v3730_v6  ;;  %v3639_v18 = vmul.f32 0.00591716, %v3638_v35 }
 0x442   : > { %4135 = vpush %v3716_v55 }
 0x443   : > { %v3750_v7 = vpop.xlane.xlu0 %3749  ;;  %v3733_v60 = vrot.slane %v3732_v21, 2  ;;  %v3642_v34 = vmul.f32 %v3641_v29, %v3639_v18 }
 0x444   : > { %v3751_v10 = vrot.slane %v3750_v7, 4 }
 0x445   : > { %v3734_v51 = vadd.f32 %v3733_v60, %v3732_v21  ;;  %v3643_v2 = vadd.f32 %v3642_v34, %v3623_v46 }
 0x446   : > { %v3752_v8 = vadd.f32 %v3751_v10, %v3750_v7 }
 0x447   : > { %v3735_v61 = vrot.slane %v3734_v51, 1 }
 0x448   : > { %v3753_v12 = vrot.slane %v3752_v8, 2 }
 0x449   : > { %v3736_v15 = vadd.f32 %v3735_v61, %v3734_v51 }
 0x44a   : > { %v3754_v27 = vadd.f32 %v3753_v12, %v3752_v8 }
 0x44b   : > { %4137 = vpush %v3736_v15 }
 0x44c   : > { %v3755_v47 = vrot.slane %v3754_v27, 1 }
 0x44e   : > { %v3756_v44 = vadd.f32 %v3755_v47, %v3754_v27 }
 0x44f   : > { %s4130_s17 = spop %4129 }
 0x450   : > { %4139 = vpush %v3756_v44  ;;  %v3658_v36 = vstv %s4130_s17 }
 0x451   : > { %v3659_v59 = vmul.f32 0.00591716, %v3658_v36 }
 0x453   : > { %v3662_v45 = vmul.f32 %v3661_v57, %v3659_v59 }
 0x455   : > { %v3663_v4 = vadd.f32 %v3662_v45, %v3643_v2 }
 0x45f   : > { %s4132_s18 = spop %4131 }
 0x460   : > { %v3678_v26 = vstv %s4132_s18 }
 0x461   : > { %v3679_v13 = vmul.f32 0.00591716, %v3678_v26 }
 0x463   : > { %v3682_v43 = vmul.f32 %v3681_v38, %v3679_v13 }
 0x465   : > { %v3683_v11 = vadd.f32 %v3682_v43, %v3663_v4 }
 0x46b   : > { %s4134_s11 = spop %4133 }
 0x46c   : > { %v3698_v28 = vstv %s4134_s11 }
 0x46d   : > { %v3699_v33 = vmul.f32 0.00591716, %v3698_v28 }
 0x46f   : > { %v3702_v0 = vmul.f32 %v3701_v5, %v3699_v33 }
 0x471   : > { %v3703_v25 = vadd.f32 %v3702_v0, %v3683_v11 }
 0x473   : > { %s4136_s27 = spop %4135 }
 0x474   : > { %v3718_v31 = vstv %s4136_s27 }
 0x475   : > { %v3719_v49 = vmul.f32 0.00591716, %v3718_v31 }
 0x477   : > { %v3722_v50 = vmul.f32 %v3721_v53, %v3719_v49 }
 0x479   : > { %v3723_v32 = vadd.f32 %v3722_v50, %v3703_v25 }
 0x47c   : > { %s4138_s19 = spop %4137 }
 0x47d   : > { %v3738_v56 = vstv %s4138_s19 }
 0x47e   : > { %v3739_v20 = vmul.f32 0.00591716, %v3738_v56 }
 0x480   : > { %v3742_v58 = vmul.f32 %v3741_v17, %v3739_v20 }
 0x481   : > { %s4140_s10 = spop %4139 }
 0x482   : > { %v3758_v3 = vstv %s4140_s10  ;;  %v3743_v40 = vadd.f32 %v3742_v58, %v3723_v32 }
 0x483   : > { %v3759_v41 = vmul.f32 0.00591716, %v3758_v3 }
 0x485   : > { %v3762_v16 = vmul.f32 %v3761_v14, %v3759_v41 }
 0x487   : > { %v3763_v24 = vadd.f32 %v3762_v16, %v3743_v40 }
 0x489   : > { %3765 = vst.msk [vmem:[%s339_s2] sm:$0x1] %vm3764_vm4, %v3763_v24 }
 0x48a PF: > { %s8447_s12 = sld [smem:[#allocation14_spill]] }
 0x490   : > { %s21_s26 = sadd.s32 1, %s8447_s12  }
 0x491   : > { %p18_p13 = scmp.ge.s32.totalorder %s21_s26, 4  }
 0x493   :  { %20 = sbr.rel (!%p18_p13) target bundleno = 12 (0xc), region = 99 }
 0x498   :  { %3783 = vsyncpa [#allocation4], 1 }
 0x499   :  { %3785 = vsyncpa [#allocation4 + $0x1], 1 }
 0x49a   :  { %3786 = vsyncpa [#allocation6], 1 }
 0x49b   :  { %3787 = vsyncpa [#allocation9], 1 }

</bundles_post_ra>
